<compile_context>
chip_gen: v6e
topology: v6e:2x2x1
jax: 0.10.0
libtpu: 0.0.40
codegen_flags: <defaults>
</compile_context>

<pallas_src>
import jax
import jax.numpy as jnp
from jax.experimental import pallas as pl
from jax.experimental.pallas import tpu as pltpu

_EPS = 1e-5

# MXU input dtype.  jnp.bfloat16 doubles MXU throughput on v5e/v6e/v7x (accumulation
# stays f32 via preferred_element_type).  Kept at f32 by default so the output matches
# the f32 reference to ~1e-6 and the 1e-3 test tolerance below stays meaningful; flip
# to jnp.bfloat16 for production on v6e/v7x (and relax the test tolerance to ~5e-2).
MXU_DTYPE = jnp.float32


def _conv_feat_kernel(xpad_ref, w1_ref, w2_ref, prm_ref, out_ref, mpad_ref):
    """Whole forward pass for one (small) batch, fully resident in VMEM."""
    N, Hp, Wp, Cin_p = xpad_ref.shape            # input pre-padded spatially (+1 each side)
    H, W = Hp - 2, Wp - 2
    H2, W2 = H // 2, W // 2                      # after the 2x2 max pool
    C1 = w1_ref.shape[-1]
    C2 = w2_ref.shape[-1]
    rH, rW = H2 // 4, W2 // 4                    # adaptive-avg-pool window (exact, divisible)

    # Packed per-channel BN params: rows = [gamma1, beta1, gamma2, beta2], shape (4, 32).
    g1, be1 = prm_ref[0:1, :], prm_ref[1:2, :]
    g2, be2 = prm_ref[2:3, :], prm_ref[3:4, :]

    # ---------------- conv1: 3x3/s1/p1 as a single im2col matmul (K = 9*Cin_p) -----------
    taps1 = [xpad_ref[:, kh:kh + H, kw:kw + W, :].reshape(N * H * W, Cin_p)
             for kh in range(3) for kw in range(3)]
    im1 = jnp.concatenate(taps1, axis=-1)                     # (N*H*W, 9*Cin_p)
    acc1 = jnp.dot(im1, w1_ref[...], preferred_element_type=jnp.float32)

    # ---------------- bn1 (training-mode batch stats, one pass) + relu --------------------
    # conv bias omitted on purpose: the batch-mean subtraction cancels it exactly.
    r1 = float(N * H * W)
    s1 = jnp.sum(acc1, axis=0, keepdims=True)
    q1 = jnp.sum(acc1 * acc1, axis=0, keepdims=True)
    mu1 = s1 * (1.0 / r1)
    var1 = q1 * (1.0 / r1) - mu1 * mu1
    scale1 = g1 * jax.lax.rsqrt(var1 + _EPS)
    shift1 = be1 - mu1 * scale1
    h1 = jnp.maximum(acc1 * scale1 + shift1, 0.0)             # (N*H*W, C1)

    # ---------------- maxpool 2x2/s2 fused into the zero-padded conv2 input ---------------
    # H-direction pair max in registers (leading-dim reshape is free).
    t5 = h1.reshape(N, H2, 2, W, C1)
    t = jnp.maximum(t5[:, :, 0], t5[:, :, 1])                 # (N, H2, W, C1)
    # Zero ONLY the 1-pixel border of the padded scratch (not the whole buffer).
    zrow = jnp.zeros((N, 1, W2 + 2, C1), jnp.float32)
    mpad_ref[:, 0:1, :, :] = zrow
    mpad_ref[:, H2 + 1:H2 + 2, :, :] = zrow
    zcol = jnp.zeros((N, H2, 1, C1), jnp.float32)
    mpad_ref[:, 1:1 + H2, 0:1, :] = zcol
    mpad_ref[:, 1:1 + H2, W2 + 1:W2 + 2, :] = zcol
    # W-direction pair max written column-by-column straight into the interior.
    for j in range(W2):
        col = jnp.maximum(t[:, :, 2 * j:2 * j + 1, :], t[:, :, 2 * j + 1:2 * j + 2, :])
        mpad_ref[:, 1:1 + H2, 1 + j:2 + j, :] = col           # (N, H2, 1, C1)

    # ---------------- conv2: single im2col matmul (K = 9*C1 = 288) ------------------------
    taps2 = [mpad_ref[:, kh:kh + H2, kw:kw + W2, :].reshape(N * H2 * W2, C1)
             for kh in range(3) for kw in range(3)]
    im2 = jnp.concatenate(taps2, axis=-1).astype(w2_ref.dtype)  # (N*H2*W2, 288)
    acc2 = jnp.dot(im2, w2_ref[...], preferred_element_type=jnp.float32)

    # ---------------- bn2 (one pass) + relu, avg-pool scale folded in ---------------------
    # inv = 1/(rH*rW) > 0 commutes with ReLU, so fold it into scale/shift: the pool below
    # then only needs adds (no trailing multiply pass).
    r2 = float(N * H2 * W2)
    s2 = jnp.sum(acc2, axis=0, keepdims=True)
    q2 = jnp.sum(acc2 * acc2, axis=0, keepdims=True)
    mu2 = s2 * (1.0 / r2)
    var2 = q2 * (1.0 / r2) - mu2 * mu2
    inv = 1.0 / (rH * rW)
    base2 = g2 * jax.lax.rsqrt(var2 + _EPS)
    scale2 = base2 * inv
    shift2 = (be2 - mu2 * base2) * inv
    h2 = jnp.maximum(acc2 * scale2 + shift2, 0.0).reshape(N, 4, rH, W2, C2)

    # ---------------- AdaptiveAvgPool2d((4,4)); exact uniform windows (H2%4==W2%4==0) ------
    hsum = h2[:, :, 0]                                        # (N, 4, W2, C2)
    for r in range(1, rH):
        hsum = hsum + h2[:, :, r]
    cols = []
    for b in range(4):                                        # per output column
        csum = hsum[:, :, b * rW:b * rW + 1, :]
        for w in range(1, rW):
            csum = csum + hsum[:, :, b * rW + w:b * rW + w + 1, :]
        cols.append(csum)                                     # (N, 4, 1, C2)
    # Pack the 4 output columns along the LANE axis -> one lane-dense (N, 4, 1, 4*C2)
    # store (single unmasked 128-lane slab instead of 4 narrow masked stores).
    out_ref[...] = jnp.concatenate(cols, axis=-1)


def init_params(key, in_channels, dtype=jnp.float32):
    """Deterministic parameter init (shapes as in the PyTorch module __init__)."""
    k1, k2, k3, k4 = jax.random.split(key, 4)
    return dict(
        w1=(jax.random.normal(k1, (3, 3, in_channels, 32), dtype) * 0.1),   # HWIO
        b1=(jax.random.normal(k2, (32,), dtype) * 0.1),
        g1=jnp.ones((32,), dtype), be1=jnp.zeros((32,), dtype),
        w2=(jax.random.normal(k3, (3, 3, 32, 32), dtype) * 0.1),            # HWIO
        b2=(jax.random.normal(k4, (32,), dtype) * 0.1),
        g2=jnp.ones((32,), dtype), be2=jnp.zeros((32,), dtype),
    )


@jax.jit
def conv_feature_extractor(x_nchw, params):
    N, Cin, H, W = x_nchw.shape
    assert H % 8 == 0 and W % 8 == 0, "kernel assumes exact 2x2 pools down to a 4x4 grid"
    H2, W2 = H // 2, W // 2

    # NCHW -> NHWC, spatial zero-pad for conv1, pad channels up to a multiple of 8 so the
    # im2col contraction depth (9*Cin_p) stays sublane-aligned (padded rows are zero).
    cin_p = ((Cin + 7) // 8) * 8
    x = jnp.transpose(x_nchw, (0, 2, 3, 1)).astype(jnp.float32)
    x = jnp.pad(x, ((0, 0), (1, 1), (1, 1), (0, cin_p - Cin))).astype(MXU_DTYPE)

    # Weights pre-reshaped to im2col form (kh, kw, cin) x cout — matches tap concat order.
    w1 = jnp.pad(params["w1"].astype(jnp.float32),
                 ((0, 0), (0, 0), (0, cin_p - Cin), (0, 0)))
    w1 = w1.reshape(9 * cin_p, 32).astype(MXU_DTYPE)
    w2 = params["w2"].astype(jnp.float32).reshape(9 * 32, 32).astype(MXU_DTYPE)

    # Conv biases are NOT passed: training-mode BN cancels them exactly.
    # All per-channel BN params packed into a single (4, 32) input (one small DMA).
    prm = jnp.stack([params["g1"], params["be1"],
                     params["g2"], params["be2"]]).astype(jnp.float32)

    out = pl.pallas_call(
        _conv_feat_kernel,
        # Lane-dense packed output: (N, 4, 1, 4*32) == (n, out_row, 1, out_col*C + c).
        out_shape=jax.ShapeDtypeStruct((N, 4, 1, 4 * 32), jnp.float32),
        in_specs=[pl.BlockSpec(memory_space=pltpu.MemorySpace.VMEM)] * 4,
        out_specs=pl.BlockSpec(memory_space=pltpu.MemorySpace.VMEM),
        scratch_shapes=[
            # single scratch: zero-padded, max-pooled conv2 input (N, H2+2, W2+2, 32)
            pltpu.VMEM((N, H2 + 2, W2 + 2, 32), jnp.float32),
        ],
        compiler_params=pltpu.CompilerParams(vmem_limit_bytes=32 * 1024 * 1024),
    )(x, w1, w2, prm)
    # Row-major (N,4,1,128) -> (N,16,32) == x.view(N, C, -1).permute(0, 2, 1); free reshape.
    return out.reshape(N, 16, 32)


def _reference(x_nchw, params):
    """Pure-JAX reference reproducing the PyTorch forward (training-mode BN, with bias)."""
    x = x_nchw.astype(jnp.float32)

    def conv(x, w_hwio, b):
        y = jax.lax.conv_general_dilated(
            x, w_hwio.astype(jnp.float32), (1, 1), ((1, 1), (1, 1)),
            dimension_numbers=("NCHW", "HWIO", "NCHW"))
        return y + b[None, :, None, None]

    def bn(x, g, b):
        mu = jnp.mean(x, axis=(0, 2, 3), keepdims=True)
        var = jnp.mean((x - mu) ** 2, axis=(0, 2, 3), keepdims=True)
        return (x - mu) * jax.lax.rsqrt(var + _EPS) * g[None, :, None, None] + b[None, :, None, None]

    def maxpool2(x):
        n, c, h, w = x.shape
        return x.reshape(n, c, h // 2, 2, w // 2, 2).max(axis=(3, 5))

    def avgpool_to4(x):
        n, c, h, w = x.shape
        return x.reshape(n, c, 4, h // 4, 4, w // 4).mean(axis=(3, 5))

    h = maxpool2(jax.nn.relu(bn(conv(x, params["w1"], params["b1"]), params["g1"], params["be1"])))
    h = avgpool_to4(jax.nn.relu(bn(conv(h, params["w2"], params["b2"]), params["g2"], params["be2"])))
    n, c = h.shape[0], h.shape[1]
    return jnp.transpose(h.reshape(n, c, -1), (0, 2, 1))


if __name__ == "__main__":
    key = jax.random.PRNGKey(0)
    kx, kp = jax.random.split(key)
    N, CIN, H, W = 2, 4, 16, 16
    x = jax.random.normal(kx, (N, CIN, H, W), jnp.float32)
    params = init_params(kp, CIN)

    out = conv_feature_extractor(x, params)
    jax.block_until_ready(out)
    assert out.shape == (N, 16, 32), out.shape

    ref = _reference(x, params)
    tol = 1e-3 if MXU_DTYPE == jnp.float32 else 5e-2   # bf16 MXU inputs vs f32 reference
    assert jnp.allclose(out, ref, atol=tol, rtol=tol), float(jnp.max(jnp.abs(out - ref)))

    print("KERNEL_OK")
</pallas_src>

<mosaic_0001>
module attributes {stable_mosaic.version = 11 : i64} {
  func.func @_conv_feat_kernel(%arg0: memref<2x18x18x8xf32, #tpu.memory_space<vmem>>, %arg1: memref<72x32xf32, #tpu.memory_space<vmem>>, %arg2: memref<288x32xf32, #tpu.memory_space<vmem>>, %arg3: memref<4x32xf32, #tpu.memory_space<vmem>>, %arg4: memref<2x4x1x128xf32, #tpu.memory_space<vmem>>, %arg5: memref<2x10x10x32xf32, #tpu.memory_space<vmem>>) attributes {dimension_semantics = [], scalar_prefetch = 0 : i64, scratch_operands = 1 : i64, tpu.core_type = #tpu.core_type<tc>} {
    %c0 = arith.constant 0 : index
    %c0_0 = arith.constant 0 : index
    %0 = vector.load %arg3[%c0, %c0_0] : memref<4x32xf32, #tpu.memory_space<vmem>>, vector<1x32xf32>
    %c1 = arith.constant 1 : index
    %c0_1 = arith.constant 0 : index
    %1 = vector.load %arg3[%c1, %c0_1] : memref<4x32xf32, #tpu.memory_space<vmem>>, vector<1x32xf32>
    %c2 = arith.constant 2 : index
    %c0_2 = arith.constant 0 : index
    %2 = vector.load %arg3[%c2, %c0_2] : memref<4x32xf32, #tpu.memory_space<vmem>>, vector<1x32xf32>
    %c3 = arith.constant 3 : index
    %c0_3 = arith.constant 0 : index
    %3 = vector.load %arg3[%c3, %c0_3] : memref<4x32xf32, #tpu.memory_space<vmem>>, vector<1x32xf32>
    %c0_4 = arith.constant 0 : index
    %c0_5 = arith.constant 0 : index
    %c0_6 = arith.constant 0 : index
    %c0_7 = arith.constant 0 : index
    %4 = vector.load %arg0[%c0_4, %c0_5, %c0_6, %c0_7] : memref<2x18x18x8xf32, #tpu.memory_space<vmem>>, vector<2x16x16x8xf32>
    %5 = vector.shape_cast %4 : vector<2x16x16x8xf32> to vector<512x8xf32>
    %c0_8 = arith.constant 0 : index
    %c0_9 = arith.constant 0 : index
    %c1_10 = arith.constant 1 : index
    %c0_11 = arith.constant 0 : index
    %6 = vector.load %arg0[%c0_8, %c0_9, %c1_10, %c0_11] : memref<2x18x18x8xf32, #tpu.memory_space<vmem>>, vector<2x16x16x8xf32>
    %7 = vector.shape_cast %6 : vector<2x16x16x8xf32> to vector<512x8xf32>
    %c0_12 = arith.constant 0 : index
    %c0_13 = arith.constant 0 : index
    %c2_14 = arith.constant 2 : index
    %c0_15 = arith.constant 0 : index
    %8 = vector.load %arg0[%c0_12, %c0_13, %c2_14, %c0_15] : memref<2x18x18x8xf32, #tpu.memory_space<vmem>>, vector<2x16x16x8xf32>
    %9 = vector.shape_cast %8 : vector<2x16x16x8xf32> to vector<512x8xf32>
    %c0_16 = arith.constant 0 : index
    %c1_17 = arith.constant 1 : index
    %c0_18 = arith.constant 0 : index
    %c0_19 = arith.constant 0 : index
    %10 = vector.load %arg0[%c0_16, %c1_17, %c0_18, %c0_19] : memref<2x18x18x8xf32, #tpu.memory_space<vmem>>, vector<2x16x16x8xf32>
    %11 = vector.shape_cast %10 : vector<2x16x16x8xf32> to vector<512x8xf32>
    %c0_20 = arith.constant 0 : index
    %c1_21 = arith.constant 1 : index
    %c1_22 = arith.constant 1 : index
    %c0_23 = arith.constant 0 : index
    %12 = vector.load %arg0[%c0_20, %c1_21, %c1_22, %c0_23] : memref<2x18x18x8xf32, #tpu.memory_space<vmem>>, vector<2x16x16x8xf32>
    %13 = vector.shape_cast %12 : vector<2x16x16x8xf32> to vector<512x8xf32>
    %c0_24 = arith.constant 0 : index
    %c1_25 = arith.constant 1 : index
    %c2_26 = arith.constant 2 : index
    %c0_27 = arith.constant 0 : index
    %14 = vector.load %arg0[%c0_24, %c1_25, %c2_26, %c0_27] : memref<2x18x18x8xf32, #tpu.memory_space<vmem>>, vector<2x16x16x8xf32>
    %15 = vector.shape_cast %14 : vector<2x16x16x8xf32> to vector<512x8xf32>
    %c0_28 = arith.constant 0 : index
    %c2_29 = arith.constant 2 : index
    %c0_30 = arith.constant 0 : index
    %c0_31 = arith.constant 0 : index
    %16 = vector.load %arg0[%c0_28, %c2_29, %c0_30, %c0_31] : memref<2x18x18x8xf32, #tpu.memory_space<vmem>>, vector<2x16x16x8xf32>
    %17 = vector.shape_cast %16 : vector<2x16x16x8xf32> to vector<512x8xf32>
    %c0_32 = arith.constant 0 : index
    %c2_33 = arith.constant 2 : index
    %c1_34 = arith.constant 1 : index
    %c0_35 = arith.constant 0 : index
    %18 = vector.load %arg0[%c0_32, %c2_33, %c1_34, %c0_35] : memref<2x18x18x8xf32, #tpu.memory_space<vmem>>, vector<2x16x16x8xf32>
    %19 = vector.shape_cast %18 : vector<2x16x16x8xf32> to vector<512x8xf32>
    %c0_36 = arith.constant 0 : index
    %c2_37 = arith.constant 2 : index
    %c2_38 = arith.constant 2 : index
    %c0_39 = arith.constant 0 : index
    %20 = vector.load %arg0[%c0_36, %c2_37, %c2_38, %c0_39] : memref<2x18x18x8xf32, #tpu.memory_space<vmem>>, vector<2x16x16x8xf32>
    %21 = vector.shape_cast %20 : vector<2x16x16x8xf32> to vector<512x8xf32>
    %22 = tpu.concatenate %5, %7, %9, %11, %13, %15, %17, %19, %21 in 1 : vector<512x8xf32>, vector<512x8xf32>, vector<512x8xf32>, vector<512x8xf32>, vector<512x8xf32>, vector<512x8xf32>, vector<512x8xf32>, vector<512x8xf32>, vector<512x8xf32> -> vector<512x72xf32>
    %c0_40 = arith.constant 0 : index
    %c0_41 = arith.constant 0 : index
    %23 = vector.load %arg1[%c0_40, %c0_41] : memref<72x32xf32, #tpu.memory_space<vmem>>, vector<72x32xf32>
    %cst = arith.constant dense<0.000000e+00> : vector<512x32xf32>
    %24 = tpu.matmul %22, %23, %cst {dimension_numbers = #tpu.dot_dimension_numbers<[1], [0], [0], [1], [0, 0, 1, 1], [], []>} : vector<512x72xf32>, vector<72x32xf32>, vector<512x32xf32> -> vector<512x32xf32>
    %cst_42 = arith.constant dense<0.000000e+00> : vector<32xf32>
    %25 = vector.multi_reduction <add>, %24, %cst_42 [0] : vector<512x32xf32> to vector<32xf32>
    %26 = vector.shape_cast %25 : vector<32xf32> to vector<1x32xf32>
    %27 = arith.mulf %24, %24 : vector<512x32xf32>
    %cst_43 = arith.constant dense<0.000000e+00> : vector<32xf32>
    %28 = vector.multi_reduction <add>, %27, %cst_43 [0] : vector<512x32xf32> to vector<32xf32>
    %29 = vector.shape_cast %28 : vector<32xf32> to vector<1x32xf32>
    %cst_44 = arith.constant 0.001953125 : f32
    %30 = vector.broadcast %cst_44 : f32 to vector<1x32xf32>
    %31 = arith.mulf %26, %30 : vector<1x32xf32>
    %cst_45 = arith.constant 0.001953125 : f32
    %32 = vector.broadcast %cst_45 : f32 to vector<1x32xf32>
    %33 = arith.mulf %29, %32 : vector<1x32xf32>
    %34 = arith.mulf %31, %31 : vector<1x32xf32>
    %35 = arith.subf %33, %34 : vector<1x32xf32>
    %cst_46 = arith.constant 9.99999974E-6 : f32
    %36 = vector.broadcast %cst_46 : f32 to vector<1x32xf32>
    %37 = arith.addf %35, %36 : vector<1x32xf32>
    %38 = math.rsqrt %37 : vector<1x32xf32>
    %39 = arith.mulf %0, %38 : vector<1x32xf32>
    %40 = arith.mulf %31, %39 : vector<1x32xf32>
    %41 = arith.subf %1, %40 : vector<1x32xf32>
    %42 = vector.broadcast %39 : vector<1x32xf32> to vector<512x32xf32>
    %43 = arith.mulf %24, %42 : vector<512x32xf32>
    %44 = vector.broadcast %41 : vector<1x32xf32> to vector<512x32xf32>
    %45 = arith.addf %43, %44 : vector<512x32xf32>
    %cst_47 = arith.constant 0.000000e+00 : f32
    %46 = vector.broadcast %cst_47 : f32 to vector<512x32xf32>
    %47 = arith.maximumf %45, %46 : vector<512x32xf32>
    %48 = vector.shape_cast %47 : vector<512x32xf32> to vector<2x8x2x16x32xf32>
    %49 = vector.extract_strided_slice %48 {offsets = [0, 0, 0, 0, 0], sizes = [2, 8, 1, 16, 32], strides = [1, 1, 1, 1, 1]} : vector<2x8x2x16x32xf32> to vector<2x8x1x16x32xf32>
    %50 = vector.shape_cast %49 : vector<2x8x1x16x32xf32> to vector<2x8x16x32xf32>
    %51 = vector.extract_strided_slice %48 {offsets = [0, 0, 1, 0, 0], sizes = [2, 8, 1, 16, 32], strides = [1, 1, 1, 1, 1]} : vector<2x8x2x16x32xf32> to vector<2x8x1x16x32xf32>
    %52 = vector.shape_cast %51 : vector<2x8x1x16x32xf32> to vector<2x8x16x32xf32>
    %53 = arith.maximumf %50, %52 : vector<2x8x16x32xf32>
    %cst_48 = arith.constant 0.000000e+00 : f32
    %54 = vector.broadcast %cst_48 : f32 to vector<2x1x10x32xf32>
    %c0_49 = arith.constant 0 : index
    %c0_50 = arith.constant 0 : index
    %c0_51 = arith.constant 0 : index
    %c0_52 = arith.constant 0 : index
    %55 = vector.load %arg5[%c0_49, %c0_50, %c0_51, %c0_52] : memref<2x10x10x32xf32, #tpu.memory_space<vmem>>, vector<2x1x10x32xf32>
    tpu.vector_store %arg5[%c0_49, %c0_50, %c0_51, %c0_52], %54 {strides = array<i32>} : memref<2x10x10x32xf32, #tpu.memory_space<vmem>>, vector<2x1x10x32xf32>,
    %c0_53 = arith.constant 0 : index
    %c9 = arith.constant 9 : index
    %c0_54 = arith.constant 0 : index
    %c0_55 = arith.constant 0 : index
    %56 = vector.load %arg5[%c0_53, %c9, %c0_54, %c0_55] : memref<2x10x10x32xf32, #tpu.memory_space<vmem>>, vector<2x1x10x32xf32>
    tpu.vector_store %arg5[%c0_53, %c9, %c0_54, %c0_55], %54 {strides = array<i32>} : memref<2x10x10x32xf32, #tpu.memory_space<vmem>>, vector<2x1x10x32xf32>,
    %cst_56 = arith.constant 0.000000e+00 : f32
    %57 = vector.broadcast %cst_56 : f32 to vector<2x8x1x32xf32>
    %c0_57 = arith.constant 0 : index
    %c1_58 = arith.constant 1 : index
    %c0_59 = arith.constant 0 : index
    %c0_60 = arith.constant 0 : index
    %58 = vector.load %arg5[%c0_57, %c1_58, %c0_59, %c0_60] : memref<2x10x10x32xf32, #tpu.memory_space<vmem>>, vector<2x8x1x32xf32>
    tpu.vector_store %arg5[%c0_57, %c1_58, %c0_59, %c0_60], %57 {strides = array<i32>} : memref<2x10x10x32xf32, #tpu.memory_space<vmem>>, vector<2x8x1x32xf32>,
    %c0_61 = arith.constant 0 : index
    %c1_62 = arith.constant 1 : index
    %c9_63 = arith.constant 9 : index
    %c0_64 = arith.constant 0 : index
    %59 = vector.load %arg5[%c0_61, %c1_62, %c9_63, %c0_64] : memref<2x10x10x32xf32, #tpu.memory_space<vmem>>, vector<2x8x1x32xf32>
    tpu.vector_store %arg5[%c0_61, %c1_62, %c9_63, %c0_64], %57 {strides = array<i32>} : memref<2x10x10x32xf32, #tpu.memory_space<vmem>>, vector<2x8x1x32xf32>,
    %60 = vector.extract_strided_slice %53 {offsets = [0, 0, 0, 0], sizes = [2, 8, 1, 32], strides = [1, 1, 1, 1]} : vector<2x8x16x32xf32> to vector<2x8x1x32xf32>
    %61 = vector.extract_strided_slice %53 {offsets = [0, 0, 1, 0], sizes = [2, 8, 1, 32], strides = [1, 1, 1, 1]} : vector<2x8x16x32xf32> to vector<2x8x1x32xf32>
    %62 = arith.maximumf %60, %61 : vector<2x8x1x32xf32>
    %c0_65 = arith.constant 0 : index
    %c1_66 = arith.constant 1 : index
    %c1_67 = arith.constant 1 : index
    %c0_68 = arith.constant 0 : index
    %63 = vector.load %arg5[%c0_65, %c1_66, %c1_67, %c0_68] : memref<2x10x10x32xf32, #tpu.memory_space<vmem>>, vector<2x8x1x32xf32>
    tpu.vector_store %arg5[%c0_65, %c1_66, %c1_67, %c0_68], %62 {strides = array<i32>} : memref<2x10x10x32xf32, #tpu.memory_space<vmem>>, vector<2x8x1x32xf32>,
    %64 = vector.extract_strided_slice %53 {offsets = [0, 0, 2, 0], sizes = [2, 8, 1, 32], strides = [1, 1, 1, 1]} : vector<2x8x16x32xf32> to vector<2x8x1x32xf32>
    %65 = vector.extract_strided_slice %53 {offsets = [0, 0, 3, 0], sizes = [2, 8, 1, 32], strides = [1, 1, 1, 1]} : vector<2x8x16x32xf32> to vector<2x8x1x32xf32>
    %66 = arith.maximumf %64, %65 : vector<2x8x1x32xf32>
    %c0_69 = arith.constant 0 : index
    %c1_70 = arith.constant 1 : index
    %c2_71 = arith.constant 2 : index
    %c0_72 = arith.constant 0 : index
    %67 = vector.load %arg5[%c0_69, %c1_70, %c2_71, %c0_72] : memref<2x10x10x32xf32, #tpu.memory_space<vmem>>, vector<2x8x1x32xf32>
    tpu.vector_store %arg5[%c0_69, %c1_70, %c2_71, %c0_72], %66 {strides = array<i32>} : memref<2x10x10x32xf32, #tpu.memory_space<vmem>>, vector<2x8x1x32xf32>,
    %68 = vector.extract_strided_slice %53 {offsets = [0, 0, 4, 0], sizes = [2, 8, 1, 32], strides = [1, 1, 1, 1]} : vector<2x8x16x32xf32> to vector<2x8x1x32xf32>
    %69 = vector.extract_strided_slice %53 {offsets = [0, 0, 5, 0], sizes = [2, 8, 1, 32], strides = [1, 1, 1, 1]} : vector<2x8x16x32xf32> to vector<2x8x1x32xf32>
    %70 = arith.maximumf %68, %69 : vector<2x8x1x32xf32>
    %c0_73 = arith.constant 0 : index
    %c1_74 = arith.constant 1 : index
    %c3_75 = arith.constant 3 : index
    %c0_76 = arith.constant 0 : index
    %71 = vector.load %arg5[%c0_73, %c1_74, %c3_75, %c0_76] : memref<2x10x10x32xf32, #tpu.memory_space<vmem>>, vector<2x8x1x32xf32>
    tpu.vector_store %arg5[%c0_73, %c1_74, %c3_75, %c0_76], %70 {strides = array<i32>} : memref<2x10x10x32xf32, #tpu.memory_space<vmem>>, vector<2x8x1x32xf32>,
    %72 = vector.extract_strided_slice %53 {offsets = [0, 0, 6, 0], sizes = [2, 8, 1, 32], strides = [1, 1, 1, 1]} : vector<2x8x16x32xf32> to vector<2x8x1x32xf32>
    %73 = vector.extract_strided_slice %53 {offsets = [0, 0, 7, 0], sizes = [2, 8, 1, 32], strides = [1, 1, 1, 1]} : vector<2x8x16x32xf32> to vector<2x8x1x32xf32>
    %74 = arith.maximumf %72, %73 : vector<2x8x1x32xf32>
    %c0_77 = arith.constant 0 : index
    %c1_78 = arith.constant 1 : index
    %c4 = arith.constant 4 : index
    %c0_79 = arith.constant 0 : index
    %75 = vector.load %arg5[%c0_77, %c1_78, %c4, %c0_79] : memref<2x10x10x32xf32, #tpu.memory_space<vmem>>, vector<2x8x1x32xf32>
    tpu.vector_store %arg5[%c0_77, %c1_78, %c4, %c0_79], %74 {strides = array<i32>} : memref<2x10x10x32xf32, #tpu.memory_space<vmem>>, vector<2x8x1x32xf32>,
    %76 = vector.extract_strided_slice %53 {offsets = [0, 0, 8, 0], sizes = [2, 8, 1, 32], strides = [1, 1, 1, 1]} : vector<2x8x16x32xf32> to vector<2x8x1x32xf32>
    %77 = vector.extract_strided_slice %53 {offsets = [0, 0, 9, 0], sizes = [2, 8, 1, 32], strides = [1, 1, 1, 1]} : vector<2x8x16x32xf32> to vector<2x8x1x32xf32>
    %78 = arith.maximumf %76, %77 : vector<2x8x1x32xf32>
    %c0_80 = arith.constant 0 : index
    %c1_81 = arith.constant 1 : index
    %c5 = arith.constant 5 : index
    %c0_82 = arith.constant 0 : index
    %79 = vector.load %arg5[%c0_80, %c1_81, %c5, %c0_82] : memref<2x10x10x32xf32, #tpu.memory_space<vmem>>, vector<2x8x1x32xf32>
    tpu.vector_store %arg5[%c0_80, %c1_81, %c5, %c0_82], %78 {strides = array<i32>} : memref<2x10x10x32xf32, #tpu.memory_space<vmem>>, vector<2x8x1x32xf32>,
    %80 = vector.extract_strided_slice %53 {offsets = [0, 0, 10, 0], sizes = [2, 8, 1, 32], strides = [1, 1, 1, 1]} : vector<2x8x16x32xf32> to vector<2x8x1x32xf32>
    %81 = vector.extract_strided_slice %53 {offsets = [0, 0, 11, 0], sizes = [2, 8, 1, 32], strides = [1, 1, 1, 1]} : vector<2x8x16x32xf32> to vector<2x8x1x32xf32>
    %82 = arith.maximumf %80, %81 : vector<2x8x1x32xf32>
    %c0_83 = arith.constant 0 : index
    %c1_84 = arith.constant 1 : index
    %c6 = arith.constant 6 : index
    %c0_85 = arith.constant 0 : index
    %83 = vector.load %arg5[%c0_83, %c1_84, %c6, %c0_85] : memref<2x10x10x32xf32, #tpu.memory_space<vmem>>, vector<2x8x1x32xf32>
    tpu.vector_store %arg5[%c0_83, %c1_84, %c6, %c0_85], %82 {strides = array<i32>} : memref<2x10x10x32xf32, #tpu.memory_space<vmem>>, vector<2x8x1x32xf32>,
    %84 = vector.extract_strided_slice %53 {offsets = [0, 0, 12, 0], sizes = [2, 8, 1, 32], strides = [1, 1, 1, 1]} : vector<2x8x16x32xf32> to vector<2x8x1x32xf32>
    %85 = vector.extract_strided_slice %53 {offsets = [0, 0, 13, 0], sizes = [2, 8, 1, 32], strides = [1, 1, 1, 1]} : vector<2x8x16x32xf32> to vector<2x8x1x32xf32>
    %86 = arith.maximumf %84, %85 : vector<2x8x1x32xf32>
    %c0_86 = arith.constant 0 : index
    %c1_87 = arith.constant 1 : index
    %c7 = arith.constant 7 : index
    %c0_88 = arith.constant 0 : index
    %87 = vector.load %arg5[%c0_86, %c1_87, %c7, %c0_88] : memref<2x10x10x32xf32, #tpu.memory_space<vmem>>, vector<2x8x1x32xf32>
    tpu.vector_store %arg5[%c0_86, %c1_87, %c7, %c0_88], %86 {strides = array<i32>} : memref<2x10x10x32xf32, #tpu.memory_space<vmem>>, vector<2x8x1x32xf32>,
    %88 = vector.extract_strided_slice %53 {offsets = [0, 0, 14, 0], sizes = [2, 8, 1, 32], strides = [1, 1, 1, 1]} : vector<2x8x16x32xf32> to vector<2x8x1x32xf32>
    %89 = vector.extract_strided_slice %53 {offsets = [0, 0, 15, 0], sizes = [2, 8, 1, 32], strides = [1, 1, 1, 1]} : vector<2x8x16x32xf32> to vector<2x8x1x32xf32>
    %90 = arith.maximumf %88, %89 : vector<2x8x1x32xf32>
    %c0_89 = arith.constant 0 : index
    %c1_90 = arith.constant 1 : index
    %c8 = arith.constant 8 : index
    %c0_91 = arith.constant 0 : index
    %91 = vector.load %arg5[%c0_89, %c1_90, %c8, %c0_91] : memref<2x10x10x32xf32, #tpu.memory_space<vmem>>, vector<2x8x1x32xf32>
    tpu.vector_store %arg5[%c0_89, %c1_90, %c8, %c0_91], %90 {strides = array<i32>} : memref<2x10x10x32xf32, #tpu.memory_space<vmem>>, vector<2x8x1x32xf32>,
    %c0_92 = arith.constant 0 : index
    %c0_93 = arith.constant 0 : index
    %c0_94 = arith.constant 0 : index
    %c0_95 = arith.constant 0 : index
    %92 = vector.load %arg5[%c0_92, %c0_93, %c0_94, %c0_95] : memref<2x10x10x32xf32, #tpu.memory_space<vmem>>, vector<2x8x8x32xf32>
    %93 = vector.shape_cast %92 : vector<2x8x8x32xf32> to vector<128x32xf32>
    %c0_96 = arith.constant 0 : index
    %c0_97 = arith.constant 0 : index
    %c1_98 = arith.constant 1 : index
    %c0_99 = arith.constant 0 : index
    %94 = vector.load %arg5[%c0_96, %c0_97, %c1_98, %c0_99] : memref<2x10x10x32xf32, #tpu.memory_space<vmem>>, vector<2x8x8x32xf32>
    %95 = vector.shape_cast %94 : vector<2x8x8x32xf32> to vector<128x32xf32>
    %c0_100 = arith.constant 0 : index
    %c0_101 = arith.constant 0 : index
    %c2_102 = arith.constant 2 : index
    %c0_103 = arith.constant 0 : index
    %96 = vector.load %arg5[%c0_100, %c0_101, %c2_102, %c0_103] : memref<2x10x10x32xf32, #tpu.memory_space<vmem>>, vector<2x8x8x32xf32>
    %97 = vector.shape_cast %96 : vector<2x8x8x32xf32> to vector<128x32xf32>
    %c0_104 = arith.constant 0 : index
    %c1_105 = arith.constant 1 : index
    %c0_106 = arith.constant 0 : index
    %c0_107 = arith.constant 0 : index
    %98 = vector.load %arg5[%c0_104, %c1_105, %c0_106, %c0_107] : memref<2x10x10x32xf32, #tpu.memory_space<vmem>>, vector<2x8x8x32xf32>
    %99 = vector.shape_cast %98 : vector<2x8x8x32xf32> to vector<128x32xf32>
    %c0_108 = arith.constant 0 : index
    %c1_109 = arith.constant 1 : index
    %c1_110 = arith.constant 1 : index
    %c0_111 = arith.constant 0 : index
    %100 = vector.load %arg5[%c0_108, %c1_109, %c1_110, %c0_111] : memref<2x10x10x32xf32, #tpu.memory_space<vmem>>, vector<2x8x8x32xf32>
    %101 = vector.shape_cast %100 : vector<2x8x8x32xf32> to vector<128x32xf32>
    %c0_112 = arith.constant 0 : index
    %c1_113 = arith.constant 1 : index
    %c2_114 = arith.constant 2 : index
    %c0_115 = arith.constant 0 : index
    %102 = vector.load %arg5[%c0_112, %c1_113, %c2_114, %c0_115] : memref<2x10x10x32xf32, #tpu.memory_space<vmem>>, vector<2x8x8x32xf32>
    %103 = vector.shape_cast %102 : vector<2x8x8x32xf32> to vector<128x32xf32>
    %c0_116 = arith.constant 0 : index
    %c2_117 = arith.constant 2 : index
    %c0_118 = arith.constant 0 : index
    %c0_119 = arith.constant 0 : index
    %104 = vector.load %arg5[%c0_116, %c2_117, %c0_118, %c0_119] : memref<2x10x10x32xf32, #tpu.memory_space<vmem>>, vector<2x8x8x32xf32>
    %105 = vector.shape_cast %104 : vector<2x8x8x32xf32> to vector<128x32xf32>
    %c0_120 = arith.constant 0 : index
    %c2_121 = arith.constant 2 : index
    %c1_122 = arith.constant 1 : index
    %c0_123 = arith.constant 0 : index
    %106 = vector.load %arg5[%c0_120, %c2_121, %c1_122, %c0_123] : memref<2x10x10x32xf32, #tpu.memory_space<vmem>>, vector<2x8x8x32xf32>
    %107 = vector.shape_cast %106 : vector<2x8x8x32xf32> to vector<128x32xf32>
    %c0_124 = arith.constant 0 : index
    %c2_125 = arith.constant 2 : index
    %c2_126 = arith.constant 2 : index
    %c0_127 = arith.constant 0 : index
    %108 = vector.load %arg5[%c0_124, %c2_125, %c2_126, %c0_127] : memref<2x10x10x32xf32, #tpu.memory_space<vmem>>, vector<2x8x8x32xf32>
    %109 = vector.shape_cast %108 : vector<2x8x8x32xf32> to vector<128x32xf32>
    %110 = tpu.concatenate %93, %95, %97, %99, %101, %103, %105, %107, %109 in 1 : vector<128x32xf32>, vector<128x32xf32>, vector<128x32xf32>, vector<128x32xf32>, vector<128x32xf32>, vector<128x32xf32>, vector<128x32xf32>, vector<128x32xf32>, vector<128x32xf32> -> vector<128x288xf32>
    %c0_128 = arith.constant 0 : index
    %c0_129 = arith.constant 0 : index
    %111 = vector.load %arg2[%c0_128, %c0_129] : memref<288x32xf32, #tpu.memory_space<vmem>>, vector<288x32xf32>
    %cst_130 = arith.constant dense<0.000000e+00> : vector<128x32xf32>
    %112 = tpu.matmul %110, %111, %cst_130 {dimension_numbers = #tpu.dot_dimension_numbers<[1], [0], [0], [1], [0, 0, 1, 1], [], []>} : vector<128x288xf32>, vector<288x32xf32>, vector<128x32xf32> -> vector<128x32xf32>
    %cst_131 = arith.constant dense<0.000000e+00> : vector<32xf32>
    %113 = vector.multi_reduction <add>, %112, %cst_131 [0] : vector<128x32xf32> to vector<32xf32>
    %114 = vector.shape_cast %113 : vector<32xf32> to vector<1x32xf32>
    %115 = arith.mulf %112, %112 : vector<128x32xf32>
    %cst_132 = arith.constant dense<0.000000e+00> : vector<32xf32>
    %116 = vector.multi_reduction <add>, %115, %cst_132 [0] : vector<128x32xf32> to vector<32xf32>
    %117 = vector.shape_cast %116 : vector<32xf32> to vector<1x32xf32>
    %cst_133 = arith.constant 7.812500e-03 : f32
    %118 = vector.broadcast %cst_133 : f32 to vector<1x32xf32>
    %119 = arith.mulf %114, %118 : vector<1x32xf32>
    %cst_134 = arith.constant 7.812500e-03 : f32
    %120 = vector.broadcast %cst_134 : f32 to vector<1x32xf32>
    %121 = arith.mulf %117, %120 : vector<1x32xf32>
    %122 = arith.mulf %119, %119 : vector<1x32xf32>
    %123 = arith.subf %121, %122 : vector<1x32xf32>
    %cst_135 = arith.constant 9.99999974E-6 : f32
    %124 = vector.broadcast %cst_135 : f32 to vector<1x32xf32>
    %125 = arith.addf %123, %124 : vector<1x32xf32>
    %126 = math.rsqrt %125 : vector<1x32xf32>
    %127 = arith.mulf %2, %126 : vector<1x32xf32>
    %cst_136 = arith.constant 2.500000e-01 : f32
    %128 = vector.broadcast %cst_136 : f32 to vector<1x32xf32>
    %129 = arith.mulf %127, %128 : vector<1x32xf32>
    %130 = arith.mulf %119, %127 : vector<1x32xf32>
    %131 = arith.subf %3, %130 : vector<1x32xf32>
    %cst_137 = arith.constant 2.500000e-01 : f32
    %132 = vector.broadcast %cst_137 : f32 to vector<1x32xf32>
    %133 = arith.mulf %131, %132 : vector<1x32xf32>
    %134 = vector.broadcast %129 : vector<1x32xf32> to vector<128x32xf32>
    %135 = arith.mulf %112, %134 : vector<128x32xf32>
    %136 = vector.broadcast %133 : vector<1x32xf32> to vector<128x32xf32>
    %137 = arith.addf %135, %136 : vector<128x32xf32>
    %cst_138 = arith.constant 0.000000e+00 : f32
    %138 = vector.broadcast %cst_138 : f32 to vector<128x32xf32>
    %139 = arith.maximumf %137, %138 : vector<128x32xf32>
    %140 = vector.shape_cast %139 : vector<128x32xf32> to vector<2x4x2x8x32xf32>
    %141 = vector.extract_strided_slice %140 {offsets = [0, 0, 0, 0, 0], sizes = [2, 4, 1, 8, 32], strides = [1, 1, 1, 1, 1]} : vector<2x4x2x8x32xf32> to vector<2x4x1x8x32xf32>
    %142 = vector.shape_cast %141 : vector<2x4x1x8x32xf32> to vector<2x4x8x32xf32>
    %143 = vector.extract_strided_slice %140 {offsets = [0, 0, 1, 0, 0], sizes = [2, 4, 1, 8, 32], strides = [1, 1, 1, 1, 1]} : vector<2x4x2x8x32xf32> to vector<2x4x1x8x32xf32>
    %144 = vector.shape_cast %143 : vector<2x4x1x8x32xf32> to vector<2x4x8x32xf32>
    %145 = arith.addf %142, %144 : vector<2x4x8x32xf32>
    %146 = vector.extract_strided_slice %145 {offsets = [0, 0, 0, 0], sizes = [2, 4, 1, 32], strides = [1, 1, 1, 1]} : vector<2x4x8x32xf32> to vector<2x4x1x32xf32>
    %147 = vector.extract_strided_slice %145 {offsets = [0, 0, 1, 0], sizes = [2, 4, 1, 32], strides = [1, 1, 1, 1]} : vector<2x4x8x32xf32> to vector<2x4x1x32xf32>
    %148 = arith.addf %146, %147 : vector<2x4x1x32xf32>
    %149 = vector.extract_strided_slice %145 {offsets = [0, 0, 2, 0], sizes = [2, 4, 1, 32], strides = [1, 1, 1, 1]} : vector<2x4x8x32xf32> to vector<2x4x1x32xf32>
    %150 = vector.extract_strided_slice %145 {offsets = [0, 0, 3, 0], sizes = [2, 4, 1, 32], strides = [1, 1, 1, 1]} : vector<2x4x8x32xf32> to vector<2x4x1x32xf32>
    %151 = arith.addf %149, %150 : vector<2x4x1x32xf32>
    %152 = vector.extract_strided_slice %145 {offsets = [0, 0, 4, 0], sizes = [2, 4, 1, 32], strides = [1, 1, 1, 1]} : vector<2x4x8x32xf32> to vector<2x4x1x32xf32>
    %153 = vector.extract_strided_slice %145 {offsets = [0, 0, 5, 0], sizes = [2, 4, 1, 32], strides = [1, 1, 1, 1]} : vector<2x4x8x32xf32> to vector<2x4x1x32xf32>
    %154 = arith.addf %152, %153 : vector<2x4x1x32xf32>
    %155 = vector.extract_strided_slice %145 {offsets = [0, 0, 6, 0], sizes = [2, 4, 1, 32], strides = [1, 1, 1, 1]} : vector<2x4x8x32xf32> to vector<2x4x1x32xf32>
    %156 = vector.extract_strided_slice %145 {offsets = [0, 0, 7, 0], sizes = [2, 4, 1, 32], strides = [1, 1, 1, 1]} : vector<2x4x8x32xf32> to vector<2x4x1x32xf32>
    %157 = arith.addf %155, %156 : vector<2x4x1x32xf32>
    %158 = tpu.concatenate %148, %151, %154, %157 in 3 : vector<2x4x1x32xf32>, vector<2x4x1x32xf32>, vector<2x4x1x32xf32>, vector<2x4x1x32xf32> -> vector<2x4x1x128xf32>
    %c0_139 = arith.constant 0 : index
    %c0_140 = arith.constant 0 : index
    %c0_141 = arith.constant 0 : index
    %c0_142 = arith.constant 0 : index
    %159 = vector.load %arg4[%c0_139, %c0_140, %c0_141, %c0_142] : memref<2x4x1x128xf32, #tpu.memory_space<vmem>>, vector<2x4x1x128xf32>
    tpu.vector_store %arg4[%c0_139, %c0_140, %c0_141, %c0_142], %158 {strides = array<i32>} : memref<2x4x1x128xf32, #tpu.memory_space<vmem>>, vector<2x4x1x128xf32>,
    return
  }
}

</mosaic_0001>

<bundles_post_ra>
// kernel: conv_feature_extractor.1
= control target key start
LH: loop header
LB: loop body
LE: loop exit
PB: predicated region body
PF: predicated region fallthrough
CT: control target
= control target key end

     0   :  { %s7037_s19 = smov 8   ;;  %s7038_s23 = smov 16   ;;  %vm2647_vm0 = vcmask 64512   ;;  %vm2712_vm1 = vcmask 130048   ;;  %vm2777_vm2 = vcmask 195584   ;;  %vm2842_vm3 = vcmask 261120   ;;  %s12204_s0 = inlined_call_operand.vmem [shape: f32[2,18,18,8], index: 0, kind: input, shape index: {}]   ;;  %s12205_s1 = inlined_call_operand.vmem [shape: f32[72,32], index: 1, kind: input, shape index: {}]   ;;  %s12206_s3 = inlined_call_operand.vmem [shape: f32[4,32], index: 3, kind: input, shape index: {}]   ;;  %s12207_s2 = inlined_call_operand.vmem [shape: f32[288,32], index: 2, kind: input, shape index: {}]   ;;  %s12208_s4 = inlined_call_operand.vmem [shape: f32[2,4,1,128], index: 4, kind: output, shape index: {}]  }
   0x1   :  { %v87_v0 = vld [vmem:[%s12204_s0 + $0x19] sm:$0xff]  ;;  %v85_v1 = vld [vmem:[%s12204_s0 + $0x1] sm:$0xff]  ;;  %v86_v3 = vld [vmem:[%s12204_s0 + $0x9] sm:$0xff]  ;;  %s7039_s26 = smov 24   ;;  %s7040_s22 = smov 32   ;;  %vm2907_vm4 = vcmask 326656  }
   0x2   :  { %667 = vrot.lane.b32.xlu1 %v87_v0, %s7037_s19  ;;  %663 = vrot.lane.b32.xlu0 %v85_v1, %s7037_s19  ;;  %v88_v2 = vld [vmem:[%s12204_s0 + $0x21] sm:$0xff]  ;;  %v90_v4 = vld [vmem:[%s12204_s0 + $0x39] sm:$0xff]  ;;  %s7042_s8 = smov 48   ;;  %s7043_s13 = smov 56   ;;  %vm2972_vm5 = vcmask 392192   ;;  %vm3037_vm6 = vcmask 457728  }
   0x3   :  { %v89_v5 = vld [vmem:[%s12204_s0 + $0x31] sm:$0xff]  ;;  %v91_v7 = vld [vmem:[%s12204_s0 + $0x49] sm:$0xff]  ;;  %v93_v9 = vld [vmem:[%s12204_s0 + $0x61] sm:$0xff]  ;;  %s7044_s18 = smov 64   ;;  %vm3102_vm7 = vcmask 523264   ;;  %vm3176_vm8 = vcmask 588800  }
   0x4   :  { %v92_v6 = vld [vmem:[%s12204_s0 + $0x51] sm:$0xff]  ;;  %v94_v8 = vld [vmem:[%s12204_s0 + $0x69] sm:$0xff]  ;;  %v96_v10 = vld [vmem:[%s12204_s0 + $0x81] sm:$0xff]  ;;  %vm4336_vm9 = vcmask 253952   ;;  %vm4326_vm10 = vcmask 254976   ;;  %vm4449_vm11 = vcmask 256002  }
   0x5   :  { %v95_v11 = vld [vmem:[%s12204_s0 + $0x79] sm:$0xff]  ;;  %v97_v13 = vld [vmem:[%s12204_s0 + $0x91] sm:$0xff]  ;;  %v99_v15 = vld [vmem:[%s12204_s0 + $0xa9] sm:$0xff]  ;;  %vm4466_vm12 = vcmask 258052   ;;  %vm4483_vm13 = vcmask 260102   ;;  %s7046_s6 = smov 96  }
   0x6   :  { %669 = vrot.lane.b32.xlu1 %v88_v2, %s7037_s19  ;;  %665 = vrot.lane.b32.xlu0 %v86_v3, %s7037_s19  ;;  %v98_v12 = vld [vmem:[%s12204_s0 + $0x99] sm:$0xff]  ;;  %v100_v14 = vld [vmem:[%s12204_s0 + $0xb1] sm:$0xff]  ;;  %vm5189_vm14 = vcmask 785408  }
   0x7   :  { %v102_v16 = vld [vmem:[%s12204_s0 + $0xc9] sm:$0xff]  ;;  %v101_v17 = vld [vmem:[%s12204_s0 + $0xc1] sm:$0xff]  ;;  %v103_v19 = vld [vmem:[%s12204_s0 + $0xd9] sm:$0xff] }
   0x8   :  { %v104_v18 = vld [vmem:[%s12204_s0 + $0xe1] sm:$0xff]  ;;  %v106_v20 = vld [vmem:[%s12204_s0 + $0xf9] sm:$0xff]  ;;  %v105_v21 = vld [vmem:[%s12204_s0 + $0xf1] sm:$0xff] }
   0x9   :  { %v108_v22 = vld [vmem:[%s12204_s0 + $0x111] sm:$0xff]  ;;  %v107_v23 = vld [vmem:[%s12204_s0 + $0x109] sm:$0xff]  ;;  %v109_v25 = vld [vmem:[%s12204_s0 + $0x121] sm:$0xff] }
   0xa   :  { %673 = vrot.lane.b32.xlu1 %v90_v4, %s7037_s19  ;;  %671 = vrot.lane.b32.xlu0 %v89_v5, %s7037_s19  ;;  %v110_v24 = vld [vmem:[%s12204_s0 + $0x129] sm:$0xff]  ;;  %v112_v26 = vld [vmem:[%s12204_s0 + $0x141] sm:$0xff] }
   0xb   :  { %v111_v27 = vld [vmem:[%s12204_s0 + $0x139] sm:$0xff]  ;;  %v113_v29 = vld [vmem:[%s12204_s0 + $0x151] sm:$0xff]  ;;  %v115_v31 = vld [vmem:[%s12204_s0 + $0x169] sm:$0xff] }
   0xc   :  { %v114_v28 = vld [vmem:[%s12204_s0 + $0x159] sm:$0xff]  ;;  %v116_v30 = vld [vmem:[%s12204_s0 + $0x171] sm:$0xff]  ;;  %v119_v35 = vld [vmem:[%s12204_s0 + $0x1c9] sm:$0xff] }
   0xd   :  { %v118_v32 = vld [vmem:[%s12204_s0 + $0x1b9] sm:$0xff]  ;;  %v117_v33 = vld [vmem:[%s12204_s0 + $0x1b1] sm:$0xff]  ;;  %v122_v36 = vld [vmem:[%s12204_s0 + $0x1e9] sm:$0xff] }
   0xe   :  { %677 = vrot.lane.b32.xlu1 %v92_v6, %s7037_s19  ;;  %675 = vrot.lane.b32.xlu0 %v91_v7, %s7037_s19  ;;  %v120_v34 = vld [vmem:[%s12204_s0 + $0x1d1] sm:$0xff]  ;;  %v121_v37 = vld [vmem:[%s12204_s0 + $0x1e1] sm:$0xff] }
   0xf   :  { %v124_v38 = vld [vmem:[%s12204_s0 + $0x201] sm:$0xff]  ;;  %v123_v39 = vld [vmem:[%s12204_s0 + $0x1f9] sm:$0xff]  ;;  %v125_v41 = vld [vmem:[%s12204_s0 + $0x211] sm:$0xff] }
  0x10   :  { %v126_v40 = vld [vmem:[%s12204_s0 + $0x219] sm:$0xff]  ;;  %v128_v42 = vld [vmem:[%s12204_s0 + $0x231] sm:$0xff]  ;;  %v127_v43 = vld [vmem:[%s12204_s0 + $0x229] sm:$0xff] }
  0x11   :  { %v130_v44 = vld [vmem:[%s12204_s0 + $0x249] sm:$0xff]  ;;  %v129_v45 = vld [vmem:[%s12204_s0 + $0x241] sm:$0xff]  ;;  %v131_v47 = vld [vmem:[%s12204_s0 + $0x259] sm:$0xff] }
  0x12   :  { %681 = vrot.lane.b32.xlu1 %v94_v8, %s7037_s19  ;;  %679 = vrot.lane.b32.xlu0 %v93_v9, %s7037_s19  ;;  %v132_v46 = vld [vmem:[%s12204_s0 + $0x261] sm:$0xff]  ;;  %v134_v48 = vld [vmem:[%s12204_s0 + $0x279] sm:$0xff] }
  0x13   :  { %v133_v49 = vld [vmem:[%s12204_s0 + $0x271] sm:$0xff]  ;;  %v135_v51 = vld [vmem:[%s12204_s0 + $0x289] sm:$0xff]  ;;  %v137_v53 = vld [vmem:[%s12204_s0 + $0x2a1] sm:$0xff] }
  0x14   :  { %v136_v50 = vld [vmem:[%s12204_s0 + $0x291] sm:$0xff]  ;;  %v138_v52 = vld [vmem:[%s12204_s0 + $0x2a9] sm:$0xff]  ;;  %v140_v54 = vld [vmem:[%s12204_s0 + $0x2c1] sm:$0xff] }
  0x15   :  { %v139_v55 = vld [vmem:[%s12204_s0 + $0x2b9] sm:$0xff]  ;;  %v141_v57 = vld [vmem:[%s12204_s0 + $0x2d1] sm:$0xff]  ;;  %v143_v59 = vld [vmem:[%s12204_s0 + $0x2e9] sm:$0xff] }
  0x16   :  { %685 = vrot.lane.b32.xlu1 %v96_v10, %s7037_s19  ;;  %683 = vrot.lane.b32.xlu0 %v95_v11, %s7037_s19  ;;  %v142_v56 = vld [vmem:[%s12204_s0 + $0x2d9] sm:$0xff]  ;;  %v144_v58 = vld [vmem:[%s12204_s0 + $0x2f1] sm:$0xff] }
  0x17   :  { %v146_v62 = vld [vmem:[%s12204_s0 + $0x309] sm:$0xff]  ;;  %v145_v63 = vld [vmem:[%s12204_s0 + $0x301] sm:$0xff]  ;;  %v147_v3 = vld [vmem:[%s12204_s0 + $0x319] sm:$0xff] }
  0x18   :  { %v148_v2 = vld [vmem:[%s12204_s0 + $0x321] sm:$0xff]  ;;  %v150_v6 = vld [vmem:[%s12204_s0 + $0xa] sm:$0xff] }
  0x19   :  { %v149_v7 = vld [vmem:[%s12204_s0 + $0x2] sm:$0xff]  ;;  %v7360_v11 = vld [vmem:[%s12204_s0 + $0x1a] sm:$0xff] }
  0x1a   :  { %689 = vrot.lane.b32.xlu1 %v98_v12, %s7037_s19  ;;  %687 = vrot.lane.b32.xlu0 %v97_v13, %s7037_s19  ;;  %v7355_v10 = vld [vmem:[%s12204_s0 + $0x22] sm:$0xff] }
  0x1e   :  { %693 = vrot.lane.b32.xlu1 %v100_v14, %s7037_s19  ;;  %691 = vrot.lane.b32.xlu0 %v99_v15, %s7037_s19  ;;  %v154_v14 = vld [vmem:[%s12204_s0 + $0x3a] sm:$0xff]  ;;  %v7376_v15 = vld [vmem:[%s12204_s0 + $0x32] sm:$0xff] }
  0x22   :  { %697 = vrot.lane.b32.xlu1 %v102_v16, %s7037_s19  ;;  %695 = vrot.lane.b32.xlu0 %v101_v17, %s7037_s19 }
  0x26   :  { %701 = vrot.lane.b32.xlu1 %v104_v18, %s7037_s19  ;;  %699 = vrot.lane.b32.xlu0 %v103_v19, %s7037_s19  ;;  %v156_v18 = vld [vmem:[%s12204_s0 + $0x52] sm:$0xff]  ;;  %v155_v19 = vld [vmem:[%s12204_s0 + $0x4a] sm:$0xff] }
  0x2a   :  { %705 = vrot.lane.b32.xlu1 %v106_v20, %s7037_s19  ;;  %703 = vrot.lane.b32.xlu0 %v105_v21, %s7037_s19 }
  0x2e   :  { %709 = vrot.lane.b32.xlu1 %v108_v22, %s7037_s19  ;;  %707 = vrot.lane.b32.xlu0 %v107_v23, %s7037_s19  ;;  %v158_v22 = vld [vmem:[%s12204_s0 + $0x6a] sm:$0xff]  ;;  %v157_v23 = vld [vmem:[%s12204_s0 + $0x62] sm:$0xff] }
  0x32   :  { %713 = vrot.lane.b32.xlu1 %v110_v24, %s7037_s19  ;;  %711 = vrot.lane.b32.xlu0 %v109_v25, %s7037_s19 }
  0x36   :  { %717 = vrot.lane.b32.xlu1 %v112_v26, %s7037_s19  ;;  %715 = vrot.lane.b32.xlu0 %v111_v27, %s7037_s19  ;;  %v160_v26 = vld [vmem:[%s12204_s0 + $0x82] sm:$0xff]  ;;  %v159_v27 = vld [vmem:[%s12204_s0 + $0x7a] sm:$0xff] }
  0x3a   :  { %721 = vrot.lane.b32.xlu1 %v114_v28, %s7037_s19  ;;  %719 = vrot.lane.b32.xlu0 %v113_v29, %s7037_s19 }
  0x3e   :  { %725 = vrot.lane.b32.xlu1 %v116_v30, %s7037_s19  ;;  %723 = vrot.lane.b32.xlu0 %v115_v31, %s7037_s19  ;;  %v162_v30 = vld [vmem:[%s12204_s0 + $0x9a] sm:$0xff]  ;;  %v161_v31 = vld [vmem:[%s12204_s0 + $0x92] sm:$0xff] }
  0x42   :  { %729 = vrot.lane.b32.xlu1 %v118_v32, %s7037_s19  ;;  %727 = vrot.lane.b32.xlu0 %v117_v33, %s7037_s19 }
  0x46   :  { %733 = vrot.lane.b32.xlu1 %v120_v34, %s7037_s19  ;;  %731 = vrot.lane.b32.xlu0 %v119_v35, %s7037_s19  ;;  %v164_v34 = vld [vmem:[%s12204_s0 + $0xb2] sm:$0xff]  ;;  %v163_v35 = vld [vmem:[%s12204_s0 + $0xaa] sm:$0xff] }
  0x4a   :  { %737 = vrot.lane.b32.xlu1 %v122_v36, %s7037_s19  ;;  %735 = vrot.lane.b32.xlu0 %v121_v37, %s7037_s19 }
  0x4e   :  { %741 = vrot.lane.b32.xlu1 %v124_v38, %s7037_s19  ;;  %739 = vrot.lane.b32.xlu0 %v123_v39, %s7037_s19  ;;  %v166_v38 = vld [vmem:[%s12204_s0 + $0xca] sm:$0xff]  ;;  %v165_v39 = vld [vmem:[%s12204_s0 + $0xc2] sm:$0xff] }
  0x52   :  { %745 = vrot.lane.b32.xlu1 %v126_v40, %s7037_s19  ;;  %743 = vrot.lane.b32.xlu0 %v125_v41, %s7037_s19 }
  0x56   :  { %749 = vrot.lane.b32.xlu1 %v128_v42, %s7037_s19  ;;  %747 = vrot.lane.b32.xlu0 %v127_v43, %s7037_s19  ;;  %v168_v42 = vld [vmem:[%s12204_s0 + $0xe2] sm:$0xff]  ;;  %v167_v43 = vld [vmem:[%s12204_s0 + $0xda] sm:$0xff] }
  0x5a   :  { %753 = vrot.lane.b32.xlu1 %v130_v44, %s7037_s19  ;;  %751 = vrot.lane.b32.xlu0 %v129_v45, %s7037_s19 }
  0x5e   :  { %757 = vrot.lane.b32.xlu1 %v132_v46, %s7037_s19  ;;  %755 = vrot.lane.b32.xlu0 %v131_v47, %s7037_s19  ;;  %v170_v46 = vld [vmem:[%s12204_s0 + $0xfa] sm:$0xff]  ;;  %v169_v47 = vld [vmem:[%s12204_s0 + $0xf2] sm:$0xff] }
  0x62   :  { %761 = vrot.lane.b32.xlu1 %v134_v48, %s7037_s19  ;;  %759 = vrot.lane.b32.xlu0 %v133_v49, %s7037_s19 }
  0x66   :  { %765 = vrot.lane.b32.xlu1 %v136_v50, %s7037_s19  ;;  %763 = vrot.lane.b32.xlu0 %v135_v51, %s7037_s19  ;;  %v172_v50 = vld [vmem:[%s12204_s0 + $0x112] sm:$0xff]  ;;  %v171_v51 = vld [vmem:[%s12204_s0 + $0x10a] sm:$0xff] }
  0x6a   :  { %769 = vrot.lane.b32.xlu1 %v138_v52, %s7037_s19  ;;  %767 = vrot.lane.b32.xlu0 %v137_v53, %s7037_s19 }
  0x6e   :  { %773 = vrot.lane.b32.xlu1 %v140_v54, %s7037_s19  ;;  %771 = vrot.lane.b32.xlu0 %v139_v55, %s7037_s19  ;;  %v174_v54 = vld [vmem:[%s12204_s0 + $0x12a] sm:$0xff]  ;;  %v173_v55 = vld [vmem:[%s12204_s0 + $0x122] sm:$0xff] }
  0x72   :  { %777 = vrot.lane.b32.xlu1 %v142_v56, %s7037_s19  ;;  %775 = vrot.lane.b32.xlu0 %v141_v57, %s7037_s19 }
  0x74   :  { %v7310_v60 = vpop.permute.xlu1 %667  ;;  %v7312_v61 = vpop.permute.xlu0 %663 }
  0x76   :  { %781 = vrot.lane.b32.xlu1 %v144_v58, %s7037_s19  ;;  %779 = vrot.lane.b32.xlu0 %v143_v59, %s7037_s19  ;;  %v176_v58 = vld [vmem:[%s12204_s0 + $0x142] sm:$0xff]  ;;  %v175_v59 = vld [vmem:[%s12204_s0 + $0x13a] sm:$0xff] }
  0x78   :  { %v7322_v0 = vpop.permute.xlu1 %669  ;;  %v7324_v1 = vpop.permute.xlu0 %665 }
  0x7a   :  { %785 = vrot.lane.b32.xlu1 %v146_v62, %s7037_s19  ;;  %783 = vrot.lane.b32.xlu0 %v145_v63, %s7037_s19 }
  0x7c   :  { %v7334_v4 = vpop.permute.xlu1 %673  ;;  %v7336_v5 = vpop.permute.xlu0 %671 }
  0x7e   :  { %789 = vrot.lane.b32.xlu1 %v148_v2, %s7037_s19  ;;  %787 = vrot.lane.b32.xlu0 %v147_v3, %s7037_s19  ;;  %v178_v2 = vld [vmem:[%s12204_s0 + $0x15a] sm:$0xff]  ;;  %v177_v3 = vld [vmem:[%s12204_s0 + $0x152] sm:$0xff]  ;;  %s7041_s19 = smov 40  }
  0x80   :  { %v7346_v8 = vpop.permute.xlu1 %677  ;;  %v7348_v9 = vpop.permute.xlu0 %675 }
  0x82   :  { %921 = vrot.lane.b32.xlu1 %v150_v6, %s7038_s23  ;;  %919 = vrot.lane.b32.xlu0 %v149_v7, %s7038_s23 }
  0x84   :  { %v7362_v12 = vpop.permute.xlu1 %681  ;;  %v7364_v13 = vpop.permute.xlu0 %679 }
  0x86   :  { %925 = vrot.lane.b32.xlu1 %v7355_v10, %s7038_s23  ;;  %923 = vrot.lane.b32.xlu0 %v7360_v11, %s7038_s23 }
  0x88   :  { %v7378_v16 = vpop.permute.xlu1 %685  ;;  %v7380_v17 = vpop.permute.xlu0 %683 }
  0x8a   :  { %929 = vrot.lane.b32.xlu1 %v154_v14, %s7038_s23  ;;  %927 = vrot.lane.b32.xlu0 %v7376_v15, %s7038_s23  ;;  %v180_v14 = vld [vmem:[%s12204_s0 + $0x172] sm:$0xff] }
  0x8c   :  { %v7391_v20 = vpop.permute.xlu1 %689  ;;  %v7393_v21 = vpop.permute.xlu0 %687 }
  0x8e   :  { %933 = vrot.lane.b32.xlu1 %v156_v18, %s7038_s23  ;;  %931 = vrot.lane.b32.xlu0 %v155_v19, %s7038_s23  ;;  %v179_v18 = vld [vmem:[%s12204_s0 + $0x16a] sm:$0xff] }
  0x90   :  { %v7403_v24 = vpop.permute.xlu1 %693  ;;  %v7405_v25 = vpop.permute.xlu0 %691 }
  0x91   :  { %12243 = vst [vmem:[#allocation3_spill] sm:$0xff] %v7403_v24  ;;  %v6169_v24 = vld [vmem:[%s12204_s0 + $0xc0] sm:$0xff] }
  0x92   :  { %937 = vrot.lane.b32.xlu1 %v158_v22, %s7038_s23  ;;  %935 = vrot.lane.b32.xlu0 %v157_v23, %s7038_s23  ;;  %v182_v23 = vld [vmem:[%s12204_s0 + $0x1ba] sm:$0xff] }
  0x94   :  { %v7415_v28 = vpop.permute.xlu1 %697  ;;  %v7417_v29 = vpop.permute.xlu0 %695 }
  0x95   :  { %12244 = vst [vmem:[#allocation4_spill] sm:$0xff] %v7415_v28  ;;  %12245 = vst [vmem:[#allocation5_spill] sm:$0xff] %v7417_v29 }
  0x96   :  { %941 = vrot.lane.b32.xlu1 %v160_v26, %s7038_s23  ;;  %939 = vrot.lane.b32.xlu0 %v159_v27, %s7038_s23  ;;  %v181_v26 = vld [vmem:[%s12204_s0 + $0x1b2] sm:$0xff] }
  0x98   :  { %v7427_v32 = vpop.permute.xlu1 %701  ;;  %v7429_v33 = vpop.permute.xlu0 %699 }
  0x99   :  { %12246 = vst [vmem:[#allocation6_spill] sm:$0xff] %v7427_v32  ;;  %12247 = vst [vmem:[#allocation7_spill] sm:$0xff] %v7429_v33 }
  0x9a   :  { %945 = vrot.lane.b32.xlu1 %v162_v30, %s7038_s23  ;;  %943 = vrot.lane.b32.xlu0 %v161_v31, %s7038_s23  ;;  %v184_v31 = vld [vmem:[%s12204_s0 + $0x1d2] sm:$0xff] }
  0x9c   :  { %v7439_v36 = vpop.permute.xlu1 %705  ;;  %v7441_v37 = vpop.permute.xlu0 %703 }
  0x9d   :  { %12248 = vst [vmem:[#allocation8_spill] sm:$0xff] %v7439_v36  ;;  %12249 = vst [vmem:[#allocation9_spill] sm:$0xff] %v7441_v37 }
  0x9e   :  { %949 = vrot.lane.b32.xlu1 %v164_v34, %s7038_s23  ;;  %947 = vrot.lane.b32.xlu0 %v163_v35, %s7038_s23  ;;  %v183_v34 = vld [vmem:[%s12204_s0 + $0x1ca] sm:$0xff] }
  0xa0   :  { %v7451_v40 = vpop.permute.xlu1 %709  ;;  %v7453_v41 = vpop.permute.xlu0 %707 }
  0xa1   :  { %12250 = vst [vmem:[#allocation10_spill] sm:$0xff] %v7451_v40  ;;  %12251 = vst [vmem:[#allocation11_spill] sm:$0xff] %v7453_v41  ;;  %v55_v40 = vld [vmem:[%s12204_s0 + $0x1c8] sm:$0xff] }
  0xa2   :  { %953 = vrot.lane.b32.xlu1 %v166_v38, %s7038_s23  ;;  %951 = vrot.lane.b32.xlu0 %v165_v39, %s7038_s23  ;;  %v186_v39 = vld [vmem:[%s12204_s0 + $0x1ea] sm:$0xff] }
  0xa4   :  { %v7463_v44 = vpop.permute.xlu1 %713  ;;  %v7465_v45 = vpop.permute.xlu0 %711 }
  0xa5   :  { %12252 = vst [vmem:[#allocation12_spill] sm:$0xff] %v7463_v44  ;;  %12253 = vst [vmem:[#allocation13_spill] sm:$0xff] %v7465_v45  ;;  %v41_v45 = vld [vmem:[%s12204_s0 + $0xf0] sm:$0xff] }
  0xa6   :  { %957 = vrot.lane.b32.xlu1 %v168_v42, %s7038_s23  ;;  %955 = vrot.lane.b32.xlu0 %v167_v43, %s7038_s23  ;;  %v185_v42 = vld [vmem:[%s12204_s0 + $0x1e2] sm:$0xff] }
  0xa8   :  { %v7475_v48 = vpop.permute.xlu1 %717  ;;  %v7477_v49 = vpop.permute.xlu0 %715 }
  0xa9   :  { %12254 = vst [vmem:[#allocation14_spill] sm:$0xff] %v7475_v48  ;;  %12255 = vst [vmem:[#allocation15_spill] sm:$0xff] %v7477_v49  ;;  %v39_v49 = vld [vmem:[%s12204_s0 + $0xd8] sm:$0xff] }
  0xaa   :  { %961 = vrot.lane.b32.xlu1 %v170_v46, %s7038_s23  ;;  %959 = vrot.lane.b32.xlu0 %v169_v47, %s7038_s23  ;;  %v188_v47 = vld [vmem:[%s12204_s0 + $0x202] sm:$0xff] }
  0xac   :  { %v7487_v52 = vpop.permute.xlu1 %721  ;;  %v7489_v53 = vpop.permute.xlu0 %719 }
  0xad   :  { %12256 = vst [vmem:[#allocation16_spill] sm:$0xff] %v7487_v52  ;;  %12257 = vst [vmem:[#allocation17_spill] sm:$0xff] %v7489_v53  ;;  %v37_v53 = vld [vmem:[%s12204_s0 + $0xc0] sm:$0xff] }
  0xae   :  { %965 = vrot.lane.b32.xlu1 %v172_v50, %s7038_s23  ;;  %963 = vrot.lane.b32.xlu0 %v171_v51, %s7038_s23  ;;  %v187_v50 = vld [vmem:[%s12204_s0 + $0x1fa] sm:$0xff] }
  0xb0   :  { %v7499_v56 = vpop.permute.xlu1 %725  ;;  %v7501_v57 = vpop.permute.xlu0 %723 }
  0xb1   :  { %12258 = vst [vmem:[#allocation18_spill] sm:$0xff] %v7499_v56  ;;  %12259 = vst [vmem:[#allocation19_spill] sm:$0xff] %v7501_v57  ;;  %v35_v57 = vld [vmem:[%s12204_s0 + $0xa8] sm:$0xff] }
  0xb2   :  { %969 = vrot.lane.b32.xlu1 %v174_v54, %s7038_s23  ;;  %967 = vrot.lane.b32.xlu0 %v173_v55, %s7038_s23  ;;  %v190_v55 = vld [vmem:[%s12204_s0 + $0x21a] sm:$0xff] }
  0xb4   :  { %v7511_v62 = vpop.permute.xlu1 %729  ;;  %v7513_v63 = vpop.permute.xlu0 %727 }
  0xb5   :  { %12260 = vst [vmem:[#allocation20_spill] sm:$0xff] %v7511_v62  ;;  %12261 = vst [vmem:[#allocation21_spill] sm:$0xff] %v7513_v63  ;;  %v34_v62 = vld [vmem:[%s12204_s0 + $0x98] sm:$0xff]  ;;  %v33_v63 = vld [vmem:[%s12204_s0 + $0x90] sm:$0xff] }
  0xb6   :  { %973 = vrot.lane.b32.xlu1 %v176_v58, %s7038_s23  ;;  %971 = vrot.lane.b32.xlu0 %v175_v59, %s7038_s23  ;;  %v189_v58 = vld [vmem:[%s12204_s0 + $0x212] sm:$0xff] }
  0xb8   :  { %v7523_v6 = vpop.permute.xlu1 %733  ;;  %v7525_v7 = vpop.permute.xlu0 %731 }
  0xb9   :  { %12262 = vst [vmem:[#allocation22_spill] sm:$0xff] %v7523_v6  ;;  %12263 = vst [vmem:[#allocation23_spill] sm:$0xff] %v7525_v7  ;;  %v31_v6 = vld [vmem:[%s12204_s0 + $0x78] sm:$0xff] }
  0xba   :  { %977 = vrot.lane.b32.xlu1 %v178_v2, %s7038_s23  ;;  %975 = vrot.lane.b32.xlu0 %v177_v3, %s7038_s23  ;;  %v192_v3 = vld [vmem:[%s12204_s0 + $0x232] sm:$0xff] }
  0xbc   :  { %v7535_v19 = vpop.permute.xlu1 %737  ;;  %v7537_v22 = vpop.permute.xlu0 %735 }
  0xbd   :  { %12264 = vst [vmem:[#allocation24_spill] sm:$0xff] %v7535_v19  ;;  %12265 = vst [vmem:[#allocation25_spill] sm:$0xff] %v7537_v22  ;;  %v32_v22 = vld [vmem:[%s12204_s0 + $0x80] sm:$0xff] }
  0xbe   :  { %981 = vrot.lane.b32.xlu1 %v180_v14, %s7038_s23  ;;  %979 = vrot.lane.b32.xlu0 %v179_v18, %s7038_s23  ;;  %v191_v14 = vld [vmem:[%s12204_s0 + $0x22a] sm:$0xff] }
  0xc0   :  { %v7547_v27 = vpop.permute.xlu1 %741  ;;  %v7549_v30 = vpop.permute.xlu0 %739 }
  0xc1   :  { %12266 = vst [vmem:[#allocation26_spill] sm:$0xff] %v7547_v27  ;;  %12267 = vst [vmem:[#allocation27_spill] sm:$0xff] %v7549_v30  ;;  %v7797_v27 = vld [vmem:[%s12204_s0 + $0x60] sm:$0xff] }
  0xc2   :  { %985 = vrot.lane.b32.xlu1 %v182_v23, %s7038_s23  ;;  %983 = vrot.lane.b32.xlu0 %v181_v26, %s7038_s23  ;;  %v194_v26 = vld [vmem:[%s12204_s0 + $0x24a] sm:$0xff] }
  0xc4   :  { %v7559_v35 = vpop.permute.xlu1 %745  ;;  %v7561_v38 = vpop.permute.xlu0 %743 }
  0xc5   :  { %12268 = vst [vmem:[#allocation28_spill] sm:$0xff] %v7559_v35  ;;  %12269 = vst [vmem:[#allocation29_spill] sm:$0xff] %v7561_v38  ;;  %v30_v38 = vld [vmem:[%s12204_s0 + $0x68] sm:$0xff] }
  0xc6   :  { %989 = vrot.lane.b32.xlu1 %v184_v31, %s7038_s23  ;;  %987 = vrot.lane.b32.xlu0 %v183_v34, %s7038_s23  ;;  %v193_v31 = vld [vmem:[%s12204_s0 + $0x242] sm:$0xff] }
  0xc8   :  { %v7571_v43 = vpop.permute.xlu1 %749  ;;  %v7573_v46 = vpop.permute.xlu0 %747 }
  0xc9   :  { %12270 = vst [vmem:[#allocation30_spill] sm:$0xff] %v7571_v43  ;;  %12271 = vst [vmem:[#allocation31_spill] sm:$0xff] %v7573_v46  ;;  %v7781_v43 = vld [vmem:[%s12204_s0 + $0x48] sm:$0xff] }
  0xca   :  { %993 = vrot.lane.b32.xlu1 %v186_v39, %s7038_s23  ;;  %991 = vrot.lane.b32.xlu0 %v185_v42, %s7038_s23  ;;  %v196_v42 = vld [vmem:[%s12204_s0 + $0x262] sm:$0xff] }
  0xcc   :  { %v7583_v51 = vpop.permute.xlu1 %753  ;;  %v7585_v54 = vpop.permute.xlu0 %751 }
  0xcd   :  { %12272 = vst [vmem:[#allocation32_spill] sm:$0xff] %v7583_v51  ;;  %12273 = vst [vmem:[#allocation33_spill] sm:$0xff] %v7585_v54  ;;  %v7776_v54 = vld [vmem:[%s12204_s0 + $0x50] sm:$0xff] }
  0xce   :  { %997 = vrot.lane.b32.xlu1 %v188_v47, %s7038_s23  ;;  %995 = vrot.lane.b32.xlu0 %v187_v50, %s7038_s23  ;;  %v195_v47 = vld [vmem:[%s12204_s0 + $0x25a] sm:$0xff] }
  0xd0   :  { %v7595_v59 = vpop.permute.xlu1 %757  ;;  %v7597_v2 = vpop.permute.xlu0 %755 }
  0xd1   :  { %12274 = vst [vmem:[#allocation34_spill] sm:$0xff] %v7595_v59  ;;  %12275 = vst [vmem:[#allocation35_spill] sm:$0xff] %v7597_v2  ;;  %v7763_v59 = vld [vmem:[%s12204_s0 + $0x30] sm:$0xff] }
  0xd2   :  { %1001 = vrot.lane.b32.xlu1 %v190_v55, %s7038_s23  ;;  %999 = vrot.lane.b32.xlu0 %v189_v58, %s7038_s23  ;;  %v198_v58 = vld [vmem:[%s12204_s0 + $0x27a] sm:$0xff] }
  0xd4   :  { %v7607_v18 = vpop.permute.xlu1 %761  ;;  %v7609_v23 = vpop.permute.xlu0 %759 }
  0xd5   :  { %12276 = vst [vmem:[#allocation36_spill] sm:$0xff] %v7607_v18  ;;  %12277 = vst [vmem:[#allocation37_spill] sm:$0xff] %v7609_v23  ;;  %v7745_v18 = vld [vmem:[%s12204_s0 + $0x20] sm:$0xff]  ;;  %v7758_v23 = vld [vmem:[%s12204_s0 + $0x38] sm:$0xff] }
  0xd6   :  { %1005 = vrot.lane.b32.xlu1 %v192_v3, %s7038_s23  ;;  %1003 = vrot.lane.b32.xlu0 %v191_v14, %s7038_s23  ;;  %v197_v3 = vld [vmem:[%s12204_s0 + $0x272] sm:$0xff] }
  0xd8   :  { %v7619_v34 = vpop.permute.xlu1 %765  ;;  %v7621_v39 = vpop.permute.xlu0 %763 }
  0xd9   :  { %12278 = vst [vmem:[#allocation38_spill] sm:$0xff] %v7619_v34  ;;  %12279 = vst [vmem:[#allocation39_spill] sm:$0xff] %v7621_v39 }
  0xda   :  { %1009 = vrot.lane.b32.xlu1 %v194_v26, %s7038_s23  ;;  %1007 = vrot.lane.b32.xlu0 %v193_v31, %s7038_s23  ;;  %v200_v31 = vld [vmem:[%s12204_s0 + $0x292] sm:$0xff] }
  0xdc   :  { %v7631_v50 = vpop.permute.xlu1 %769  ;;  %v7633_v55 = vpop.permute.xlu0 %767 }
  0xdd   :  { %12280 = vst [vmem:[#allocation40_spill] sm:$0xff] %v7631_v50  ;;  %12281 = vst [vmem:[#allocation41_spill] sm:$0xff] %v7633_v55 }
  0xde   :  { %1013 = vrot.lane.b32.xlu1 %v196_v42, %s7038_s23  ;;  %1011 = vrot.lane.b32.xlu0 %v195_v47, %s7038_s23  ;;  %v199_v42 = vld [vmem:[%s12204_s0 + $0x28a] sm:$0xff] }
  0xe0   :  { %v7643_v14 = vpop.permute.xlu1 %773  ;;  %v7645_v26 = vpop.permute.xlu0 %771 }
  0xe1   :  { %12282 = vst [vmem:[#allocation42_spill] sm:$0xff] %v7643_v14  ;;  %12283 = vst [vmem:[#allocation43_spill] sm:$0xff] %v7645_v26 }
  0xe2   :  { %1017 = vrot.lane.b32.xlu1 %v198_v58, %s7038_s23  ;;  %1015 = vrot.lane.b32.xlu0 %v197_v3, %s7038_s23  ;;  %v202_v58 = vld [vmem:[%s12204_s0 + $0x2aa] sm:$0xff]  ;;  %v201_v3 = vld [vmem:[%s12204_s0 + $0x2a2] sm:$0xff] }
  0xe4   :  { %v7655_v47 = vpop.permute.xlu1 %777  ;;  %v7657_v50 = vpop.permute.xlu0 %775 }
  0xe5   :  { %12284 = vst [vmem:[#allocation44_spill] sm:$0xff] %v7655_v47  ;;  %12285 = vst [vmem:[#allocation45_spill] sm:$0xff] %v7657_v50 }
  0xe6   :  { %1021 = vrot.lane.b32.xlu1 %v200_v31, %s7038_s23  ;;  %1019 = vrot.lane.b32.xlu0 %v199_v42, %s7038_s23  ;;  %v204_v31 = vld [vmem:[%s12204_s0 + $0x2c2] sm:$0xff]  ;;  %v203_v42 = vld [vmem:[%s12204_s0 + $0x2ba] sm:$0xff] }
  0xe8   :  { %v7667_v14 = vpop.permute.xlu1 %781  ;;  %v7669_v26 = vpop.permute.xlu0 %779 }
  0xe9   :  { %12286 = vst [vmem:[#allocation46_spill] sm:$0xff] %v7667_v14  ;;  %12287 = vst [vmem:[#allocation47_spill] sm:$0xff] %v7669_v26 }
  0xea   :  { %1025 = vrot.lane.b32.xlu1 %v202_v58, %s7038_s23  ;;  %1023 = vrot.lane.b32.xlu0 %v201_v3, %s7038_s23  ;;  %v206_v58 = vld [vmem:[%s12204_s0 + $0x2da] sm:$0xff]  ;;  %v205_v3 = vld [vmem:[%s12204_s0 + $0x2d2] sm:$0xff] }
  0xec   :  { %v7679_v47 = vpop.permute.xlu1 %785  ;;  %v7681_v50 = vpop.permute.xlu0 %783 }
  0xed   :  { %12288 = vst [vmem:[#allocation48_spill] sm:$0xff] %v7679_v47  ;;  %12289 = vst [vmem:[#allocation49_spill] sm:$0xff] %v7681_v50 }
  0xee   :  { %1029 = vrot.lane.b32.xlu1 %v204_v31, %s7038_s23  ;;  %1027 = vrot.lane.b32.xlu0 %v203_v42, %s7038_s23  ;;  %v208_v31 = vld [vmem:[%s12204_s0 + $0x2f2] sm:$0xff]  ;;  %v207_v42 = vld [vmem:[%s12204_s0 + $0x2ea] sm:$0xff] }
  0xf0   :  { %v7691_v14 = vpop.permute.xlu1 %789  ;;  %v7693_v26 = vpop.permute.xlu0 %787 }
  0xf1   :  { %12290 = vst [vmem:[#allocation50_spill] sm:$0xff] %v7691_v14  ;;  %12291 = vst [vmem:[#allocation51_spill] sm:$0xff] %v7693_v26 }
  0xf2   :  { %1033 = vrot.lane.b32.xlu1 %v206_v58, %s7038_s23  ;;  %1031 = vrot.lane.b32.xlu0 %v205_v3, %s7038_s23  ;;  %v210_v58 = vld [vmem:[%s12204_s0 + $0x30a] sm:$0xff]  ;;  %v209_v3 = vld [vmem:[%s12204_s0 + $0x302] sm:$0xff] }
  0xf4   :  { %v7703_v47 = vpop.permute.xlu1 %921  ;;  %v7705_v50 = vpop.permute.xlu0 %919 }
  0xf6   :  { %1037 = vrot.lane.b32.xlu1 %v208_v31, %s7038_s23  ;;  %1035 = vrot.lane.b32.xlu0 %v207_v42, %s7038_s23  ;;  %v212_v31 = vld [vmem:[%s12204_s0 + $0x322] sm:$0xff]  ;;  %v211_v42 = vld [vmem:[%s12204_s0 + $0x31a] sm:$0xff] }
  0xf8   :  { %v7715_v26 = vpop.permute.xlu1 %925  ;;  %v7717_v14 = vpop.permute.xlu0 %923 }
  0xfa   :  { %1041 = vrot.lane.b32.xlu1 %v210_v58, %s7038_s23  ;;  %1039 = vrot.lane.b32.xlu0 %v209_v3, %s7038_s23  ;;  %v7740_v3 = vld [vmem:[%s12204_s0 + $0x18] sm:$0xff] }
  0xfc   :  { %v7727_v55 = vpop.permute.xlu1 %929  ;;  %v7729_v34 = vpop.permute.xlu0 %927 }
  0xfe   :  { %1045 = vrot.lane.b32.xlu1 %v212_v31, %s7038_s23  ;;  %1043 = vrot.lane.b32.xlu0 %v211_v42, %s7038_s23 }
 0x100   :  { %v7733_v39 = vpop.permute.xlu1 %933  ;;  %v7735_v58 = vpop.permute.xlu0 %931 }
 0x102   :  { %1177 = vrot.lane.b32.xlu1 %v7745_v18, %s7039_s26  ;;  %1175 = vrot.lane.b32.xlu0 %v7740_v3, %s7039_s26 }
 0x104   :  { %v7751_v31 = vpop.permute.xlu1 %937  ;;  %v7753_v42 = vpop.permute.xlu0 %935 }
 0x106   :  { %1181 = vrot.lane.b32.xlu1 %v7758_v23, %s7039_s26  ;;  %1179 = vrot.lane.b32.xlu0 %v7763_v59, %s7039_s26 }
 0x108   :  { %v7769_v2 = vpop.permute.xlu1 %941  ;;  %v7771_v51 = vpop.permute.xlu0 %939 }
 0x10a   :  { %1185 = vrot.lane.b32.xlu1 %v7776_v54, %s7039_s26  ;;  %1183 = vrot.lane.b32.xlu0 %v7781_v43, %s7039_s26 }
 0x10c   :  { %v7787_v46 = vpop.permute.xlu1 %945  ;;  %v7789_v35 = vpop.permute.xlu0 %943 }
 0x10e   :  { %1189 = vrot.lane.b32.xlu1 %v30_v38, %s7039_s26  ;;  %1187 = vrot.lane.b32.xlu0 %v7797_v27, %s7039_s26 }
 0x110   :  { %v7802_v30 = vpop.permute.xlu1 %949  ;;  %v7804_v19 = vpop.permute.xlu0 %947 }
 0x111   :  { %12292 = vst [vmem:[#allocation52_spill] sm:$0xff] %v7802_v30  ;;  %12293 = vst [vmem:[#allocation53_spill] sm:$0xff] %v7804_v19 }
 0x112   :  { %1193 = vrot.lane.b32.xlu1 %v32_v22, %s7039_s26  ;;  %1191 = vrot.lane.b32.xlu0 %v31_v6, %s7039_s26  ;;  %v36_v6 = vld [vmem:[%s12204_s0 + $0xb0] sm:$0xff] }
 0x114   :  { %v7814_v38 = vpop.permute.xlu1 %953  ;;  %v7816_v7 = vpop.permute.xlu0 %951 }
 0x115   :  { %12294 = vst [vmem:[#allocation54_spill] sm:$0xff] %v7814_v38  ;;  %12295 = vst [vmem:[#allocation55_spill] sm:$0xff] %v7816_v7 }
 0x116   :  { %1197 = vrot.lane.b32.xlu1 %v34_v62, %s7039_s26  ;;  %1195 = vrot.lane.b32.xlu0 %v33_v63, %s7039_s26  ;;  %v38_v63 = vld [vmem:[%s12204_s0 + $0xc8] sm:$0xff] }
 0x118   :  { %v7826_v56 = vpop.permute.xlu1 %957  ;;  %v7828_v22 = vpop.permute.xlu0 %955 }
 0x119   :  { %12296 = vst [vmem:[#allocation56_spill] sm:$0xff] %v7826_v56  ;;  %12297 = vst [vmem:[#allocation57_spill] sm:$0xff] %v7828_v22  ;;  %v6289_v56 = vld [vmem:[%s12204_s0 + $0x62] sm:$0xff] }
 0x11a   :  { %1201 = vrot.lane.b32.xlu1 %v36_v6, %s7039_s26  ;;  %1199 = vrot.lane.b32.xlu0 %v35_v57, %s7039_s26  ;;  %v40_v57 = vld [vmem:[%s12204_s0 + $0xe0] sm:$0xff] }
 0x11c   :  { %v7838_v52 = vpop.permute.xlu1 %961  ;;  %v7840_v62 = vpop.permute.xlu0 %959 }
 0x11d   :  { %12298 = vst [vmem:[#allocation58_spill] sm:$0xff] %v7838_v52  ;;  %12299 = vst [vmem:[#allocation59_spill] sm:$0xff] %v7840_v62  ;;  %v6162_v52 = vld [vmem:[%s12204_s0 + $0x68] sm:$0xff] }
 0x11e   :  { %1205 = vrot.lane.b32.xlu1 %v38_v63, %s7039_s26  ;;  %1203 = vrot.lane.b32.xlu0 %v37_v53, %s7039_s26  ;;  %v42_v53 = vld [vmem:[%s12204_s0 + $0xf8] sm:$0xff] }
 0x120   :  { %v7850_v48 = vpop.permute.xlu1 %965  ;;  %v7852_v6 = vpop.permute.xlu0 %963 }
 0x121   :  { %12300 = vst [vmem:[#allocation60_spill] sm:$0xff] %v7850_v48  ;;  %12301 = vst [vmem:[#allocation61_spill] sm:$0xff] %v7852_v6 }
 0x122   :  { %1209 = vrot.lane.b32.xlu1 %v40_v57, %s7039_s26  ;;  %1207 = vrot.lane.b32.xlu0 %v39_v49, %s7039_s26  ;;  %v44_v49 = vld [vmem:[%s12204_s0 + $0x110] sm:$0xff] }
 0x124   :  { %v7862_v44 = vpop.permute.xlu1 %969  ;;  %v7864_v63 = vpop.permute.xlu0 %967 }
 0x125   :  { %12302 = vst [vmem:[#allocation62_spill] sm:$0xff] %v7862_v44  ;;  %12303 = vst [vmem:[#allocation63_spill] sm:$0xff] %v7864_v63  ;;  %v43_v44 = vld [vmem:[%s12204_s0 + $0x108] sm:$0xff] }
 0x126   :  { %1213 = vrot.lane.b32.xlu1 %v42_v53, %s7039_s26  ;;  %1211 = vrot.lane.b32.xlu0 %v41_v45, %s7039_s26  ;;  %v46_v45 = vld [vmem:[%s12204_s0 + $0x128] sm:$0xff] }
 0x128   :  { %v7874_v48 = vpop.permute.xlu1 %973  ;;  %v7876_v57 = vpop.permute.xlu0 %971 }
 0x129   :  { %12304 = vst [vmem:[#allocation64_spill] sm:$0xff] %v7874_v48  ;;  %12305 = vst [vmem:[#allocation65_spill] sm:$0xff] %v7876_v57  ;;  %v45_v48 = vld [vmem:[%s12204_s0 + $0x120] sm:$0xff] }
 0x12a   :  { %1217 = vrot.lane.b32.xlu1 %v44_v49, %s7039_s26  ;;  %1215 = vrot.lane.b32.xlu0 %v43_v44, %s7039_s26  ;;  %v48_v44 = vld [vmem:[%s12204_s0 + $0x140] sm:$0xff] }
 0x12c   :  { %v7886_v63 = vpop.permute.xlu1 %977  ;;  %v7888_v53 = vpop.permute.xlu0 %975 }
 0x12d   :  { %12306 = vst [vmem:[#allocation66_spill] sm:$0xff] %v7886_v63  ;;  %12307 = vst [vmem:[#allocation67_spill] sm:$0xff] %v7888_v53  ;;  %v47_v63 = vld [vmem:[%s12204_s0 + $0x138] sm:$0xff] }
 0x12e   :  { %1221 = vrot.lane.b32.xlu1 %v46_v45, %s7039_s26  ;;  %1219 = vrot.lane.b32.xlu0 %v45_v48, %s7039_s26  ;;  %v50_v48 = vld [vmem:[%s12204_s0 + $0x158] sm:$0xff] }
 0x130   :  { %v7898_v57 = vpop.permute.xlu1 %981  ;;  %v7900_v49 = vpop.permute.xlu0 %979 }
 0x131   :  { %12308 = vst [vmem:[#allocation68_spill] sm:$0xff] %v7898_v57  ;;  %12309 = vst [vmem:[#allocation69_spill] sm:$0xff] %v7900_v49  ;;  %v49_v57 = vld [vmem:[%s12204_s0 + $0x150] sm:$0xff] }
 0x132   :  { %1225 = vrot.lane.b32.xlu1 %v48_v44, %s7039_s26  ;;  %1223 = vrot.lane.b32.xlu0 %v47_v63, %s7039_s26  ;;  %v52_v63 = vld [vmem:[%s12204_s0 + $0x170] sm:$0xff] }
 0x134   :  { %v7910_v53 = vpop.permute.xlu1 %985  ;;  %v7912_v45 = vpop.permute.xlu0 %983 }
 0x135   :  { %12310 = vst [vmem:[#allocation70_spill] sm:$0xff] %v7910_v53  ;;  %12311 = vst [vmem:[#allocation71_spill] sm:$0xff] %v7912_v45  ;;  %v51_v53 = vld [vmem:[%s12204_s0 + $0x168] sm:$0xff] }
 0x136   :  { %1229 = vrot.lane.b32.xlu1 %v50_v48, %s7039_s26  ;;  %1227 = vrot.lane.b32.xlu0 %v49_v57, %s7039_s26  ;;  %v5996_v57 = vld [vmem:[%s12204_s0 + $0x188] sm:$0xff]  ;;  %v5995_v48 = vld [vmem:[%s12204_s0 + $0x180] sm:$0xff] }
 0x138   :  { %v7922_v49 = vpop.permute.xlu1 %989  ;;  %v7924_v44 = vpop.permute.xlu0 %987 }
 0x139   :  { %12312 = vst [vmem:[#allocation72_spill] sm:$0xff] %v7922_v49  ;;  %12313 = vst [vmem:[#allocation73_spill] sm:$0xff] %v7924_v44 }
 0x13a   :  { %1233 = vrot.lane.b32.xlu1 %v52_v63, %s7039_s26  ;;  %1231 = vrot.lane.b32.xlu0 %v51_v53, %s7039_s26  ;;  %v56_v53 = vld [vmem:[%s12204_s0 + $0x1d0] sm:$0xff] }
 0x13c   :  { %v7940_v49 = vpop.permute.xlu1 %993  ;;  %v7942_v44 = vpop.permute.xlu0 %991 }
 0x13d   :  { %12314 = vst [vmem:[#allocation74_spill] sm:$0xff] %v7940_v49  ;;  %12315 = vst [vmem:[#allocation75_spill] sm:$0xff] %v7942_v44 }
 0x13e   :  { %1237 = vrot.lane.b32.xlu1 %v5996_v57, %s7039_s26  ;;  %1235 = vrot.lane.b32.xlu0 %v5995_v48, %s7039_s26  ;;  %v58_v48 = vld [vmem:[%s12204_s0 + $0x1e8] sm:$0xff] }
 0x140   :  { %v7946_v45 = vpop.permute.xlu1 %997  ;;  %v7948_v63 = vpop.permute.xlu0 %995 }
 0x141   :  { %12316 = vst [vmem:[#allocation76_spill] sm:$0xff] %v7946_v45  ;;  %12317 = vst [vmem:[#allocation77_spill] sm:$0xff] %v7948_v63  ;;  %v57_v45 = vld [vmem:[%s12204_s0 + $0x1e0] sm:$0xff] }
 0x142   :  { %1241 = vrot.lane.b32.xlu1 %v56_v53, %s7039_s26  ;;  %1239 = vrot.lane.b32.xlu0 %v55_v40, %s7039_s26  ;;  %v60_v40 = vld [vmem:[%s12204_s0 + $0x200] sm:$0xff] }
 0x144   :  { %v7958_v49 = vpop.permute.xlu1 %1001  ;;  %v7960_v57 = vpop.permute.xlu0 %999 }
 0x145   :  { %12318 = vst [vmem:[#allocation78_spill] sm:$0xff] %v7958_v49  ;;  %12319 = vst [vmem:[#allocation79_spill] sm:$0xff] %v7960_v57  ;;  %v59_v49 = vld [vmem:[%s12204_s0 + $0x1f8] sm:$0xff] }
 0x146   :  { %1245 = vrot.lane.b32.xlu1 %v58_v48, %s7039_s26  ;;  %1243 = vrot.lane.b32.xlu0 %v57_v45, %s7039_s26  ;;  %v62_v45 = vld [vmem:[%s12204_s0 + $0x218] sm:$0xff] }
 0x148   :  { %v7970_v63 = vpop.permute.xlu1 %1005  ;;  %v7972_v53 = vpop.permute.xlu0 %1003 }
 0x149   :  { %12320 = vst [vmem:[#allocation80_spill] sm:$0xff] %v7970_v63  ;;  %12321 = vst [vmem:[#allocation81_spill] sm:$0xff] %v7972_v53  ;;  %v61_v63 = vld [vmem:[%s12204_s0 + $0x210] sm:$0xff] }
 0x14a   :  { %1249 = vrot.lane.b32.xlu1 %v60_v40, %s7039_s26  ;;  %1247 = vrot.lane.b32.xlu0 %v59_v49, %s7039_s26  ;;  %v64_v49 = vld [vmem:[%s12204_s0 + $0x230] sm:$0xff] }
 0x14c   :  { %v7982_v57 = vpop.permute.xlu1 %1009  ;;  %v7984_v48 = vpop.permute.xlu0 %1007 }
 0x14d   :  { %12322 = vst [vmem:[#allocation82_spill] sm:$0xff] %v7982_v57  ;;  %12323 = vst [vmem:[#allocation83_spill] sm:$0xff] %v7984_v48  ;;  %v63_v57 = vld [vmem:[%s12204_s0 + $0x228] sm:$0xff]  ;;  %v65_v48 = vld [vmem:[%s12204_s0 + $0x240] sm:$0xff] }
 0x14e   :  { %1253 = vrot.lane.b32.xlu1 %v62_v45, %s7039_s26  ;;  %1251 = vrot.lane.b32.xlu0 %v61_v63, %s7039_s26  ;;  %v3175_v63 = vld [vmem:[%s12205_s1 + $0x40] sm:$0xff] }
 0x14f   :  { %6602 = vmatprep.subr.mxu0 %v3175_v63 }
 0x150   :  { %v7994_v53 = vpop.permute.xlu1 %1013  ;;  %v7996_v40 = vpop.permute.xlu0 %1011  ;;  %6603 = vmatpush3.msra.mxu0 %v3175_v63  ;;  %v6029_v63 = vld [vmem:[%s12204_s0 + $0x19] sm:$0xff] }
 0x151   :  { %12324 = vst [vmem:[#allocation84_spill] sm:$0xff] %v7994_v53  ;;  %12325 = vst [vmem:[#allocation85_spill] sm:$0xff] %v7996_v40  ;;  %v66_v40 = vld [vmem:[%s12204_s0 + $0x248] sm:$0xff] }
 0x152   :  { %1257 = vrot.lane.b32.xlu1 %v64_v49, %s7039_s26  ;;  %1255 = vrot.lane.b32.xlu0 %v63_v57, %s7039_s26  ;;  %v3174_v57 = vld [vmem:[%s12205_s1 + $0x38] sm:$0xff]  ;;  %v3173_v49 = vld [vmem:[%s12205_s1 + $0x30] sm:$0xff] }
 0x153   :  { %6604 = vmatprep.subr.mxu0 %v3174_v57 }
 0x154   :  { %v8009_v45 = vpop.permute.xlu1 %1017  ;;  %v8011_v53 = vpop.permute.xlu0 %1015  ;;  %6605 = vmatpush3.msra.mxu0 %v3174_v57  ;;  %v3171_v57 = vld [vmem:[%s12205_s1 + $0x20] sm:$0xff] }
 0x155   :  { %12326 = vst [vmem:[#allocation86_spill] sm:$0xff] %v8009_v45  ;;  %12327 = vst [vmem:[#allocation87_spill] sm:$0xff] %v8011_v53  ;;  %v6030_v45 = vld [vmem:[%s12204_s0 + $0x21] sm:$0xff]  ;;  %6606 = vmatprep.subr.mxu0 %v3173_v49 }
 0x156   :  { %1261 = vrot.lane.b32.xlu1 %v66_v40, %s7039_s26  ;;  %1259 = vrot.lane.b32.xlu0 %v65_v48, %s7039_s26  ;;  %v3172_v48 = vld [vmem:[%s12205_s1 + $0x28] sm:$0xff] }
 0x157   :  { %6607 = vmatpush3.msra.mxu0 %v3173_v49  ;;  %v6158_v49 = vld [vmem:[%s12204_s0 + $0x38] sm:$0xff] }
 0x158   :  { %v8033_v53 = vpop.permute.xlu1 %1021  ;;  %v8035_v44 = vpop.permute.xlu0 %1019  ;;  %6608 = vmatprep.subr.mxu0 %v3172_v48 }
 0x159   :  { %12328 = vst [vmem:[#allocation88_spill] sm:$0xff] %v8033_v53  ;;  %12329 = vst [vmem:[#allocation89_spill] sm:$0xff] %v8035_v44  ;;  %6609 = vmatpush3.msra.mxu0 %v3172_v48 }
 0x15a   :  { %1433 = vrot.lane.b32.xlu1 %v6030_v45, %s7040_s22  ;;  %1431 = vrot.lane.b32.xlu0 %v6029_v63, %s7040_s22  ;;  %v3170_v45 = vld [vmem:[%s12205_s1 + $0x18] sm:$0xff]  ;;  %v6157_v63 = vld [vmem:[%s12204_s0 + $0x30] sm:$0xff] }
 0x15b   :  { %6610 = vmatprep.subr.mxu0 %v3171_v57 }
 0x15c   :  { %v8042_v40 = vpop.permute.xlu1 %1025  ;;  %v8044_v6 = vpop.permute.xlu0 %1023  ;;  %6611 = vmatpush3.msra.mxu0 %v3171_v57  ;;  %v3168_v57 = vld [vmem:[%s12205_s1 + $0x8] sm:$0xff] }
 0x15d   :  { %12330 = vst [vmem:[#allocation90_spill] sm:$0xff] %v8042_v40  ;;  %12331 = vst [vmem:[#allocation91_spill] sm:$0xff] %v8044_v6  ;;  %6612 = vmatprep.subr.mxu0 %v3170_v45 }
 0x15e   :  { %1689 = vrot.lane.b32.xlu1 %v7355_v10, %s7041_s19  ;;  %1687 = vrot.lane.b32.xlu0 %v7360_v11, %s7041_s19  ;;  %v3169_v10 = vld [vmem:[%s12205_s1 + $0x10] sm:$0xff] }
 0x15f   :  { %v6031_v11 = vld [vmem:[%s12204_s0 + $0x31] sm:$0xff]  ;;  %6613 = vmatpush3.msra.mxu0 %v3170_v45  ;;  %v6222_v45 = vld [vmem:[%s12204_s0 + $0x39] sm:$0xff] }
 0x160   :  { %v8062_v48 = vpop.permute.xlu1 %1029  ;;  %v8064_v40 = vpop.permute.xlu0 %1027  ;;  %6614 = vmatprep.subr.mxu0 %v3169_v10 }
 0x161   :  { %12332 = vst [vmem:[#allocation92_spill] sm:$0xff] %v8062_v48  ;;  %12333 = vst [vmem:[#allocation93_spill] sm:$0xff] %v8064_v40  ;;  %6615 = vmatpush3.msra.mxu0 %v3169_v10  ;;  %v6095_v10 = vld [vmem:[%s12204_s0 + $0x32] sm:$0xff] }
 0x162   :  { %1945 = vrot.lane.b32.xlu1 %v6158_v49, %s7042_s8  ;;  %1943 = vrot.lane.b32.xlu0 %v6157_v63, %s7042_s8  ;;  %v3167_v49 = vld [vmem:[%s12205_s1] sm:$0xff] }
 0x163   :  { %6616 = vmatprep.subr.mxu0 %v3168_v57 }
 0x164   :  { %v8074_v6 = vpop.permute.xlu1 %1033  ;;  %v8076_v48 = vpop.permute.xlu0 %1031  ;;  %6617 = vmatpush3.msra.mxu0 %v3168_v57  ;;  %v6096_v57 = vld [vmem:[%s12204_s0 + $0x3a] sm:$0xff] }
 0x165   :  { %12334 = vst [vmem:[#allocation94_spill] sm:$0xff] %v8074_v6  ;;  %12335 = vst [vmem:[#allocation95_spill] sm:$0xff] %v8076_v48  ;;  %6618 = vmatprep.subr.mxu0 %v3167_v49 }
 0x166   :  { %1435 = vrot.lane.b32.xlu1 %v6031_v11, %s7040_s22  ;;  %2199 = vrot.lane.b32.xlu0 %v6031_v11, %s7043_s13 }
 0x167   :  { %6619 = vmatpush3.msra.mxu0 %v3167_v49  ;;  %v6160_v49 = vld [vmem:[%s12204_s0 + $0x50] sm:$0xff] }
 0x168   :  { %v8089_v63 = vpop.permute.xlu1 %1037  ;;  %v8091_v6 = vpop.permute.xlu0 %1035 }
 0x169   :  { %12336 = vst [vmem:[#allocation96_spill] sm:$0xff] %v8089_v63  ;;  %12337 = vst [vmem:[#allocation97_spill] sm:$0xff] %v8091_v6 }
 0x16a   :  { %2455 = vrot.lane.b32.xlu1 %v7376_v15, %s7044_s18  ;;  %2201 = vrot.lane.b32.xlu0 %v6222_v45, %s7043_s13 }
 0x16c   :  { %v8099_v11 = vpop.permute.xlu1 %1041  ;;  %v8101_v48 = vpop.permute.xlu0 %1039 }
 0x16d   :  { %12338 = vst [vmem:[#allocation98_spill] sm:$0xff] %v8099_v11  ;;  %12339 = vst [vmem:[#allocation99_spill] sm:$0xff] %v8101_v48  ;;  %v6287_v48 = vld [vmem:[%s12204_s0 + $0x4a] sm:$0xff] }
 0x16e   :  { %1691 = vrot.lane.b32.xlu1 %v6095_v10, %s7041_s19  ;;  %1437 = vrot.lane.b32.xlu0 %v6222_v45, %s7040_s22  ;;  %v6159_v45 = vld [vmem:[%s12204_s0 + $0x48] sm:$0xff] }
 0x170   :  { %v8108_v15 = vpop.permute.xlu1 %1045  ;;  %v8110_v63 = vpop.permute.xlu0 %1043 }
 0x171   :  { %12340 = vst [vmem:[#allocation100_spill] sm:$0xff] %v8108_v15  ;;  %12341 = vst [vmem:[#allocation101_spill] sm:$0xff] %v8110_v63 }
 0x172   :  { %1693 = vrot.lane.b32.xlu1 %v6096_v57, %s7041_s19  ;;  %2457 = vrot.lane.b32.xlu0 %v6096_v57, %s7044_s18  ;;  %v6033_v57 = vld [vmem:[%s12204_s0 + $0x49] sm:$0xff] }
 0x174   :  { %v8120_v10 = vpop.permute.xlu1 %1177  ;;  %v8122_v11 = vpop.permute.xlu0 %1175 }
 0x176   :  { %1949 = vrot.lane.b32.xlu1 %v6160_v49, %s7042_s8  ;;  %1947 = vrot.lane.b32.xlu0 %v6159_v45, %s7042_s8  ;;  %v6224_v49 = vld [vmem:[%s12204_s0 + $0x51] sm:$0xff] }
 0x178   :  { %v8129_v63 = vpop.permute.xlu1 %1181  ;;  %v8131_v15 = vpop.permute.xlu0 %1179 }
 0x17a   :  { %1439 = vrot.lane.b32.xlu1 %v6033_v57, %s7040_s22  ;;  %2203 = vrot.lane.b32.xlu0 %v6033_v57, %s7043_s13  ;;  %v6098_v57 = vld [vmem:[%s12204_s0 + $0x52] sm:$0xff] }
 0x17c   :  { %v8141_v45 = vpop.permute.xlu1 %1185  ;;  %v8143_v6 = vpop.permute.xlu0 %1183 }
 0x17e   :  { %2459 = vrot.lane.b32.xlu1 %v6287_v48, %s7044_s18  ;;  %2205 = vrot.lane.b32.xlu0 %v6224_v49, %s7043_s13 }
 0x180   :  { %v8147_v40 = vpop.permute.xlu1 %1189  ;;  %v8149_v53 = vpop.permute.xlu0 %1187 }
 0x182   :  { %1695 = vrot.lane.b32.xlu1 %v6287_v48, %s7041_s19  ;;  %1441 = vrot.lane.b32.xlu0 %v6224_v49, %s7040_s22  ;;  %v6161_v48 = vld [vmem:[%s12204_s0 + $0x60] sm:$0xff] }
 0x184   :  { %v8156_v44 = vpop.permute.xlu1 %1193  ;;  %v8158_v41 = vpop.permute.xlu0 %1191 }
 0x186   :  { %1697 = vrot.lane.b32.xlu1 %v6098_v57, %s7041_s19  ;;  %2461 = vrot.lane.b32.xlu0 %v6098_v57, %s7044_s18  ;;  %v6035_v57 = vld [vmem:[%s12204_s0 + $0x61] sm:$0xff] }
 0x188   :  { %v8168_v49 = vpop.permute.xlu1 %1197  ;;  %v8170_v36 = vpop.permute.xlu0 %1195 }
 0x18a   :  { %1953 = vrot.lane.b32.xlu1 %v6162_v52, %s7042_s8  ;;  %1951 = vrot.lane.b32.xlu0 %v6161_v48, %s7042_s8  ;;  %v6226_v52 = vld [vmem:[%s12204_s0 + $0x69] sm:$0xff] }
 0x18c   :  { %v8177_v62 = vpop.permute.xlu1 %1201  ;;  %v8179_v37 = vpop.permute.xlu0 %1199 }
 0x18e   :  { %1443 = vrot.lane.b32.xlu1 %v6035_v57, %s7040_s22  ;;  %2207 = vrot.lane.b32.xlu0 %v6035_v57, %s7043_s13  ;;  %v6100_v57 = vld [vmem:[%s12204_s0 + $0x6a] sm:$0xff] }
 0x190   :  { %v8189_v48 = vpop.permute.xlu1 %1205  ;;  %v8191_v32 = vpop.permute.xlu0 %1203 }
 0x191   :  { %12342 = vst [vmem:[#allocation102_spill] sm:$0xff] %v8189_v48  ;;  %12343 = vst [vmem:[#allocation103_spill] sm:$0xff] %v8191_v32 }
 0x192   :  { %2463 = vrot.lane.b32.xlu1 %v6289_v56, %s7044_s18  ;;  %2209 = vrot.lane.b32.xlu0 %v6226_v52, %s7043_s13 }
 0x194   :  { %v8195_v22 = vpop.permute.xlu1 %1209  ;;  %v8197_v33 = vpop.permute.xlu0 %1207 }
 0x195   :  { %12344 = vst [vmem:[#allocation104_spill] sm:$0xff] %v8195_v22  ;;  %12345 = vst [vmem:[#allocation105_spill] sm:$0xff] %v8197_v33  ;;  %v6164_v22 = vld [vmem:[%s12204_s0 + $0x80] sm:$0xff] }
 0x196   :  { %1699 = vrot.lane.b32.xlu1 %v6289_v56, %s7041_s19  ;;  %1445 = vrot.lane.b32.xlu0 %v6226_v52, %s7040_s22  ;;  %v6163_v56 = vld [vmem:[%s12204_s0 + $0x78] sm:$0xff] }
 0x198   :  { %v8204_v38 = vpop.permute.xlu1 %1213  ;;  %v8206_v28 = vpop.permute.xlu0 %1211 }
 0x199   :  { %12346 = vst [vmem:[#allocation106_spill] sm:$0xff] %v8204_v38  ;;  %12347 = vst [vmem:[#allocation107_spill] sm:$0xff] %v8206_v28 }
 0x19a   :  { %1701 = vrot.lane.b32.xlu1 %v6100_v57, %s7041_s19  ;;  %2465 = vrot.lane.b32.xlu0 %v6100_v57, %s7044_s18  ;;  %v6037_v57 = vld [vmem:[%s12204_s0 + $0x79] sm:$0xff] }
 0x19c   :  { %v8216_v52 = vpop.permute.xlu1 %1217  ;;  %v8218_v33 = vpop.permute.xlu0 %1215 }
 0x19d   :  { %12348 = vst [vmem:[#allocation108_spill] sm:$0xff] %v8216_v52  ;;  %12349 = vst [vmem:[#allocation109_spill] sm:$0xff] %v8218_v33  ;;  %v6291_v52 = vld [vmem:[%s12204_s0 + $0x7a] sm:$0xff] }
 0x19e   :  { %1957 = vrot.lane.b32.xlu1 %v6164_v22, %s7042_s8  ;;  %1955 = vrot.lane.b32.xlu0 %v6163_v56, %s7042_s8  ;;  %v6228_v22 = vld [vmem:[%s12204_s0 + $0x81] sm:$0xff] }
 0x1a0   :  { %v8225_v38 = vpop.permute.xlu1 %1221  ;;  %v8227_v28 = vpop.permute.xlu0 %1219 }
 0x1a1   :  { %12350 = vst [vmem:[#allocation110_spill] sm:$0xff] %v8225_v38  ;;  %12351 = vst [vmem:[#allocation111_spill] sm:$0xff] %v8227_v28 }
 0x1a2   :  { %1447 = vrot.lane.b32.xlu1 %v6037_v57, %s7040_s22  ;;  %2211 = vrot.lane.b32.xlu0 %v6037_v57, %s7043_s13  ;;  %v6102_v57 = vld [vmem:[%s12204_s0 + $0x82] sm:$0xff] }
 0x1a4   :  { %v8237_v56 = vpop.permute.xlu1 %1225  ;;  %v8239_v33 = vpop.permute.xlu0 %1223 }
 0x1a5   :  { %12352 = vst [vmem:[#allocation112_spill] sm:$0xff] %v8237_v56  ;;  %12353 = vst [vmem:[#allocation113_spill] sm:$0xff] %v8239_v33 }
 0x1a6   :  { %2467 = vrot.lane.b32.xlu1 %v6291_v52, %s7044_s18  ;;  %2213 = vrot.lane.b32.xlu0 %v6228_v22, %s7043_s13 }
 0x1a8   :  { %v8243_v38 = vpop.permute.xlu1 %1229  ;;  %v8245_v28 = vpop.permute.xlu0 %1227 }
 0x1a9   :  { %12354 = vst [vmem:[#allocation114_spill] sm:$0xff] %v8243_v38  ;;  %12355 = vst [vmem:[#allocation115_spill] sm:$0xff] %v8245_v28  ;;  %v6166_v38 = vld [vmem:[%s12204_s0 + $0x98] sm:$0xff] }
 0x1aa   :  { %1703 = vrot.lane.b32.xlu1 %v6291_v52, %s7041_s19  ;;  %1449 = vrot.lane.b32.xlu0 %v6228_v22, %s7040_s22  ;;  %v6165_v52 = vld [vmem:[%s12204_s0 + $0x90] sm:$0xff] }
 0x1ac   :  { %v8252_v7 = vpop.permute.xlu1 %1233  ;;  %v8254_v56 = vpop.permute.xlu0 %1231 }
 0x1ad   :  { %12356 = vst [vmem:[#allocation116_spill] sm:$0xff] %v8252_v7  ;;  %12357 = vst [vmem:[#allocation117_spill] sm:$0xff] %v8254_v56 }
 0x1ae   :  { %1705 = vrot.lane.b32.xlu1 %v6102_v57, %s7041_s19  ;;  %2469 = vrot.lane.b32.xlu0 %v6102_v57, %s7044_s18  ;;  %v6039_v57 = vld [vmem:[%s12204_s0 + $0x91] sm:$0xff] }
 0x1b0   :  { %v8264_v22 = vpop.permute.xlu1 %1237  ;;  %v8266_v28 = vpop.permute.xlu0 %1235 }
 0x1b1   :  { %12358 = vst [vmem:[#allocation118_spill] sm:$0xff] %v8264_v22  ;;  %12359 = vst [vmem:[#allocation119_spill] sm:$0xff] %v8266_v28  ;;  %v6293_v22 = vld [vmem:[%s12204_s0 + $0x92] sm:$0xff] }
 0x1b2   :  { %1961 = vrot.lane.b32.xlu1 %v6166_v38, %s7042_s8  ;;  %1959 = vrot.lane.b32.xlu0 %v6165_v52, %s7042_s8  ;;  %v6230_v38 = vld [vmem:[%s12204_s0 + $0x99] sm:$0xff] }
 0x1b4   :  { %v8273_v7 = vpop.permute.xlu1 %1241  ;;  %v8275_v56 = vpop.permute.xlu0 %1239 }
 0x1b5   :  { %12360 = vst [vmem:[#allocation120_spill] sm:$0xff] %v8273_v7  ;;  %12361 = vst [vmem:[#allocation121_spill] sm:$0xff] %v8275_v56 }
 0x1b6   :  { %1451 = vrot.lane.b32.xlu1 %v6039_v57, %s7040_s22  ;;  %2215 = vrot.lane.b32.xlu0 %v6039_v57, %s7043_s13  ;;  %v6104_v57 = vld [vmem:[%s12204_s0 + $0x9a] sm:$0xff] }
 0x1b8   :  { %v8285_v52 = vpop.permute.xlu1 %1245  ;;  %v8287_v28 = vpop.permute.xlu0 %1243 }
 0x1b9   :  { %12362 = vst [vmem:[#allocation122_spill] sm:$0xff] %v8285_v52  ;;  %12363 = vst [vmem:[#allocation123_spill] sm:$0xff] %v8287_v28  ;;  %v6106_v28 = vld [vmem:[%s12204_s0 + $0xb2] sm:$0xff] }
 0x1ba   :  { %2471 = vrot.lane.b32.xlu1 %v6293_v22, %s7044_s18  ;;  %2217 = vrot.lane.b32.xlu0 %v6230_v38, %s7043_s13 }
 0x1bc   :  { %v8291_v7 = vpop.permute.xlu1 %1249  ;;  %v8293_v56 = vpop.permute.xlu0 %1247 }
 0x1bd   :  { %12364 = vst [vmem:[#allocation124_spill] sm:$0xff] %v8291_v7  ;;  %12365 = vst [vmem:[#allocation125_spill] sm:$0xff] %v8293_v56  ;;  %v6168_v7 = vld [vmem:[%s12204_s0 + $0xb0] sm:$0xff] }
 0x1be   :  { %1707 = vrot.lane.b32.xlu1 %v6293_v22, %s7041_s19  ;;  %1453 = vrot.lane.b32.xlu0 %v6230_v38, %s7040_s22  ;;  %v6167_v22 = vld [vmem:[%s12204_s0 + $0xa8] sm:$0xff] }
 0x1c0   :  { %v8300_v33 = vpop.permute.xlu1 %1253  ;;  %v8302_v52 = vpop.permute.xlu0 %1251 }
 0x1c1   :  { %12366 = vst [vmem:[#allocation126_spill] sm:$0xff] %v8300_v33  ;;  %12367 = vst [vmem:[#allocation127_spill] sm:$0xff] %v8302_v52 }
 0x1c2   :  { %1709 = vrot.lane.b32.xlu1 %v6104_v57, %s7041_s19  ;;  %2473 = vrot.lane.b32.xlu0 %v6104_v57, %s7044_s18  ;;  %v6041_v57 = vld [vmem:[%s12204_s0 + $0xa9] sm:$0xff] }
 0x1c4   :  { %v8312_v38 = vpop.permute.xlu1 %1257  ;;  %v8314_v56 = vpop.permute.xlu0 %1255 }
 0x1c5   :  { %12368 = vst [vmem:[#allocation128_spill] sm:$0xff] %v8312_v38  ;;  %12369 = vst [vmem:[#allocation129_spill] sm:$0xff] %v8314_v56  ;;  %v6295_v38 = vld [vmem:[%s12204_s0 + $0xaa] sm:$0xff] }
 0x1c6   :  { %1965 = vrot.lane.b32.xlu1 %v6168_v7, %s7042_s8  ;;  %1963 = vrot.lane.b32.xlu0 %v6167_v22, %s7042_s8  ;;  %v6232_v7 = vld [vmem:[%s12204_s0 + $0xb1] sm:$0xff] }
 0x1c8   :  { %v8321_v33 = vpop.permute.xlu1 %1261  ;;  %v8323_v52 = vpop.permute.xlu0 %1259 }
 0x1c9   :  { %12370 = vst [vmem:[#allocation130_spill] sm:$0xff] %v8321_v33  ;;  %12371 = vst [vmem:[#allocation131_spill] sm:$0xff] %v8323_v52 }
 0x1ca   :  { %1455 = vrot.lane.b32.xlu1 %v6041_v57, %s7040_s22  ;;  %2219 = vrot.lane.b32.xlu0 %v6041_v57, %s7043_s13  ;;  %v21_v57 = vld [vmem:[%s12204_s0] sm:$0xff] }
 0x1cb   :  { %v2648_v30 = vsel %vm2647_vm0, %v21_v57, %v7312_v61 }
 0x1cc   :  { %v1434_v22 = vpop.permute.xlu1 %1433  ;;  %v1432_v56 = vpop.permute.xlu0 %1431 }
 0x1ce   :  { %2475 = vrot.lane.b32.xlu1 %v6295_v38, %s7044_s18  ;;  %2221 = vrot.lane.b32.xlu0 %v6232_v7, %s7043_s13 }
 0x1d0   :  { %v1690_v33 = vpop.permute.xlu1 %1689  ;;  %v1688_v52 = vpop.permute.xlu0 %1687 }
 0x1d2   :  { %1711 = vrot.lane.b32.xlu1 %v6295_v38, %s7041_s19  ;;  %1457 = vrot.lane.b32.xlu0 %v6232_v7, %s7040_s22  ;;  %v2713_v38 = vsel %vm2712_vm1, %v2648_v30, %v7705_v50  ;;  %v6170_v7 = vld [vmem:[%s12204_s0 + $0xc8] sm:$0xff] }
 0x1d3   :  { %v2778_v61 = vsel %vm2777_vm2, %v2713_v38, %v8122_v11  ;;  %v22_v50 = vld [vmem:[%s12204_s0 + $0x8] sm:$0xff] }
 0x1d4   :  { %v1946_v29 = vpop.permute.xlu1 %1945  ;;  %v1944_v48 = vpop.permute.xlu0 %1943  ;;  %v6043_v11 = vld [vmem:[%s12204_s0 + $0xc1] sm:$0xff] }
 0x1d6   :  { %1713 = vrot.lane.b32.xlu1 %v6106_v28, %s7041_s19  ;;  %2477 = vrot.lane.b32.xlu0 %v6106_v28, %s7044_s18  ;;  %v2843_v28 = vsel %vm2842_vm3, %v2778_v61, %v1432_v56 }
 0x1d7   :  { %v2908_v30 = vsel %vm2907_vm4, %v2843_v28, %v1688_v52 }
 0x1d8   :  { %v1436_v57 = vpop.permute.xlu1 %1435  ;;  %v2200_v32 = vpop.permute.xlu0 %2199  ;;  %v2973_v19 = vsel %vm2972_vm5, %v2908_v30, %v1944_v48 }
 0x1d9   :  { %v3038_v56 = vsel %vm3037_vm6, %v2973_v19, %v2200_v32  ;;  %v6297_v32 = vld [vmem:[%s12204_s0 + $0xc2] sm:$0xff] }
 0x1da   :  { %1969 = vrot.lane.b32.xlu1 %v6170_v7, %s7042_s8  ;;  %1967 = vrot.lane.b32.xlu0 %v6169_v24, %s7042_s8  ;;  %v2649_v24 = vsel %vm2647_vm0, %v22_v50, %v7324_v1  ;;  %v6234_v19 = vld [vmem:[%s12204_s0 + $0xc9] sm:$0xff] }
 0x1db   :  { %v2714_v48 = vsel %vm2712_vm1, %v2649_v24, %v7703_v47  ;;  %v6172_v24 = vld [vmem:[%s12204_s0 + $0xe0] sm:$0xff] }
 0x1dc   :  { %v2456_v38 = vpop.permute.xlu1 %2455  ;;  %v2202_v61 = vpop.permute.xlu0 %2201  ;;  %v2779_v1 = vsel %vm2777_vm2, %v2714_v48, %v8120_v10  ;;  %v6171_v48 = vld [vmem:[%s12204_s0 + $0xd8] sm:$0xff] }
 0x1dd   :  { %v3103_v52 = vsel %vm3102_vm7, %v3038_v56, %v2456_v38  ;;  %v2844_v30 = vsel %vm2842_vm3, %v2779_v1, %v1434_v22 }
 0x1de   :  { %1459 = vrot.lane.b32.xlu1 %v6043_v11, %s7040_s22  ;;  %2223 = vrot.lane.b32.xlu0 %v6043_v11, %s7043_s13  ;;  %v2909_v50 = vsel %vm2907_vm4, %v2844_v30, %v1690_v33  ;;  %v6108_v33 = vld [vmem:[%s12204_s0 + $0xca] sm:$0xff]  ;;  %v6045_v30 = vld [vmem:[%s12204_s0 + $0xd9] sm:$0xff] }
 0x1df   :  { %6620 = vmatprep.mubr.msk.f32.mxu0 %vm3176_vm8, %v3103_v52  ;;  %v2974_v47 = vsel %vm2972_vm5, %v2909_v50, %v1946_v29  ;;  %v2650_v29 = vsel %vm2647_vm0, %v7740_v3, %v7310_v60 }
 0x1e0   :  { %v1692_v7 = vpop.permute.xlu1 %1691  ;;  %v1438_v28 = vpop.permute.xlu0 %1437  ;;  %v3039_v11 = vsel %vm3037_vm6, %v2974_v47, %v2202_v61  ;;  %v2715_v61 = vsel %vm2712_vm1, %v2650_v29, %v7717_v14 }
 0x1e2   :  { %2479 = vrot.lane.b32.xlu1 %v6297_v32, %s7044_s18  ;;  %2225 = vrot.lane.b32.xlu0 %v6234_v19, %s7043_s13 }
 0x1e4   :  { %v1694_v56 = vpop.permute.xlu1 %1693  ;;  %v2458_v38 = vpop.permute.xlu0 %2457 }
 0x1e5   :  { %v3104_v52 = vsel %vm3102_vm7, %v3039_v11, %v2458_v38  ;;  %v6299_v38 = vld [vmem:[%s12204_s0 + $0xda] sm:$0xff] }
 0x1e6   :  { %1715 = vrot.lane.b32.xlu1 %v6297_v32, %s7041_s19  ;;  %1461 = vrot.lane.b32.xlu0 %v6234_v19, %s7040_s22  ;;  %v2780_v32 = vsel %vm2777_vm2, %v2715_v61, %v8131_v15 }
 0x1e7   :  { %6621 = vmatmul.mubr.msk.f32.vlgmr.msra.gmra.mxu0 %vm3176_vm8, %v3104_v52  ;;  %v2845_v3 = vsel %vm2842_vm3, %v2780_v32, %v1436_v57  ;;  %v2651_v57 = vsel %vm2647_vm0, %v7745_v18, %v7322_v0  ;;  %v6236_v52 = vld [vmem:[%s12204_s0 + $0xe1] sm:$0xff] }
 0x1e8   :  { %v1950_v10 = vpop.permute.xlu1 %1949  ;;  %v1948_v22 = vpop.permute.xlu0 %1947  ;;  %v2910_v1 = vsel %vm2907_vm4, %v2845_v3, %v1692_v7  ;;  %v2716_v7 = vsel %vm2712_vm1, %v2651_v57, %v7715_v26  ;;  %v6174_v3 = vld [vmem:[%s12204_s0 + $0xf8] sm:$0xff] }
 0x1e9   :  { %v2975_v14 = vsel %vm2972_vm5, %v2910_v1, %v1948_v22  ;;  %v2781_v0 = vsel %vm2777_vm2, %v2716_v7, %v8129_v63  ;;  %v6110_v63 = vld [vmem:[%s12204_s0 + $0xe2] sm:$0xff]  ;;  %v6173_v1 = vld [vmem:[%s12204_s0 + $0xf0] sm:$0xff] }
 0x1ea   :  { %1717 = vrot.lane.b32.xlu1 %v6108_v33, %s7041_s19  ;;  %2481 = vrot.lane.b32.xlu0 %v6108_v33, %s7044_s18  ;;  %v2846_v22 = vsel %vm2842_vm3, %v2781_v0, %v1438_v28 }
 0x1eb   :  { %v2911_v29 = vsel %vm2907_vm4, %v2846_v22, %v1694_v56 }
 0x1ec   :  { %v1440_v19 = vpop.permute.xlu1 %1439  ;;  %v2204_v60 = vpop.permute.xlu0 %2203  ;;  %v2976_v26 = vsel %vm2972_vm5, %v2911_v29, %v1950_v10  ;;  %v2652_v10 = vsel %vm2647_vm0, %v7763_v59, %v7336_v5 }
 0x1ed   :  { %v3040_v50 = vsel %vm3037_vm6, %v2975_v14, %v2204_v60  ;;  %v2717_v60 = vsel %vm2712_vm1, %v2652_v10, %v7729_v34 }
 0x1ee   :  { %1973 = vrot.lane.b32.xlu1 %v6172_v24, %s7042_s8  ;;  %1971 = vrot.lane.b32.xlu0 %v6171_v48, %s7042_s8  ;;  %v2782_v14 = vsel %vm2777_vm2, %v2717_v60, %v8143_v6 }
 0x1ef   :  { %v2847_v59 = vsel %vm2842_vm3, %v2782_v14, %v1440_v19  ;;  %v2653_v19 = vsel %vm2647_vm0, %v7758_v23, %v7334_v4 }
 0x1f0   :  { %v2460_v47 = vpop.permute.xlu1 %2459  ;;  %v2206_v15 = vpop.permute.xlu0 %2205  ;;  %v2718_v7 = vsel %vm2712_vm1, %v2653_v19, %v7727_v55 }
 0x1f1   :  { %v3105_v11 = vsel %vm3102_vm7, %v3040_v50, %v2460_v47  ;;  %v3041_v61 = vsel %vm3037_vm6, %v2976_v26, %v2206_v15  ;;  %v6047_v47 = vld [vmem:[%s12204_s0 + $0xf1] sm:$0xff]  ;;  %v2783_v4 = vsel %vm2777_vm2, %v2718_v7, %v8141_v45  ;;  %v6112_v45 = vld [vmem:[%s12204_s0 + $0xfa] sm:$0xff] }
 0x1f2   :  { %1463 = vrot.lane.b32.xlu1 %v6045_v30, %s7040_s22  ;;  %2227 = vrot.lane.b32.xlu0 %v6045_v30, %s7043_s13 }
 0x1f3   :  { %6623 = vmatprep.mubr.msk.f32.mxu0 %vm3176_vm8, %v3105_v11 }
 0x1f4   :  { %v1696_v18 = vpop.permute.xlu1 %1695  ;;  %v1442_v33 = vpop.permute.xlu0 %1441 }
 0x1f5   :  { %v2912_v50 = vsel %vm2907_vm4, %v2847_v59, %v1696_v18  ;;  %v2848_v18 = vsel %vm2842_vm3, %v2783_v4, %v1442_v33 }
 0x1f6   :  { %2483 = vrot.lane.b32.xlu1 %v6299_v38, %s7044_s18  ;;  %2229 = vrot.lane.b32.xlu0 %v6236_v52, %s7043_s13 }
 0x1f8   :  { %v1698_v24 = vpop.permute.xlu1 %1697  ;;  %v2462_v48 = vpop.permute.xlu0 %2461 }
 0x1f9   :  { %v3106_v32 = vsel %vm3102_vm7, %v3041_v61, %v2462_v48  ;;  %v2913_v22 = vsel %vm2907_vm4, %v2848_v18, %v1698_v24  ;;  %v6178_v18 = vld [vmem:[%s12204_s0 + $0x128] sm:$0xff] }
 0x1fa   :  { %1719 = vrot.lane.b32.xlu1 %v6299_v38, %s7041_s19  ;;  %1465 = vrot.lane.b32.xlu0 %v6236_v52, %s7040_s22  ;;  %v6301_v38 = vld [vmem:[%s12204_s0 + $0xf2] sm:$0xff] }
 0x1fb   :  { %6624 = vmatmul.mubr.msk.f32.gmra.mxu0 %vm3176_vm8, %v3106_v32  ;;  %v6238_v52 = vld [vmem:[%s12204_s0 + $0xf9] sm:$0xff]  ;;  %v2654_v32 = vsel %vm2647_vm0, %v7781_v43, %v7348_v9 }
 0x1fc   :  { %v1954_v28 = vpop.permute.xlu1 %1953  ;;  %v1952_v56 = vpop.permute.xlu0 %1951 }
 0x1fd   :  { %v2977_v34 = vsel %vm2972_vm5, %v2912_v50, %v1952_v56  ;;  %v2978_v55 = vsel %vm2972_vm5, %v2913_v22, %v1954_v28  ;;  %v6176_v28 = vld [vmem:[%s12204_s0 + $0x110] sm:$0xff]  ;;  %v6175_v56 = vld [vmem:[%s12204_s0 + $0x108] sm:$0xff]  ;;  %v6177_v22 = vld [vmem:[%s12204_s0 + $0x120] sm:$0xff] }
 0x1fe   :  { %1721 = vrot.lane.b32.xlu1 %v6110_v63, %s7041_s19  ;;  %2485 = vrot.lane.b32.xlu0 %v6110_v63, %s7044_s18  ;;  %v2719_v63 = vsel %vm2712_vm1, %v2654_v32, %v7735_v58 }
 0x1ff   :  { %v2784_v10 = vsel %vm2777_vm2, %v2719_v63, %v8149_v53 }
 0x200   :  { %v1444_v30 = vpop.permute.xlu1 %1443  ;;  %v2208_v5 = vpop.permute.xlu0 %2207 }
 0x201   :  { %v3042_v15 = vsel %vm3037_vm6, %v2977_v34, %v2208_v5  ;;  %v2849_v43 = vsel %vm2842_vm3, %v2784_v10, %v1444_v30  ;;  %v2655_v30 = vsel %vm2647_vm0, %v7776_v54, %v7346_v8  ;;  %v6303_v34 = vld [vmem:[%s12204_s0 + $0x10a] sm:$0xff] }
 0x202   :  { %1977 = vrot.lane.b32.xlu1 %v6174_v3, %s7042_s8  ;;  %1975 = vrot.lane.b32.xlu0 %v6173_v1, %s7042_s8  ;;  %v6049_v1 = vld [vmem:[%s12204_s0 + $0x109] sm:$0xff]  ;;  %v2720_v50 = vsel %vm2712_vm1, %v2655_v30, %v7733_v39 }
 0x203   :  { %v2785_v8 = vsel %vm2777_vm2, %v2720_v50, %v8147_v40  ;;  %v6114_v40 = vld [vmem:[%s12204_s0 + $0x112] sm:$0xff] }
 0x204   :  { %v2464_v11 = vpop.permute.xlu1 %2463  ;;  %v2210_v6 = vpop.permute.xlu0 %2209 }
 0x205   :  { %v3107_v57 = vsel %vm3102_vm7, %v3042_v15, %v2464_v11  ;;  %v3043_v29 = vsel %vm3037_vm6, %v2978_v55, %v2210_v6 }
 0x206   :  { %1467 = vrot.lane.b32.xlu1 %v6047_v47, %s7040_s22  ;;  %2231 = vrot.lane.b32.xlu0 %v6047_v47, %s7043_s13  ;;  %v6240_v47 = vld [vmem:[%s12204_s0 + $0x111] sm:$0xff] }
 0x207   :  { %6626 = vmatprep.mubr.msk.f32.mxu0 %vm3176_vm8, %v3107_v57 }
 0x208   :  { %v1700_v23 = vpop.permute.xlu1 %1699  ;;  %v1446_v0 = vpop.permute.xlu0 %1445 }
 0x209   :  { %v2914_v3 = vsel %vm2907_vm4, %v2849_v43, %v1700_v23  ;;  %v2850_v11 = vsel %vm2842_vm3, %v2785_v8, %v1446_v0  ;;  %v2656_v23 = vsel %vm2647_vm0, %v7797_v27, %v7364_v13 }
 0x20a   :  { %2487 = vrot.lane.b32.xlu1 %v6301_v38, %s7044_s18  ;;  %2233 = vrot.lane.b32.xlu0 %v6238_v52, %s7043_s13  ;;  %v2721_v0 = vsel %vm2712_vm1, %v2656_v23, %v7753_v42 }
 0x20b   :  { %v2786_v55 = vsel %vm2777_vm2, %v2721_v0, %v8158_v41 }
 0x20c   :  { %v1702_v26 = vpop.permute.xlu1 %1701  ;;  %v2466_v61 = vpop.permute.xlu0 %2465 }
 0x20d   :  { %v3108_v48 = vsel %vm3102_vm7, %v3043_v29, %v2466_v61  ;;  %v2915_v6 = vsel %vm2907_vm4, %v2850_v11, %v1702_v26  ;;  %v6051_v61 = vld [vmem:[%s12204_s0 + $0x121] sm:$0xff] }
 0x20e   :  { %1723 = vrot.lane.b32.xlu1 %v6301_v38, %s7041_s19  ;;  %1469 = vrot.lane.b32.xlu0 %v6238_v52, %s7040_s22 }
 0x20f   :  { %6627 = vmatmul.mubr.msk.f32.gmra.mxu0 %vm3176_vm8, %v3108_v48 }
 0x210   :  { %v1958_v33 = vpop.permute.xlu1 %1957  ;;  %v1956_v24 = vpop.permute.xlu0 %1955 }
 0x211   :  { %v2979_v58 = vsel %vm2972_vm5, %v2914_v3, %v1956_v24  ;;  %v2980_v39 = vsel %vm2972_vm5, %v2915_v6, %v1958_v33  ;;  %v7002_v24 = vld [vmem:[%s12204_s0 + $0x68] sm:$0xff]  ;;  %v6053_v6 = vld [vmem:[%s12204_s0 + $0x139] sm:$0xff] }
 0x212   :  { %1725 = vrot.lane.b32.xlu1 %v6112_v45, %s7041_s19  ;;  %2489 = vrot.lane.b32.xlu0 %v6112_v45, %s7044_s18  ;;  %v2657_v32 = vsel %vm2647_vm0, %v7002_v24, %v7362_v12 }
 0x213   :  { %v2722_v63 = vsel %vm2712_vm1, %v2657_v32, %v7751_v31 }
 0x214   :  { %v1448_v60 = vpop.permute.xlu1 %1447  ;;  %v2212_v9 = vpop.permute.xlu0 %2211  ;;  %v2787_v12 = vsel %vm2777_vm2, %v2722_v63, %v8156_v44  ;;  %v6116_v44 = vld [vmem:[%s12204_s0 + $0x12a] sm:$0xff] }
 0x215   :  { %v3044_v14 = vsel %vm3037_vm6, %v2979_v58, %v2212_v9  ;;  %v2851_v27 = vsel %vm2842_vm3, %v2786_v55, %v1448_v60 }
 0x216   :  { %1981 = vrot.lane.b32.xlu1 %v6176_v28, %s7042_s8  ;;  %1979 = vrot.lane.b32.xlu0 %v6175_v56, %s7042_s8  ;;  %v6305_v28 = vld [vmem:[%s12204_s0 + $0x122] sm:$0xff] }
 0x217   :  { %v6242_v56 = vld [vmem:[%s12204_s0 + $0x129] sm:$0xff] }
 0x218   :  { %v2468_v5 = vpop.permute.xlu1 %2467  ;;  %v2214_v53 = vpop.permute.xlu0 %2213 }
 0x219   :  { %v3109_v59 = vsel %vm3102_vm7, %v3044_v14, %v2468_v5  ;;  %v3045_v57 = vsel %vm3037_vm6, %v2980_v39, %v2214_v53 }
 0x21a   :  { %1471 = vrot.lane.b32.xlu1 %v6049_v1, %s7040_s22  ;;  %2235 = vrot.lane.b32.xlu0 %v6049_v1, %s7043_s13 }
 0x21b   :  { %6629 = vmatprep.mubr.msk.f32.mxu0 %vm3176_vm8, %v3109_v59  ;;  %v7003_v59 = vld [vmem:[%s12204_s0 + $0x78] sm:$0xff] }
 0x21c   :  { %v1704_v54 = vpop.permute.xlu1 %1703  ;;  %v1450_v15 = vpop.permute.xlu0 %1449  ;;  %v2658_v30 = vsel %vm2647_vm0, %v7003_v59, %v7380_v17 }
 0x21d   :  { %v2916_v26 = vsel %vm2907_vm4, %v2851_v27, %v1704_v54  ;;  %v2852_v9 = vsel %vm2842_vm3, %v2787_v12, %v1450_v15  ;;  %v2723_v50 = vsel %vm2712_vm1, %v2658_v30, %v7771_v51 }
 0x21e   :  { %2491 = vrot.lane.b32.xlu1 %v6303_v34, %s7044_s18  ;;  %2237 = vrot.lane.b32.xlu0 %v6240_v47, %s7043_s13  ;;  %v2788_v8 = vsel %vm2777_vm2, %v2723_v50, %v8170_v36 }
 0x220   :  { %v1706_v19 = vpop.permute.xlu1 %1705  ;;  %v2470_v7 = vpop.permute.xlu0 %2469 }
 0x221   :  { %v3110_v38 = vsel %vm3102_vm7, %v3045_v57, %v2470_v7  ;;  %v2917_v43 = vsel %vm2907_vm4, %v2852_v9, %v1706_v19  ;;  %v7004_v7 = vld [vmem:[%s12204_s0 + $0x80] sm:$0xff]  ;;  %v7006_v9 = vld [vmem:[%s12204_s0 + $0x98] sm:$0xff] }
 0x222   :  { %1727 = vrot.lane.b32.xlu1 %v6303_v34, %s7041_s19  ;;  %1473 = vrot.lane.b32.xlu0 %v6240_v47, %s7040_s22  ;;  %v6180_v34 = vld [vmem:[%s12204_s0 + $0x140] sm:$0xff]  ;;  %v6179_v47 = vld [vmem:[%s12204_s0 + $0x138] sm:$0xff] }
 0x223   :  { %6630 = vmatmul.mubr.msk.f32.gmra.mxu0 %vm3176_vm8, %v3110_v38  ;;  %v2659_v38 = vsel %vm2647_vm0, %v7004_v7, %v7378_v16 }
 0x224   :  { %v1962_v52 = vpop.permute.xlu1 %1961  ;;  %v1960_v4 = vpop.permute.xlu0 %1959 }
 0x225   :  { %v2981_v42 = vsel %vm2972_vm5, %v2916_v26, %v1960_v4  ;;  %v2982_v31 = vsel %vm2972_vm5, %v2917_v43, %v1962_v52  ;;  %v6307_v52 = vld [vmem:[%s12204_s0 + $0x13a] sm:$0xff]  ;;  %v2661_v43 = vsel %vm2647_vm0, %v7006_v9, %v7391_v20  ;;  %v12379_v9 = vld [vmem:[#allocation105_spill] sm:$0xff] }
 0x226   :  { %1729 = vrot.lane.b32.xlu1 %v6114_v40, %s7041_s19  ;;  %2493 = vrot.lane.b32.xlu0 %v6114_v40, %s7044_s18  ;;  %v2724_v40 = vsel %vm2712_vm1, %v2659_v38, %v7769_v2  ;;  %v6244_v4 = vld [vmem:[%s12204_s0 + $0x141] sm:$0xff]  ;;  %v6057_v38 = vld [vmem:[%s12204_s0 + $0x169] sm:$0xff] }
 0x227   :  { %v2789_v16 = vsel %vm2777_vm2, %v2724_v40, %v8168_v49  ;;  %v6118_v49 = vld [vmem:[%s12204_s0 + $0x142] sm:$0xff] }
 0x228   :  { %v1452_v29 = vpop.permute.xlu1 %1451  ;;  %v2216_v13 = vpop.permute.xlu0 %2215 }
 0x229   :  { %v3046_v48 = vsel %vm3037_vm6, %v2981_v42, %v2216_v13  ;;  %v2853_v15 = vsel %vm2842_vm3, %v2788_v8, %v1452_v29  ;;  %v7007_v8 = vld [vmem:[%s12204_s0 + $0xa8] sm:$0xff] }
 0x22a   :  { %1985 = vrot.lane.b32.xlu1 %v6178_v18, %s7042_s8  ;;  %1983 = vrot.lane.b32.xlu0 %v6177_v22, %s7042_s8 }
 0x22c   :  { %v2472_v45 = vpop.permute.xlu1 %2471  ;;  %v2218_v41 = vpop.permute.xlu0 %2217 }
 0x22d   :  { %v3111_v33 = vsel %vm3102_vm7, %v3046_v48, %v2472_v45  ;;  %v3047_v3 = vsel %vm3037_vm6, %v2982_v31, %v2218_v41  ;;  %v6182_v41 = vld [vmem:[%s12204_s0 + $0x158] sm:$0xff]  ;;  %v2726_v31 = vsel %vm2712_vm1, %v2661_v43, %v7787_v46 }
 0x22e   :  { %1475 = vrot.lane.b32.xlu1 %v6051_v61, %s7040_s22  ;;  %2239 = vrot.lane.b32.xlu0 %v6051_v61, %s7043_s13  ;;  %v7005_v61 = vld [vmem:[%s12204_s0 + $0x90] sm:$0xff]  ;;  %v2791_v20 = vsel %vm2777_vm2, %v2726_v31, %v8177_v62  ;;  %v6120_v62 = vld [vmem:[%s12204_s0 + $0x15a] sm:$0xff] }
 0x22f   :  { %6632 = vmatprep.mubr.msk.f32.mxu0 %vm3176_vm8, %v3111_v33  ;;  %v2660_v48 = vsel %vm2647_vm0, %v7005_v61, %v7393_v21  ;;  %v6181_v33 = vld [vmem:[%s12204_s0 + $0x150] sm:$0xff] }
 0x230   :  { %v1708_v10 = vpop.permute.xlu1 %1707  ;;  %v1454_v60 = vpop.permute.xlu0 %1453  ;;  %v2725_v45 = vsel %vm2712_vm1, %v2660_v48, %v7789_v35 }
 0x231   :  { %v2918_v11 = vsel %vm2907_vm4, %v2853_v15, %v1708_v10  ;;  %v2854_v18 = vsel %vm2842_vm3, %v2789_v16, %v1454_v60  ;;  %v2790_v24 = vsel %vm2777_vm2, %v2725_v45, %v8179_v37 }
 0x232   :  { %2495 = vrot.lane.b32.xlu1 %v6305_v28, %s7044_s18  ;;  %2241 = vrot.lane.b32.xlu0 %v6242_v56, %s7043_s13 }
 0x234   :  { %v1710_v58 = vpop.permute.xlu1 %1709  ;;  %v2474_v1 = vpop.permute.xlu0 %2473 }
 0x235   :  { %v3112_v14 = vsel %vm3102_vm7, %v3047_v3, %v2474_v1  ;;  %v2919_v22 = vsel %vm2907_vm4, %v2854_v18, %v1710_v58  ;;  %v6309_v3 = vld [vmem:[%s12204_s0 + $0x152] sm:$0xff] }
 0x236   :  { %1731 = vrot.lane.b32.xlu1 %v6305_v28, %s7041_s19  ;;  %1477 = vrot.lane.b32.xlu0 %v6242_v56, %s7040_s22  ;;  %v6055_v56 = vld [vmem:[%s12204_s0 + $0x151] sm:$0xff]  ;;  %v6246_v58 = vld [vmem:[%s12204_s0 + $0x159] sm:$0xff] }
 0x237   :  { %6633 = vmatmul.mubr.msk.f32.gmra.mxu0 %vm3176_vm8, %v3112_v14 }
 0x238   :  { %v1966_v5 = vpop.permute.xlu1 %1965  ;;  %v1964_v53 = vpop.permute.xlu0 %1963 }
 0x239   :  { %v2983_v51 = vsel %vm2972_vm5, %v2918_v11, %v1964_v53  ;;  %v2984_v2 = vsel %vm2972_vm5, %v2919_v22, %v1966_v5  ;;  %v6184_v11 = vld [vmem:[%s12204_s0 + $0x170] sm:$0xff]  ;;  %v12375_v22 = vld [vmem:[#allocation52_spill] sm:$0xff] }
 0x23a   :  { %1733 = vrot.lane.b32.xlu1 %v6116_v44, %s7041_s19  ;;  %2497 = vrot.lane.b32.xlu0 %v6116_v44, %s7044_s18 }
 0x23c   :  { %v1456_v54 = vpop.permute.xlu1 %1455  ;;  %v2220_v17 = vpop.permute.xlu0 %2219 }
 0x23d   :  { %v3048_v39 = vsel %vm3037_vm6, %v2983_v51, %v2220_v17  ;;  %v2855_v63 = vsel %vm2842_vm3, %v2790_v24, %v1456_v54  ;;  %v2662_v54 = vsel %vm2647_vm0, %v7007_v8, %v7405_v25  ;;  %v12372_v17 = vld [vmem:[#allocation53_spill] sm:$0xff]  ;;  %v6183_v51 = vld [vmem:[%s12204_s0 + $0x168] sm:$0xff] }
 0x23e   :  { %1989 = vrot.lane.b32.xlu1 %v6180_v34, %s7042_s8  ;;  %1987 = vrot.lane.b32.xlu0 %v6179_v47, %s7042_s8  ;;  %v2727_v15 = vsel %vm2712_vm1, %v2662_v54, %v12372_v17  ;;  %v6250_v8 = vld [vmem:[%s12204_s0 + $0x189] sm:$0xff] }
 0x23f   :  { %v12382_v54 = vld [vmem:[#allocation104_spill] sm:$0xff] }
 0x240   :  { %v2476_v57 = vpop.permute.xlu1 %2475  ;;  %v2222_v36 = vpop.permute.xlu0 %2221 }
 0x241   :  { %v3113_v19 = vsel %vm3102_vm7, %v3048_v39, %v2476_v57  ;;  %v3049_v55 = vsel %vm3037_vm6, %v2984_v2, %v2222_v36 }
 0x242   :  { %1479 = vrot.lane.b32.xlu1 %v6053_v6, %s7040_s22  ;;  %2243 = vrot.lane.b32.xlu0 %v6053_v6, %s7043_s13  ;;  %v12373_v6 = vld [vmem:[#allocation103_spill] sm:$0xff] }
 0x243   :  { %6635 = vmatprep.mubr.msk.f32.mxu0 %vm3176_vm8, %v3113_v19  ;;  %v2792_v39 = vsel %vm2777_vm2, %v2727_v15, %v12373_v6 }
 0x244   :  { %v1712_v23 = vpop.permute.xlu1 %1711  ;;  %v1458_v0 = vpop.permute.xlu0 %1457 }
 0x245   :  { %v2920_v28 = vsel %vm2907_vm4, %v2855_v63, %v1712_v23  ;;  %v2856_v44 = vsel %vm2842_vm3, %v2791_v20, %v1458_v0  ;;  %v7008_v23 = vld [vmem:[%s12204_s0 + $0xb0] sm:$0xff]  ;;  %v12374_v0 = vld [vmem:[#allocation3_spill] sm:$0xff] }
 0x246   :  { %2499 = vrot.lane.b32.xlu1 %v6307_v52, %s7044_s18  ;;  %2245 = vrot.lane.b32.xlu0 %v6244_v4, %s7043_s13  ;;  %v2663_v18 = vsel %vm2647_vm0, %v7008_v23, %v12374_v0  ;;  %v12384_v23 = vld [vmem:[#allocation57_spill] sm:$0xff] }
 0x247   :  { %v2728_v2 = vsel %vm2712_vm1, %v2663_v18, %v12375_v22  ;;  %v6188_v18 = vld [vmem:[%s12204_s0 + $0x1a0] sm:$0xff]  ;;  %v6187_v22 = vld [vmem:[%s12204_s0 + $0x198] sm:$0xff] }
 0x248   :  { %v1714_v29 = vpop.permute.xlu1 %1713  ;;  %v2478_v13 = vpop.permute.xlu0 %2477 }
 0x249   :  { %v3114_v27 = vsel %vm3102_vm7, %v3049_v55, %v2478_v13  ;;  %v2921_v5 = vsel %vm2907_vm4, %v2856_v44, %v1714_v29  ;;  %v6311_v55 = vld [vmem:[%s12204_s0 + $0x16a] sm:$0xff]  ;;  %v12376_v13 = vld [vmem:[#allocation102_spill] sm:$0xff] }
 0x24a   :  { %1735 = vrot.lane.b32.xlu1 %v6307_v52, %s7041_s19  ;;  %1481 = vrot.lane.b32.xlu0 %v6244_v4, %s7040_s22  ;;  %v6248_v29 = vld [vmem:[%s12204_s0 + $0x171] sm:$0xff] }
 0x24b   :  { %6636 = vmatmul.mubr.msk.f32.gmra.mxu0 %vm3176_vm8, %v3114_v27  ;;  %v2793_v27 = vsel %vm2777_vm2, %v2728_v2, %v12376_v13  ;;  %v12385_v2 = vld [vmem:[#allocation107_spill] sm:$0xff] }
 0x24c   :  { %v1970_v26 = vpop.permute.xlu1 %1969  ;;  %v1968_v42 = vpop.permute.xlu0 %1967 }
 0x24d   :  { %v2985_v35 = vsel %vm2972_vm5, %v2920_v28, %v1968_v42  ;;  %v2986_v46 = vsel %vm2972_vm5, %v2921_v5, %v1970_v26  ;;  %v7009_v28 = vld [vmem:[%s12204_s0 + $0xc0] sm:$0xff] }
 0x24e   :  { %1737 = vrot.lane.b32.xlu1 %v6118_v49, %s7041_s19  ;;  %2501 = vrot.lane.b32.xlu0 %v6118_v49, %s7044_s18 }
 0x250   :  { %v1460_v32 = vpop.permute.xlu1 %1459  ;;  %v2224_v21 = vpop.permute.xlu0 %2223 }
 0x251   :  { %v3050_v12 = vsel %vm3037_vm6, %v2985_v35, %v2224_v21  ;;  %v2857_v36 = vsel %vm2842_vm3, %v2792_v39, %v1460_v32  ;;  %v6122_v32 = vld [vmem:[%s12204_s0 + $0x172] sm:$0xff] }
 0x252   :  { %1993 = vrot.lane.b32.xlu1 %v6182_v41, %s7042_s8  ;;  %1991 = vrot.lane.b32.xlu0 %v6181_v33, %s7042_s8  ;;  %v12377_v35 = vld [vmem:[#allocation5_spill] sm:$0xff] }
 0x254   :  { %v2480_v10 = vpop.permute.xlu1 %2479  ;;  %v2226_v37 = vpop.permute.xlu0 %2225 }
 0x255   :  { %v3115_v60 = vsel %vm3102_vm7, %v3050_v12, %v2480_v10  ;;  %v3051_v53 = vsel %vm3037_vm6, %v2986_v46, %v2226_v37  ;;  %v12378_v12 = vld [vmem:[#allocation55_spill] sm:$0xff]  ;;  %v6186_v37 = vld [vmem:[%s12204_s0 + $0x188] sm:$0xff] }
 0x256   :  { %1483 = vrot.lane.b32.xlu1 %v6055_v56, %s7040_s22  ;;  %2247 = vrot.lane.b32.xlu0 %v6055_v56, %s7043_s13  ;;  %v2664_v56 = vsel %vm2647_vm0, %v7009_v28, %v12377_v35  ;;  %v6315_v35 = vld [vmem:[%s12204_s0 + $0x19a] sm:$0xff] }
 0x257   :  { %6638 = vmatprep.mubr.msk.f32.mxu0 %vm3176_vm8, %v3115_v60  ;;  %v2729_v10 = vsel %vm2712_vm1, %v2664_v56, %v12378_v12  ;;  %v6185_v60 = vld [vmem:[%s12204_s0 + $0x180] sm:$0xff]  ;;  %v12388_v12 = vld [vmem:[#allocation106_spill] sm:$0xff] }
 0x258   :  { %v1716_v1 = vpop.permute.xlu1 %1715  ;;  %v1462_v14 = vpop.permute.xlu0 %1461  ;;  %v2794_v43 = vsel %vm2777_vm2, %v2729_v10, %v12379_v9  ;;  %v6252_v56 = vld [vmem:[%s12204_s0 + $0x1a1] sm:$0xff] }
 0x259   :  { %v2922_v19 = vsel %vm2907_vm4, %v2857_v36, %v1716_v1  ;;  %v2858_v42 = vsel %vm2842_vm3, %v2793_v27, %v1462_v14  ;;  %v6059_v14 = vld [vmem:[%s12204_s0 + $0x181] sm:$0xff] }
 0x25a   :  { %2503 = vrot.lane.b32.xlu1 %v6309_v3, %s7044_s18  ;;  %2249 = vrot.lane.b32.xlu0 %v6246_v58, %s7043_s13 }
 0x25c   :  { %v1718_v59 = vpop.permute.xlu1 %1717  ;;  %v2482_v30 = vpop.permute.xlu0 %2481 }
 0x25d   :  { %v3116_v50 = vsel %vm3102_vm7, %v3051_v53, %v2482_v30  ;;  %v2923_v61 = vsel %vm2907_vm4, %v2858_v42, %v1718_v59  ;;  %v7010_v59 = vld [vmem:[%s12204_s0 + $0xc8] sm:$0xff] }
 0x25e   :  { %1739 = vrot.lane.b32.xlu1 %v6309_v3, %s7041_s19  ;;  %1485 = vrot.lane.b32.xlu0 %v6246_v58, %s7040_s22  ;;  %v12380_v30 = vld [vmem:[#allocation4_spill] sm:$0xff] }
 0x25f   :  { %6639 = vmatmul.mubr.msk.f32.gmra.mxu0 %vm3176_vm8, %v3116_v50  ;;  %v2665_v50 = vsel %vm2647_vm0, %v7010_v59, %v12380_v30  ;;  %v6061_v42 = vld [vmem:[%s12204_s0 + $0x1c9] sm:$0xff] }
 0x260   :  { %v1974_v34 = vpop.permute.xlu1 %1973  ;;  %v1972_v47 = vpop.permute.xlu0 %1971  ;;  %v7013_v30 = vld [vmem:[%s12204_s0 + $0xf0] sm:$0xff] }
 0x261   :  { %v2987_v7 = vsel %vm2972_vm5, %v2922_v19, %v1972_v47  ;;  %v2988_v48 = vsel %vm2972_vm5, %v2923_v61, %v1974_v34  ;;  %v6313_v47 = vld [vmem:[%s12204_s0 + $0x182] sm:$0xff]  ;;  %v6251_v61 = vld [vmem:[%s12204_s0 + $0x199] sm:$0xff] }
 0x262   :  { %1741 = vrot.lane.b32.xlu1 %v6120_v62, %s7041_s19  ;;  %2505 = vrot.lane.b32.xlu0 %v6120_v62, %s7044_s18  ;;  %v12381_v62 = vld [vmem:[#allocation54_spill] sm:$0xff] }
 0x263   :  { %v2730_v34 = vsel %vm2712_vm1, %v2665_v50, %v12381_v62  ;;  %v12389_v50 = vld [vmem:[#allocation9_spill] sm:$0xff] }
 0x264   :  { %v1464_v57 = vpop.permute.xlu1 %1463  ;;  %v2228_v25 = vpop.permute.xlu0 %2227  ;;  %v2795_v17 = vsel %vm2777_vm2, %v2730_v34, %v12382_v54  ;;  %v2668_v62 = vsel %vm2647_vm0, %v7013_v30, %v12389_v50  ;;  %v12390_v34 = vld [vmem:[#allocation59_spill] sm:$0xff] }
 0x265   :  { %v3052_v40 = vsel %vm3037_vm6, %v2987_v7, %v2228_v25  ;;  %v2859_v58 = vsel %vm2842_vm3, %v2794_v43, %v1464_v57  ;;  %v6124_v7 = vld [vmem:[%s12204_s0 + $0x18a] sm:$0xff]  ;;  %v6189_v54 = vld [vmem:[%s12204_s0 + $0x1e0] sm:$0xff] }
 0x266   :  { %1997 = vrot.lane.b32.xlu1 %v6184_v11, %s7042_s8  ;;  %1995 = vrot.lane.b32.xlu0 %v6183_v51, %s7042_s8  ;;  %v6319_v30 = vld [vmem:[%s12204_s0 + $0x1fa] sm:$0xff] }
 0x267   :  { %v6256_v50 = vld [vmem:[%s12204_s0 + $0x201] sm:$0xff] }
 0x268   :  { %v2484_v52 = vpop.permute.xlu1 %2483  ;;  %v2230_v4 = vpop.permute.xlu0 %2229 }
 0x269   :  { %v3117_v16 = vsel %vm3102_vm7, %v3052_v40, %v2484_v52  ;;  %v3053_v45 = vsel %vm3037_vm6, %v2988_v48, %v2230_v4  ;;  %v7011_v52 = vld [vmem:[%s12204_s0 + $0xd8] sm:$0xff]  ;;  %v12383_v4 = vld [vmem:[#allocation7_spill] sm:$0xff] }
 0x26a   :  { %1487 = vrot.lane.b32.xlu1 %v6057_v38, %s7040_s22  ;;  %2251 = vrot.lane.b32.xlu0 %v6057_v38, %s7043_s13 }
 0x26b   :  { %6641 = vmatprep.mubr.msk.f32.mxu0 %vm3176_vm8, %v3117_v16  ;;  %v2666_v16 = vsel %vm2647_vm0, %v7011_v52, %v12383_v4  ;;  %v12392_v52 = vld [vmem:[#allocation8_spill] sm:$0xff] }
 0x26c   :  { %v1720_v49 = vpop.permute.xlu1 %1719  ;;  %v1466_v26 = vpop.permute.xlu0 %1465  ;;  %v2731_v0 = vsel %vm2712_vm1, %v2666_v16, %v12384_v23  ;;  %v12393_v16 = vld [vmem:[#allocation58_spill] sm:$0xff] }
 0x26d   :  { %v2924_v20 = vsel %vm2907_vm4, %v2859_v58, %v1720_v49  ;;  %v2860_v51 = vsel %vm2842_vm3, %v2795_v17, %v1466_v26  ;;  %v6062_v58 = vld [vmem:[%s12204_s0 + $0x1d1] sm:$0xff] }
 0x26e   :  { %2507 = vrot.lane.b32.xlu1 %v6311_v55, %s7044_s18  ;;  %2253 = vrot.lane.b32.xlu0 %v6248_v29, %s7043_s13  ;;  %v12391_v17 = vld [vmem:[#allocation109_spill] sm:$0xff] }
 0x270   :  { %v1722_v41 = vpop.permute.xlu1 %1721  ;;  %v2486_v33 = vpop.permute.xlu0 %2485 }
 0x271   :  { %v3118_v24 = vsel %vm3102_vm7, %v3053_v45, %v2486_v33  ;;  %v2925_v6 = vsel %vm2907_vm4, %v2860_v51, %v1722_v41 }
 0x272   :  { %1743 = vrot.lane.b32.xlu1 %v6311_v55, %s7041_s19  ;;  %1489 = vrot.lane.b32.xlu0 %v6248_v29, %s7040_s22  ;;  %v2796_v55 = vsel %vm2777_vm2, %v2731_v0, %v12385_v2  ;;  %v6317_v0 = vld [vmem:[%s12204_s0 + $0x1e2] sm:$0xff] }
 0x273   :  { %6642 = vmatmul.mubr.msk.f32.gmra.mxu0 %vm3176_vm8, %v3118_v24  ;;  %v7012_v24 = vld [vmem:[%s12204_s0 + $0xe0] sm:$0xff] }
 0x274   :  { %v1978_v21 = vpop.permute.xlu1 %1977  ;;  %v1976_v63 = vpop.permute.xlu0 %1975 }
 0x275   :  { %v2989_v1 = vsel %vm2972_vm5, %v2924_v20, %v1976_v63  ;;  %v2990_v39 = vsel %vm2972_vm5, %v2925_v6, %v1978_v21  ;;  %v12387_v63 = vld [vmem:[#allocation56_spill] sm:$0xff] }
 0x276   :  { %1745 = vrot.lane.b32.xlu1 %v6122_v32, %s7041_s19  ;;  %2509 = vrot.lane.b32.xlu0 %v6122_v32, %s7044_s18  ;;  %v12386_v32 = vld [vmem:[#allocation6_spill] sm:$0xff] }
 0x277   :  { %v2667_v21 = vsel %vm2647_vm0, %v7012_v24, %v12386_v32  ;;  %v7015_v24 = vld [vmem:[%s12204_s0 + $0x108] sm:$0xff]  ;;  %v12395_v32 = vld [vmem:[#allocation11_spill] sm:$0xff] }
 0x278   :  { %v1468_v31 = vpop.permute.xlu1 %1467  ;;  %v2232_v3 = vpop.permute.xlu0 %2231  ;;  %v2732_v28 = vsel %vm2712_vm1, %v2667_v21, %v12387_v63  ;;  %v2670_v21 = vsel %vm2647_vm0, %v7015_v24, %v12395_v32  ;;  %v12396_v63 = vld [vmem:[#allocation61_spill] sm:$0xff]  ;;  %v6258_v32 = vld [vmem:[%s12204_s0 + $0x219] sm:$0xff] }
 0x279   :  { %v3054_v44 = vsel %vm3037_vm6, %v2989_v1, %v2232_v3  ;;  %v2861_v27 = vsel %vm2842_vm3, %v2796_v55, %v1468_v31  ;;  %v2797_v10 = vsel %vm2777_vm2, %v2732_v28, %v12388_v12  ;;  %v6125_v3 = vld [vmem:[%s12204_s0 + $0x1ca] sm:$0xff]  ;;  %v2735_v28 = vsel %vm2712_vm1, %v2670_v21, %v12396_v63  ;;  %v12397_v12 = vld [vmem:[#allocation111_spill] sm:$0xff]  ;;  %v6321_v24 = vld [vmem:[%s12204_s0 + $0x212] sm:$0xff] }
 0x27a   :  { %2001 = vrot.lane.b32.xlu1 %v6186_v37, %s7042_s8  ;;  %1999 = vrot.lane.b32.xlu0 %v6185_v60, %s7042_s8  ;;  %v12406_v21 = vld [vmem:[#allocation112_spill] sm:$0xff] }
 0x27c   :  { %v2488_v5 = vpop.permute.xlu1 %2487  ;;  %v2234_v46 = vpop.permute.xlu0 %2233 }
 0x27d   :  { %v3119_v53 = vsel %vm3102_vm7, %v3054_v44, %v2488_v5  ;;  %v3055_v57 = vsel %vm3037_vm6, %v2990_v39, %v2234_v46  ;;  %v6126_v5 = vld [vmem:[%s12204_s0 + $0x1d2] sm:$0xff]  ;;  %v6316_v46 = vld [vmem:[%s12204_s0 + $0x1a2] sm:$0xff] }
 0x27e   :  { %1491 = vrot.lane.b32.xlu1 %v6059_v14, %s7040_s22  ;;  %2255 = vrot.lane.b32.xlu0 %v6059_v14, %s7043_s13 }
 0x27f   :  { %6644 = vmatprep.mubr.msk.f32.mxu0 %vm3176_vm8, %v3119_v53 }
 0x280   :  { %v1724_v15 = vpop.permute.xlu1 %1723  ;;  %v1470_v11 = vpop.permute.xlu0 %1469 }
 0x281   :  { %v2926_v49 = vsel %vm2907_vm4, %v2861_v27, %v1724_v15  ;;  %v2862_v9 = vsel %vm2842_vm3, %v2797_v10, %v1470_v11  ;;  %v2800_v10 = vsel %vm2777_vm2, %v2735_v28, %v12397_v12 }
 0x282   :  { %2511 = vrot.lane.b32.xlu1 %v6313_v47, %s7044_s18  ;;  %2257 = vrot.lane.b32.xlu0 %v6250_v8, %s7043_s13 }
 0x284   :  { %v1726_v25 = vpop.permute.xlu1 %1725  ;;  %v2490_v36 = vpop.permute.xlu0 %2489 }
 0x285   :  { %v3120_v19 = vsel %vm3102_vm7, %v3055_v57, %v2490_v36  ;;  %v2927_v43 = vsel %vm2907_vm4, %v2862_v9, %v1726_v25  ;;  %v6063_v25 = vld [vmem:[%s12204_s0 + $0x1e1] sm:$0xff] }
 0x286   :  { %1747 = vrot.lane.b32.xlu1 %v6313_v47, %s7041_s19  ;;  %1493 = vrot.lane.b32.xlu0 %v6250_v8, %s7040_s22  ;;  %v2733_v47 = vsel %vm2712_vm1, %v2668_v62, %v12390_v34  ;;  %v6190_v8 = vld [vmem:[%s12204_s0 + $0x1e8] sm:$0xff]  ;;  %v12400_v62 = vld [vmem:[#allocation110_spill] sm:$0xff] }
 0x287   :  { %6645 = vmatmul.mubr.msk.f32.gmra.mxu0 %vm3176_vm8, %v3120_v19  ;;  %v2798_v15 = vsel %vm2777_vm2, %v2733_v47, %v12391_v17 }
 0x288   :  { %v1982_v38 = vpop.permute.xlu1 %1981  ;;  %v1980_v40 = vpop.permute.xlu0 %1979 }
 0x289   :  { %v2991_v26 = vsel %vm2972_vm5, %v2926_v49, %v1980_v40  ;;  %v2992_v31 = vsel %vm2972_vm5, %v2927_v43, %v1982_v38  ;;  %v7014_v40 = vld [vmem:[%s12204_s0 + $0xf8] sm:$0xff] }
 0x28a   :  { %1749 = vrot.lane.b32.xlu1 %v6124_v7, %s7041_s19  ;;  %2513 = vrot.lane.b32.xlu0 %v6124_v7, %s7044_s18  ;;  %v2669_v4 = vsel %vm2647_vm0, %v7014_v40, %v12392_v52  ;;  %v12402_v40 = vld [vmem:[#allocation63_spill] sm:$0xff] }
 0x28b   :  { %v2734_v23 = vsel %vm2712_vm1, %v2669_v4, %v12393_v16  ;;  %v6194_v4 = vld [vmem:[%s12204_s0 + $0x218] sm:$0xff]  ;;  %v6193_v16 = vld [vmem:[%s12204_s0 + $0x210] sm:$0xff] }
 0x28c   :  { %v1472_v29 = vpop.permute.xlu1 %1471  ;;  %v2236_v13 = vpop.permute.xlu0 %2235 }
 0x28d   :  { %v3056_v48 = vsel %vm3037_vm6, %v2991_v26, %v2236_v13  ;;  %v2863_v6 = vsel %vm2842_vm3, %v2798_v15, %v1472_v29 }
 0x28e   :  { %2005 = vrot.lane.b32.xlu1 %v6188_v18, %s7042_s8  ;;  %2003 = vrot.lane.b32.xlu0 %v6187_v22, %s7042_s8  ;;  %v6254_v18 = vld [vmem:[%s12204_s0 + $0x1e9] sm:$0xff] }
 0x28f   :  { %v12394_v22 = vld [vmem:[#allocation108_spill] sm:$0xff] }
 0x290   :  { %v2492_v45 = vpop.permute.xlu1 %2491  ;;  %v2238_v41 = vpop.permute.xlu0 %2237  ;;  %v2799_v2 = vsel %vm2777_vm2, %v2734_v23, %v12394_v22  ;;  %v12403_v23 = vld [vmem:[#allocation113_spill] sm:$0xff] }
 0x291   :  { %v3121_v33 = vsel %vm3102_vm7, %v3056_v48, %v2492_v45  ;;  %v3057_v20 = vsel %vm3037_vm6, %v2992_v31, %v2238_v41  ;;  %v6128_v45 = vld [vmem:[%s12204_s0 + $0x1ea] sm:$0xff] }
 0x292   :  { %1495 = vrot.lane.b32.xlu1 %v6061_v42, %s7040_s22  ;;  %2259 = vrot.lane.b32.xlu0 %v6251_v61, %s7043_s13 }
 0x293   :  { %6647 = vmatprep.mubr.msk.f32.mxu0 %vm3176_vm8, %v3121_v33 }
 0x294   :  { %v1728_v37 = vpop.permute.xlu1 %1727  ;;  %v1474_v60 = vpop.permute.xlu0 %1473 }
 0x295   :  { %v2928_v39 = vsel %vm2907_vm4, %v2863_v6, %v1728_v37  ;;  %v2864_v13 = vsel %vm2842_vm3, %v2799_v2, %v1474_v60 }
 0x296   :  { %2515 = vrot.lane.b32.xlu1 %v6315_v35, %s7044_s18  ;;  %2261 = vrot.lane.b32.xlu0 %v6252_v56, %s7043_s13  ;;  %v6192_v35 = vld [vmem:[%s12204_s0 + $0x200] sm:$0xff]  ;;  %v6191_v56 = vld [vmem:[%s12204_s0 + $0x1f8] sm:$0xff] }
 0x298   :  { %v1730_v1 = vpop.permute.xlu1 %1729  ;;  %v2494_v14 = vpop.permute.xlu0 %2493 }
 0x299   :  { %v3122_v44 = vsel %vm3102_vm7, %v3057_v20, %v2494_v14  ;;  %v2929_v27 = vsel %vm2907_vm4, %v2864_v13, %v1730_v1  ;;  %v6067_v13 = vld [vmem:[%s12204_s0 + $0x211] sm:$0xff] }
 0x29a   :  { %1751 = vrot.lane.b32.xlu1 %v6125_v3, %s7041_s19  ;;  %1497 = vrot.lane.b32.xlu0 %v6062_v58, %s7040_s22  ;;  %v6065_v3 = vld [vmem:[%s12204_s0 + $0x1f9] sm:$0xff] }
 0x29b   :  { %6648 = vmatmul.mubr.msk.f32.gmra.mxu0 %vm3176_vm8, %v3122_v44  ;;  %v7016_v44 = vld [vmem:[%s12204_s0 + $0x110] sm:$0xff] }
 0x29c   :  { %v1986_v53 = vpop.permute.xlu1 %1985  ;;  %v1984_v59 = vpop.permute.xlu0 %1983 }
 0x29d   :  { %v2993_v57 = vsel %vm2972_vm5, %v2928_v39, %v1984_v59  ;;  %v2994_v49 = vsel %vm2972_vm5, %v2929_v27, %v1986_v53  ;;  %v12399_v53 = vld [vmem:[#allocation60_spill] sm:$0xff] }
 0x29e   :  { %1753 = vrot.lane.b32.xlu1 %v6126_v5, %s7041_s19  ;;  %2517 = vrot.lane.b32.xlu0 %v6316_v46, %s7044_s18  ;;  %v12398_v5 = vld [vmem:[#allocation10_spill] sm:$0xff] }
 0x29f   :  { %v2671_v46 = vsel %vm2647_vm0, %v7016_v44, %v12398_v5  ;;  %v12408_v44 = vld [vmem:[#allocation65_spill] sm:$0xff] }
 0x2a0   :  { %v1476_v11 = vpop.permute.xlu1 %1475  ;;  %v2240_v51 = vpop.permute.xlu0 %2239  ;;  %v2736_v59 = vsel %vm2712_vm1, %v2671_v46, %v12399_v53  ;;  %v6196_v46 = vld [vmem:[%s12204_s0 + $0x230] sm:$0xff]  ;;  %v6195_v53 = vld [vmem:[%s12204_s0 + $0x228] sm:$0xff] }
 0x2a1   :  { %v3058_v36 = vsel %vm3037_vm6, %v2993_v57, %v2240_v51  ;;  %v2865_v9 = vsel %vm2842_vm3, %v2800_v10, %v1476_v11  ;;  %v2801_v34 = vsel %vm2777_vm2, %v2736_v59, %v12400_v62  ;;  %v6130_v57 = vld [vmem:[%s12204_s0 + $0x202] sm:$0xff] }
 0x2a2   :  { %2009 = vrot.lane.b32.xlu1 %v6190_v8, %s7042_s8  ;;  %2007 = vrot.lane.b32.xlu0 %v6189_v54, %s7042_s8  ;;  %v12409_v59 = vld [vmem:[#allocation115_spill] sm:$0xff] }
 0x2a4   :  { %v2496_v19 = vpop.permute.xlu1 %2495  ;;  %v2242_v7 = vpop.permute.xlu0 %2241 }
 0x2a5   :  { %v3123_v38 = vsel %vm3102_vm7, %v3058_v36, %v2496_v19  ;;  %v3059_v26 = vsel %vm3037_vm6, %v2994_v49, %v2242_v7  ;;  %v7017_v19 = vld [vmem:[%s12204_s0 + $0x120] sm:$0xff]  ;;  %v12401_v7 = vld [vmem:[#allocation13_spill] sm:$0xff] }
 0x2a6   :  { %1499 = vrot.lane.b32.xlu1 %v6063_v25, %s7040_s22  ;;  %2263 = vrot.lane.b32.xlu0 %v6063_v25, %s7043_s13 }
 0x2a7   :  { %6650 = vmatprep.mubr.msk.f32.mxu0 %vm3176_vm8, %v3123_v38  ;;  %v2672_v38 = vsel %vm2647_vm0, %v7017_v19, %v12401_v7  ;;  %v6323_v19 = vld [vmem:[%s12204_s0 + $0x22a] sm:$0xff] }
 0x2a8   :  { %v1732_v55 = vpop.permute.xlu1 %1731  ;;  %v1478_v29 = vpop.permute.xlu0 %1477  ;;  %v2737_v52 = vsel %vm2712_vm1, %v2672_v38, %v12402_v40  ;;  %v6260_v7 = vld [vmem:[%s12204_s0 + $0x231] sm:$0xff] }
 0x2a9   :  { %v2930_v43 = vsel %vm2907_vm4, %v2865_v9, %v1732_v55  ;;  %v2866_v54 = vsel %vm2842_vm3, %v2801_v34, %v1478_v29  ;;  %v12412_v38 = vld [vmem:[#allocation114_spill] sm:$0xff] }
 0x2aa   :  { %2519 = vrot.lane.b32.xlu1 %v6317_v0, %s7044_s18  ;;  %2265 = vrot.lane.b32.xlu0 %v6254_v18, %s7043_s13 }
 0x2ac   :  { %v1734_v42 = vpop.permute.xlu1 %1733  ;;  %v2498_v61 = vpop.permute.xlu0 %2497 }
 0x2ad   :  { %v3124_v48 = vsel %vm3102_vm7, %v3059_v26, %v2498_v61  ;;  %v2931_v17 = vsel %vm2907_vm4, %v2866_v54, %v1734_v42  ;;  %v7018_v61 = vld [vmem:[%s12204_s0 + $0x128] sm:$0xff] }
 0x2ae   :  { %1755 = vrot.lane.b32.xlu1 %v6317_v0, %s7041_s19  ;;  %1501 = vrot.lane.b32.xlu0 %v6254_v18, %s7040_s22  ;;  %v2802_v0 = vsel %vm2777_vm2, %v2737_v52, %v12403_v23  ;;  %v6069_v54 = vld [vmem:[%s12204_s0 + $0x229] sm:$0xff] }
 0x2af   :  { %6651 = vmatmul.mubr.msk.f32.gmra.mxu0 %vm3176_vm8, %v3124_v48  ;;  %v12404_v48 = vld [vmem:[#allocation12_spill] sm:$0xff] }
 0x2b0   :  { %v1990_v41 = vpop.permute.xlu1 %1989  ;;  %v1988_v33 = vpop.permute.xlu0 %1987 }
 0x2b1   :  { %v2995_v31 = vsel %vm2972_vm5, %v2930_v43, %v1988_v33  ;;  %v2996_v15 = vsel %vm2972_vm5, %v2931_v17, %v1990_v41  ;;  %v12405_v41 = vld [vmem:[#allocation62_spill] sm:$0xff] }
 0x2b2   :  { %1757 = vrot.lane.b32.xlu1 %v6128_v45, %s7041_s19  ;;  %2521 = vrot.lane.b32.xlu0 %v6128_v45, %s7044_s18  ;;  %v2673_v45 = vsel %vm2647_vm0, %v7018_v61, %v12404_v48  ;;  %v12414_v61 = vld [vmem:[#allocation67_spill] sm:$0xff] }
 0x2b3   :  { %v2738_v33 = vsel %vm2712_vm1, %v2673_v45, %v12405_v41  ;;  %v6198_v45 = vld [vmem:[%s12204_s0 + $0x248] sm:$0xff]  ;;  %v6197_v41 = vld [vmem:[%s12204_s0 + $0x240] sm:$0xff] }
 0x2b4   :  { %v1480_v37 = vpop.permute.xlu1 %1479  ;;  %v2244_v60 = vpop.permute.xlu0 %2243  ;;  %v2803_v63 = vsel %vm2777_vm2, %v2738_v33, %v12406_v21  ;;  %v12415_v33 = vld [vmem:[#allocation117_spill] sm:$0xff] }
 0x2b5   :  { %v3060_v58 = vsel %vm3037_vm6, %v2995_v31, %v2244_v60  ;;  %v2867_v2 = vsel %vm2842_vm3, %v2802_v0, %v1480_v37  ;;  %v6132_v31 = vld [vmem:[%s12204_s0 + $0x21a] sm:$0xff] }
 0x2b6   :  { %2013 = vrot.lane.b32.xlu1 %v6192_v35, %s7042_s8  ;;  %2011 = vrot.lane.b32.xlu0 %v6191_v56, %s7042_s8 }
 0x2b8   :  { %v2500_v20 = vpop.permute.xlu1 %2499  ;;  %v2246_v1 = vpop.permute.xlu0 %2245 }
 0x2b9   :  { %v3125_v14 = vsel %vm3102_vm7, %v3060_v58, %v2500_v20  ;;  %v3061_v11 = vsel %vm3037_vm6, %v2996_v15, %v2246_v1  ;;  %v7019_v20 = vld [vmem:[%s12204_s0 + $0x138] sm:$0xff]  ;;  %v12407_v1 = vld [vmem:[#allocation15_spill] sm:$0xff] }
 0x2ba   :  { %1503 = vrot.lane.b32.xlu1 %v6065_v3, %s7040_s22  ;;  %2267 = vrot.lane.b32.xlu0 %v6065_v3, %s7043_s13 }
 0x2bb   :  { %6653 = vmatprep.mubr.msk.f32.mxu0 %vm3176_vm8, %v3125_v14  ;;  %v2674_v14 = vsel %vm2647_vm0, %v7019_v20, %v12407_v1  ;;  %v6325_v20 = vld [vmem:[%s12204_s0 + $0x242] sm:$0xff] }
 0x2bc   :  { %v1736_v47 = vpop.permute.xlu1 %1735  ;;  %v1482_v8 = vpop.permute.xlu0 %1481  ;;  %v2739_v5 = vsel %vm2712_vm1, %v2674_v14, %v12408_v44  ;;  %v6262_v1 = vld [vmem:[%s12204_s0 + $0x249] sm:$0xff] }
 0x2bd   :  { %v2932_v55 = vsel %vm2907_vm4, %v2867_v2, %v1736_v47  ;;  %v2868_v56 = vsel %vm2842_vm3, %v2803_v63, %v1482_v8  ;;  %v12418_v14 = vld [vmem:[#allocation116_spill] sm:$0xff] }
 0x2be   :  { %2523 = vrot.lane.b32.xlu1 %v6319_v30, %s7044_s18  ;;  %2269 = vrot.lane.b32.xlu0 %v6256_v50, %s7043_s13 }
 0x2c0   :  { %v1738_v51 = vpop.permute.xlu1 %1737  ;;  %v2502_v6 = vpop.permute.xlu0 %2501 }
 0x2c1   :  { %v3126_v39 = vsel %vm3102_vm7, %v3061_v11, %v2502_v6  ;;  %v2933_v12 = vsel %vm2907_vm4, %v2868_v56, %v1738_v51  ;;  %v7020_v6 = vld [vmem:[%s12204_s0 + $0x140] sm:$0xff] }
 0x2c2   :  { %1759 = vrot.lane.b32.xlu1 %v6319_v30, %s7041_s19  ;;  %1505 = vrot.lane.b32.xlu0 %v6256_v50, %s7040_s22  ;;  %v2804_v30 = vsel %vm2777_vm2, %v2739_v5, %v12409_v59  ;;  %v6071_v56 = vld [vmem:[%s12204_s0 + $0x241] sm:$0xff] }
 0x2c3   :  { %6654 = vmatmul.mubr.msk.f32.gmra.mxu0 %vm3176_vm8, %v3126_v39  ;;  %v12410_v39 = vld [vmem:[#allocation14_spill] sm:$0xff] }
 0x2c4   :  { %v1994_v25 = vpop.permute.xlu1 %1993  ;;  %v1992_v36 = vpop.permute.xlu0 %1991 }
 0x2c5   :  { %v2997_v29 = vsel %vm2972_vm5, %v2932_v55, %v1992_v36  ;;  %v2998_v10 = vsel %vm2972_vm5, %v2933_v12, %v1994_v25  ;;  %v12411_v25 = vld [vmem:[#allocation64_spill] sm:$0xff] }
 0x2c6   :  { %1761 = vrot.lane.b32.xlu1 %v6130_v57, %s7041_s19  ;;  %2525 = vrot.lane.b32.xlu0 %v6130_v57, %s7044_s18  ;;  %v2675_v57 = vsel %vm2647_vm0, %v7020_v6, %v12410_v39  ;;  %v12420_v6 = vld [vmem:[#allocation69_spill] sm:$0xff] }
 0x2c7   :  { %v2740_v36 = vsel %vm2712_vm1, %v2675_v57, %v12411_v25  ;;  %v6009_v57 = vld [vmem:[%s12204_s0 + $0x258] sm:$0xff]  ;;  %v12421_v25 = vld [vmem:[#allocation119_spill] sm:$0xff] }
 0x2c8   :  { %v1484_v18 = vpop.permute.xlu1 %1483  ;;  %v2248_v22 = vpop.permute.xlu0 %2247  ;;  %v2805_v40 = vsel %vm2777_vm2, %v2740_v36, %v12412_v38 }
 0x2c9   :  { %v3062_v27 = vsel %vm3037_vm6, %v2997_v29, %v2248_v22  ;;  %v2869_v34 = vsel %vm2842_vm3, %v2804_v30, %v1484_v18  ;;  %v6134_v29 = vld [vmem:[%s12204_s0 + $0x232] sm:$0xff] }
 0x2ca   :  { %2017 = vrot.lane.b32.xlu1 %v6194_v4, %s7042_s8  ;;  %2015 = vrot.lane.b32.xlu0 %v6193_v16, %s7042_s8 }
 0x2cc   :  { %v2504_v49 = vpop.permute.xlu1 %2503  ;;  %v2250_v26 = vpop.permute.xlu0 %2249 }
 0x2cd   :  { %v3127_v42 = vsel %vm3102_vm7, %v3062_v27, %v2504_v49  ;;  %v3063_v37 = vsel %vm3037_vm6, %v2998_v10, %v2250_v26  ;;  %v7021_v49 = vld [vmem:[%s12204_s0 + $0x150] sm:$0xff] }
 0x2ce   :  { %1507 = vrot.lane.b32.xlu1 %v6067_v13, %s7040_s22  ;;  %2271 = vrot.lane.b32.xlu0 %v6067_v13, %s7043_s13  ;;  %v12413_v26 = vld [vmem:[#allocation17_spill] sm:$0xff] }
 0x2cf   :  { %6656 = vmatprep.mubr.msk.f32.mxu0 %vm3176_vm8, %v3127_v42  ;;  %v2676_v42 = vsel %vm2647_vm0, %v7021_v49, %v12413_v26  ;;  %v12424_v49 = vld [vmem:[#allocation118_spill] sm:$0xff] }
 0x2d0   :  { %v1740_v28 = vpop.permute.xlu1 %1739  ;;  %v1486_v35 = vpop.permute.xlu0 %1485  ;;  %v2741_v48 = vsel %vm2712_vm1, %v2676_v42, %v12414_v61 }
 0x2d1   :  { %v2934_v47 = vsel %vm2907_vm4, %v2869_v34, %v1740_v28  ;;  %v2870_v16 = vsel %vm2842_vm3, %v2805_v40, %v1486_v35 }
 0x2d2   :  { %2527 = vrot.lane.b32.xlu1 %v6321_v24, %s7044_s18  ;;  %2273 = vrot.lane.b32.xlu0 %v6258_v32, %s7043_s13 }
 0x2d4   :  { %v1742_v60 = vpop.permute.xlu1 %1741  ;;  %v2506_v9 = vpop.permute.xlu0 %2505 }
 0x2d5   :  { %v3128_v43 = vsel %vm3102_vm7, %v3063_v37, %v2506_v9  ;;  %v2935_v23 = vsel %vm2907_vm4, %v2870_v16, %v1742_v60  ;;  %v7022_v9 = vld [vmem:[%s12204_s0 + $0x158] sm:$0xff]  ;;  %v6200_v16 = vld [vmem:[%s12204_s0 + $0x260] sm:$0xff] }
 0x2d6   :  { %1763 = vrot.lane.b32.xlu1 %v6321_v24, %s7041_s19  ;;  %1509 = vrot.lane.b32.xlu0 %v6258_v32, %s7040_s22  ;;  %v2806_v24 = vsel %vm2777_vm2, %v2741_v48, %v12415_v33  ;;  %v6327_v33 = vld [vmem:[%s12204_s0 + $0x25a] sm:$0xff] }
 0x2d7   :  { %6657 = vmatmul.mubr.msk.f32.gmra.mxu0 %vm3176_vm8, %v3128_v43  ;;  %v12416_v43 = vld [vmem:[#allocation16_spill] sm:$0xff] }
 0x2d8   :  { %v1998_v3 = vpop.permute.xlu1 %1997  ;;  %v1996_v58 = vpop.permute.xlu0 %1995 }
 0x2d9   :  { %v2999_v8 = vsel %vm2972_vm5, %v2934_v47, %v1996_v58  ;;  %v3000_v0 = vsel %vm2972_vm5, %v2935_v23, %v1998_v3  ;;  %v12417_v3 = vld [vmem:[#allocation66_spill] sm:$0xff] }
 0x2da   :  { %1765 = vrot.lane.b32.xlu1 %v6132_v31, %s7041_s19  ;;  %2529 = vrot.lane.b32.xlu0 %v6132_v31, %s7044_s18  ;;  %v2677_v31 = vsel %vm2647_vm0, %v7022_v9, %v12416_v43  ;;  %v6138_v43 = vld [vmem:[%s12204_s0 + $0x262] sm:$0xff] }
 0x2db   :  { %v2742_v58 = vsel %vm2712_vm1, %v2677_v31, %v12417_v3  ;;  %v12427_v31 = vld [vmem:[#allocation121_spill] sm:$0xff] }
 0x2dc   :  { %v1488_v50 = vpop.permute.xlu1 %1487  ;;  %v2252_v62 = vpop.permute.xlu0 %2251  ;;  %v2807_v44 = vsel %vm2777_vm2, %v2742_v58, %v12418_v14 }
 0x2dd   :  { %v3064_v17 = vsel %vm3037_vm6, %v2999_v8, %v2252_v62  ;;  %v2871_v63 = vsel %vm2842_vm3, %v2806_v24, %v1488_v50  ;;  %v6136_v8 = vld [vmem:[%s12204_s0 + $0x24a] sm:$0xff]  ;;  %v6264_v24 = vld [vmem:[%s12204_s0 + $0x261] sm:$0xff] }
 0x2de   :  { %2021 = vrot.lane.b32.xlu1 %v6196_v46, %s7042_s8  ;;  %2019 = vrot.lane.b32.xlu0 %v6195_v53, %s7042_s8 }
 0x2e0   :  { %v2508_v15 = vpop.permute.xlu1 %2507  ;;  %v2254_v11 = vpop.permute.xlu0 %2253 }
 0x2e1   :  { %v3129_v51 = vsel %vm3102_vm7, %v3064_v17, %v2508_v15  ;;  %v3065_v18 = vsel %vm3037_vm6, %v3000_v0, %v2254_v11  ;;  %v7023_v15 = vld [vmem:[%s12204_s0 + $0x168] sm:$0xff]  ;;  %v12419_v11 = vld [vmem:[#allocation19_spill] sm:$0xff] }
 0x2e2   :  { %1511 = vrot.lane.b32.xlu1 %v6069_v54, %s7040_s22  ;;  %2275 = vrot.lane.b32.xlu0 %v6069_v54, %s7043_s13 }
 0x2e3   :  { %6659 = vmatprep.mubr.msk.f32.mxu0 %vm3176_vm8, %v3129_v51  ;;  %v2678_v51 = vsel %vm2647_vm0, %v7023_v15, %v12419_v11  ;;  %v12430_v15 = vld [vmem:[#allocation120_spill] sm:$0xff] }
 0x2e4   :  { %v1744_v52 = vpop.permute.xlu1 %1743  ;;  %v1490_v4 = vpop.permute.xlu0 %1489  ;;  %v2743_v39 = vsel %vm2712_vm1, %v2678_v51, %v12420_v6 }
 0x2e5   :  { %v2936_v28 = vsel %vm2907_vm4, %v2871_v63, %v1744_v52  ;;  %v2872_v53 = vsel %vm2842_vm3, %v2807_v44, %v1490_v4  ;;  %v2808_v36 = vsel %vm2777_vm2, %v2743_v39, %v12421_v25  ;;  %v6263_v4 = vld [vmem:[%s12204_s0 + $0x259] sm:$0xff] }
 0x2e6   :  { %2531 = vrot.lane.b32.xlu1 %v6323_v19, %s7044_s18  ;;  %2277 = vrot.lane.b32.xlu0 %v6260_v7, %s7043_s13  ;;  %v54_v44 = vld [vmem:[%s12204_s0 + $0x1b8] sm:$0xff] }
 0x2e8   :  { %v1746_v22 = vpop.permute.xlu1 %1745  ;;  %v2510_v2 = vpop.permute.xlu0 %2509 }
 0x2e9   :  { %v3130_v55 = vsel %vm3102_vm7, %v3065_v18, %v2510_v2  ;;  %v2937_v59 = vsel %vm2907_vm4, %v2872_v53, %v1746_v22  ;;  %v7024_v2 = vld [vmem:[%s12204_s0 + $0x170] sm:$0xff] }
 0x2ea   :  { %1767 = vrot.lane.b32.xlu1 %v6323_v19, %s7041_s19  ;;  %1513 = vrot.lane.b32.xlu0 %v6260_v7, %s7040_s22 }
 0x2eb   :  { %6660 = vmatmul.mubr.msk.f32.gmra.mxu0 %vm3176_vm8, %v3130_v55  ;;  %v12422_v55 = vld [vmem:[#allocation18_spill] sm:$0xff] }
 0x2ec   :  { %v2002_v13 = vpop.permute.xlu1 %2001  ;;  %v2000_v27 = vpop.permute.xlu0 %1999 }
 0x2ed   :  { %v3001_v35 = vsel %vm2972_vm5, %v2936_v28, %v2000_v27  ;;  %v3002_v30 = vsel %vm2972_vm5, %v2937_v59, %v2002_v13  ;;  %v12423_v13 = vld [vmem:[#allocation68_spill] sm:$0xff] }
 0x2ee   :  { %1769 = vrot.lane.b32.xlu1 %v6134_v29, %s7041_s19  ;;  %2533 = vrot.lane.b32.xlu0 %v6134_v29, %s7044_s18  ;;  %v2679_v29 = vsel %vm2647_vm0, %v7024_v2, %v12422_v55  ;;  %v12433_v55 = vld [vmem:[#allocation123_spill] sm:$0xff] }
 0x2ef   :  { %v2744_v27 = vsel %vm2712_vm1, %v2679_v29, %v12423_v13 }
 0x2f0   :  { %v1492_v32 = vpop.permute.xlu1 %1491  ;;  %v2256_v21 = vpop.permute.xlu0 %2255  ;;  %v2809_v26 = vsel %vm2777_vm2, %v2744_v27, %v12424_v49 }
 0x2f1   :  { %v3066_v12 = vsel %vm3037_vm6, %v3001_v35, %v2256_v21  ;;  %v2873_v38 = vsel %vm2842_vm3, %v2808_v36, %v1492_v32  ;;  %v53_v35 = vld [vmem:[%s12204_s0 + $0x1b0] sm:$0xff] }
 0x2f2   :  { %2025 = vrot.lane.b32.xlu1 %v6198_v45, %s7042_s8  ;;  %2023 = vrot.lane.b32.xlu0 %v6197_v41, %s7042_s8 }
 0x2f4   :  { %v2512_v10 = vpop.permute.xlu1 %2511  ;;  %v2258_v37 = vpop.permute.xlu0 %2257 }
 0x2f5   :  { %v3131_v60 = vsel %vm3102_vm7, %v3066_v12, %v2512_v10  ;;  %v3067_v50 = vsel %vm3037_vm6, %v3002_v30, %v2258_v37  ;;  %v12425_v10 = vld [vmem:[#allocation21_spill] sm:$0xff] }
 0x2f6   :  { %1515 = vrot.lane.b32.xlu1 %v6071_v56, %s7040_s22  ;;  %2279 = vrot.lane.b32.xlu0 %v6071_v56, %s7043_s13  ;;  %v2680_v37 = vsel %vm2647_vm0, %v53_v35, %v12425_v10  ;;  %v6013_v35 = vld [vmem:[%s12204_s0 + $0x288] sm:$0xff] }
 0x2f7   :  { %6662 = vmatprep.mubr.msk.f32.mxu0 %vm3176_vm8, %v3131_v60  ;;  %v12426_v60 = vld [vmem:[#allocation71_spill] sm:$0xff] }
 0x2f8   :  { %v1748_v5 = vpop.permute.xlu1 %1747  ;;  %v1494_v46 = vpop.permute.xlu0 %1493  ;;  %v2745_v9 = vsel %vm2712_vm1, %v2680_v37, %v12426_v60 }
 0x2f9   :  { %v2938_v40 = vsel %vm2907_vm4, %v2873_v38, %v1748_v5  ;;  %v2874_v48 = vsel %vm2842_vm3, %v2809_v26, %v1494_v46  ;;  %v2810_v3 = vsel %vm2777_vm2, %v2745_v9, %v12427_v31  ;;  %v6011_v46 = vld [vmem:[%s12204_s0 + $0x270] sm:$0xff] }
 0x2fa   :  { %2535 = vrot.lane.b32.xlu1 %v6325_v20, %s7044_s18  ;;  %2281 = vrot.lane.b32.xlu0 %v6262_v1, %s7043_s13  ;;  %v6267_v31 = vld [vmem:[%s12204_s0 + $0x289] sm:$0xff] }
 0x2fc   :  { %v1750_v62 = vpop.permute.xlu1 %1749  ;;  %v2514_v34 = vpop.permute.xlu0 %2513 }
 0x2fd   :  { %v3132_v47 = vsel %vm3102_vm7, %v3067_v50, %v2514_v34  ;;  %v2939_v45 = vsel %vm2907_vm4, %v2874_v48, %v1750_v62  ;;  %v12428_v62 = vld [vmem:[#allocation20_spill] sm:$0xff] }
 0x2fe   :  { %1771 = vrot.lane.b32.xlu1 %v6325_v20, %s7041_s19  ;;  %1517 = vrot.lane.b32.xlu0 %v6262_v1, %s7040_s22  ;;  %v2681_v34 = vsel %vm2647_vm0, %v54_v44, %v12428_v62  ;;  %v6331_v62 = vld [vmem:[%s12204_s0 + $0x28a] sm:$0xff] }
 0x2ff   :  { %6663 = vmatmul.mubr.msk.f32.gmra.mxu0 %vm3176_vm8, %v3132_v47  ;;  %v12429_v47 = vld [vmem:[#allocation70_spill] sm:$0xff] }
 0x300   :  { %v2006_v54 = vpop.permute.xlu1 %2005  ;;  %v2004_v17 = vpop.permute.xlu0 %2003 }
 0x301   :  { %v3003_v52 = vsel %vm2972_vm5, %v2938_v40, %v2004_v17  ;;  %v3004_v41 = vsel %vm2972_vm5, %v2939_v45, %v2006_v54  ;;  %v6265_v54 = vld [vmem:[%s12204_s0 + $0x271] sm:$0xff] }
 0x302   :  { %1773 = vrot.lane.b32.xlu1 %v6136_v8, %s7041_s19  ;;  %2537 = vrot.lane.b32.xlu0 %v6136_v8, %s7044_s18  ;;  %v2746_v8 = vsel %vm2712_vm1, %v2681_v34, %v12429_v47  ;;  %v6202_v17 = vld [vmem:[%s12204_s0 + $0x278] sm:$0xff]  ;;  %v12439_v47 = vld [vmem:[#allocation125_spill] sm:$0xff] }
 0x303   :  { %v2811_v11 = vsel %vm2777_vm2, %v2746_v8, %v12430_v15  ;;  %v6329_v40 = vld [vmem:[%s12204_s0 + $0x272] sm:$0xff] }
 0x304   :  { %v1496_v19 = vpop.permute.xlu1 %1495  ;;  %v2260_v7 = vpop.permute.xlu0 %2259  ;;  %v6268_v34 = vld [vmem:[%s12204_s0 + $0x291] sm:$0xff] }
 0x305   :  { %v3068_v23 = vsel %vm3037_vm6, %v3003_v52, %v2260_v7  ;;  %v2875_v1 = vsel %vm2842_vm3, %v2810_v3, %v1496_v19  ;;  %v6266_v52 = vld [vmem:[%s12204_s0 + $0x279] sm:$0xff]  ;;  %v6204_v3 = vld [vmem:[%s12204_s0 + $0x290] sm:$0xff] }
 0x306   :  { %1263 = vrot.lane.b32.xlu1 %v6009_v57, %s7039_s26  ;;  %2027 = vrot.lane.b32.xlu0 %v6009_v57, %s7042_s8 }
 0x308   :  { %v2516_v0 = vpop.permute.xlu1 %2515  ;;  %v2262_v18 = vpop.permute.xlu0 %2261 }
 0x309   :  { %v3133_v22 = vsel %vm3102_vm7, %v3068_v23, %v2516_v0  ;;  %v3069_v32 = vsel %vm3037_vm6, %v3004_v41, %v2262_v18  ;;  %v7025_v23 = vld [vmem:[%s12204_s0 + $0x1c8] sm:$0xff]  ;;  %v12431_v0 = vld [vmem:[#allocation23_spill] sm:$0xff] }
 0x30a   :  { %2283 = vrot.lane.b32.xlu1 %v6263_v4, %s7043_s13  ;;  %2029 = vrot.lane.b32.xlu0 %v6200_v16, %s7042_s8  ;;  %v2682_v18 = vsel %vm2647_vm0, %v7025_v23, %v12431_v0 }
 0x30b   :  { %6665 = vmatprep.mubr.msk.f32.mxu0 %vm3176_vm8, %v3133_v22  ;;  %v12432_v22 = vld [vmem:[#allocation73_spill] sm:$0xff] }
 0x30c   :  { %v1752_v42 = vpop.permute.xlu1 %1751  ;;  %v1498_v61 = vpop.permute.xlu0 %1497  ;;  %v2747_v2 = vsel %vm2712_vm1, %v2682_v18, %v12432_v22 }
 0x30d   :  { %v2940_v14 = vsel %vm2907_vm4, %v2875_v1, %v1752_v42  ;;  %v2876_v39 = vsel %vm2842_vm3, %v2811_v11, %v1498_v61  ;;  %v2812_v29 = vsel %vm2777_vm2, %v2747_v2, %v12433_v55  ;;  %v6140_v61 = vld [vmem:[%s12204_s0 + $0x27a] sm:$0xff] }
 0x30e   :  { %1519 = vrot.lane.b32.xlu1 %v6263_v4, %s7040_s22  ;;  %1265 = vrot.lane.b32.xlu0 %v6200_v16, %s7039_s26  ;;  %v6015_v55 = vld [vmem:[%s12204_s0 + $0x2a0] sm:$0xff] }
 0x310   :  { %v1754_v21 = vpop.permute.xlu1 %1753  ;;  %v2518_v63 = vpop.permute.xlu0 %2517 }
 0x311   :  { %v3134_v28 = vsel %vm3102_vm7, %v3069_v32, %v2518_v63  ;;  %v2941_v57 = vsel %vm2907_vm4, %v2876_v39, %v1754_v21  ;;  %v12434_v32 = vld [vmem:[#allocation22_spill] sm:$0xff]  ;;  %v12435_v63 = vld [vmem:[#allocation72_spill] sm:$0xff] }
 0x312   :  { %2539 = vrot.lane.b32.xlu1 %v6327_v33, %s7044_s18  ;;  %2285 = vrot.lane.b32.xlu0 %v6264_v24, %s7043_s13 }
 0x313   :  { %6666 = vmatmul.mubr.msk.f32.gmra.mxu0 %vm3176_vm8, %v3134_v28 }
 0x314   :  { %v2010_v56 = vpop.permute.xlu1 %2009  ;;  %v2008_v12 = vpop.permute.xlu0 %2007 }
 0x315   :  { %v3005_v5 = vsel %vm2972_vm5, %v2940_v14, %v2008_v12  ;;  %v3006_v25 = vsel %vm2972_vm5, %v2941_v57, %v2010_v56  ;;  %v12436_v56 = vld [vmem:[#allocation122_spill] sm:$0xff] }
 0x316   :  { %1775 = vrot.lane.b32.xlu1 %v6327_v33, %s7041_s19  ;;  %1521 = vrot.lane.b32.xlu0 %v6264_v24, %s7040_s22  ;;  %v7026_v24 = vld [vmem:[%s12204_s0 + $0x1d0] sm:$0xff] }
 0x317   :  { %v2683_v21 = vsel %vm2647_vm0, %v7026_v24, %v12434_v32  ;;  %v12444_v24 = vld [vmem:[#allocation77_spill] sm:$0xff] }
 0x318   :  { %v1500_v58 = vpop.permute.xlu1 %1499  ;;  %v2264_v20 = vpop.permute.xlu0 %2263  ;;  %v2748_v28 = vsel %vm2712_vm1, %v2683_v21, %v12435_v63  ;;  %v12445_v21 = vld [vmem:[#allocation127_spill] sm:$0xff] }
 0x319   :  { %v3070_v53 = vsel %vm3037_vm6, %v3005_v5, %v2264_v20  ;;  %v2877_v49 = vsel %vm2842_vm3, %v2812_v29, %v1500_v58  ;;  %v2813_v12 = vsel %vm2777_vm2, %v2748_v28, %v12436_v56 }
 0x31a   :  { %1777 = vrot.lane.b32.xlu1 %v6138_v43, %s7041_s19  ;;  %2541 = vrot.lane.b32.xlu0 %v6138_v43, %s7044_s18 }
 0x31c   :  { %v2520_v59 = vpop.permute.xlu1 %2519  ;;  %v2266_v30 = vpop.permute.xlu0 %2265 }
 0x31d   :  { %v3135_v50 = vsel %vm3102_vm7, %v3070_v53, %v2520_v59  ;;  %v3071_v36 = vsel %vm3037_vm6, %v3006_v25, %v2266_v30  ;;  %v12437_v53 = vld [vmem:[#allocation25_spill] sm:$0xff]  ;;  %v12438_v30 = vld [vmem:[#allocation75_spill] sm:$0xff] }
 0x31e   :  { %1267 = vrot.lane.b32.xlu1 %v6011_v46, %s7039_s26  ;;  %2031 = vrot.lane.b32.xlu0 %v6011_v46, %s7042_s8  ;;  %v7027_v46 = vld [vmem:[%s12204_s0 + $0x1e0] sm:$0xff] }
 0x31f   :  { %6668 = vmatprep.mubr.msk.f32.mxu0 %vm3176_vm8, %v3135_v50  ;;  %v2684_v59 = vsel %vm2647_vm0, %v7027_v46, %v12437_v53 }
 0x320   :  { %v1756_v51 = vpop.permute.xlu1 %1755  ;;  %v1502_v6 = vpop.permute.xlu0 %1501  ;;  %v2749_v50 = vsel %vm2712_vm1, %v2684_v59, %v12438_v30 }
 0x321   :  { %v2942_v26 = vsel %vm2907_vm4, %v2877_v49, %v1756_v51  ;;  %v2878_v60 = vsel %vm2842_vm3, %v2813_v12, %v1502_v6  ;;  %v2814_v8 = vsel %vm2777_vm2, %v2749_v50, %v12439_v47 }
 0x322   :  { %2287 = vrot.lane.b32.xlu1 %v6265_v54, %s7043_s13  ;;  %2033 = vrot.lane.b32.xlu0 %v6202_v17, %s7042_s8 }
 0x324   :  { %v1758_v19 = vpop.permute.xlu1 %1757  ;;  %v2522_v7 = vpop.permute.xlu0 %2521 }
 0x325   :  { %v3136_v38 = vsel %vm3102_vm7, %v3071_v36, %v2522_v7  ;;  %v2943_v9 = vsel %vm2907_vm4, %v2878_v60, %v1758_v19  ;;  %v7028_v36 = vld [vmem:[%s12204_s0 + $0x1e8] sm:$0xff] }
 0x326   :  { %1523 = vrot.lane.b32.xlu1 %v6265_v54, %s7040_s22  ;;  %1269 = vrot.lane.b32.xlu0 %v6202_v17, %s7039_s26  ;;  %v12440_v19 = vld [vmem:[#allocation24_spill] sm:$0xff] }
 0x327   :  { %6669 = vmatmul.mubr.msk.f32.gmra.mxu0 %vm3176_vm8, %v3136_v38  ;;  %v2685_v7 = vsel %vm2647_vm0, %v7028_v36, %v12440_v19  ;;  %v12441_v38 = vld [vmem:[#allocation74_spill] sm:$0xff]  ;;  %v6270_v60 = vld [vmem:[%s12204_s0 + $0x2a9] sm:$0xff] }
 0x328   :  { %v2014_v4 = vpop.permute.xlu1 %2013  ;;  %v2012_v16 = vpop.permute.xlu0 %2011  ;;  %v6271_v19 = vld [vmem:[%s12204_s0 + $0x2b9] sm:$0xff] }
 0x329   :  { %v3007_v42 = vsel %vm2972_vm5, %v2942_v26, %v2012_v16  ;;  %v3008_v43 = vsel %vm2972_vm5, %v2943_v9, %v2014_v4  ;;  %v12442_v4 = vld [vmem:[#allocation124_spill] sm:$0xff] }
 0x32a   :  { %2543 = vrot.lane.b32.xlu1 %v6329_v40, %s7044_s18  ;;  %2289 = vrot.lane.b32.xlu0 %v6266_v52, %s7043_s13  ;;  %v6269_v26 = vld [vmem:[%s12204_s0 + $0x2a1] sm:$0xff] }
 0x32c   :  { %v1504_v13 = vpop.permute.xlu1 %1503  ;;  %v2268_v27 = vpop.permute.xlu0 %2267 }
 0x32d   :  { %v3072_v48 = vsel %vm3037_vm6, %v3007_v42, %v2268_v27  ;;  %v2879_v15 = vsel %vm2842_vm3, %v2814_v8, %v1504_v13  ;;  %v6206_v42 = vld [vmem:[%s12204_s0 + $0x2a8] sm:$0xff] }
 0x32e   :  { %1779 = vrot.lane.b32.xlu1 %v6329_v40, %s7041_s19  ;;  %1525 = vrot.lane.b32.xlu0 %v6266_v52, %s7040_s22  ;;  %v2750_v40 = vsel %vm2712_vm1, %v2685_v7, %v12441_v38  ;;  %v6142_v52 = vld [vmem:[%s12204_s0 + $0x292] sm:$0xff]  ;;  %v6208_v7 = vld [vmem:[%s12204_s0 + $0x2c0] sm:$0xff] }
 0x32f   :  { %v2815_v16 = vsel %vm2777_vm2, %v2750_v40, %v12442_v4  ;;  %v12451_v38 = vld [vmem:[#allocation129_spill] sm:$0xff] }
 0x330   :  { %v2524_v45 = vpop.permute.xlu1 %2523  ;;  %v2270_v41 = vpop.permute.xlu0 %2269 }
 0x331   :  { %v3137_v33 = vsel %vm3102_vm7, %v3072_v48, %v2524_v45  ;;  %v3073_v58 = vsel %vm3037_vm6, %v3008_v43, %v2270_v41  ;;  %v7029_v45 = vld [vmem:[%s12204_s0 + $0x1f8] sm:$0xff]  ;;  %v12443_v41 = vld [vmem:[#allocation27_spill] sm:$0xff] }
 0x332   :  { %1781 = vrot.lane.b32.xlu1 %v6140_v61, %s7041_s19  ;;  %2545 = vrot.lane.b32.xlu0 %v6140_v61, %s7044_s18 }
 0x333   :  { %6671 = vmatprep.mubr.msk.f32.mxu0 %vm3176_vm8, %v3137_v33  ;;  %v2686_v33 = vsel %vm2647_vm0, %v7029_v45, %v12443_v41 }
 0x334   :  { %v1760_v10 = vpop.permute.xlu1 %1759  ;;  %v1506_v37 = vpop.permute.xlu0 %1505  ;;  %v2751_v32 = vsel %vm2712_vm1, %v2686_v33, %v12444_v24 }
 0x335   :  { %v2944_v11 = vsel %vm2907_vm4, %v2879_v15, %v1760_v10  ;;  %v2880_v18 = vsel %vm2842_vm3, %v2815_v16, %v1506_v37  ;;  %v2816_v63 = vsel %vm2777_vm2, %v2751_v32, %v12445_v21  ;;  %v6333_v37 = vld [vmem:[%s12204_s0 + $0x2a2] sm:$0xff]  ;;  %v6017_v15 = vld [vmem:[%s12204_s0 + $0x2b8] sm:$0xff] }
 0x336   :  { %1271 = vrot.lane.b32.xlu1 %v6013_v35, %s7039_s26  ;;  %2035 = vrot.lane.b32.xlu0 %v6013_v35, %s7042_s8 }
 0x338   :  { %v1762_v20 = vpop.permute.xlu1 %1761  ;;  %v2526_v1 = vpop.permute.xlu0 %2525 }
 0x339   :  { %v3138_v14 = vsel %vm3102_vm7, %v3073_v58, %v2526_v1  ;;  %v2945_v22 = vsel %vm2907_vm4, %v2880_v18, %v1762_v20  ;;  %v7030_v58 = vld [vmem:[%s12204_s0 + $0x200] sm:$0xff]  ;;  %v12446_v20 = vld [vmem:[#allocation26_spill] sm:$0xff] }
 0x33a   :  { %2291 = vrot.lane.b32.xlu1 %v6267_v31, %s7043_s13  ;;  %2037 = vrot.lane.b32.xlu0 %v6204_v3, %s7042_s8  ;;  %v2687_v1 = vsel %vm2647_vm0, %v7030_v58, %v12446_v20  ;;  %v12456_v20 = vld [vmem:[#allocation81_spill] sm:$0xff] }
 0x33b   :  { %6672 = vmatmul.mubr.msk.f32.gmra.mxu0 %vm3176_vm8, %v3138_v14  ;;  %v12447_v14 = vld [vmem:[#allocation76_spill] sm:$0xff] }
 0x33c   :  { %v2018_v44 = vpop.permute.xlu1 %2017  ;;  %v2016_v5 = vpop.permute.xlu0 %2015 }
 0x33d   :  { %v3009_v51 = vsel %vm2972_vm5, %v2944_v11, %v2016_v5  ;;  %v3010_v2 = vsel %vm2972_vm5, %v2945_v22, %v2018_v44  ;;  %v2752_v44 = vsel %vm2712_vm1, %v2687_v1, %v12447_v14  ;;  %v12448_v5 = vld [vmem:[#allocation126_spill] sm:$0xff] }
 0x33e   :  { %1527 = vrot.lane.b32.xlu1 %v6267_v31, %s7040_s22  ;;  %1273 = vrot.lane.b32.xlu0 %v6204_v3, %s7039_s26  ;;  %v2817_v46 = vsel %vm2777_vm2, %v2752_v44, %v12448_v5  ;;  %v6273_v14 = vld [vmem:[%s12204_s0 + $0x2d1] sm:$0xff]  ;;  %v12457_v5 = vld [vmem:[#allocation131_spill] sm:$0xff] }
 0x33f   :  { %v6210_v44 = vld [vmem:[%s12204_s0 + $0x2d8] sm:$0xff] }
 0x340   :  { %v1508_v54 = vpop.permute.xlu1 %1507  ;;  %v2272_v17 = vpop.permute.xlu0 %2271 }
 0x341   :  { %v3074_v6 = vsel %vm3037_vm6, %v3009_v51, %v2272_v17  ;;  %v2881_v56 = vsel %vm2842_vm3, %v2816_v63, %v1508_v54 }
 0x342   :  { %2547 = vrot.lane.b32.xlu1 %v6331_v62, %s7044_s18  ;;  %2293 = vrot.lane.b32.xlu0 %v6268_v34, %s7043_s13 }
 0x344   :  { %v2528_v39 = vpop.permute.xlu1 %2527  ;;  %v2274_v57 = vpop.permute.xlu0 %2273 }
 0x345   :  { %v3139_v25 = vsel %vm3102_vm7, %v3074_v6, %v2528_v39  ;;  %v3075_v29 = vsel %vm3037_vm6, %v3010_v2, %v2274_v57  ;;  %v7031_v6 = vld [vmem:[%s12204_s0 + $0x210] sm:$0xff] }
 0x346   :  { %1783 = vrot.lane.b32.xlu1 %v6331_v62, %s7041_s19  ;;  %1529 = vrot.lane.b32.xlu0 %v6268_v34, %s7040_s22  ;;  %v6144_v34 = vld [vmem:[%s12204_s0 + $0x2aa] sm:$0xff] }
 0x347   :  { %6674 = vmatprep.mubr.msk.f32.mxu0 %vm3176_vm8, %v3139_v25  ;;  %v12449_v39 = vld [vmem:[#allocation29_spill] sm:$0xff]  ;;  %v12450_v25 = vld [vmem:[#allocation79_spill] sm:$0xff] }
 0x348   :  { %v1764_v23 = vpop.permute.xlu1 %1763  ;;  %v1510_v0 = vpop.permute.xlu0 %1509  ;;  %v2688_v57 = vsel %vm2647_vm0, %v7031_v6, %v12449_v39  ;;  %v6337_v39 = vld [vmem:[%s12204_s0 + $0x2d2] sm:$0xff] }
 0x349   :  { %v2946_v12 = vsel %vm2907_vm4, %v2881_v56, %v1764_v23  ;;  %v2882_v30 = vsel %vm2842_vm3, %v2817_v46, %v1510_v0  ;;  %v2753_v36 = vsel %vm2712_vm1, %v2688_v57, %v12450_v25  ;;  %v6274_v57 = vld [vmem:[%s12204_s0 + $0x2d9] sm:$0xff] }
 0x34a   :  { %1785 = vrot.lane.b32.xlu1 %v6142_v52, %s7041_s19  ;;  %2549 = vrot.lane.b32.xlu0 %v6142_v52, %s7044_s18  ;;  %v2818_v40 = vsel %vm2777_vm2, %v2753_v36, %v12451_v38  ;;  %v12460_v25 = vld [vmem:[#allocation130_spill] sm:$0xff] }
 0x34c   :  { %v1766_v13 = vpop.permute.xlu1 %1765  ;;  %v2530_v27 = vpop.permute.xlu0 %2529 }
 0x34d   :  { %v3140_v49 = vsel %vm3102_vm7, %v3075_v29, %v2530_v27  ;;  %v2947_v50 = vsel %vm2907_vm4, %v2882_v30, %v1766_v13  ;;  %v7032_v29 = vld [vmem:[%s12204_s0 + $0x218] sm:$0xff]  ;;  %v12452_v13 = vld [vmem:[#allocation28_spill] sm:$0xff] }
 0x34e   :  { %1275 = vrot.lane.b32.xlu1 %v6015_v55, %s7039_s26  ;;  %2039 = vrot.lane.b32.xlu0 %v6015_v55, %s7042_s8  ;;  %v2689_v27 = vsel %vm2647_vm0, %v7032_v29, %v12452_v13 }
 0x34f   :  { %6675 = vmatmul.mubr.msk.f32.gmra.mxu0 %vm3176_vm8, %v3140_v49  ;;  %v12453_v49 = vld [vmem:[#allocation78_spill] sm:$0xff] }
 0x350   :  { %v2022_v61 = vpop.permute.xlu1 %2021  ;;  %v2020_v48 = vpop.permute.xlu0 %2019 }
 0x351   :  { %v3011_v10 = vsel %vm2972_vm5, %v2946_v12, %v2020_v48  ;;  %v3012_v62 = vsel %vm2972_vm5, %v2947_v50, %v2022_v61  ;;  %v6272_v61 = vld [vmem:[%s12204_s0 + $0x2c1] sm:$0xff] }
 0x352   :  { %2295 = vrot.lane.b32.xlu1 %v6269_v26, %s7043_s13  ;;  %2041 = vrot.lane.b32.xlu0 %v6206_v42, %s7042_s8  ;;  %v12454_v48 = vld [vmem:[#allocation128_spill] sm:$0xff] }
 0x353   :  { %v6146_v12 = vld [vmem:[%s12204_s0 + $0x2c2] sm:$0xff] }
 0x354   :  { %v1512_v28 = vpop.permute.xlu1 %1511  ;;  %v2276_v35 = vpop.permute.xlu0 %2275 }
 0x355   :  { %v3076_v9 = vsel %vm3037_vm6, %v3011_v10, %v2276_v35  ;;  %v2883_v16 = vsel %vm2842_vm3, %v2818_v40, %v1512_v28 }
 0x356   :  { %1531 = vrot.lane.b32.xlu1 %v6269_v26, %s7040_s22  ;;  %1277 = vrot.lane.b32.xlu0 %v6206_v42, %s7039_s26  ;;  %v2754_v26 = vsel %vm2712_vm1, %v2689_v27, %v12453_v49  ;;  %v6335_v42 = vld [vmem:[%s12204_s0 + $0x2ba] sm:$0xff]  ;;  %v12461_v49 = vld [vmem:[#allocation33_spill] sm:$0xff] }
 0x357   :  { %v2819_v45 = vsel %vm2777_vm2, %v2754_v26, %v12454_v48  ;;  %v7035_v27 = vld [vmem:[%s12204_s0 + $0x240] sm:$0xff]  ;;  %v6275_v48 = vld [vmem:[%s12204_s0 + $0x2e9] sm:$0xff] }
 0x358   :  { %v2532_v43 = vpop.permute.xlu1 %2531  ;;  %v2278_v31 = vpop.permute.xlu0 %2277  ;;  %v2692_v26 = vsel %vm2647_vm0, %v7035_v27, %v12461_v49 }
 0x359   :  { %v3141_v3 = vsel %vm3102_vm7, %v3076_v9, %v2532_v43  ;;  %v3077_v47 = vsel %vm3037_vm6, %v3012_v62, %v2278_v31  ;;  %v7033_v31 = vld [vmem:[%s12204_s0 + $0x228] sm:$0xff] }
 0x35a   :  { %2551 = vrot.lane.b32.xlu1 %v6333_v37, %s7044_s18  ;;  %2297 = vrot.lane.b32.xlu0 %v6270_v60, %s7043_s13 }
 0x35b   :  { %6677 = vmatprep.mubr.msk.f32.mxu0 %vm3176_vm8, %v3141_v3  ;;  %v12455_v3 = vld [vmem:[#allocation31_spill] sm:$0xff] }
 0x35c   :  { %v1768_v53 = vpop.permute.xlu1 %1767  ;;  %v1514_v59 = vpop.permute.xlu0 %1513  ;;  %v2690_v58 = vsel %vm2647_vm0, %v7033_v31, %v12455_v3  ;;  %v6339_v31 = vld [vmem:[%s12204_s0 + $0x2ea] sm:$0xff] }
 0x35d   :  { %v2948_v23 = vsel %vm2907_vm4, %v2883_v16, %v1768_v53  ;;  %v2884_v24 = vsel %vm2842_vm3, %v2819_v45, %v1514_v59  ;;  %v2755_v1 = vsel %vm2712_vm1, %v2690_v58, %v12456_v20  ;;  %v6212_v45 = vld [vmem:[%s12204_s0 + $0x2f0] sm:$0xff] }
 0x35e   :  { %1787 = vrot.lane.b32.xlu1 %v6333_v37, %s7041_s19  ;;  %1533 = vrot.lane.b32.xlu0 %v6270_v60, %s7040_s22  ;;  %v6019_v60 = vld [vmem:[%s12204_s0 + $0x2d0] sm:$0xff]  ;;  %v2820_v46 = vsel %vm2777_vm2, %v2755_v1, %v12457_v5 }
 0x35f   :  { %v6276_v3 = vld [vmem:[%s12204_s0 + $0x2f1] sm:$0xff] }
 0x360   :  { %v1770_v8 = vpop.permute.xlu1 %1769  ;;  %v2534_v54 = vpop.permute.xlu0 %2533 }
 0x361   :  { %v3142_v17 = vsel %vm3102_vm7, %v3077_v47, %v2534_v54  ;;  %v2949_v32 = vsel %vm2907_vm4, %v2884_v24, %v1770_v8 }
 0x362   :  { %1789 = vrot.lane.b32.xlu1 %v6144_v34, %s7041_s19  ;;  %2553 = vrot.lane.b32.xlu0 %v6144_v34, %s7044_s18 }
 0x363   :  { %6678 = vmatmul.mubr.msk.f32.gmra.mxu0 %vm3176_vm8, %v3142_v17  ;;  %v7034_v17 = vld [vmem:[%s12204_s0 + $0x230] sm:$0xff] }
 0x364   :  { %v2026_v11 = vpop.permute.xlu1 %2025  ;;  %v2024_v51 = vpop.permute.xlu0 %2023 }
 0x365   :  { %v3013_v0 = vsel %vm2972_vm5, %v2948_v23, %v2024_v51  ;;  %v3014_v21 = vsel %vm2972_vm5, %v2949_v32, %v2026_v11  ;;  %v12459_v51 = vld [vmem:[#allocation80_spill] sm:$0xff] }
 0x366   :  { %1279 = vrot.lane.b32.xlu1 %v6017_v15, %s7039_s26  ;;  %2043 = vrot.lane.b32.xlu0 %v6017_v15, %s7042_s8  ;;  %v12458_v15 = vld [vmem:[#allocation30_spill] sm:$0xff] }
 0x367   :  { %v2691_v11 = vsel %vm2647_vm0, %v7034_v17, %v12458_v15  ;;  %v12465_v15 = vld [vmem:[#allocation35_spill] sm:$0xff] }
 0x368   :  { %v1516_v52 = vpop.permute.xlu1 %1515  ;;  %v2280_v4 = vpop.permute.xlu0 %2279  ;;  %v2756_v6 = vsel %vm2712_vm1, %v2691_v11, %v12459_v51  ;;  %v12466_v51 = vld [vmem:[#allocation85_spill] sm:$0xff] }
 0x369   :  { %v3078_v18 = vsel %vm3037_vm6, %v3013_v0, %v2280_v4  ;;  %v2885_v30 = vsel %vm2842_vm3, %v2820_v46, %v1516_v52  ;;  %v2821_v36 = vsel %vm2777_vm2, %v2756_v6, %v12460_v25 }
 0x36a   :  { %2299 = vrot.lane.b32.xlu1 %v6271_v19, %s7043_s13  ;;  %2045 = vrot.lane.b32.xlu0 %v6208_v7, %s7042_s8 }
 0x36c   :  { %v2536_v22 = vpop.permute.xlu1 %2535  ;;  %v2282_v2 = vpop.permute.xlu0 %2281 }
 0x36d   :  { %v3143_v55 = vsel %vm3102_vm7, %v3078_v18, %v2536_v22  ;;  %v3079_v63 = vsel %vm3037_vm6, %v3014_v21, %v2282_v2  ;;  %v6148_v18 = vld [vmem:[%s12204_s0 + $0x2da] sm:$0xff] }
 0x36e   :  { %1535 = vrot.lane.b32.xlu1 %v6271_v19, %s7040_s22  ;;  %1281 = vrot.lane.b32.xlu0 %v6208_v7, %s7039_s26 }
 0x36f   :  { %6680 = vmatprep.mubr.msk.f32.mxu0 %vm3176_vm8, %v3143_v55  ;;  %v6021_v55 = vld [vmem:[%s12204_s0 + $0x2e8] sm:$0xff] }
 0x370   :  { %v1772_v41 = vpop.permute.xlu1 %1771  ;;  %v1518_v33 = vpop.permute.xlu0 %1517 }
 0x371   :  { %v2950_v50 = vsel %vm2907_vm4, %v2885_v30, %v1772_v41  ;;  %v2886_v38 = vsel %vm2842_vm3, %v2821_v36, %v1518_v33 }
 0x372   :  { %2555 = vrot.lane.b32.xlu1 %v6335_v42, %s7044_s18  ;;  %2301 = vrot.lane.b32.xlu0 %v6272_v61, %s7043_s13 }
 0x374   :  { %v1774_v28 = vpop.permute.xlu1 %1773  ;;  %v2538_v35 = vpop.permute.xlu0 %2537 }
 0x375   :  { %v3144_v56 = vsel %vm3102_vm7, %v3079_v63, %v2538_v35  ;;  %v2951_v40 = vsel %vm2907_vm4, %v2886_v38, %v1774_v28 }
 0x376   :  { %1791 = vrot.lane.b32.xlu1 %v6335_v42, %s7041_s19  ;;  %1537 = vrot.lane.b32.xlu0 %v6272_v61, %s7040_s22  ;;  %v12462_v42 = vld [vmem:[#allocation83_spill] sm:$0xff] }
 0x377   :  { %6681 = vmatmul.mubr.msk.f32.gmra.mxu0 %vm3176_vm8, %v3144_v56  ;;  %v2757_v61 = vsel %vm2712_vm1, %v2692_v26, %v12462_v42 }
 0x378   :  { %v9538_v10 = vpop.permute.xlu1 %1263  ;;  %v2028_v37 = vpop.permute.xlu0 %2027 }
 0x379   :  { %v3015_v62 = vsel %vm2972_vm5, %v2950_v50, %v2028_v37  ;;  %v2822_v41 = vsel %vm2777_vm2, %v2757_v61, %v9538_v10  ;;  %v7036_v10 = vld [vmem:[%s12204_s0 + $0x248] sm:$0xff] }
 0x37a   :  { %1793 = vrot.lane.b32.xlu1 %v6146_v12, %s7041_s19  ;;  %2557 = vrot.lane.b32.xlu0 %v6146_v12, %s7044_s18  ;;  %v12463_v37 = vld [vmem:[#allocation32_spill] sm:$0xff] }
 0x37c   :  { %v2284_v9 = vpop.permute.xlu1 %2283  ;;  %v2030_v43 = vpop.permute.xlu0 %2029 }
 0x37d   :  { %v3080_v34 = vsel %vm3037_vm6, %v3015_v62, %v2284_v9  ;;  %v3016_v52 = vsel %vm2972_vm5, %v2951_v40, %v2030_v43  ;;  %v12464_v9 = vld [vmem:[#allocation82_spill] sm:$0xff]  ;;  %v68_v40 = vld [vmem:[%s12204_s0 + $0x260] sm:$0xff] }
 0x37e   :  { %1283 = vrot.lane.b32.xlu1 %v6019_v60, %s7039_s26  ;;  %2047 = vrot.lane.b32.xlu0 %v6019_v60, %s7042_s8  ;;  %v2693_v60 = vsel %vm2647_vm0, %v7036_v10, %v12463_v37  ;;  %v12469_v10 = vld [vmem:[#allocation37_spill] sm:$0xff] }
 0x37f   :  { %v2758_v43 = vsel %vm2712_vm1, %v2693_v60, %v12464_v9  ;;  %v12470_v60 = vld [vmem:[#allocation87_spill] sm:$0xff] }
 0x380   :  { %v1520_v53 = vpop.permute.xlu1 %1519  ;;  %v9562_v59 = vpop.permute.xlu0 %1265 }
 0x381   :  { %v2887_v32 = vsel %vm2842_vm3, %v2822_v41, %v1520_v53  ;;  %v2823_v58 = vsel %vm2777_vm2, %v2758_v43, %v9562_v59  ;;  %v6150_v59 = vld [vmem:[%s12204_s0 + $0x2f2] sm:$0xff] }
 0x382   :  { %2303 = vrot.lane.b32.xlu1 %v6273_v14, %s7043_s13  ;;  %2049 = vrot.lane.b32.xlu0 %v6210_v44, %s7042_s8  ;;  %v6279_v43 = vld [vmem:[%s12204_s0 + $0x319] sm:$0xff] }
 0x384   :  { %v2540_v47 = vpop.permute.xlu1 %2539  ;;  %v2286_v8 = vpop.permute.xlu0 %2285 }
 0x385   :  { %v3145_v54 = vsel %vm3102_vm7, %v3080_v34, %v2540_v47  ;;  %v3081_v4 = vsel %vm3037_vm6, %v3016_v52, %v2286_v8  ;;  %v67_v47 = vld [vmem:[%s12204_s0 + $0x258] sm:$0xff]  ;;  %v6023_v8 = vld [vmem:[%s12204_s0 + $0x300] sm:$0xff] }
 0x386   :  { %1539 = vrot.lane.b32.xlu1 %v6273_v14, %s7040_s22  ;;  %1285 = vrot.lane.b32.xlu0 %v6210_v44, %s7039_s26  ;;  %v2694_v11 = vsel %vm2647_vm0, %v67_v47, %v12465_v15 }
 0x387   :  { %6683 = vmatprep.mubr.msk.f32.mxu0 %vm3176_vm8, %v3145_v54  ;;  %v2759_v6 = vsel %vm2712_vm1, %v2694_v11, %v12466_v51 }
 0x388   :  { %v1776_v19 = vpop.permute.xlu1 %1775  ;;  %v1522_v7 = vpop.permute.xlu0 %1521 }
 0x389   :  { %v2952_v21 = vsel %vm2907_vm4, %v2887_v32, %v1776_v19  ;;  %v2888_v14 = vsel %vm2842_vm3, %v2823_v58, %v1522_v7 }
 0x38a   :  { %2559 = vrot.lane.b32.xlu1 %v6337_v39, %s7044_s18  ;;  %2305 = vrot.lane.b32.xlu0 %v6274_v57, %s7043_s13 }
 0x38c   :  { %v1778_v16 = vpop.permute.xlu1 %1777  ;;  %v2542_v23 = vpop.permute.xlu0 %2541 }
 0x38d   :  { %v3146_v0 = vsel %vm3102_vm7, %v3081_v4, %v2542_v23  ;;  %v2953_v44 = vsel %vm2907_vm4, %v2888_v14, %v1778_v16 }
 0x38e   :  { %1795 = vrot.lane.b32.xlu1 %v6337_v39, %s7041_s19  ;;  %1541 = vrot.lane.b32.xlu0 %v6274_v57, %s7040_s22  ;;  %v6277_v39 = vld [vmem:[%s12204_s0 + $0x301] sm:$0xff] }
 0x38f   :  { %6684 = vmatmul.mubr.msk.f32.gmra.mxu0 %vm3176_vm8, %v3146_v0  ;;  %v6214_v57 = vld [vmem:[%s12204_s0 + $0x308] sm:$0xff] }
 0x390   :  { %v9602_v22 = vpop.permute.xlu1 %1267  ;;  %v2032_v2 = vpop.permute.xlu0 %2031 }
 0x391   :  { %v3017_v63 = vsel %vm2972_vm5, %v2952_v21, %v2032_v2  ;;  %v2824_v25 = vsel %vm2777_vm2, %v2759_v6, %v9602_v22  ;;  %v12468_v2 = vld [vmem:[#allocation84_spill] sm:$0xff] }
 0x392   :  { %1797 = vrot.lane.b32.xlu1 %v6148_v18, %s7041_s19  ;;  %2561 = vrot.lane.b32.xlu0 %v6148_v18, %s7044_s18  ;;  %v12467_v18 = vld [vmem:[#allocation34_spill] sm:$0xff] }
 0x393   :  { %v2695_v22 = vsel %vm2647_vm0, %v68_v40, %v12467_v18 }
 0x394   :  { %v2288_v29 = vpop.permute.xlu1 %2287  ;;  %v2034_v13 = vpop.permute.xlu0 %2033 }
 0x395   :  { %v3082_v28 = vsel %vm3037_vm6, %v3017_v63, %v2288_v29  ;;  %v3018_v5 = vsel %vm2972_vm5, %v2953_v44, %v2034_v13  ;;  %v6341_v29 = vld [vmem:[%s12204_s0 + $0x302] sm:$0xff]  ;;  %v70_v44 = vld [vmem:[%s12204_s0 + $0x278] sm:$0xff] }
 0x396   :  { %1287 = vrot.lane.b32.xlu1 %v6021_v55, %s7039_s26  ;;  %2051 = vrot.lane.b32.xlu0 %v6021_v55, %s7042_s8  ;;  %v2760_v55 = vsel %vm2712_vm1, %v2695_v22, %v12468_v2  ;;  %v6278_v13 = vld [vmem:[%s12204_s0 + $0x309] sm:$0xff] }
 0x397   :  { %v12474_v22 = vld [vmem:[#allocation89_spill] sm:$0xff] }
 0x398   :  { %v1524_v33 = vpop.permute.xlu1 %1523  ;;  %v9626_v24 = vpop.permute.xlu0 %1269 }
 0x399   :  { %v2889_v7 = vsel %vm2842_vm3, %v2824_v25, %v1524_v33  ;;  %v2825_v27 = vsel %vm2777_vm2, %v2760_v55, %v9626_v24  ;;  %v6152_v24 = vld [vmem:[%s12204_s0 + $0x30a] sm:$0xff] }
 0x39a   :  { %2307 = vrot.lane.b32.xlu1 %v6275_v48, %s7043_s13  ;;  %2053 = vrot.lane.b32.xlu0 %v6212_v45, %s7042_s8  ;;  %v6281_v55 = vld [vmem:[%s12204_s0 + $0x331] sm:$0xff] }
 0x39c   :  { %v2544_v35 = vpop.permute.xlu1 %2543  ;;  %v2290_v56 = vpop.permute.xlu0 %2289 }
 0x39d   :  { %v3147_v12 = vsel %vm3102_vm7, %v3082_v28, %v2544_v35  ;;  %v3083_v46 = vsel %vm3037_vm6, %v3018_v5, %v2290_v56  ;;  %v69_v28 = vld [vmem:[%s12204_s0 + $0x270] sm:$0xff]  ;;  %v6025_v35 = vld [vmem:[%s12204_s0 + $0x318] sm:$0xff] }
 0x39e   :  { %1543 = vrot.lane.b32.xlu1 %v6275_v48, %s7040_s22  ;;  %1289 = vrot.lane.b32.xlu0 %v6212_v45, %s7039_s26  ;;  %v2696_v37 = vsel %vm2647_vm0, %v69_v28, %v12469_v10 }
 0x39f   :  { %6686 = vmatprep.mubr.msk.f32.mxu0 %vm3176_vm8, %v3147_v12  ;;  %v2761_v9 = vsel %vm2712_vm1, %v2696_v37, %v12470_v60 }
 0x3a0   :  { %v1780_v20 = vpop.permute.xlu1 %1779  ;;  %v1526_v1 = vpop.permute.xlu0 %1525 }
 0x3a1   :  { %v2954_v38 = vsel %vm2907_vm4, %v2889_v7, %v1780_v20  ;;  %v2890_v42 = vsel %vm2842_vm3, %v2825_v27, %v1526_v1 }
 0x3a2   :  { %2563 = vrot.lane.b32.xlu1 %v6339_v31, %s7044_s18  ;;  %2309 = vrot.lane.b32.xlu0 %v6276_v3, %s7043_s13 }
 0x3a4   :  { %v1782_v53 = vpop.permute.xlu1 %1781  ;;  %v2546_v30 = vpop.permute.xlu0 %2545 }
 0x3a5   :  { %v3148_v50 = vsel %vm3102_vm7, %v3083_v46, %v2546_v30  ;;  %v2955_v61 = vsel %vm2907_vm4, %v2890_v42, %v1782_v53 }
 0x3a6   :  { %1799 = vrot.lane.b32.xlu1 %v6339_v31, %s7041_s19  ;;  %1545 = vrot.lane.b32.xlu0 %v6276_v3, %s7040_s22  ;;  %v6216_v31 = vld [vmem:[%s12204_s0 + $0x320] sm:$0xff] }
 0x3a7   :  { %6687 = vmatmul.mubr.msk.f32.gmra.mxu0 %vm3176_vm8, %v3148_v50 }
 0x3a8   :  { %v9666_v62 = vpop.permute.xlu1 %1271  ;;  %v2036_v34 = vpop.permute.xlu0 %2035 }
 0x3a9   :  { %v3019_v52 = vsel %vm2972_vm5, %v2954_v38, %v2036_v34  ;;  %v2826_v3 = vsel %vm2777_vm2, %v2761_v9, %v9666_v62  ;;  %v12472_v34 = vld [vmem:[#allocation86_spill] sm:$0xff] }
 0x3aa   :  { %1801 = vrot.lane.b32.xlu1 %v6150_v59, %s7041_s19  ;;  %2565 = vrot.lane.b32.xlu0 %v6150_v59, %s7044_s18  ;;  %v12471_v59 = vld [vmem:[#allocation36_spill] sm:$0xff] }
 0x3ab   :  { %v2697_v62 = vsel %vm2647_vm0, %v70_v44, %v12471_v59  ;;  %v12477_v59 = vld [vmem:[#allocation41_spill] sm:$0xff] }
 0x3ac   :  { %v2292_v54 = vpop.permute.xlu1 %2291  ;;  %v2038_v17 = vpop.permute.xlu0 %2037  ;;  %v2762_v47 = vsel %vm2712_vm1, %v2697_v62, %v12472_v34  ;;  %v12478_v34 = vld [vmem:[#allocation91_spill] sm:$0xff] }
 0x3ad   :  { %v3084_v4 = vsel %vm3037_vm6, %v3019_v52, %v2292_v54  ;;  %v3020_v48 = vsel %vm2972_vm5, %v2955_v61, %v2038_v17  ;;  %v6280_v54 = vld [vmem:[%s12204_s0 + $0x321] sm:$0xff]  ;;  %v72_v61 = vld [vmem:[%s12204_s0 + $0x290] sm:$0xff] }
 0x3ae   :  { %1291 = vrot.lane.b32.xlu1 %v6023_v8, %s7039_s26  ;;  %2055 = vrot.lane.b32.xlu0 %v6023_v8, %s7042_s8  ;;  %v6343_v8 = vld [vmem:[%s12204_s0 + $0x31a] sm:$0xff]  ;;  %v71_v52 = vld [vmem:[%s12204_s0 + $0x288] sm:$0xff] }
 0x3b0   :  { %v1528_v36 = vpop.permute.xlu1 %1527  ;;  %v9690_v19 = vpop.permute.xlu0 %1273 }
 0x3b1   :  { %v2891_v1 = vsel %vm2842_vm3, %v2826_v3, %v1528_v36  ;;  %v2827_v17 = vsel %vm2777_vm2, %v2762_v47, %v9690_v19  ;;  %v6154_v19 = vld [vmem:[%s12204_s0 + $0x322] sm:$0xff] }
 0x3b2   :  { %2311 = vrot.lane.b32.xlu1 %v6277_v39, %s7043_s13  ;;  %2057 = vrot.lane.b32.xlu0 %v6214_v57, %s7042_s8 }
 0x3b4   :  { %v2548_v16 = vpop.permute.xlu1 %2547  ;;  %v2294_v23 = vpop.permute.xlu0 %2293 }
 0x3b5   :  { %v3149_v0 = vsel %vm3102_vm7, %v3084_v4, %v2548_v16  ;;  %v3085_v45 = vsel %vm3037_vm6, %v3020_v48, %v2294_v23  ;;  %v6027_v4 = vld [vmem:[%s12204_s0 + $0x330] sm:$0xff] }
 0x3b6   :  { %1547 = vrot.lane.b32.xlu1 %v6277_v39, %s7040_s22  ;;  %1293 = vrot.lane.b32.xlu0 %v6214_v57, %s7039_s26 }
 0x3b7   :  { %6689 = vmatprep.mubr.msk.f32.mxu0 %vm3176_vm8, %v3149_v0  ;;  %v12473_v0 = vld [vmem:[#allocation39_spill] sm:$0xff] }
 0x3b8   :  { %v1784_v49 = vpop.permute.xlu1 %1783  ;;  %v1530_v26 = vpop.permute.xlu0 %1529  ;;  %v2698_v18 = vsel %vm2647_vm0, %v71_v52, %v12473_v0  ;;  %v12479_v52 = vld [vmem:[#allocation40_spill] sm:$0xff] }
 0x3b9   :  { %v2956_v14 = vsel %vm2907_vm4, %v2891_v1, %v1784_v49  ;;  %v2892_v51 = vsel %vm2842_vm3, %v2827_v17, %v1530_v26  ;;  %v2763_v2 = vsel %vm2712_vm1, %v2698_v18, %v12474_v22 }
 0x3ba   :  { %2567 = vrot.lane.b32.xlu1 %v6341_v29, %s7044_s18  ;;  %2313 = vrot.lane.b32.xlu0 %v6278_v13, %s7043_s13 }
 0x3bc   :  { %v1786_v41 = vpop.permute.xlu1 %1785  ;;  %v2550_v33 = vpop.permute.xlu0 %2549 }
 0x3bd   :  { %v3150_v32 = vsel %vm3102_vm7, %v3085_v45, %v2550_v33  ;;  %v2957_v6 = vsel %vm2907_vm4, %v2892_v51, %v1786_v41 }
 0x3be   :  { %1803 = vrot.lane.b32.xlu1 %v6341_v29, %s7041_s19  ;;  %1549 = vrot.lane.b32.xlu0 %v6278_v13, %s7040_s22  ;;  %v6218_v29 = vld [vmem:[%s12204_s0 + $0x338] sm:$0xff] }
 0x3bf   :  { %6690 = vmatmul.mubr.msk.f32.gmra.mxu0 %vm3176_vm8, %v3150_v32 }
 0x3c0   :  { %v9730_v21 = vpop.permute.xlu1 %1275  ;;  %v2040_v63 = vpop.permute.xlu0 %2039 }
 0x3c1   :  { %v3021_v5 = vsel %vm2972_vm5, %v2956_v14, %v2040_v63  ;;  %v2828_v13 = vsel %vm2777_vm2, %v2763_v2, %v9730_v21  ;;  %v12476_v63 = vld [vmem:[#allocation88_spill] sm:$0xff] }
 0x3c2   :  { %1805 = vrot.lane.b32.xlu1 %v6152_v24, %s7041_s19  ;;  %2569 = vrot.lane.b32.xlu0 %v6152_v24, %s7044_s18  ;;  %v12475_v24 = vld [vmem:[#allocation38_spill] sm:$0xff] }
 0x3c3   :  { %v2699_v21 = vsel %vm2647_vm0, %v72_v61, %v12475_v24  ;;  %v12482_v24 = vld [vmem:[#allocation93_spill] sm:$0xff] }
 0x3c4   :  { %v2296_v56 = vpop.permute.xlu1 %2295  ;;  %v2042_v12 = vpop.permute.xlu0 %2041  ;;  %v2764_v28 = vsel %vm2712_vm1, %v2699_v21, %v12476_v63 }
 0x3c5   :  { %v3086_v46 = vsel %vm3037_vm6, %v3021_v5, %v2296_v56  ;;  %v3022_v39 = vsel %vm2972_vm5, %v2957_v6, %v2042_v12  ;;  %v6282_v56 = vld [vmem:[%s12204_s0 + $0x339] sm:$0xff] }
 0x3c6   :  { %1295 = vrot.lane.b32.xlu1 %v6025_v35, %s7039_s26  ;;  %2059 = vrot.lane.b32.xlu0 %v6025_v35, %s7042_s8  ;;  %v6345_v35 = vld [vmem:[%s12204_s0 + $0x332] sm:$0xff]  ;;  %v73_v5 = vld [vmem:[%s12204_s0 + $0x2a0] sm:$0xff] }
 0x3c7   :  { %v2700_v62 = vsel %vm2647_vm0, %v73_v5, %v12477_v59 }
 0x3c8   :  { %v1532_v58 = vpop.permute.xlu1 %1531  ;;  %v9754_v20 = vpop.permute.xlu0 %1277  ;;  %v2765_v47 = vsel %vm2712_vm1, %v2700_v62, %v12478_v34 }
 0x3c9   :  { %v2893_v26 = vsel %vm2842_vm3, %v2828_v13, %v1532_v58  ;;  %v2829_v12 = vsel %vm2777_vm2, %v2764_v28, %v9754_v20  ;;  %v6156_v20 = vld [vmem:[%s12204_s0 + $0x33a] sm:$0xff] }
 0x3ca   :  { %2315 = vrot.lane.b32.xlu1 %v6279_v43, %s7043_s13  ;;  %2061 = vrot.lane.b32.xlu0 %v6216_v31, %s7042_s8 }
 0x3cc   :  { %v2552_v53 = vpop.permute.xlu1 %2551  ;;  %v2298_v30 = vpop.permute.xlu0 %2297 }
 0x3cd   :  { %v3151_v50 = vsel %vm3102_vm7, %v3086_v46, %v2552_v53  ;;  %v3087_v57 = vsel %vm3037_vm6, %v3022_v39, %v2298_v30  ;;  %v6220_v46 = vld [vmem:[%s12204_s0 + $0x350] sm:$0xff]  ;;  %v6219_v53 = vld [vmem:[%s12204_s0 + $0x348] sm:$0xff] }
 0x3ce   :  { %1551 = vrot.lane.b32.xlu1 %v6279_v43, %s7040_s22  ;;  %1297 = vrot.lane.b32.xlu0 %v6216_v31, %s7039_s26  ;;  %v74_v39 = vld [vmem:[%s12204_s0 + $0x2a8] sm:$0xff] }
 0x3cf   :  { %6692 = vmatprep.mubr.msk.f32.mxu0 %vm3176_vm8, %v3151_v50 }
 0x3d0   :  { %v1788_v15 = vpop.permute.xlu1 %1787  ;;  %v1534_v11 = vpop.permute.xlu0 %1533 }
 0x3d1   :  { %v2958_v42 = vsel %vm2907_vm4, %v2893_v26, %v1788_v15  ;;  %v2894_v60 = vsel %vm2842_vm3, %v2829_v12, %v1534_v11 }
 0x3d2   :  { %2571 = vrot.lane.b32.xlu1 %v6343_v8, %s7044_s18  ;;  %2317 = vrot.lane.b32.xlu0 %v6280_v54, %s7043_s13 }
 0x3d4   :  { %v1790_v25 = vpop.permute.xlu1 %1789  ;;  %v2554_v36 = vpop.permute.xlu0 %2553 }
 0x3d5   :  { %v3152_v7 = vsel %vm3102_vm7, %v3087_v57, %v2554_v36  ;;  %v2959_v9 = vsel %vm2907_vm4, %v2894_v60, %v1790_v25  ;;  %v6348_v25 = vld [vmem:[%s12204_s0 + $0x352] sm:$0xff]  ;;  %v6347_v36 = vld [vmem:[%s12204_s0 + $0x34a] sm:$0xff] }
 0x3d6   :  { %1807 = vrot.lane.b32.xlu1 %v6343_v8, %s7041_s19  ;;  %1553 = vrot.lane.b32.xlu0 %v6280_v54, %s7040_s22  ;;  %v6284_v8 = vld [vmem:[%s12204_s0 + $0x351] sm:$0xff]  ;;  %v6283_v54 = vld [vmem:[%s12204_s0 + $0x349] sm:$0xff] }
 0x3d7   :  { %6693 = vmatmul.mubr.msk.f32.gmra.mxu0 %vm3176_vm8, %v3152_v7 }
 0x3d8   :  { %v9794_v38 = vpop.permute.xlu1 %1279  ;;  %v2044_v40 = vpop.permute.xlu0 %2043 }
 0x3d9   :  { %v3023_v48 = vsel %vm2972_vm5, %v2958_v42, %v2044_v40  ;;  %v2830_v17 = vsel %vm2777_vm2, %v2765_v47, %v9794_v38 }
 0x3da   :  { %1809 = vrot.lane.b32.xlu1 %v6154_v19, %s7041_s19  ;;  %2573 = vrot.lane.b32.xlu0 %v6154_v19, %s7044_s18 }
 0x3dc   :  { %v2300_v16 = vpop.permute.xlu1 %2299  ;;  %v2046_v23 = vpop.permute.xlu0 %2045 }
 0x3dd   :  { %v3088_v45 = vsel %vm3037_vm6, %v3023_v48, %v2300_v16  ;;  %v3024_v43 = vsel %vm2972_vm5, %v2959_v9, %v2046_v23  ;;  %v12480_v16 = vld [vmem:[#allocation90_spill] sm:$0xff] }
 0x3de   :  { %1299 = vrot.lane.b32.xlu1 %v6027_v4, %s7039_s26  ;;  %2063 = vrot.lane.b32.xlu0 %v6027_v4, %s7042_s8  ;;  %v2701_v4 = vsel %vm2647_vm0, %v74_v39, %v12479_v52 }
 0x3df   :  { %v2766_v23 = vsel %vm2712_vm1, %v2701_v4, %v12480_v16 }
 0x3e0   :  { %v1536_v27 = vpop.permute.xlu1 %1535  ;;  %v9818_v49 = vpop.permute.xlu0 %1281 }
 0x3e1   :  { %v2895_v51 = vsel %vm2842_vm3, %v2830_v17, %v1536_v27  ;;  %v2831_v0 = vsel %vm2777_vm2, %v2766_v23, %v9818_v49  ;;  %v75_v49 = vld [vmem:[%s12204_s0 + $0x2b8] sm:$0xff] }
 0x3e2   :  { %2319 = vrot.lane.b32.xlu1 %v6281_v55, %s7043_s13  ;;  %2065 = vrot.lane.b32.xlu0 %v6218_v29, %s7042_s8 }
 0x3e4   :  { %v2556_v41 = vpop.permute.xlu1 %2555  ;;  %v2302_v33 = vpop.permute.xlu0 %2301 }
 0x3e5   :  { %v3153_v32 = vsel %vm3102_vm7, %v3088_v45, %v2556_v41  ;;  %v3089_v31 = vsel %vm3037_vm6, %v3024_v43, %v2302_v33  ;;  %v12481_v33 = vld [vmem:[#allocation43_spill] sm:$0xff] }
 0x3e6   :  { %1555 = vrot.lane.b32.xlu1 %v6281_v55, %s7040_s22  ;;  %1301 = vrot.lane.b32.xlu0 %v6218_v29, %s7039_s26 }
 0x3e7   :  { %6695 = vmatprep.mubr.msk.f32.mxu0 %vm3176_vm8, %v3153_v32  ;;  %v2702_v32 = vsel %vm2647_vm0, %v75_v49, %v12481_v33 }
 0x3e8   :  { %v1792_v10 = vpop.permute.xlu1 %1791  ;;  %v1538_v37 = vpop.permute.xlu0 %1537  ;;  %v2767_v21 = vsel %vm2712_vm1, %v2702_v32, %v12482_v24  ;;  %v79_v32 = vld [vmem:[%s12204_s0 + $0x2e8] sm:$0xff] }
 0x3e9   :  { %v2960_v6 = vsel %vm2907_vm4, %v2895_v51, %v1792_v10  ;;  %v2896_v2 = vsel %vm2842_vm3, %v2831_v0, %v1538_v37  ;;  %v76_v10 = vld [vmem:[%s12204_s0 + $0x2c0] sm:$0xff]  ;;  %v12487_v0 = vld [vmem:[#allocation44_spill] sm:$0xff] }
 0x3ea   :  { %2575 = vrot.lane.b32.xlu1 %v6345_v35, %s7044_s18  ;;  %2321 = vrot.lane.b32.xlu0 %v6282_v56, %s7043_s13 }
 0x3ec   :  { %v1794_v3 = vpop.permute.xlu1 %1793  ;;  %v2558_v58 = vpop.permute.xlu0 %2557 }
 0x3ed   :  { %v3154_v1 = vsel %vm3102_vm7, %v3089_v31, %v2558_v58  ;;  %v2961_v55 = vsel %vm2907_vm4, %v2896_v2, %v1794_v3  ;;  %v12483_v3 = vld [vmem:[#allocation42_spill] sm:$0xff] }
 0x3ee   :  { %1811 = vrot.lane.b32.xlu1 %v6345_v35, %s7041_s19  ;;  %1557 = vrot.lane.b32.xlu0 %v6282_v56, %s7040_s22  ;;  %v2703_v58 = vsel %vm2647_vm0, %v76_v10, %v12483_v3 }
 0x3ef   :  { %6696 = vmatmul.mubr.msk.f32.gmra.mxu0 %vm3176_vm8, %v3154_v1  ;;  %v12484_v1 = vld [vmem:[#allocation92_spill] sm:$0xff] }
 0x3f0   :  { %v1284_v14 = vpop.permute.xlu1 %1283  ;;  %v2048_v44 = vpop.permute.xlu0 %2047 }
 0x3f1   :  { %v3025_v57 = vsel %vm2972_vm5, %v2960_v6, %v2048_v44  ;;  %v2832_v63 = vsel %vm2777_vm2, %v2767_v21, %v1284_v14  ;;  %v12486_v6 = vld [vmem:[#allocation95_spill] sm:$0xff] }
 0x3f2   :  { %1813 = vrot.lane.b32.xlu1 %v6156_v20, %s7041_s19  ;;  %2577 = vrot.lane.b32.xlu0 %v6156_v20, %s7044_s18  ;;  %v2768_v20 = vsel %vm2712_vm1, %v2703_v58, %v12484_v1 }
 0x3f4   :  { %v2304_v30 = vpop.permute.xlu1 %2303  ;;  %v2050_v50 = vpop.permute.xlu0 %2049 }
 0x3f5   :  { %v3090_v7 = vsel %vm3037_vm6, %v3025_v57, %v2304_v30  ;;  %v3026_v29 = vsel %vm2972_vm5, %v2961_v55, %v2050_v50 }
 0x3f6   :  { %2069 = vrot.lane.b32.xlu1 %v6220_v46, %s7042_s8  ;;  %2067 = vrot.lane.b32.xlu0 %v6219_v53, %s7042_s8 }
 0x3f8   :  { %v1540_v15 = vpop.permute.xlu1 %1539  ;;  %v1286_v11 = vpop.permute.xlu0 %1285 }
 0x3f9   :  { %v2897_v56 = vsel %vm2842_vm3, %v2832_v63, %v1540_v15  ;;  %v2833_v14 = vsel %vm2777_vm2, %v2768_v20, %v1286_v11  ;;  %v12485_v11 = vld [vmem:[#allocation45_spill] sm:$0xff]  ;;  %v12489_v63 = vld [vmem:[#allocation47_spill] sm:$0xff] }
 0x3fa   :  { %2325 = vrot.lane.b32.xlu1 %v6284_v8, %s7043_s13  ;;  %2323 = vrot.lane.b32.xlu0 %v6283_v54, %s7043_s13  ;;  %v77_v54 = vld [vmem:[%s12204_s0 + $0x2d0] sm:$0xff] }
 0x3fb   :  { %v2704_v51 = vsel %vm2647_vm0, %v77_v54, %v12485_v11 }
 0x3fc   :  { %v2560_v19 = vpop.permute.xlu1 %2559  ;;  %v2306_v38 = vpop.permute.xlu0 %2305  ;;  %v2769_v39 = vsel %vm2712_vm1, %v2704_v51, %v12486_v6  ;;  %v81_v51 = vld [vmem:[%s12204_s0 + $0x300] sm:$0xff] }
 0x3fd   :  { %v3155_v40 = vsel %vm3102_vm7, %v3090_v7, %v2560_v19  ;;  %v3091_v13 = vsel %vm3037_vm6, %v3026_v29, %v2306_v38  ;;  %v78_v38 = vld [vmem:[%s12204_s0 + $0x2d8] sm:$0xff] }
 0x3fe   :  { %2581 = vrot.lane.b32.xlu1 %v6348_v25, %s7044_s18  ;;  %2579 = vrot.lane.b32.xlu0 %v6347_v36, %s7044_s18 }
 0x3ff   :  { %6698 = vmatprep.mubr.msk.f32.mxu0 %vm3176_vm8, %v3155_v40 }
 0x400   :  { %v1796_v18 = vpop.permute.xlu1 %1795  ;;  %v1542_v22 = vpop.permute.xlu0 %1541 }
 0x401   :  { %v2962_v12 = vsel %vm2907_vm4, %v2897_v56, %v1796_v18  ;;  %v2898_v46 = vsel %vm2842_vm3, %v2833_v14, %v1542_v22  ;;  %v2705_v18 = vsel %vm2647_vm0, %v78_v38, %v12487_v0  ;;  %v12488_v22 = vld [vmem:[#allocation94_spill] sm:$0xff] }
 0x402   :  { %v2770_v2 = vsel %vm2712_vm1, %v2705_v18, %v12488_v22  ;;  %v12491_v14 = vld [vmem:[#allocation46_spill] sm:$0xff] }
 0x404   :  { %v1798_v27 = vpop.permute.xlu1 %1797  ;;  %v2562_v26 = vpop.permute.xlu0 %2561 }
 0x405   :  { %v3156_v42 = vsel %vm3102_vm7, %v3091_v13, %v2562_v26  ;;  %v2963_v53 = vsel %vm2907_vm4, %v2898_v46, %v1798_v27 }
 0x406   :  { %6699 = vmatmul.mubr.msk.f32.gmra.mxu0 %vm3176_vm8, %v3156_v42 }
 0x408   :  { %v1288_v61 = vpop.permute.xlu1 %1287  ;;  %v2052_v48 = vpop.permute.xlu0 %2051 }
 0x409   :  { %v3027_v37 = vsel %vm2972_vm5, %v2962_v12, %v2052_v48  ;;  %v2834_v57 = vsel %vm2777_vm2, %v2769_v39, %v1288_v61 }
 0x40c   :  { %v2308_v45 = vpop.permute.xlu1 %2307  ;;  %v2054_v41 = vpop.permute.xlu0 %2053 }
 0x40d   :  { %v3092_v60 = vsel %vm3037_vm6, %v3027_v37, %v2308_v45  ;;  %v3028_v30 = vsel %vm2972_vm5, %v2963_v53, %v2054_v41 }
 0x410   :  { %v1544_v28 = vpop.permute.xlu1 %1543  ;;  %v1290_v35 = vpop.permute.xlu0 %1289 }
 0x411   :  { %v2899_v7 = vsel %vm2842_vm3, %v2834_v57, %v1544_v28  ;;  %v2835_v55 = vsel %vm2777_vm2, %v2770_v2, %v1290_v35  ;;  %v2706_v28 = vsel %vm2647_vm0, %v79_v32, %v12489_v63  ;;  %v12490_v35 = vld [vmem:[#allocation97_spill] sm:$0xff]  ;;  %v83_v63 = vld [vmem:[%s12204_s0 + $0x318] sm:$0xff] }
 0x412   :  { %v2771_v56 = vsel %vm2712_vm1, %v2706_v28, %v12490_v35  ;;  %v12493_v57 = vld [vmem:[#allocation49_spill] sm:$0xff] }
 0x414   :  { %v2564_v9 = vpop.permute.xlu1 %2563  ;;  %v2310_v43 = vpop.permute.xlu0 %2309 }
 0x415   :  { %v3157_v31 = vsel %vm3102_vm7, %v3092_v60, %v2564_v9  ;;  %v3093_v50 = vsel %vm3037_vm6, %v3028_v30, %v2310_v43  ;;  %v80_v43 = vld [vmem:[%s12204_s0 + $0x2f0] sm:$0xff] }
 0x416   :  { %6701 = vmatprep.mubr.msk.f32.mxu0 %vm3176_vm8, %v3157_v31 }
 0x418   :  { %v1800_v44 = vpop.permute.xlu1 %1799  ;;  %v1546_v5 = vpop.permute.xlu0 %1545 }
 0x419   :  { %v2964_v19 = vsel %vm2907_vm4, %v2899_v7, %v1800_v44  ;;  %v2900_v27 = vsel %vm2842_vm3, %v2835_v55, %v1546_v5  ;;  %v2707_v44 = vsel %vm2647_vm0, %v80_v43, %v12491_v14  ;;  %v12492_v5 = vld [vmem:[#allocation96_spill] sm:$0xff]  ;;  %v12500_v43 = vld [vmem:[#allocation101_spill] sm:$0xff] }
 0x41a   :  { %v2772_v46 = vsel %vm2712_vm1, %v2707_v44, %v12492_v5  ;;  %v12495_v55 = vld [vmem:[#allocation48_spill] sm:$0xff] }
 0x41c   :  { %v1802_v59 = vpop.permute.xlu1 %1801  ;;  %v2566_v62 = vpop.permute.xlu0 %2565 }
 0x41d   :  { %v3158_v34 = vsel %vm3102_vm7, %v3093_v50, %v2566_v62  ;;  %v2965_v26 = vsel %vm2907_vm4, %v2900_v27, %v1802_v59 }
 0x41e   :  { %6702 = vmatmul.mubr.msk.f32.gmra.mxu0 %vm3176_vm8, %v3158_v34 }
 0x420   :  { %v1292_v47 = vpop.permute.xlu1 %1291  ;;  %v2056_v8 = vpop.permute.xlu0 %2055 }
 0x421   :  { %v3029_v40 = vsel %vm2972_vm5, %v2964_v19, %v2056_v8  ;;  %v2836_v12 = vsel %vm2777_vm2, %v2771_v56, %v1292_v47  ;;  %v12497_v56 = vld [vmem:[#allocation50_spill] sm:$0xff] }
 0x424   :  { %v2312_v17 = vpop.permute.xlu1 %2311  ;;  %v2058_v15 = vpop.permute.xlu0 %2057 }
 0x425   :  { %v3094_v52 = vsel %vm3037_vm6, %v3029_v40, %v2312_v17  ;;  %v3030_v42 = vsel %vm2972_vm5, %v2965_v26, %v2058_v15 }
 0x428   :  { %v1548_v25 = vpop.permute.xlu1 %1547  ;;  %v1294_v36 = vpop.permute.xlu0 %1293 }
 0x429   :  { %v2901_v60 = vsel %vm2842_vm3, %v2836_v12, %v1548_v25  ;;  %v2837_v53 = vsel %vm2777_vm2, %v2772_v46, %v1294_v36  ;;  %v2708_v25 = vsel %vm2647_vm0, %v81_v51, %v12493_v57  ;;  %v12494_v36 = vld [vmem:[#allocation99_spill] sm:$0xff] }
 0x42a   :  { %v2773_v7 = vsel %vm2712_vm1, %v2708_v25, %v12494_v36 }
 0x42c   :  { %v2568_v4 = vpop.permute.xlu1 %2567  ;;  %v2314_v16 = vpop.permute.xlu0 %2313 }
 0x42d   :  { %v3159_v23 = vsel %vm3102_vm7, %v3094_v52, %v2568_v4  ;;  %v3095_v61 = vsel %vm3037_vm6, %v3030_v42, %v2314_v16  ;;  %v82_v16 = vld [vmem:[%s12204_s0 + $0x308] sm:$0xff] }
 0x42e   :  { %6704 = vmatprep.mubr.msk.f32.mxu0 %vm3176_vm8, %v3159_v23 }
 0x430   :  { %v1804_v29 = vpop.permute.xlu1 %1803  ;;  %v1550_v13 = vpop.permute.xlu0 %1549 }
 0x431   :  { %v2966_v9 = vsel %vm2907_vm4, %v2901_v60, %v1804_v29  ;;  %v2902_v59 = vsel %vm2842_vm3, %v2837_v53, %v1550_v13  ;;  %v2709_v29 = vsel %vm2647_vm0, %v82_v16, %v12495_v55  ;;  %v12496_v13 = vld [vmem:[#allocation98_spill] sm:$0xff]  ;;  %v12499_v60 = vld [vmem:[#allocation100_spill] sm:$0xff] }
 0x432   :  { %v2774_v27 = vsel %vm2712_vm1, %v2709_v29, %v12496_v13 }
 0x434   :  { %v1806_v48 = vpop.permute.xlu1 %1805  ;;  %v2570_v49 = vpop.permute.xlu0 %2569 }
 0x435   :  { %v3160_v45 = vsel %vm3102_vm7, %v3095_v61, %v2570_v49  ;;  %v2967_v62 = vsel %vm2907_vm4, %v2902_v59, %v1806_v48 }
 0x436   :  { %6705 = vmatmul.mubr.msk.f32.gmra.mxu0 %vm3176_vm8, %v3160_v45 }
 0x438   :  { %v1296_v41 = vpop.permute.xlu1 %1295  ;;  %v2060_v33 = vpop.permute.xlu0 %2059 }
 0x439   :  { %v3031_v31 = vsel %vm2972_vm5, %v2966_v9, %v2060_v33  ;;  %v2838_v19 = vsel %vm2777_vm2, %v2773_v7, %v1296_v41 }
 0x43c   :  { %v2316_v24 = vpop.permute.xlu1 %2315  ;;  %v2062_v21 = vpop.permute.xlu0 %2061 }
 0x43d   :  { %v3096_v3 = vsel %vm3037_vm6, %v3031_v31, %v2316_v24  ;;  %v3032_v34 = vsel %vm2972_vm5, %v2967_v62, %v2062_v21  ;;  %v84_v21 = vld [vmem:[%s12204_s0 + $0x320] sm:$0xff] }
 0x43e   :  { %v2711_v12 = vsel %vm2647_vm0, %v84_v21, %v12497_v56 }
 0x43f   :  { %v2776_v9 = vsel %vm2712_vm1, %v2711_v12, %v12499_v60 }
 0x440   :  { %v1552_v10 = vpop.permute.xlu1 %1551  ;;  %v1298_v37 = vpop.permute.xlu0 %1297 }
 0x441   :  { %v2903_v52 = vsel %vm2842_vm3, %v2838_v19, %v1552_v10  ;;  %v2839_v26 = vsel %vm2777_vm2, %v2774_v27, %v1298_v37  ;;  %v12498_v10 = vld [vmem:[#allocation51_spill] sm:$0xff] }
 0x442   :  { %v2710_v37 = vsel %vm2647_vm0, %v83_v63, %v12498_v10 }
 0x443   :  { %v2775_v31 = vsel %vm2712_vm1, %v2710_v37, %v12500_v43 }
 0x444   :  { %v2572_v58 = vpop.permute.xlu1 %2571  ;;  %v2318_v1 = vpop.permute.xlu0 %2317 }
 0x445   :  { %v3161_v20 = vsel %vm3102_vm7, %v3096_v3, %v2572_v58  ;;  %v3097_v47 = vsel %vm3037_vm6, %v3032_v34, %v2318_v1 }
 0x446   :  { %6707 = vmatprep.mubr.msk.f32.mxu0 %vm3176_vm8, %v3161_v20 }
 0x448   :  { %v1808_v30 = vpop.permute.xlu1 %1807  ;;  %v1554_v50 = vpop.permute.xlu0 %1553 }
 0x449   :  { %v2968_v4 = vsel %vm2907_vm4, %v2903_v52, %v1808_v30  ;;  %v2904_v48 = vsel %vm2842_vm3, %v2839_v26, %v1554_v50 }
 0x44c   :  { %v1810_v8 = vpop.permute.xlu1 %1809  ;;  %v2574_v54 = vpop.permute.xlu0 %2573 }
 0x44d   :  { %v3162_v17 = vsel %vm3102_vm7, %v3097_v47, %v2574_v54  ;;  %v2969_v49 = vsel %vm2907_vm4, %v2904_v48, %v1810_v8  ;;  %v10050_v47 = vpop.f32.mrf.mxu0 }
 0x44e   :  { %6708 = vmatmul.mubr.msk.f32.gmra.mxu0 %vm3176_vm8, %v3162_v17  ;;  %v3755_v36 = vsel %vm2842_vm3, %v10050_v47, 0.0 }
 0x44f   :  { %v10056_v17 = vpop.f32.mrf.mxu0 }
 0x450   :  { %v1300_v15 = vpop.permute.xlu1 %1299  ;;  %v2064_v11 = vpop.permute.xlu0 %2063  ;;  %v3887_v51 = vmul.f32 %v10056_v17, %v10056_v17  ;;  %v3754_v57 = vsel %vm2842_vm3, %v10056_v17, 0.0 }
 0x451   :  { %v3033_v23 = vsel %vm2972_vm5, %v2968_v4, %v2064_v11  ;;  %v2840_v3 = vsel %vm2777_vm2, %v2775_v31, %v1300_v15  ;;  %v10058_v15 = vpop.f32.mrf.mxu0 }
 0x452   :  { %v3951_v7 = vsel %vm2842_vm3, %v3887_v51, 0.0  ;;  %v3759_v55 = vsel %vm2842_vm3, %v10058_v15, 0.0 }
 0x453   :  { %v10060_v11 = vpop.f32.mrf.mxu0 }
 0x454   :  { %v2320_v6 = vpop.permute.xlu1 %2319  ;;  %v2066_v39 = vpop.permute.xlu0 %2065  ;;  %v3889_v25 = vmul.f32 %v10060_v11, %v10060_v11  ;;  %v3757_v19 = vsel %vm2842_vm3, %v10060_v11, 0.0 }
 0x455   :  { %v3098_v0 = vsel %vm3037_vm6, %v3033_v23, %v2320_v6  ;;  %v3034_v45 = vsel %vm2972_vm5, %v2969_v49, %v2066_v39  ;;  %v10064_v6 = vpop.f32.mrf.mxu0  ;;  %v3888_v39 = vmul.f32 %v10050_v47, %v10050_v47 }
 0x456   :  { %v3954_v4 = vsel %vm2842_vm3, %v3889_v25, 0.0 }
 0x457   :  { %v3952_v52 = vsel %vm2842_vm3, %v3888_v39, 0.0 }
 0x458   :  { %v1556_v38 = vpop.permute.xlu1 %1555  ;;  %v1302_v40 = vpop.permute.xlu0 %1301  ;;  %v3953_v16 = vadd.f32 %v3952_v52, %v3951_v7 }
 0x459   :  { %v2841_v58 = vsel %vm2777_vm2, %v2776_v9, %v1302_v40  ;;  %v2905_v14 = vsel %vm2842_vm3, %v2840_v3, %v1556_v38  ;;  %v3756_v38 = vadd.f32 %v3755_v36, %v3754_v57  ;;  %v10077_v40 = vpop.f32.mrf.mxu0 }
 0x45a   :  { %v3761_v29 = vsel %vm2842_vm3, %v10077_v40, 0.0 }
 0x45b   :  { %v3758_v23 = vadd.f32 %v3757_v19, %v3756_v38 }
 0x45c   :  { %v2576_v18 = vpop.permute.xlu1 %2575  ;;  %v2322_v22 = vpop.permute.xlu0 %2321 }
 0x45d   :  { %v3163_v2 = vsel %vm3102_vm7, %v3098_v0, %v2576_v18  ;;  %v3099_v41 = vsel %vm3037_vm6, %v3034_v45, %v2322_v22  ;;  %v10081_v0 = vpop.f32.mrf.mxu0  ;;  %v3890_v18 = vmul.f32 %v10058_v15, %v10058_v15  ;;  %v3891_v22 = vmul.f32 %v10077_v40, %v10077_v40 }
 0x45e   :  { %6710 = vmatprep.mubr.msk.f32.mxu0 %vm3176_vm8, %v3163_v2  ;;  %v3955_v2 = vadd.f32 %v3954_v4, %v3953_v16  ;;  %v3760_v13 = vadd.f32 %v3759_v55, %v3758_v23  ;;  %v3892_v45 = vmul.f32 %v10064_v6, %v10064_v6  ;;  %v3894_v37 = vmul.f32 %v10081_v0, %v10081_v0 }
 0x45f   :  { %v10091_v27 = vpop.f32.mrf.mxu0  ;;  %v3956_v26 = vsel %vm2842_vm3, %v3890_v18, 0.0  ;;  %v3767_v43 = vsel %vm2842_vm3, %v10081_v0, 0.0 }
 0x460   :  { %v1812_v42 = vpop.permute.xlu1 %1811  ;;  %v1558_v61 = vpop.permute.xlu0 %1557  ;;  %v3762_v48 = vadd.f32 %v3761_v29, %v3760_v13 }
 0x461   :  { %v2906_v44 = vsel %vm2842_vm3, %v2841_v58, %v1558_v61  ;;  %v2970_v5 = vsel %vm2907_vm4, %v2905_v14, %v1812_v42  ;;  %v3958_v42 = vsel %vm2842_vm3, %v3891_v22, 0.0  ;;  %v3957_v61 = vadd.f32 %v3956_v26, %v3955_v2  ;;  %v10095_v49 = vpop.f32.mrf.mxu0 }
 0x463   :  { %v10105_v63 = vpop.f32.mrf.mxu0 }
 0x464   :  { %v1814_v33 = vpop.permute.xlu1 %1813  ;;  %v2578_v32 = vpop.permute.xlu0 %2577  ;;  %v3895_v60 = vmul.f32 %v10105_v63, %v10105_v63  ;;  %v3769_v31 = vsel %vm2842_vm3, %v10105_v63, 0.0 }
 0x465   :  { %v3164_v24 = vsel %vm3102_vm7, %v3099_v41, %v2578_v32  ;;  %v2971_v46 = vsel %vm2907_vm4, %v2906_v44, %v1814_v33  ;;  %v3893_v41 = vmul.f32 %v10091_v27, %v10091_v27  ;;  %v3959_v33 = vadd.f32 %v3958_v42, %v3957_v61  ;;  %v10109_v10 = vpop.f32.mrf.mxu0 }
 0x466   :  { %6711 = vmatmul.mubr.msk.f32.gmra.mxu0 %vm3176_vm8, %v3164_v24  ;;  %v3763_v32 = vsel %vm2842_vm3, %v10064_v6, 0.0  ;;  %v3765_v24 = vsel %vm2842_vm3, %v10091_v27, 0.0  ;;  %v3898_v25 = vmul.f32 %v10109_v10, %v10109_v10  ;;  %v3775_v19 = vsel %vm2842_vm3, %v10109_v10, 0.0 }
 0x467   :  { %v3764_v21 = vadd.f32 %v3763_v32, %v3762_v48  ;;  %v10119_v58 = vpop.f32.mrf.mxu0 }
 0x468   :  { %v2070_v28 = vpop.permute.xlu1 %2069  ;;  %v2068_v35 = vpop.permute.xlu0 %2067  ;;  %v3972_v16 = vsel %vm2842_vm3, %v3898_v25, 0.0 }
 0x469   :  { %v3036_v53 = vsel %vm2972_vm5, %v2971_v46, %v2070_v28  ;;  %v3035_v30 = vsel %vm2972_vm5, %v2970_v5, %v2068_v35  ;;  %v3960_v28 = vsel %vm2842_vm3, %v3892_v45, 0.0  ;;  %v3962_v35 = vsel %vm2842_vm3, %v3893_v41, 0.0  ;;  %v10123_v5 = vpop.f32.mrf.mxu0 }
 0x46a   :  { %v3766_v56 = vadd.f32 %v3765_v24, %v3764_v21  ;;  %v3961_v12 = vadd.f32 %v3960_v28, %v3959_v33  ;;  %v3896_v46 = vmul.f32 %v10095_v49, %v10095_v49  ;;  %v3900_v55 = vmul.f32 %v10123_v5, %v10123_v5 }
 0x46b   :  { %v3779_v26 = vsel %vm2842_vm3, %v10123_v5, 0.0 }
 0x46c   :  { %v2326_v1 = vpop.permute.xlu1 %2325  ;;  %v2324_v20 = vpop.permute.xlu0 %2323  ;;  %v3963_v9 = vadd.f32 %v3962_v35, %v3961_v12  ;;  %v3768_v3 = vadd.f32 %v3767_v43, %v3766_v56  ;;  %v3976_v45 = vsel %vm2842_vm3, %v3900_v55, 0.0 }
 0x46d   :  { %v3101_v50 = vsel %vm3037_vm6, %v3036_v53, %v2326_v1  ;;  %v3100_v59 = vsel %vm3037_vm6, %v3035_v30, %v2324_v20  ;;  %v3964_v1 = vsel %vm2842_vm3, %v3894_v37, 0.0  ;;  %v3966_v20 = vsel %vm2842_vm3, %v3895_v60, 0.0 }
 0x46e   :  { %v3770_v14 = vadd.f32 %v3769_v31, %v3768_v3  ;;  %v3965_v44 = vadd.f32 %v3964_v1, %v3963_v9  ;;  %v3897_v53 = vmul.f32 %v10119_v58, %v10119_v58 }
 0x470   :  { %v2582_v62 = vpop.permute.xlu1 %2581  ;;  %v2580_v34 = vpop.permute.xlu0 %2579  ;;  %v3967_v30 = vadd.f32 %v3966_v20, %v3965_v44 }
 0x471   :  { %v3166_v8 = vsel %vm3102_vm7, %v3101_v50, %v2582_v62  ;;  %v3165_v54 = vsel %vm3102_vm7, %v3100_v59, %v2580_v34  ;;  %v3771_v50 = vsel %vm2842_vm3, %v10095_v49, 0.0  ;;  %v3773_v59 = vsel %vm2842_vm3, %v10119_v58, 0.0  ;;  %v10133_v34 = vpop.f32.mrf.mxu0 }
 0x472   :  { %6713 = vmatprep.mubr.msk.f32.mxu0 %vm3176_vm8, %v3165_v54  ;;  %v3772_v62 = vadd.f32 %v3771_v50, %v3770_v14  ;;  %v3970_v54 = vsel %vm2842_vm3, %v3897_v53, 0.0  ;;  %v3899_v36 = vmul.f32 %v10133_v34, %v10133_v34  ;;  %v3777_v38 = vsel %vm2842_vm3, %v10133_v34, 0.0 }
 0x473   :  { %6714 = vmatmul.mubr.msk.f32.gmra.mxu0 %vm3176_vm8, %v3166_v8  ;;  %v3968_v8 = vsel %vm2842_vm3, %v3896_v46, 0.0  ;;  %v10137_v57 = vpop.f32.mrf.mxu0 }
 0x474   :  { %v3774_v51 = vadd.f32 %v3773_v59, %v3772_v62  ;;  %v3969_v39 = vadd.f32 %v3968_v8, %v3967_v30  ;;  %v3974_v23 = vsel %vm2842_vm3, %v3899_v36, 0.0  ;;  %v3902_v21 = vmul.f32 %v10137_v57, %v10137_v57 }
 0x475   :  { %v10147_v4 = vpop.f32.mrf.mxu0  ;;  %v3783_v56 = vsel %vm2842_vm3, %v10137_v57, 0.0 }
 0x476   :  { %v3971_v7 = vadd.f32 %v3970_v54, %v3969_v39  ;;  %v3776_v52 = vadd.f32 %v3775_v19, %v3774_v51  ;;  %v3901_v29 = vmul.f32 %v10147_v4, %v10147_v4  ;;  %v3781_v42 = vsel %vm2842_vm3, %v10147_v4, 0.0 }
 0x477   :  { %v10151_v2 = vpop.f32.mrf.mxu0  ;;  %v3980_v9 = vsel %vm2842_vm3, %v3902_v21, 0.0 }
 0x478   :  { %v3778_v18 = vadd.f32 %v3777_v38, %v3776_v52  ;;  %v3973_v22 = vadd.f32 %v3972_v16, %v3971_v7  ;;  %v3978_v41 = vsel %vm2842_vm3, %v3901_v29, 0.0  ;;  %v3904_v20 = vmul.f32 %v10151_v2, %v10151_v2 }
 0x479   :  { %v10161_v48 = vpop.f32.mrf.mxu0  ;;  %v3787_v46 = vsel %vm2842_vm3, %v10151_v2, 0.0 }
 0x47a   :  { %v3975_v13 = vadd.f32 %v3974_v23, %v3973_v22  ;;  %v3780_v61 = vadd.f32 %v3779_v26, %v3778_v18  ;;  %v3903_v28 = vmul.f32 %v10161_v48, %v10161_v48  ;;  %v3785_v12 = vsel %vm2842_vm3, %v10161_v48, 0.0 }
 0x47b   :  { %v10165_v24 = vpop.f32.mrf.mxu0  ;;  %v3984_v59 = vsel %vm2842_vm3, %v3904_v20, 0.0 }
 0x47c   :  { %v3782_v33 = vadd.f32 %v3781_v42, %v3780_v61  ;;  %v3977_v32 = vadd.f32 %v3976_v45, %v3975_v13  ;;  %v3982_v43 = vsel %vm2842_vm3, %v3903_v28, 0.0  ;;  %v3906_v39 = vmul.f32 %v10165_v24, %v10165_v24 }
 0x47d   :  { %v10175_v60 = vpop.f32.mrf.mxu0  ;;  %v3791_v7 = vsel %vm2842_vm3, %v10165_v24, 0.0 }
 0x47e   :  { %v3979_v35 = vadd.f32 %v3978_v41, %v3977_v32  ;;  %v3784_v37 = vadd.f32 %v3783_v56, %v3782_v33  ;;  %v3905_v14 = vmul.f32 %v10175_v60, %v10175_v60  ;;  %v3789_v53 = vsel %vm2842_vm3, %v10175_v60, 0.0 }
 0x47f   :  { %v10179_v1 = vpop.f32.mrf.mxu0  ;;  %v3988_v16 = vsel %vm2842_vm3, %v3906_v39, 0.0 }
 0x480   :  { %v3786_v31 = vadd.f32 %v3785_v12, %v3784_v37  ;;  %v3981_v3 = vadd.f32 %v3980_v9, %v3979_v35  ;;  %v3986_v62 = vsel %vm2842_vm3, %v3905_v14, 0.0  ;;  %v3908_v29 = vmul.f32 %v10179_v1, %v10179_v1 }
 0x481   :  { %v10189_v50 = vpop.f32.mrf.mxu0  ;;  %v3795_v42 = vsel %vm2842_vm3, %v10179_v1, 0.0 }
 0x482   :  { %v3983_v44 = vadd.f32 %v3982_v43, %v3981_v3  ;;  %v3788_v30 = vadd.f32 %v3787_v46, %v3786_v31  ;;  %v3907_v25 = vmul.f32 %v10189_v50, %v10189_v50  ;;  %v3793_v19 = vsel %vm2842_vm3, %v10189_v50, 0.0 }
 0x483   :  { %v10193_v51 = vpop.f32.mrf.mxu0  ;;  %v3992_v33 = vsel %vm2842_vm3, %v3908_v29, 0.0 }
 0x484   :  { %v3790_v8 = vadd.f32 %v3789_v53, %v3788_v30  ;;  %v3985_v54 = vadd.f32 %v3984_v59, %v3983_v44  ;;  %v3990_v23 = vsel %vm2842_vm3, %v3907_v25, 0.0  ;;  %v3910_v56 = vmul.f32 %v10193_v51, %v10193_v51 }
 0x485   :  { %v10203_v52 = vpop.f32.mrf.mxu0  ;;  %v3799_v9 = vsel %vm2842_vm3, %v10193_v51, 0.0 }
 0x486   :  { %v3987_v36 = vadd.f32 %v3986_v62, %v3985_v54  ;;  %v3792_v38 = vadd.f32 %v3791_v7, %v3790_v8  ;;  %v3909_v13 = vmul.f32 %v10203_v52, %v10203_v52  ;;  %v3797_v61 = vsel %vm2842_vm3, %v10203_v52, 0.0 }
 0x487   :  { %v10207_v55 = vpop.f32.mrf.mxu0  ;;  %v3996_v20 = vsel %vm2842_vm3, %v3910_v56, 0.0 }
 0x488   :  { %v3794_v18 = vadd.f32 %v3793_v19, %v3792_v38  ;;  %v3989_v22 = vadd.f32 %v3988_v16, %v3987_v36  ;;  %v3994_v32 = vsel %vm2842_vm3, %v3909_v13, 0.0  ;;  %v3912_v30 = vmul.f32 %v10207_v55, %v10207_v55 }
 0x489   :  { %v10217_v41 = vpop.f32.mrf.mxu0  ;;  %v3803_v8 = vsel %vm2842_vm3, %v10207_v55, 0.0 }
 0x48a   :  { %v3991_v26 = vadd.f32 %v3990_v23, %v3989_v22  ;;  %v3796_v45 = vadd.f32 %v3795_v42, %v3794_v18  ;;  %v3911_v12 = vmul.f32 %v10217_v41, %v10217_v41  ;;  %v3801_v43 = vsel %vm2842_vm3, %v10217_v41, 0.0 }
 0x48b   :  { %v10221_v35 = vpop.f32.mrf.mxu0  ;;  %v4000_v36 = vsel %vm2842_vm3, %v3912_v30, 0.0 }
 0x48c   :  { %v3798_v21 = vadd.f32 %v3797_v61, %v3796_v45  ;;  %v3993_v28 = vadd.f32 %v3992_v33, %v3991_v26  ;;  %v3998_v14 = vsel %vm2842_vm3, %v3911_v12, 0.0  ;;  %v3914_v23 = vmul.f32 %v10221_v35, %v10221_v35 }
 0x48d   :  { %v10231_v3 = vpop.f32.mrf.mxu0  ;;  %v3807_v29 = vsel %vm2842_vm3, %v10221_v35, 0.0 }
 0x48e   :  { %v3995_v37 = vadd.f32 %v3994_v32, %v3993_v28  ;;  %v3800_v31 = vadd.f32 %v3799_v9, %v3798_v21  ;;  %v3913_v59 = vmul.f32 %v10231_v3, %v10231_v3  ;;  %v3805_v54 = vsel %vm2842_vm3, %v10231_v3, 0.0 }
 0x48f   :  { %v10235_v53 = vpop.f32.mrf.mxu0  ;;  %v4004_v61 = vsel %vm2842_vm3, %v3914_v23, 0.0 }
 0x490   :  { %v3802_v44 = vadd.f32 %v3801_v43, %v3800_v31  ;;  %v3997_v46 = vadd.f32 %v3996_v20, %v3995_v37  ;;  %v4002_v7 = vsel %vm2842_vm3, %v3913_v59, 0.0  ;;  %v3916_v28 = vmul.f32 %v10235_v53, %v10235_v53 }
 0x491   :  { %v10245_v25 = vpop.f32.mrf.mxu0  ;;  %v3811_v37 = vsel %vm2842_vm3, %v10235_v53, 0.0 }
 0x492   :  { %v3999_v62 = vadd.f32 %v3998_v14, %v3997_v46  ;;  %v3804_v39 = vadd.f32 %v3803_v8, %v3802_v44  ;;  %v3915_v18 = vmul.f32 %v10245_v25, %v10245_v25  ;;  %v3809_v13 = vsel %vm2842_vm3, %v10245_v25, 0.0 }
 0x493   :  { %v10249_v16 = vpop.f32.mrf.mxu0  ;;  %v4008_v20 = vsel %vm2842_vm3, %v3916_v28, 0.0 }
 0x494   :  { %v3806_v19 = vadd.f32 %v3805_v54, %v3804_v39  ;;  %v4001_v38 = vadd.f32 %v4000_v36, %v3999_v62  ;;  %v4006_v45 = vsel %vm2842_vm3, %v3915_v18, 0.0  ;;  %v3918_v59 = vmul.f32 %v10249_v16, %v10249_v16 }
 0x495   :  { %v10259_v42 = vpop.f32.mrf.mxu0  ;;  %v3815_v54 = vsel %vm2842_vm3, %v10249_v16, 0.0 }
 0x496   :  { %v4003_v22 = vadd.f32 %v4002_v7, %v4001_v38  ;;  %v3808_v26 = vadd.f32 %v3807_v29, %v3806_v19  ;;  %v3917_v56 = vmul.f32 %v10259_v42, %v10259_v42  ;;  %v3813_v9 = vsel %vm2842_vm3, %v10259_v42, 0.0 }
 0x497   :  { %v10263_v21 = vpop.f32.mrf.mxu0  ;;  %v4012_v19 = vsel %vm2842_vm3, %v3918_v59, 0.0 }
 0x498   :  { %v3810_v33 = vadd.f32 %v3809_v13, %v3808_v26  ;;  %v4005_v32 = vadd.f32 %v4004_v61, %v4003_v22  ;;  %v4010_v14 = vsel %vm2842_vm3, %v3917_v56, 0.0  ;;  %v3920_v29 = vmul.f32 %v10263_v21, %v10263_v21 }
 0x499   :  { %v10273_v31 = vpop.f32.mrf.mxu0  ;;  %v3819_v61 = vsel %vm2842_vm3, %v10263_v21, 0.0 }
 0x49a   :  { %v4007_v12 = vadd.f32 %v4006_v45, %v4005_v32  ;;  %v3812_v43 = vadd.f32 %v3811_v37, %v3810_v33  ;;  %v3919_v62 = vmul.f32 %v10273_v31, %v10273_v31  ;;  %v3817_v39 = vsel %vm2842_vm3, %v10273_v31, 0.0 }
 0x49b   :  { %v10277_v30 = vpop.f32.mrf.mxu0  ;;  %v4016_v28 = vsel %vm2842_vm3, %v3920_v29, 0.0 }
 0x49c   :  { %v3814_v44 = vadd.f32 %v3813_v9, %v3812_v43  ;;  %v4009_v46 = vadd.f32 %v4008_v20, %v4007_v12  ;;  %v4014_v38 = vsel %vm2842_vm3, %v3919_v62, 0.0  ;;  %v3922_v43 = vmul.f32 %v10277_v30, %v10277_v30 }
 0x49d   :  { %v10287_v7 = vpop.f32.mrf.mxu0 }
 0x49e   :  { %v4011_v8 = vadd.f32 %v4010_v14, %v4009_v46  ;;  %v3816_v36 = vadd.f32 %v3815_v54, %v3814_v44  ;;  %v3921_v13 = vmul.f32 %v10287_v7, %v10287_v7  ;;  %v3821_v45 = vsel %vm2842_vm3, %v10287_v7, 0.0 }
 0x49f   :  { %v10291_v22 = vpop.f32.mrf.mxu0  ;;  %v3823_v44 = vsel %vm2842_vm3, %v10277_v30, 0.0 }
 0x4a0   :  { %v3818_v23 = vadd.f32 %v3817_v39, %v3816_v36  ;;  %v4013_v18 = vadd.f32 %v4012_v19, %v4011_v8  ;;  %v4018_v56 = vsel %vm2842_vm3, %v3921_v13, 0.0  ;;  %v4020_v8 = vsel %vm2842_vm3, %v3922_v43, 0.0 }
 0x4a1   :  { %v10301_v32 = vpop.f32.mrf.mxu0  ;;  %v3827_v29 = vsel %vm2842_vm3, %v10291_v22, 0.0 }
 0x4a2   :  { %v4015_v26 = vadd.f32 %v4014_v38, %v4013_v18  ;;  %v3820_v33 = vadd.f32 %v3819_v61, %v3818_v23  ;;  %v3923_v20 = vmul.f32 %v10301_v32, %v10301_v32  ;;  %v3825_v46 = vsel %vm2842_vm3, %v10301_v32, 0.0 }
 0x4a3   :  { %v10305_v9 = vpop.f32.mrf.mxu0  ;;  %v3924_v38 = vmul.f32 %v10291_v22, %v10291_v22 }
 0x4a4   :  { %v3822_v12 = vadd.f32 %v3821_v45, %v3820_v33  ;;  %v4017_v37 = vadd.f32 %v4016_v28, %v4015_v26  ;;  %12501 = vst [vmem:[#allocation53_spill] sm:$0xff] %v10305_v9  ;;  %v4022_v54 = vsel %vm2842_vm3, %v3923_v20, 0.0 }
 0x4a5   :  { %v10315_v62 = vpop.f32.mrf.mxu0  ;;  %v4024_v45 = vsel %vm2842_vm3, %v3924_v38, 0.0 }
 0x4a6   :  { %v4019_v14 = vadd.f32 %v4018_v56, %v4017_v37  ;;  %v3824_v59 = vadd.f32 %v3823_v44, %v3822_v12  ;;  %12502 = vst [vmem:[#allocation103_spill] sm:$0xff] %v10315_v62  ;;  %v3925_v23 = vmul.f32 %v10315_v62, %v10315_v62  ;;  %v3829_v13 = vsel %vm2842_vm3, %v10315_v62, 0.0 }
 0x4a7   :  { %v10319_v19 = vpop.f32.mrf.mxu0  ;;  %v3926_v37 = vmul.f32 %v10305_v9, %v10305_v9 }
 0x4a8   :  { %v3826_v39 = vadd.f32 %v3825_v46, %v3824_v59  ;;  %v4021_v36 = vadd.f32 %v4020_v8, %v4019_v14  ;;  %12503 = vst [vmem:[#allocation3_spill] sm:$0xff] %v10319_v19  ;;  %v4026_v33 = vsel %vm2842_vm3, %v3925_v23, 0.0  ;;  %v3831_v14 = vsel %vm2842_vm3, %v10305_v9, 0.0 }
 0x4a9   :  { %v10329_v61 = vpop.f32.mrf.mxu0  ;;  %v4028_v8 = vsel %vm2842_vm3, %v3926_v37, 0.0  ;;  %v3928_v23 = vmul.f32 %v10319_v19, %v10319_v19 }
 0x4aa   :  { %v4023_v18 = vadd.f32 %v4022_v54, %v4021_v36  ;;  %v3828_v26 = vadd.f32 %v3827_v29, %v3826_v39  ;;  %12504 = vst [vmem:[#allocation52_spill] sm:$0xff] %v10329_v61  ;;  %v3927_v43 = vmul.f32 %v10329_v61, %v10329_v61  ;;  %v3833_v44 = vsel %vm2842_vm3, %v10329_v61, 0.0 }
 0x4ab   :  { %v10333_v12 = vpop.f32.mrf.mxu0 }
 0x4ac   :  { %v3830_v28 = vadd.f32 %v3829_v13, %v3828_v26  ;;  %v4025_v56 = vadd.f32 %v4024_v45, %v4023_v18  ;;  %12505 = vst [vmem:[#allocation102_spill] sm:$0xff] %v10333_v12  ;;  %v4030_v54 = vsel %vm2842_vm3, %v3927_v43, 0.0  ;;  %v3835_v13 = vsel %vm2842_vm3, %v10319_v19, 0.0 }
 0x4ad   :  { %v10343_v59 = vpop.f32.mrf.mxu0 }
 0x4ae   :  { %v4027_v20 = vadd.f32 %v4026_v33, %v4025_v56  ;;  %v3832_v46 = vadd.f32 %v3831_v14, %v3830_v28  ;;  %12506 = vst [vmem:[#allocation5_spill] sm:$0xff] %v10343_v59  ;;  %v3929_v18 = vmul.f32 %v10343_v59, %v10343_v59  ;;  %v3837_v26 = vsel %vm2842_vm3, %v10343_v59, 0.0 }
 0x4af   :  { %v10347_v38 = vpop.f32.mrf.mxu0  ;;  %v7045_v28 = vmov 0.0   ;;  %v4032_v56 = vsel %vm2842_vm3, %v3928_v23, 0.0 }
 0x4b0   :  { %v3834_v39 = vadd.f32 %v3833_v44, %v3832_v46  ;;  %v4029_v36 = vadd.f32 %v4028_v8, %v4027_v20  ;;  %12507 = vst [vmem:[#allocation55_spill] sm:$0xff] %v10347_v38  ;;  %4325 = vst.msk [vmem:[#allocation2] sm:$0xff] %vm2842_vm3, %v7045_v28  ;;  %v4034_v37 = vsel %vm2842_vm3, %v3929_v18, 0.0  ;;  %v3930_v44 = vmul.f32 %v10333_v12, %v10333_v12 }
 0x4b1   :  { %v10357_v33 = vpop.f32.mrf.mxu0  ;;  %4327 = vst.msk [vmem:[#allocation2 + $0x8] sm:$0x3] %vm4326_vm10, %v7045_v28  ;;  %4329 = vst.msk [vmem:[#allocation2 + $0xa8] sm:$0x3] %vm4326_vm10, %v7045_v28 }
 0x4b2   :  { %v4031_v29 = vadd.f32 %v4030_v54, %v4029_v36  ;;  %v3836_v45 = vadd.f32 %v3835_v13, %v3834_v39  ;;  %12508 = vst [vmem:[#allocation105_spill] sm:$0xff] %v10357_v33  ;;  %4338 = vst.msk [vmem:[#allocation2 + $0x20] sm:$0x1] %vm4336_vm9, %v7045_v28  ;;  %v3931_v46 = vmul.f32 %v10357_v33, %v10357_v33  ;;  %v3839_v54 = vsel %vm2842_vm3, %v10333_v12, 0.0 }
 0x4b3   :  { %4328 = vst.msk [vmem:[#allocation2 + $0xa0] sm:$0xff] %vm2842_vm3, %v7045_v28  ;;  %4331 = vst.msk [vmem:[#allocation2 + $0x90] sm:$0xff] %vm2842_vm3, %v7045_v28  ;;  %v10397_v14 = vpop.f32.mrf.mxu0  ;;  %v3841_v39 = vsel %vm2842_vm3, %v10357_v33, 0.0  ;;  %v4036_v18 = vsel %vm2842_vm3, %v3930_v44, 0.0 }
 0x4b4   :  { %4332 = vst.msk [vmem:[#allocation2 + $0x98] sm:$0x3] %vm4326_vm10, %v7045_v28  ;;  %4334 = vst.msk [vmem:[#allocation2 + $0x138] sm:$0x3] %vm4326_vm10, %v7045_v28  ;;  %v3838_v43 = vadd.f32 %v3837_v26, %v3836_v45  ;;  %v4033_v20 = vadd.f32 %v4032_v56, %v4031_v29  ;;  %v4038_v29 = vsel %vm2842_vm3, %v3931_v46, 0.0 }
 0x4b5   :  { %4333 = vst.msk [vmem:[#allocation2 + $0x130] sm:$0xff] %vm2842_vm3, %v7045_v28  ;;  %12509 = vst [vmem:[#allocation4_spill] sm:$0xff] %v10397_v14  ;;  %v10407_v23 = vpop.f32.mrf.mxu0 }
 0x4b6   :  { %4337 = vst.msk [vmem:[#allocation2 + $0x10] sm:$0x1] %vm4336_vm9, %v7045_v28  ;;  %4339 = vst.msk [vmem:[#allocation2 + $0x30] sm:$0x1] %vm4336_vm9, %v7045_v28  ;;  %v4035_v8 = vadd.f32 %v4034_v37, %v4033_v20  ;;  %v3840_v36 = vadd.f32 %v3839_v54, %v3838_v43  ;;  %v3933_v56 = vmul.f32 %v10407_v23, %v10407_v23  ;;  %v3843_v43 = vsel %vm2842_vm3, %v10347_v38, 0.0 }
 0x4b7   :  { %4340 = vst.msk [vmem:[#allocation2 + $0x40] sm:$0x1] %vm4336_vm9, %v7045_v28  ;;  %4341 = vst.msk [vmem:[#allocation2 + $0x50] sm:$0x1] %vm4336_vm9, %v7045_v28  ;;  %v10411_v45 = vpop.f32.mrf.mxu0  ;;  %v3845_v20 = vsel %vm2842_vm3, %v10407_v23, 0.0 }
 0x4b8   :  { %4342 = vst.msk [vmem:[#allocation2 + $0x60] sm:$0x1] %vm4336_vm9, %v7045_v28  ;;  %4343 = vst.msk [vmem:[#allocation2 + $0x70] sm:$0x1] %vm4336_vm9, %v7045_v28  ;;  %v3842_v13 = vadd.f32 %v3841_v39, %v3840_v36  ;;  %v4037_v26 = vadd.f32 %v4036_v18, %v4035_v8  ;;  %v4042_v8 = vsel %vm2842_vm3, %v3933_v56, 0.0 }
 0x4b9   :  { %4344 = vst.msk [vmem:[#allocation2 + $0x80] sm:$0x1] %vm4336_vm9, %v7045_v28  ;;  %4345 = vst.msk [vmem:[#allocation2 + $0xb0] sm:$0x1] %vm4336_vm9, %v7045_v28  ;;  %v10421_v54 = vpop.f32.mrf.mxu0 }
 0x4ba   :  { %4346 = vst.msk [vmem:[#allocation2 + $0xc0] sm:$0x1] %vm4336_vm9, %v7045_v28  ;;  %4347 = vst.msk [vmem:[#allocation2 + $0xd0] sm:$0x1] %vm4336_vm9, %v7045_v28  ;;  %v4039_v37 = vadd.f32 %v4038_v29, %v4037_v26  ;;  %v3844_v44 = vadd.f32 %v3843_v43, %v3842_v13  ;;  %v3934_v29 = vmul.f32 %v10397_v14, %v10397_v14  ;;  %v3847_v13 = vsel %vm2842_vm3, %v10397_v14, 0.0 }
 0x4bb   :  { %4348 = vst.msk [vmem:[#allocation2 + $0xe0] sm:$0x1] %vm4336_vm9, %v7045_v28  ;;  %4349 = vst.msk [vmem:[#allocation2 + $0xf0] sm:$0x1] %vm4336_vm9, %v7045_v28  ;;  %v10425_v18 = vpop.f32.mrf.mxu0  ;;  %v3935_v26 = vmul.f32 %v10421_v54, %v10421_v54  ;;  %v3849_v43 = vsel %vm2842_vm3, %v10421_v54, 0.0 }
 0x4bc   :  { %4350 = vst.msk [vmem:[#allocation2 + $0x100] sm:$0x1] %vm4336_vm9, %v7045_v28  ;;  %4351 = vst.msk [vmem:[#allocation2 + $0x110] sm:$0x1] %vm4336_vm9, %v7045_v28  ;;  %v3846_v39 = vadd.f32 %v3845_v20, %v3844_v44  ;;  %v4044_v56 = vsel %vm2842_vm3, %v3934_v29, 0.0 }
 0x4bd   :  { %4352 = vst.msk [vmem:[#allocation2 + $0x120] sm:$0x1] %vm4336_vm9, %v7045_v28  ;;  %4353 = vst.msk [vmem:[#allocation2 + $0x19] sm:$0x1] %vm4336_vm9, %v7045_v28 }
 0x4be   :  { %4354 = vst.msk [vmem:[#allocation2 + $0x29] sm:$0x1] %vm4336_vm9, %v7045_v28  ;;  %4355 = vst.msk [vmem:[#allocation2 + $0x39] sm:$0x1] %vm4336_vm9, %v7045_v28 }
 0x4bf   :  { %4356 = vst.msk [vmem:[#allocation2 + $0x49] sm:$0x1] %vm4336_vm9, %v7045_v28  ;;  %4357 = vst.msk [vmem:[#allocation2 + $0x59] sm:$0x1] %vm4336_vm9, %v7045_v28 }
 0x4c0   :  { %4358 = vst.msk [vmem:[#allocation2 + $0x69] sm:$0x1] %vm4336_vm9, %v7045_v28  ;;  %4359 = vst.msk [vmem:[#allocation2 + $0x79] sm:$0x1] %vm4336_vm9, %v7045_v28 }
 0x4c1   :  { %4360 = vst.msk [vmem:[#allocation2 + $0x89] sm:$0x1] %vm4336_vm9, %v7045_v28  ;;  %4361 = vst.msk [vmem:[#allocation2 + $0xb9] sm:$0x1] %vm4336_vm9, %v7045_v28 }
 0x4c2   :  { %4362 = vst.msk [vmem:[#allocation2 + $0xc9] sm:$0x1] %vm4336_vm9, %v7045_v28  ;;  %4363 = vst.msk [vmem:[#allocation2 + $0xd9] sm:$0x1] %vm4336_vm9, %v7045_v28 }
 0x4c3   :  { %4364 = vst.msk [vmem:[#allocation2 + $0xe9] sm:$0x1] %vm4336_vm9, %v7045_v28  ;;  %4365 = vst.msk [vmem:[#allocation2 + $0xf9] sm:$0x1] %vm4336_vm9, %v7045_v28 }
 0x4c4   :  { %4366 = vst.msk [vmem:[#allocation2 + $0x109] sm:$0x1] %vm4336_vm9, %v7045_v28  ;;  %4367 = vst.msk [vmem:[#allocation2 + $0x119] sm:$0x1] %vm4336_vm9, %v7045_v28 }
 0x4c5   :  { %4368 = vst.msk [vmem:[#allocation2 + $0x129] sm:$0x1] %vm4336_vm9, %v7045_v28  ;;  %12510 = vst [vmem:[#allocation54_spill] sm:$0xff] %v10407_v23  ;;  %v3932_v28 = vmul.f32 %v10347_v38, %v10347_v38  ;;  %v10435_v23 = vpop.f32.mrf.mxu0 }
 0x4c6   :  { %12511 = vst [vmem:[#allocation104_spill] sm:$0xff] %v10411_v45  ;;  %12512 = vst [vmem:[#allocation7_spill] sm:$0xff] %v10421_v54 }
 0x4c7   :  { %v4040_v46 = vsel %vm2842_vm3, %v3932_v28, 0.0  ;;  %12513 = vst [vmem:[#allocation57_spill] sm:$0xff] %v10425_v18  ;;  %v3848_v28 = vadd.f32 %v3847_v13, %v3846_v39  ;;  %12514 = vst [vmem:[#allocation107_spill] sm:$0xff] %v10435_v23  ;;  %v3851_v39 = vsel %vm2842_vm3, %v10411_v45, 0.0  ;;  %v3853_v13 = vsel %vm2842_vm3, %v10435_v23, 0.0 }
 0x4c8   :  { %v4041_v36 = vadd.f32 %v4040_v46, %v4039_v37  ;;  %v4046_v37 = vsel %vm2842_vm3, %v3935_v26, 0.0  ;;  %v10439_v46 = vpop.f32.mrf.mxu0 }
 0x4c9   :  { %v3850_v20 = vadd.f32 %v3849_v43, %v3848_v28  ;;  %12515 = vst [vmem:[#allocation6_spill] sm:$0xff] %v10439_v46 }
 0x4ca   :  { %v4043_v38 = vadd.f32 %v4042_v8, %v4041_v36  ;;  %v3936_v8 = vmul.f32 %v10411_v45, %v10411_v45  ;;  %v3937_v36 = vmul.f32 %v10435_v23, %v10435_v23  ;;  %v10449_v54 = vpop.f32.mrf.mxu0 }
 0x4cb   :  { %v3852_v29 = vadd.f32 %v3851_v39, %v3850_v20  ;;  %12516 = vst [vmem:[#allocation56_spill] sm:$0xff] %v10449_v54  ;;  %v3855_v20 = vsel %vm2842_vm3, %v10425_v18, 0.0  ;;  %v3857_v39 = vsel %vm2842_vm3, %v10449_v54, 0.0 }
 0x4cc   :  { %v4045_v44 = vadd.f32 %v4044_v56, %v4043_v38  ;;  %v4048_v38 = vsel %vm2842_vm3, %v3936_v8, 0.0  ;;  %v4050_v26 = vsel %vm2842_vm3, %v3937_v36, 0.0 }
 0x4cd   :  { %v3854_v43 = vadd.f32 %v3853_v13, %v3852_v29 }
 0x4ce   :  { %v4047_v14 = vadd.f32 %v4046_v37, %v4045_v44  ;;  %v3938_v37 = vmul.f32 %v10425_v18, %v10425_v18  ;;  %v3939_v44 = vmul.f32 %v10449_v54, %v10449_v54 }
 0x4cf   :  { %v3856_v8 = vadd.f32 %v3855_v20, %v3854_v43  ;;  %v3859_v43 = vsel %vm2842_vm3, %v10439_v46, 0.0 }
 0x4d0   :  { %v4049_v28 = vadd.f32 %v4048_v38, %v4047_v14  ;;  %v4052_v14 = vsel %vm2842_vm3, %v3938_v37, 0.0  ;;  %v4054_v36 = vsel %vm2842_vm3, %v3939_v44, 0.0 }
 0x4d1   :  { %v3858_v13 = vadd.f32 %v3857_v39, %v3856_v8 }
 0x4d2   :  { %v4051_v45 = vadd.f32 %v4050_v26, %v4049_v28  ;;  %v3940_v26 = vmul.f32 %v10439_v46, %v10439_v46 }
 0x4d3   :  { %v3860_v37 = vadd.f32 %v3859_v43, %v3858_v13 }
 0x4d4   :  { %v4053_v29 = vadd.f32 %v4052_v14, %v4051_v45  ;;  %v4056_v45 = vsel %vm2842_vm3, %v3940_v26, 0.0 }
 0x4d6   :  { %v4055_v18 = vadd.f32 %v4054_v36, %v4053_v29 }
 0x4d8   :  { %v4057_v8 = vadd.f32 %v4056_v45, %v4055_v18 }
 0x4de   :  { %v10453_v56 = vpop.f32.mrf.mxu0 }
 0x4df   :  { %12517 = vst [vmem:[#allocation106_spill] sm:$0xff] %v10453_v56  ;;  %v3942_v36 = vmul.f32 %v10453_v56, %v10453_v56  ;;  %v3863_v13 = vsel %vm2842_vm3, %v10453_v56, 0.0 }
 0x4e0   :  { %v10463_v23 = vpop.f32.mrf.mxu0 }
 0x4e1   :  { %12518 = vst [vmem:[#allocation9_spill] sm:$0xff] %v10463_v23  ;;  %v3941_v28 = vmul.f32 %v10463_v23, %v10463_v23  ;;  %v3861_v20 = vsel %vm2842_vm3, %v10463_v23, 0.0  ;;  %v4060_v18 = vsel %vm2842_vm3, %v3942_v36, 0.0 }
 0x4e2   :  { %v3862_v39 = vadd.f32 %v3861_v20, %v3860_v37 }
 0x4e3   :  { %v4058_v44 = vsel %vm2842_vm3, %v3941_v28, 0.0 }
 0x4e4   :  { %v4059_v46 = vadd.f32 %v4058_v44, %v4057_v8  ;;  %v3864_v26 = vadd.f32 %v3863_v13, %v3862_v39 }
 0x4e6   :  { %v4061_v37 = vadd.f32 %v4060_v18, %v4059_v46 }
 0x4f6   :  { %v10467_v38 = vpop.f32.mrf.mxu0 }
 0x4f7   :  { %12519 = vst [vmem:[#allocation59_spill] sm:$0xff] %v10467_v38  ;;  %v3944_v45 = vmul.f32 %v10467_v38, %v10467_v38  ;;  %v3867_v39 = vsel %vm2842_vm3, %v10467_v38, 0.0 }
 0x4f8   :  { %v10477_v54 = vpop.f32.mrf.mxu0 }
 0x4f9   :  { %12520 = vst [vmem:[#allocation109_spill] sm:$0xff] %v10477_v54  ;;  %v3943_v29 = vmul.f32 %v10477_v54, %v10477_v54  ;;  %v3865_v43 = vsel %vm2842_vm3, %v10477_v54, 0.0 }
 0x4fa   :  { %v3866_v20 = vadd.f32 %v3865_v43, %v3864_v26 }
 0x4fb   :  { %v4062_v28 = vsel %vm2842_vm3, %v3943_v29, 0.0  ;;  %v4064_v29 = vsel %vm2842_vm3, %v3944_v45, 0.0 }
 0x4fc   :  { %v4063_v56 = vadd.f32 %v4062_v28, %v4061_v37  ;;  %v3868_v36 = vadd.f32 %v3867_v39, %v3866_v20 }
 0x4fe   :  { %v4065_v26 = vadd.f32 %v4064_v29, %v4063_v56 }
 0x50e   :  { %v10481_v14 = vpop.f32.mrf.mxu0 }
 0x50f   :  { %12521 = vst [vmem:[#allocation8_spill] sm:$0xff] %v10481_v14  ;;  %v3946_v18 = vmul.f32 %v10481_v14, %v10481_v14  ;;  %v3871_v28 = vsel %vm2842_vm3, %v10481_v14, 0.0 }
 0x510   :  { %v10491_v23 = vpop.f32.mrf.mxu0 }
 0x511   :  { %12522 = vst [vmem:[#allocation58_spill] sm:$0xff] %v10491_v23  ;;  %v3945_v44 = vmul.f32 %v10491_v23, %v10491_v23  ;;  %v3869_v13 = vsel %vm2842_vm3, %v10491_v23, 0.0  ;;  %v4068_v20 = vsel %vm2842_vm3, %v3946_v18, 0.0 }
 0x512   :  { %v3870_v43 = vadd.f32 %v3869_v13, %v3868_v36 }
 0x513   :  { %v4066_v46 = vsel %vm2842_vm3, %v3945_v44, 0.0 }
 0x514   :  { %v4067_v12 = vadd.f32 %v4066_v46, %v4065_v26  ;;  %v3872_v38 = vadd.f32 %v3871_v28, %v3870_v43 }
 0x516   :  { %v4069_v23 = vadd.f32 %v4068_v20, %v4067_v12 }
 0x526   :  { %v10499_v8 = vpop.f32.mrf.mxu0 }
 0x527   :  { %12523 = vst [vmem:[#allocation108_spill] sm:$0xff] %v10499_v8  ;;  %v3948_v56 = vmul.f32 %v10499_v8, %v10499_v8  ;;  %v3875_v36 = vsel %vm2842_vm3, %v10499_v8, 0.0 }
 0x528   :  { %v3735_v54 = vpop.f32.mrf.mxu0 }
 0x529   :  { %v3947_v33 = vmul.f32 %v3735_v54, %v3735_v54  ;;  %v3873_v37 = vsel %vm2842_vm3, %v3735_v54, 0.0  ;;  %v4072_v26 = vsel %vm2842_vm3, %v3948_v56, 0.0 }
 0x52a   :  { %v3874_v45 = vadd.f32 %v3873_v37, %v3872_v38 }
 0x52b   :  { %v4070_v39 = vsel %vm2842_vm3, %v3947_v33, 0.0 }
 0x52c   :  { %v4071_v44 = vadd.f32 %v4070_v39, %v4069_v23  ;;  %v3876_v46 = vadd.f32 %v3875_v36, %v3874_v45 }
 0x52e   :  { %v4073_v18 = vadd.f32 %v4072_v26, %v4071_v44 }
 0x533   :  { %v10516_v13 = vpop.f32.mrf.mxu0 }
 0x534   :  { %12524 = vst [vmem:[#allocation11_spill] sm:$0xff] %v10516_v13  ;;  %v3950_v43 = vmul.f32 %v10516_v13, %v10516_v13  ;;  %v3879_v23 = vsel %vm2842_vm3, %v10516_v13, 0.0 }
 0x535   :  { %v3745_v29 = vpop.f32.mrf.mxu0 }
 0x536   :  { %v3877_v33 = vsel %vm2842_vm3, %v3745_v29, 0.0  ;;  %v3949_v38 = vmul.f32 %v3745_v29, %v3745_v29  ;;  %v4076_v39 = vsel %vm2842_vm3, %v3950_v43, 0.0  ;;  %v4093_v43 = vlaneseq }
 0x537   :  { %v3878_v12 = vadd.f32 %v3877_v33, %v3876_v46 }
 0x538   :  { %v4074_v28 = vsel %vm2842_vm3, %v3949_v38, 0.0 }
 0x539   :  { %v3880_v37 = vadd.f32 %v3879_v23, %v3878_v12  ;;  %v4075_v20 = vadd.f32 %v4074_v28, %v4073_v18  ;;  %v4094_v23 = vshrl.u32 %v4093_v43, 7  ;;  %v17_v28 = vld [vmem:[%s12206_s3] sm:$0x1] }
 0x53b   :  { %v3881_v45 = vrot.slane %v3880_v37, 4  ;;  %v4077_v36 = vadd.f32 %v4076_v39, %v4075_v20 }
 0x53d   :  { %v3882_v56 = vadd.f32 %v3881_v45, %v3880_v37  ;;  %v4078_v8 = vrot.slane %v4077_v36, 4 }
 0x53f   :  { %v3883_v14 = vrot.slane %v3882_v56, 2  ;;  %v4079_v59 = vadd.f32 %v4078_v8, %v4077_v36  ;;  %v10531_v8 = vsub.s32 0, %v4094_v23  ;;  %v12528_v23 = vld [vmem:[#allocation52_spill] sm:$0xff] }
 0x541   :  { %v3884_v19 = vadd.f32 %v3883_v14, %v3882_v56  ;;  %v4080_v61 = vrot.slane %v4079_v59, 2  ;;  %12525 = vst [vmem:[#allocation61_spill] sm:$0xff] %v10531_v8 }
 0x543   :  { %v3885_v9 = vrot.slane %v3884_v19, 1  ;;  %v4081_v46 = vadd.f32 %v4080_v61, %v4079_v59 }
 0x545   :  { %v3886_v44 = vadd.f32 %v3885_v9, %v3884_v19  ;;  %v4082_v26 = vrot.slane %v4081_v46, 1  ;;  %v18_v9 = vld [vmem:[%s12206_s3 + $0x1] sm:$0x1] }
 0x547   :  { %v4083_v33 = vadd.f32 %v4082_v26, %v4081_v46  ;;  %v4084_v13 = vmul.f32 0.001953125, %v3886_v44 }
 0x549   :  { %v4085_v62 = vmul.f32 0.001953125, %v4083_v33  ;;  %v4086_v38 = vmul.f32 %v4084_v13, %v4084_v13 }
 0x54b   :  { %v4087_v12 = vsub.f32 %v4085_v62, %v4086_v38 }
 0x54d   :  { %v4088_v18 = vadd.f32 1e-05, %v4087_v12 }
 0x54f   :  { %6998 = vrsqrt.f32 %v4088_v18  ;;  %v12526_v18 = vld [vmem:[#allocation103_spill] sm:$0xff] }
 0x55c   :  { %v6999_v14 = vpop.eup %6998 }
 0x55d   :  { %v4090_v37 = vmul.f32 %v6999_v14, %v17_v28  ;;  %v12530_v14 = vld [vmem:[#allocation5_spill] sm:$0xff] }
 0x55f   :  { %v4091_v19 = vmul.f32 %v4090_v37, %v4084_v13  ;;  %v10537_v61 = vrot.slane %v4090_v37, %v10531_v8  ;;  %v12531_v37 = vld [vmem:[#allocation102_spill] sm:$0xff] }
 0x561   :  { %v4092_v62 = vsub.f32 %v18_v9, %v4091_v19  ;;  %v4157_v59 = vmul.f32 %v10537_v61, %v3735_v54  ;;  %v4159_v20 = vmul.f32 %v10537_v61, %v3745_v29  ;;  %v10543_v39 = vmul.f32 %v10537_v61, %v10056_v17  ;;  %v12532_v19 = vld [vmem:[#allocation105_spill] sm:$0xff] }
 0x562   :  { %v10547_v45 = vmul.f32 %v10050_v47, %v10537_v61  ;;  %v10551_v36 = vmul.f32 %v10537_v61, %v10060_v11  ;;  %v10555_v13 = vmul.f32 %v10058_v15, %v10537_v61  ;;  %v10559_v54 = vmul.f32 %v10537_v61, %v10077_v40 }
 0x563   :  { %v10562_v29 = vrot.slane %v4092_v62, %v10531_v8  ;;  %v10566_v17 = vmul.f32 %v10064_v6, %v10537_v61  ;;  %v10570_v47 = vmul.f32 %v10537_v61, %v10091_v27  ;;  %v10574_v11 = vmul.f32 %v10081_v0, %v10537_v61  ;;  %v12549_v8 = vld [vmem:[#allocation109_spill] sm:$0xff] }
 0x564   :  { %v10578_v15 = vmul.f32 %v10537_v61, %v10105_v63  ;;  %v10582_v40 = vmul.f32 %v10095_v49, %v10537_v61  ;;  %v10586_v6 = vmul.f32 %v10537_v61, %v10119_v58  ;;  %v10590_v27 = vmul.f32 %v10109_v10, %v10537_v61 }
 0x565   :  { %v4225_v0 = vadd.f32 %v10562_v29, %v4157_v59  ;;  %v4227_v56 = vadd.f32 %v10562_v29, %v4159_v20  ;;  %v10596_v63 = vmul.f32 %v10537_v61, %v10133_v34  ;;  %v10600_v49 = vmul.f32 %v10123_v5, %v10537_v61  ;;  %v12533_v59 = vld [vmem:[#allocation55_spill] sm:$0xff] }
 0x566   :  { %v10604_v58 = vmul.f32 %v10537_v61, %v10147_v4  ;;  %v10608_v10 = vmul.f32 %v10137_v57, %v10537_v61  ;;  %v10612_v46 = vmul.f32 %v10537_v61, %v10161_v48  ;;  %v10616_v34 = vmul.f32 %v10151_v2, %v10537_v61 }
 0x567   :  { %v4289_v44 = vmax.f32 %v4225_v0, 0.0  ;;  %v4291_v26 = vmax.f32 %v4227_v56, 0.0  ;;  %v10620_v5 = vmul.f32 %v10537_v61, %v10175_v60  ;;  %v10624_v4 = vmul.f32 %v10165_v24, %v10537_v61  ;;  %v12534_v0 = vld [vmem:[#allocation54_spill] sm:$0xff] }
 0x568   :  { %v10628_v57 = vmul.f32 %v10537_v61, %v10189_v50  ;;  %v10632_v48 = vmul.f32 %v10179_v1, %v10537_v61  ;;  %v10636_v2 = vmul.f32 %v10537_v61, %v10203_v52  ;;  %v10640_v60 = vmul.f32 %v10193_v51, %v10537_v61 }
 0x569   :  { %v4323_v33 = vmax.f32 %v4289_v44, %v4291_v26  ;;  %v10644_v24 = vmul.f32 %v10537_v61, %v10217_v41  ;;  %v10648_v50 = vmul.f32 %v10207_v55, %v10537_v61  ;;  %v10652_v1 = vmul.f32 %v10537_v61, %v10231_v3  ;;  %v12535_v44 = vld [vmem:[#allocation4_spill] sm:$0xff] }
 0x56a   :  { %v10656_v52 = vmul.f32 %v10221_v35, %v10537_v61  ;;  %v10660_v51 = vmul.f32 %v10537_v61, %v10245_v25  ;;  %v10664_v41 = vmul.f32 %v10235_v53, %v10537_v61  ;;  %v10668_v55 = vmul.f32 %v10537_v61, %v10259_v42 }
 0x56b   :  { %v4400_v38 = vrot.slane %v4323_v33, 1  ;;  %v10672_v3 = vmul.f32 %v10249_v16, %v10537_v61  ;;  %v10676_v35 = vmul.f32 %v10537_v61, %v10273_v31  ;;  %v10680_v25 = vmul.f32 %v10263_v21, %v10537_v61 }
 0x56c   :  { %v10684_v53 = vmul.f32 %v10537_v61, %v10287_v7  ;;  %v10688_v42 = vmul.f32 %v10277_v30, %v10537_v61  ;;  %v10692_v16 = vmul.f32 %v10537_v61, %v10301_v32  ;;  %v10696_v31 = vmul.f32 %v10291_v22, %v10537_v61  ;;  %v12527_v7 = vld [vmem:[#allocation53_spill] sm:$0xff]  ;;  %v12529_v32 = vld [vmem:[#allocation3_spill] sm:$0xff] }
 0x56d   :  { %v4432_v12 = vmax.f32 %v4323_v33, %v4400_v38  ;;  %v10700_v21 = vmul.f32 %v10537_v61, %v12526_v18  ;;  %v10704_v43 = vmul.f32 %v12527_v7, %v10537_v61  ;;  %v10708_v30 = vmul.f32 %v10537_v61, %v12528_v23  ;;  %v12536_v33 = vld [vmem:[#allocation7_spill] sm:$0xff]  ;;  %v12537_v18 = vld [vmem:[#allocation104_spill] sm:$0xff] }
 0x56e   :  { %v10712_v28 = vmul.f32 %v12529_v32, %v10537_v61  ;;  %v10716_v22 = vmul.f32 %v10537_v61, %v12530_v14  ;;  %v10720_v9 = vmul.f32 %v12531_v37, %v10537_v61  ;;  %v10724_v62 = vmul.f32 %v10537_v61, %v12532_v19  ;;  %v12539_v32 = vld [vmem:[#allocation57_spill] sm:$0xff]  ;;  %v12541_v37 = vld [vmem:[#allocation56_spill] sm:$0xff] }
 0x56f   :  { %4448 = vst.msk [vmem:[#allocation2 + $0x121] sm:$0x1] %vm4336_vm9, %v4432_v12  ;;  %v10732_v20 = vmul.f32 %v12533_v59, %v10537_v61  ;;  %v10736_v56 = vmul.f32 %v10537_v61, %v12534_v0  ;;  %v10740_v26 = vmul.f32 %v12535_v44, %v10537_v61  ;;  %v10744_v38 = vmul.f32 %v10537_v61, %v12536_v33  ;;  %v12543_v59 = vld [vmem:[#allocation6_spill] sm:$0xff]  ;;  %v12545_v44 = vld [vmem:[#allocation9_spill] sm:$0xff] }
 0x570   :  { %4465 = vst.msk [vmem:[#allocation2 + $0x120] sm:$0x4] %vm4449_vm11, %v4432_v12  ;;  %v10748_v7 = vmul.f32 %v12537_v18, %v10537_v61  ;;  %v10756_v14 = vmul.f32 %v12539_v32, %v10537_v61  ;;  %v10760_v19 = vmul.f32 %v10537_v61, %v12541_v37  ;;  %v10764_v0 = vmul.f32 %v12543_v59, %v10537_v61  ;;  %v12547_v18 = vld [vmem:[#allocation106_spill] sm:$0xff] }
 0x571   :  { %4482 = vst.msk [vmem:[#allocation2 + $0x11f] sm:$0x10] %vm4466_vm12, %v4432_v12  ;;  %v10768_v33 = vmul.f32 %v10537_v61, %v12545_v44  ;;  %v10776_v32 = vmul.f32 %v10537_v61, %v12549_v8 }
 0x572   :  { %4499 = vst.msk [vmem:[#allocation2 + $0x11e] sm:$0x40] %vm4483_vm13, %v4432_v12  ;;  %v12538_v12 = vld [vmem:[#allocation107_spill] sm:$0xff]  ;;  %12540 = vst [vmem:[#allocation111_spill] sm:$0xff] %v10756_v14 }
 0x573   :  { %v10752_v23 = vmul.f32 %v10537_v61, %v12538_v12  ;;  %12542 = vst [vmem:[#allocation10_spill] sm:$0xff] %v10760_v19  ;;  %12544 = vst [vmem:[#allocation60_spill] sm:$0xff] %v10764_v0  ;;  %v10772_v12 = vmul.f32 %v12547_v18, %v10537_v61  ;;  %v12550_v14 = vld [vmem:[#allocation59_spill] sm:$0xff]  ;;  %v12552_v19 = vld [vmem:[#allocation58_spill] sm:$0xff] }
 0x574   :  { %12546 = vst [vmem:[#allocation110_spill] sm:$0xff] %v10768_v33  ;;  %v10780_v37 = vmul.f32 %v12550_v14, %v10537_v61  ;;  %v10784_v59 = vmul.f32 %v10537_v61, %v12552_v19  ;;  %v12553_v0 = vld [vmem:[#allocation8_spill] sm:$0xff]  ;;  %v4169_v14 = vadd.f32 %v10562_v29, %v10559_v54  ;;  %v4171_v19 = vadd.f32 %v10562_v29, %v10570_v47 }
 0x575   :  { %12548 = vst [vmem:[#allocation13_spill] sm:$0xff] %v10772_v12  ;;  %v10788_v44 = vmul.f32 %v12553_v0, %v10537_v61  ;;  %v12554_v33 = vld [vmem:[#allocation108_spill] sm:$0xff]  ;;  %v12555_v12 = vld [vmem:[#allocation11_spill] sm:$0xff]  ;;  %v4172_v0 = vadd.f32 %v10562_v29, %v10574_v11  ;;  %v10816_v54 = vadd.f32 %v10562_v29, %v10551_v36  ;;  %v10820_v47 = vadd.f32 %v10562_v29, %v10555_v13 }
 0x576   :  { %12551 = vst [vmem:[#allocation63_spill] sm:$0xff] %v10780_v37  ;;  %v10792_v18 = vmul.f32 %v12554_v33, %v10537_v61  ;;  %v10796_v8 = vmul.f32 %v12555_v12, %v10537_v61  ;;  %v4170_v37 = vadd.f32 %v10562_v29, %v10566_v17  ;;  %v10808_v33 = vadd.f32 %v10562_v29, %v10543_v39 }
 0x577   :  { %v10812_v61 = vadd.f32 %v10562_v29, %v10547_v45  ;;  %v4233_v12 = vmax.f32 %v4169_v14, 0.0  ;;  %v4236_v11 = vmax.f32 %v4172_v0, 0.0  ;;  %v10824_v39 = vadd.f32 %v10562_v29, %v10578_v15 }
 0x578   :  { %12556 = vst [vmem:[#allocation113_spill] sm:$0xff] %v10796_v8  ;;  %v4234_v17 = vmax.f32 %v4170_v37, 0.0  ;;  %v4235_v8 = vmax.f32 %v4171_v19, 0.0  ;;  %v10828_v45 = vadd.f32 %v10562_v29, %v10582_v40  ;;  %v10832_v36 = vadd.f32 %v10562_v29, %v10586_v6 }
 0x579   :  { %v10836_v37 = vadd.f32 %v10562_v29, %v10590_v27  ;;  %v10840_v13 = vadd.f32 %v10562_v29, %v10596_v63  ;;  %v10844_v15 = vadd.f32 %v10562_v29, %v10600_v49  ;;  %v10848_v40 = vadd.f32 %v10562_v29, %v10604_v58 }
 0x57a   :  { %v4295_v14 = vmax.f32 %v4233_v12, %v4235_v8  ;;  %v4296_v19 = vmax.f32 %v4234_v17, %v4236_v11  ;;  %v10852_v6 = vadd.f32 %v10562_v29, %v10608_v10  ;;  %v10856_v27 = vadd.f32 %v10562_v29, %v10612_v46  ;;  %v12565_v11 = vld [vmem:[#allocation111_spill] sm:$0xff] }
 0x57b   :  { %v10860_v63 = vadd.f32 %v10562_v29, %v10616_v34  ;;  %v10864_v49 = vadd.f32 %v10562_v29, %v10620_v5  ;;  %v10868_v58 = vadd.f32 %v10562_v29, %v10624_v4  ;;  %v10872_v10 = vadd.f32 %v10562_v29, %v10628_v57 }
 0x57c   :  { %v4386_v8 = vrot.slane %v4295_v14, 1  ;;  %v4517_v0 = vrot.slane %v4296_v19, 1  ;;  %v10876_v46 = vadd.f32 %v10562_v29, %v10632_v48  ;;  %v10880_v34 = vadd.f32 %v10562_v29, %v10636_v2 }
 0x57d   :  { %v10884_v5 = vadd.f32 %v10562_v29, %v10640_v60  ;;  %v10888_v4 = vadd.f32 %v10562_v29, %v10644_v24  ;;  %v10892_v57 = vadd.f32 %v10562_v29, %v10648_v50  ;;  %v10896_v48 = vadd.f32 %v10562_v29, %v10652_v1 }
 0x57e   :  { %v4418_v12 = vmax.f32 %v4295_v14, %v4386_v8  ;;  %v4549_v17 = vmax.f32 %v4296_v19, %v4517_v0  ;;  %v10900_v2 = vadd.f32 %v10562_v29, %v10656_v52  ;;  %v10904_v60 = vadd.f32 %v10562_v29, %v10660_v51  ;;  %v12566_v14 = vld [vmem:[#allocation10_spill] sm:$0xff]  ;;  %v4660_v8 = vld [vmem:[#allocation2 + $0x2] sm:$0xff] }
 0x57f   :  { %v10912_v24 = vadd.f32 %v10562_v29, %v10664_v41  ;;  %v10916_v50 = vadd.f32 %v10562_v29, %v10668_v55  ;;  %v10920_v1 = vadd.f32 %v10562_v29, %v10672_v3  ;;  %v10924_v52 = vadd.f32 %v10562_v29, %v10676_v35  ;;  %v12567_v0 = vld [vmem:[#allocation60_spill] sm:$0xff] }
 0x580   :  { %4434 = vst.msk [vmem:[#allocation2 + $0x21] sm:$0x1] %vm4336_vm9, %v4418_v12  ;;  %4565 = vst.msk [vmem:[#allocation2 + $0x25] sm:$0x1] %vm4336_vm9, %v4549_v17  ;;  %v10931_v51 = vadd.f32 %v10562_v29, %v10680_v25  ;;  %v10935_v41 = vadd.f32 %v10562_v29, %v10684_v53  ;;  %v10939_v55 = vadd.f32 %v10562_v29, %v10688_v42 }
 0x581   :  { %4451 = vst.msk [vmem:[#allocation2 + $0x20] sm:$0x4] %vm4449_vm11, %v4418_v12  ;;  %4581 = vst.msk [vmem:[#allocation2 + $0x24] sm:$0x4] %vm4449_vm11, %v4549_v17  ;;  %v10943_v3 = vadd.f32 %v10562_v29, %v10692_v16  ;;  %v10948_v35 = vadd.f32 %v10562_v29, %v10696_v31  ;;  %v10952_v25 = vadd.f32 %v10562_v29, %v10700_v21 }
 0x582   :  { %4468 = vst.msk [vmem:[#allocation2 + $0x1f] sm:$0x10] %vm4466_vm12, %v4418_v12  ;;  %4597 = vst.msk [vmem:[#allocation2 + $0x23] sm:$0x10] %vm4466_vm12, %v4549_v17  ;;  %v10956_v53 = vadd.f32 %v10562_v29, %v10704_v43  ;;  %v10960_v42 = vadd.f32 %v10562_v29, %v10708_v30  ;;  %v10964_v16 = vadd.f32 %v10562_v29, %v10712_v28 }
 0x583   :  { %4485 = vst.msk [vmem:[#allocation2 + $0x1e] sm:$0x40] %vm4483_vm13, %v4418_v12  ;;  %12557 = vst [vmem:[#allocation12_spill] sm:$0xff] %v10931_v51  ;;  %v10968_v31 = vadd.f32 %v10562_v29, %v10716_v22  ;;  %v10972_v21 = vadd.f32 %v10562_v29, %v10720_v9  ;;  %v10976_v43 = vadd.f32 %v10562_v29, %v10724_v62  ;;  %v5285_v62 = vld [vmem:[%s12207_s2 + $0xf8] sm:$0xff] }
 0x584   :  { %12558 = vst [vmem:[#allocation62_spill] sm:$0xff] %v10943_v3  ;;  %4613 = vst.msk [vmem:[#allocation2 + $0x22] sm:$0x40] %vm4483_vm13, %v4549_v17  ;;  %v10980_v30 = vadd.f32 %v10562_v29, %v10732_v20  ;;  %v10984_v28 = vadd.f32 %v10562_v29, %v10736_v56  ;;  %v10988_v22 = vadd.f32 %v10562_v29, %v10740_v26  ;;  %v5269_v20 = vld [vmem:[%s12207_s2 + $0x78] sm:$0xff]  ;;  %6502 = vmatprep.subr.mxu1 %v5285_v62 }
 0x585   :  { %12559 = vst [vmem:[#allocation112_spill] sm:$0xff] %v10948_v35  ;;  %12560 = vst [vmem:[#allocation15_spill] sm:$0xff] %v10952_v25  ;;  %v10992_v9 = vadd.f32 %v10562_v29, %v10744_v38  ;;  %v11002_v56 = vadd.f32 %v10562_v29, %v10748_v7  ;;  %v11006_v26 = vadd.f32 %v10562_v29, %v10752_v23  ;;  %v12568_v7 = vld [vmem:[#allocation110_spill] sm:$0xff]  ;;  %v12570_v23 = vld [vmem:[#allocation13_spill] sm:$0xff]  ;;  %6503 = vmatpush3.msra.mxu1 %v5269_v20 }
 0x586   :  { %12561 = vst [vmem:[#allocation65_spill] sm:$0xff] %v10956_v53  ;;  %12562 = vst [vmem:[#allocation115_spill] sm:$0xff] %v10960_v42  ;;  %v11010_v38 = vadd.f32 %v10562_v29, %v12565_v11  ;;  %v11014_v19 = vadd.f32 %v10562_v29, %v12566_v14  ;;  %v11018_v12 = vadd.f32 %v10562_v29, %v12567_v0  ;;  %v12573_v14 = vld [vmem:[#allocation63_spill] sm:$0xff]  ;;  %v5268_v20 = vld [vmem:[%s12207_s2 + $0x70] sm:$0xff] }
 0x587   :  { %12563 = vst [vmem:[#allocation14_spill] sm:$0xff] %v10964_v16  ;;  %12564 = vst [vmem:[#allocation64_spill] sm:$0xff] %v11006_v26  ;;  %v11022_v17 = vadd.f32 %v10562_v29, %v12568_v7  ;;  %v11026_v26 = vadd.f32 %v10562_v29, %v12570_v23  ;;  %v11030_v11 = vadd.f32 %v10562_v29, %v10776_v32  ;;  %v5284_v32 = vld [vmem:[%s12207_s2 + $0xf0] sm:$0xff] }
 0x588   :  { %v11034_v62 = vadd.f32 %v10562_v29, %v12573_v14  ;;  %v11038_v0 = vadd.f32 %v10562_v29, %v10784_v59  ;;  %v11042_v7 = vadd.f32 %v10562_v29, %v10788_v44  ;;  %v11046_v23 = vadd.f32 %v10562_v29, %v10792_v18  ;;  %v5283_v59 = vld [vmem:[%s12207_s2 + $0xe8] sm:$0xff]  ;;  %v12579_v44 = vld [vmem:[#allocation113_spill] sm:$0xff]  ;;  %6504 = vmatprep.subr.mxu1 %v5284_v32  ;;  %v5266_v32 = vld [vmem:[%s12207_s2 + $0x60] sm:$0xff] }
 0x589   :  { %12569 = vst [vmem:[#allocation114_spill] sm:$0xff] %v11022_v17  ;;  %12571 = vst [vmem:[#allocation17_spill] sm:$0xff] %v11026_v26  ;;  %v4229_v18 = vmax.f32 %v10808_v33, 0.0  ;;  %6505 = vmatpush3.msra.mxu1 %v5268_v20  ;;  %v5282_v33 = vld [vmem:[%s12207_s2 + $0xe0] sm:$0xff]  ;;  %v4276_v17 = vmax.f32 %v10988_v22, 0.0  ;;  %v4282_v22 = vmax.f32 %v11018_v12, 0.0 }
 0x58a   :  { %12572 = vst [vmem:[#allocation67_spill] sm:$0xff] %v11030_v11  ;;  %12574 = vst [vmem:[#allocation117_spill] sm:$0xff] %v11034_v62  ;;  %v11057_v14 = vld [vmem:[#allocation2 + $0x20] sm:$0xff]  ;;  %v4232_v11 = vmax.f32 %v10820_v47, 0.0  ;;  %6506 = vmatprep.subr.mxu1 %v5283_v59  ;;  %v5280_v59 = vld [vmem:[%s12207_s2 + $0xd0] sm:$0xff] }
 0x58b   :  { %12575 = vst [vmem:[#allocation16_spill] sm:$0xff] %v11038_v0  ;;  %12576 = vst [vmem:[#allocation66_spill] sm:$0xff] %v11042_v7  ;;  %v11061_v7 = vadd.f32 %v10562_v29, %v12579_v44  ;;  %v4231_v0 = vmax.f32 %v10816_v54, 0.0  ;;  %v6763_v62 = vpack.i.bf16 %v4660_v8, %v11057_v14  ;;  %v5267_v29 = vld [vmem:[%s12207_s2 + $0x68] sm:$0xff]  ;;  %v5277_v44 = vld [vmem:[%s12207_s2 + $0xb8] sm:$0xff] }
 0x58c   :  { %12577 = vst [vmem:[#allocation116_spill] sm:$0xff] %v11046_v23  ;;  %12578 = vst [vmem:[#allocation19_spill] sm:$0xff] %v11057_v14  ;;  %v4230_v23 = vmax.f32 %v10812_v61, 0.0  ;;  %6507 = vmatpush3.msra.mxu1 %v5267_v29  ;;  %v5275_v12 = vld [vmem:[%s12207_s2 + $0xa8] sm:$0xff] }
 0x58d   :  { %v4293_v61 = vmax.f32 %v4229_v18, %v4231_v0  ;;  %6764 = vrot.lane.b32.xlu1 %v6763_v62, %s7044_s18  ;;  %v5281_v18 = vld [vmem:[%s12207_s2 + $0xd8] sm:$0xff]  ;;  %6508 = vmatprep.subr.mxu1 %v5282_v33  ;;  %v12582_v33 = vmov %v11026_v26  ;;  %v4292_v35 = vmax.f32 %v11061_v7, 0.0 }
 0x58e   :  { %v4294_v20 = vmax.f32 %v4230_v23, %v4232_v11  ;;  %v5265_v11 = vld [vmem:[%s12207_s2 + $0x58] sm:$0xff]  ;;  %6509 = vmatpush3.msra.mxu1 %v5266_v32  ;;  %v5264_v23 = vld [vmem:[%s12207_s2 + $0x50] sm:$0xff]  ;;  %v4284_v26 = vmax.f32 %v12582_v33, 0.0 }
 0x58f   :  { %v4385_v47 = vrot.slane %v4293_v61, 1  ;;  %6510 = vmatprep.subr.mxu1 %v5281_v18  ;;  %v4275_v18 = vmax.f32 %v10984_v28, 0.0  ;;  %v4281_v28 = vmax.f32 %v11014_v19, 0.0 }
 0x590   :  { %v4516_v62 = vrot.slane %v4294_v20, 1  ;;  %6511 = vmatpush3.msra.mxu1 %v5265_v11  ;;  %v5263_v11 = vld [vmem:[%s12207_s2 + $0x48] sm:$0xff] }
 0x591   :  { %v4417_v8 = vmax.f32 %v4293_v61, %v4385_v47  ;;  %v5279_v61 = vld [vmem:[%s12207_s2 + $0xc8] sm:$0xff]  ;;  %6512 = vmatprep.subr.mxu1 %v5280_v59  ;;  %v5278_v59 = vld [vmem:[%s12207_s2 + $0xc0] sm:$0xff] }
 0x592   :  { %v4548_v29 = vmax.f32 %v4294_v20, %v4516_v62  ;;  %6513 = vmatpush3.msra.mxu1 %v5264_v23  ;;  %v5262_v47 = vld [vmem:[%s12207_s2 + $0x40] sm:$0xff]  ;;  %v4271_v20 = vmax.f32 %v10968_v31, 0.0  ;;  %v4272_v62 = vmax.f32 %v10972_v21, 0.0  ;;  %v5261_v31 = vld [vmem:[%s12207_s2 + $0x38] sm:$0xff]  ;;  %v4277_v21 = vmax.f32 %v10992_v9, 0.0  ;;  %v12585_v14 = vld [vmem:[#allocation16_spill] sm:$0xff] }
 0x593   :  { %4450 = vst.msk [vmem:[#allocation2 + $0x10] sm:$0x4] %vm4449_vm11, %v4417_v8  ;;  %6514 = vmatprep.subr.mxu1 %v5279_v61  ;;  %v4274_v61 = vmax.f32 %v10980_v30, 0.0  ;;  %v4644_v23 = vld [vmem:[#allocation2 + $0x1] sm:$0xff]  ;;  %v5276_v30 = vld [vmem:[%s12207_s2 + $0xb0] sm:$0xff]  ;;  %v4287_v16 = vmax.f32 %v12585_v14, 0.0 }
 0x594   :  { %4467 = vst.msk [vmem:[#allocation2 + $0xf] sm:$0x10] %vm4466_vm12, %v4417_v8  ;;  %4596 = vst.msk [vmem:[#allocation2 + $0x13] sm:$0x10] %vm4466_vm12, %v4548_v29  ;;  %6515 = vmatpush3.msra.mxu1 %v5263_v11  ;;  %v4278_v11 = vmax.f32 %v11002_v56, 0.0  ;;  %v11167_v9 = vld [vmem:[#allocation2 + $0x21] sm:$0xff] }
 0x595   :  { %4484 = vst.msk [vmem:[#allocation2 + $0xe] sm:$0x40] %vm4483_vm13, %v4417_v8  ;;  %4612 = vst.msk [vmem:[#allocation2 + $0x12] sm:$0x40] %vm4483_vm13, %v4548_v29  ;;  %6516 = vmatprep.subr.mxu1 %v5278_v59  ;;  %v12581_v59 = vld [vmem:[#allocation114_spill] sm:$0xff]  ;;  %v5260_v56 = vld [vmem:[%s12207_s2 + $0x30] sm:$0xff] }
 0x596   :  { %4433 = vst.msk [vmem:[#allocation2 + $0x11] sm:$0x1] %vm4336_vm9, %v4417_v8  ;;  %4564 = vst.msk [vmem:[#allocation2 + $0x15] sm:$0x1] %vm4336_vm9, %v4548_v29  ;;  %v12580_v8 = vld [vmem:[#allocation64_spill] sm:$0xff]  ;;  %6517 = vmatpush3.msra.mxu1 %v5262_v47  ;;  %v4283_v32 = vmax.f32 %v12581_v59, 0.0 }
 0x597   :  { %4580 = vst.msk [vmem:[#allocation2 + $0x14] sm:$0x4] %vm4449_vm11, %v4548_v29  ;;  %v4273_v29 = vmax.f32 %v10976_v43, 0.0  ;;  %v4279_v0 = vmax.f32 %v12580_v8, 0.0  ;;  %v4280_v43 = vmax.f32 %v11010_v38, 0.0  ;;  %6518 = vmatprep.subr.mxu1 %v5277_v44  ;;  %v12583_v38 = vld [vmem:[#allocation67_spill] sm:$0xff] }
 0x598   :  { %v4285_v47 = vmax.f32 %v12583_v38, 0.0  ;;  %v12584_v8 = vld [vmem:[#allocation117_spill] sm:$0xff]  ;;  %v12586_v19 = vld [vmem:[#allocation66_spill] sm:$0xff]  ;;  %6519 = vmatpush3.msra.mxu1 %v5261_v31  ;;  %v12587_v44 = vld [vmem:[#allocation116_spill] sm:$0xff]  ;;  %v12588_v38 = vmax.f32 %v10832_v36, 0.0  ;;  %v12590_v31 = vmax.f32 %v10836_v37, 0.0 }
 0x599   :  { %v4286_v54 = vmax.f32 %v12584_v8, 0.0  ;;  %v4288_v42 = vmax.f32 %v12586_v19, 0.0  ;;  %v4290_v59 = vmax.f32 %v12587_v44, 0.0  ;;  %v12589_v8 = vmax.f32 %v10824_v39, 0.0  ;;  %6520 = vmatprep.subr.mxu1 %v5276_v30 }
 0x59a   :  { %v12591_v19 = vmax.f32 %v10828_v45, 0.0  ;;  %v12592_v44 = vmax.f32 %v10848_v40, 0.0  ;;  %v12593_v36 = vmax.f32 %v10840_v13, 0.0  ;;  %v12594_v39 = vmax.f32 %v10852_v6, 0.0  ;;  %6521 = vmatpush3.msra.mxu1 %v5260_v56  ;;  %v5259_v45 = vld [vmem:[%s12207_s2 + $0x28] sm:$0xff] }
 0x59b   :  { %v11189_v14 = vmax.f32 %v12589_v8, %v12588_v38  ;;  %v12595_v37 = vmax.f32 %v10844_v15, 0.0  ;;  %v12597_v30 = vmax.f32 %v10856_v27, 0.0  ;;  %v12598_v13 = vmax.f32 %v10868_v58, 0.0  ;;  %6522 = vmatprep.subr.mxu1 %v5275_v12  ;;  %v5274_v27 = vld [vmem:[%s12207_s2 + $0xa0] sm:$0xff] }
 0x59c   :  { %v11195_v3 = vmax.f32 %v12591_v19, %v12590_v31  ;;  %v11204_v51 = vmax.f32 %v12593_v36, %v12592_v44  ;;  %v12599_v8 = vmax.f32 %v10860_v63, 0.0  ;;  %v12600_v15 = vmax.f32 %v10880_v34, 0.0  ;;  %6523 = vmatpush3.msra.mxu1 %v5259_v45 }
 0x59d   :  { %v11210_v38 = vmax.f32 %v12595_v37, %v12594_v39  ;;  %v12601_v56 = vmax.f32 %v10872_v10, 0.0  ;;  %v12602_v19 = vmax.f32 %v10884_v5, 0.0  ;;  %v12604_v63 = vmax.f32 %v10896_v48, 0.0  ;;  %6524 = vmatprep.subr.mxu1 %v5274_v27  ;;  %v5255_v27 = vld [vmem:[%s12207_s2 + $0x8] sm:$0xff] }
 0x59e   :  { %v11179_v33 = vld [vmem:[#allocation2 + $0x12] sm:$0xff]  ;;  %v11225_v6 = vmax.f32 %v12599_v8, %v12598_v13  ;;  %v12605_v58 = vmax.f32 %v10888_v4, 0.0  ;;  %v12606_v34 = vmax.f32 %v10900_v2, 0.0  ;;  %v12607_v5 = vmax.f32 %v10892_v57, 0.0  ;;  %v5258_v4 = vld [vmem:[%s12207_s2 + $0x20] sm:$0xff] }
 0x59f   :  { %v11183_v53 = vld [vmem:[#allocation2 + $0x10] sm:$0xff]  ;;  %v6758_v25 = vpack.i.bf16 %v4644_v23, %v11179_v33  ;;  %v12596_v23 = vmax.f32 %v10864_v49, 0.0  ;;  %v11231_v31 = vmax.f32 %v12601_v56, %v12600_v15  ;;  %v12603_v49 = vmax.f32 %v10876_v46, 0.0  ;;  %v12619_v8 = vld [vmem:[#allocation62_spill] sm:$0xff]  ;;  %6525 = vmatpush3.msra.mxu1 %v5258_v4 }
 0x5a0   :  { %v6768_v7 = vpack.i.bf16 %v11183_v53, %v11167_v9  ;;  %v11247_v10 = vmax.f32 %v12605_v58, %v12604_v63  ;;  %v11253_v46 = vmax.f32 %v12607_v5, %v12606_v34  ;;  %v12608_v12 = vmax.f32 %v10916_v50, 0.0  ;;  %v12615_v50 = vld [vmem:[#allocation12_spill] sm:$0xff] }
 0x5a1   :  { %v11219_v40 = vmax.f32 %v12597_v30, %v12596_v23  ;;  %v11237_v44 = vmax.f32 %v12603_v49, %v12602_v19  ;;  %6759 = vrot.lane.b32.xlu0 %v6758_v25, %s7040_s22  ;;  %v12609_v36 = vmax.f32 %v10904_v60, 0.0  ;;  %v12610_v25 = vmax.f32 %v10920_v1, 0.0  ;;  %v12617_v1 = vld [vmem:[#allocation15_spill] sm:$0xff]  ;;  %v12621_v19 = vld [vmem:[#allocation65_spill] sm:$0xff]  ;;  %v12623_v63 = vld [vmem:[#allocation112_spill] sm:$0xff] }
 0x5a2   :  { %v12611_v48 = vmax.f32 %v10912_v24, 0.0  ;;  %v12612_v57 = vmax.f32 %v10935_v41, 0.0  ;;  %v12613_v2 = vmax.f32 %v10924_v52, 0.0  ;;  %v12614_v60 = vmax.f32 %v10939_v55, 0.0  ;;  %v11294_v52 = vld [vmem:[#allocation2 + $0x11] sm:$0xff]  ;;  %v11296_v34 = vld [vmem:[#allocation2 + $0x22] sm:$0xff] }
 0x5a3   :  { %v11259_v39 = vmax.f32 %v12609_v36, %v12608_v12  ;;  %v12616_v30 = vmax.f32 %v12615_v50, 0.0  ;;  %v12618_v24 = vmax.f32 %v12617_v1, 0.0  ;;  %v12620_v15 = vmax.f32 %v12619_v8, 0.0  ;;  %v12625_v55 = vld [vmem:[#allocation115_spill] sm:$0xff]  ;;  %v12627_v36 = vld [vmem:[#allocation14_spill] sm:$0xff] }
 0x5a4   :  { %v11265_v37 = vmax.f32 %v12611_v48, %v12610_v25  ;;  %v11274_v23 = vmax.f32 %v12613_v2, %v12612_v57  ;;  %v12622_v49 = vmax.f32 %v12621_v19, 0.0  ;;  %v12624_v41 = vmax.f32 %v12623_v63, 0.0 }
 0x5a5   :  { %v11280_v13 = vmax.f32 %v12616_v30, %v12614_v60  ;;  %v11286_v56 = vmax.f32 %v12620_v15, %v12618_v24  ;;  %v12626_v5 = vmax.f32 %v12625_v55, 0.0  ;;  %v12628_v25 = vmax.f32 %v12627_v36, 0.0  ;;  %v5273_v60 = vld [vmem:[%s12207_s2 + $0x98] sm:$0xff]  ;;  %6769 = vrot.lane.b32.xlu0 %v6768_v7, %s7046_s6  ;;  %v5270_v15 = vld [vmem:[%s12207_s2 + $0x80] sm:$0xff] }
 0x5a6   :  { %v11292_v58 = vmax.f32 %v12624_v41, %v12622_v49  ;;  %v11306_v57 = vmax.f32 %v4273_v29, %v4275_v18  ;;  %v11308_v2 = vmax.f32 %v4274_v61, %v4276_v17  ;;  %v11313_v50 = vmax.f32 %v4277_v21, %v4279_v0  ;;  %v5257_v18 = vld [vmem:[%s12207_s2 + $0x18] sm:$0xff]  ;;  %6526 = vmatprep.subr.mxu1 %v5273_v60  ;;  %v5254_v55 = vld [vmem:[%s12207_s2] sm:$0xff] }
 0x5a7   :  { %v11300_v12 = vmax.f32 %v12626_v5, %v4271_v20  ;;  %v11304_v48 = vmax.f32 %v12628_v25, %v4272_v62  ;;  %v11315_v45 = vmax.f32 %v4278_v11, %v4280_v43  ;;  %v11317_v30 = vmax.f32 %v4281_v28, %v4283_v32  ;;  %6527 = vmatpush3.msra.mxu1 %v5257_v18  ;;  %v5271_v28 = vld [vmem:[%s12207_s2 + $0x88] sm:$0xff] }
 0x5a8   :  { %v11319_v20 = vmax.f32 %v4282_v22, %v4284_v26  ;;  %v11325_v17 = vmax.f32 %v4285_v47, %v4287_v16  ;;  %v11327_v62 = vmax.f32 %v4286_v54, %v4288_v42  ;;  %v11329_v0 = vmax.f32 %v4290_v59, %v4292_v35  ;;  %v5272_v26 = vld [vmem:[%s12207_s2 + $0x90] sm:$0xff] }
 0x5a9   :  { %v6773_v32 = vpack.i.bf16 %v11294_v52, %v11296_v34  ;;  %v4387_v29 = vrot.slane %v11189_v14, 1  ;;  %v4388_v61 = vrot.slane %v11204_v51, 1  ;;  %v4389_v21 = vrot.slane %v11219_v40, 1  ;;  %v5256_v35 = vld [vmem:[%s12207_s2 + $0x10] sm:$0xff]  ;;  %6528 = vmatprep.subr.mxu1 %v5272_v26 }
 0x5aa   :  { %v4390_v16 = vrot.slane %v11231_v31, 1  ;;  %v4391_v42 = vrot.slane %v11247_v10, 1  ;;  %v4392_v54 = vrot.slane %v11259_v39, 1  ;;  %v4393_v11 = vrot.slane %v11274_v23, 1  ;;  %6529 = vmatpush3.msra.mxu1 %v5256_v35 }
 0x5ab   :  { %6774 = vrot.lane.b32.xlu1 %v6773_v32, %s7040_s22  ;;  %v4394_v43 = vrot.slane %v11286_v56, 1  ;;  %v4395_v22 = vrot.slane %v11300_v12, 1  ;;  %v4396_v47 = vrot.slane %v11306_v57, 1  ;;  %v4397_v59 = vrot.slane %v11313_v50, 1  ;;  %6530 = vmatprep.subr.mxu1 %v5271_v28 }
 0x5ac   :  { %v4398_v7 = vrot.slane %v11317_v30, 1  ;;  %v4399_v4 = vrot.slane %v11325_v17, 1  ;;  %v4518_v1 = vrot.slane %v11195_v3, 1  ;;  %v4519_v24 = vrot.slane %v11210_v38, 1  ;;  %6531 = vmatpush3.msra.mxu1 %v5255_v27 }
 0x5ad   :  { %v4520_v8 = vrot.slane %v11225_v6, 1  ;;  %v4521_v19 = vrot.slane %v11237_v44, 1  ;;  %v4522_v49 = vrot.slane %v11253_v46, 1  ;;  %v4523_v63 = vrot.slane %v11265_v37, 1  ;;  %6532 = vmatprep.subr.mxu1 %v5270_v15 }
 0x5ae   :  { %v4524_v41 = vrot.slane %v11280_v13, 1  ;;  %v4528_v60 = vrot.slane %v11315_v45, 1  ;;  %v4529_v18 = vrot.slane %v11319_v20, 1  ;;  %v4530_v32 = vrot.slane %v11327_v62, 1  ;;  %6533 = vmatpush3.msra.mxu1 %v5254_v55 }
 0x5af   :  { %v4531_v26 = vrot.slane %v11329_v0, 1  ;;  %v4419_v35 = vmax.f32 %v11189_v14, %v4387_v29  ;;  %v4550_v28 = vmax.f32 %v11195_v3, %v4518_v1  ;;  %v4420_v5 = vmax.f32 %v11204_v51, %v4388_v61 }
 0x5b0   :  { %v4421_v36 = vmax.f32 %v11219_v40, %v4389_v21  ;;  %v4422_v25 = vmax.f32 %v11231_v31, %v4390_v16  ;;  %v4423_v14 = vmax.f32 %v11247_v10, %v4391_v42  ;;  %v4424_v29 = vmax.f32 %v11259_v39, %v4392_v54 }
 0x5b1   :  { %4435 = vst.msk [vmem:[#allocation2 + $0x31] sm:$0x1] %vm4336_vm9, %v4419_v35  ;;  %v4425_v3 = vmax.f32 %v11274_v23, %v4393_v11  ;;  %v4426_v51 = vmax.f32 %v11286_v56, %v4394_v43  ;;  %4566 = vst.msk [vmem:[#allocation2 + $0x35] sm:$0x1] %vm4336_vm9, %v4550_v28  ;;  %v4427_v40 = vmax.f32 %v11300_v12, %v4395_v22 }
 0x5b2   :  { %4452 = vst.msk [vmem:[#allocation2 + $0x30] sm:$0x4] %vm4449_vm11, %v4419_v35  ;;  %4582 = vst.msk [vmem:[#allocation2 + $0x34] sm:$0x4] %vm4449_vm11, %v4550_v28  ;;  %v4428_v31 = vmax.f32 %v11306_v57, %v4396_v47  ;;  %v4429_v61 = vmax.f32 %v11313_v50, %v4397_v59  ;;  %v4430_v10 = vmax.f32 %v11317_v30, %v4398_v7  ;;  %v12629_v57 = vrot.slane %v11292_v58, 1 }
 0x5b3   :  { %4469 = vst.msk [vmem:[#allocation2 + $0x2f] sm:$0x10] %vm4466_vm12, %v4419_v35  ;;  %4598 = vst.msk [vmem:[#allocation2 + $0x33] sm:$0x10] %vm4466_vm12, %v4550_v28  ;;  %v4431_v39 = vmax.f32 %v11325_v17, %v4399_v4  ;;  %v4551_v23 = vmax.f32 %v11210_v38, %v4519_v24  ;;  %v4552_v56 = vmax.f32 %v11225_v6, %v4520_v8 }
 0x5b4   :  { %4486 = vst.msk [vmem:[#allocation2 + $0x2e] sm:$0x40] %vm4483_vm13, %v4419_v35  ;;  %4614 = vst.msk [vmem:[#allocation2 + $0x32] sm:$0x40] %vm4483_vm13, %v4550_v28  ;;  %v4553_v12 = vmax.f32 %v11237_v44, %v4521_v19  ;;  %v4554_v38 = vmax.f32 %v11253_v46, %v4522_v49  ;;  %v4555_v6 = vmax.f32 %v11265_v37, %v4523_v63  ;;  %v12630_v46 = vrot.slane %v11304_v48, 1  ;;  %v11576_v49 = vld [vmem:[%s12207_s2 + $0x118] sm:$0xff] }
 0x5b5   :  { %4436 = vst.msk [vmem:[#allocation2 + $0x41] sm:$0x1] %vm4336_vm9, %v4420_v5  ;;  %4437 = vst.msk [vmem:[#allocation2 + $0x51] sm:$0x1] %vm4336_vm9, %v4421_v36  ;;  %v4556_v44 = vmax.f32 %v11280_v13, %v4524_v41  ;;  %v4557_v50 = vmax.f32 %v11292_v58, %v12629_v57  ;;  %v12631_v13 = vrot.slane %v11308_v2, 1  ;;  %v4560_v30 = vmax.f32 %v11315_v45, %v4528_v60 }
 0x5b6   :  { %4438 = vst.msk [vmem:[#allocation2 + $0x61] sm:$0x1] %vm4336_vm9, %v4422_v25  ;;  %4439 = vst.msk [vmem:[#allocation2 + $0x71] sm:$0x1] %vm4336_vm9, %v4423_v14  ;;  %v4558_v37 = vmax.f32 %v11304_v48, %v12630_v46  ;;  %v4561_v17 = vmax.f32 %v11319_v20, %v4529_v18  ;;  %v4562_v48 = vmax.f32 %v11327_v62, %v4530_v32  ;;  %6716 = vmatprep.subr.mxu1 %v11576_v49 }
 0x5b7   :  { %4453 = vst.msk [vmem:[#allocation2 + $0x40] sm:$0x4] %vm4449_vm11, %v4420_v5  ;;  %4454 = vst.msk [vmem:[#allocation2 + $0x50] sm:$0x4] %vm4449_vm11, %v4421_v36  ;;  %v4559_v58 = vmax.f32 %v11308_v2, %v12631_v13  ;;  %v4563_v2 = vmax.f32 %v11329_v0, %v4531_v26  ;;  %v12632_v0 = vld [vmem:[#allocation19_spill] sm:$0xff] }
 0x5b8   :  { %4455 = vst.msk [vmem:[#allocation2 + $0x60] sm:$0x4] %vm4449_vm11, %v4422_v25  ;;  %4456 = vst.msk [vmem:[#allocation2 + $0x70] sm:$0x4] %vm4449_vm11, %v4423_v14 }
 0x5b9   :  { %4470 = vst.msk [vmem:[#allocation2 + $0x3f] sm:$0x10] %vm4466_vm12, %v4420_v5  ;;  %4471 = vst.msk [vmem:[#allocation2 + $0x4f] sm:$0x10] %vm4466_vm12, %v4421_v36 }
 0x5ba   :  { %4472 = vst.msk [vmem:[#allocation2 + $0x5f] sm:$0x10] %vm4466_vm12, %v4422_v25  ;;  %4473 = vst.msk [vmem:[#allocation2 + $0x6f] sm:$0x10] %vm4466_vm12, %v4423_v14 }
 0x5bb   :  { %4487 = vst.msk [vmem:[#allocation2 + $0x3e] sm:$0x40] %vm4483_vm13, %v4420_v5  ;;  %4488 = vst.msk [vmem:[#allocation2 + $0x4e] sm:$0x40] %vm4483_vm13, %v4421_v36  ;;  %v11534_v45 = vld [vmem:[#allocation2 + $0x30] sm:$0xff] }
 0x5bc   :  { %4489 = vst.msk [vmem:[#allocation2 + $0x5e] sm:$0x40] %vm4483_vm13, %v4422_v25  ;;  %4490 = vst.msk [vmem:[#allocation2 + $0x6e] sm:$0x40] %vm4483_vm13, %v4423_v14  ;;  %v11536_v20 = vld [vmem:[#allocation2 + $0x31] sm:$0xff]  ;;  %v6778_v62 = vpack.i.bf16 %v11179_v33, %v11534_v45 }
 0x5bd   :  { %4440 = vst.msk [vmem:[#allocation2 + $0x81] sm:$0x1] %vm4336_vm9, %v4424_v29  ;;  %4441 = vst.msk [vmem:[#allocation2 + $0xb1] sm:$0x1] %vm4336_vm9, %v4425_v3  ;;  %v6783_v21 = vpack.i.bf16 %v12632_v0, %v11536_v20  ;;  %v4710_v16 = vld [vmem:[#allocation2 + $0x32] sm:$0xff] }
 0x5be   :  { %4442 = vst.msk [vmem:[#allocation2 + $0xc1] sm:$0x1] %vm4336_vm9, %v4426_v51  ;;  %4443 = vst.msk [vmem:[#allocation2 + $0xd1] sm:$0x1] %vm4336_vm9, %v4427_v40  ;;  %6779 = vrot.lane.b32.xlu0 %v6778_v62, %s7044_s18  ;;  %v6788_v54 = vpack.i.bf16 %v11167_v9, %v4710_v16 }
 0x5bf   :  { %4457 = vst.msk [vmem:[#allocation2 + $0x80] sm:$0x4] %vm4449_vm11, %v4424_v29  ;;  %4458 = vst.msk [vmem:[#allocation2 + $0xb0] sm:$0x4] %vm4449_vm11, %v4425_v3  ;;  %6784 = vrot.lane.b32.xlu1 %v6783_v21, %s7046_s6 }
 0x5c0   :  { %4459 = vst.msk [vmem:[#allocation2 + $0xc0] sm:$0x4] %vm4449_vm11, %v4426_v51  ;;  %4460 = vst.msk [vmem:[#allocation2 + $0xd0] sm:$0x4] %vm4449_vm11, %v4427_v40 }
 0x5c1   :  { %4474 = vst.msk [vmem:[#allocation2 + $0x7f] sm:$0x10] %vm4466_vm12, %v4424_v29  ;;  %4475 = vst.msk [vmem:[#allocation2 + $0xaf] sm:$0x10] %vm4466_vm12, %v4425_v3 }
 0x5c2   :  { %4476 = vst.msk [vmem:[#allocation2 + $0xbf] sm:$0x10] %vm4466_vm12, %v4426_v51  ;;  %4477 = vst.msk [vmem:[#allocation2 + $0xcf] sm:$0x10] %vm4466_vm12, %v4427_v40  ;;  %6789 = vrot.lane.b32.xlu0 %v6788_v54, %s7040_s22 }
 0x5c3   :  { %4491 = vst.msk [vmem:[#allocation2 + $0x7e] sm:$0x40] %vm4483_vm13, %v4424_v29  ;;  %4492 = vst.msk [vmem:[#allocation2 + $0xae] sm:$0x40] %vm4483_vm13, %v4425_v3  ;;  %v4732_v3 = vld [vmem:[#allocation2 + $0x90] sm:$0xff] }
 0x5c4   :  { %4493 = vst.msk [vmem:[#allocation2 + $0xbe] sm:$0x40] %vm4483_vm13, %v4426_v51  ;;  %4494 = vst.msk [vmem:[#allocation2 + $0xce] sm:$0x40] %vm4483_vm13, %v4427_v40  ;;  %v4748_v51 = vld [vmem:[#allocation2 + $0x91] sm:$0xff] }
 0x5c5   :  { %4444 = vst.msk [vmem:[#allocation2 + $0xe1] sm:$0x1] %vm4336_vm9, %v4428_v31  ;;  %4445 = vst.msk [vmem:[#allocation2 + $0xf1] sm:$0x1] %vm4336_vm9, %v4429_v61 }
 0x5c6   :  { %4446 = vst.msk [vmem:[#allocation2 + $0x101] sm:$0x1] %vm4336_vm9, %v4430_v10  ;;  %4447 = vst.msk [vmem:[#allocation2 + $0x111] sm:$0x1] %vm4336_vm9, %v4431_v39 }
 0x5c7   :  { %4461 = vst.msk [vmem:[#allocation2 + $0xe0] sm:$0x4] %vm4449_vm11, %v4428_v31  ;;  %4462 = vst.msk [vmem:[#allocation2 + $0xf0] sm:$0x4] %vm4449_vm11, %v4429_v61 }
 0x5c8   :  { %4463 = vst.msk [vmem:[#allocation2 + $0x100] sm:$0x4] %vm4449_vm11, %v4430_v10  ;;  %4464 = vst.msk [vmem:[#allocation2 + $0x110] sm:$0x4] %vm4449_vm11, %v4431_v39 }
 0x5c9   :  { %4478 = vst.msk [vmem:[#allocation2 + $0xdf] sm:$0x10] %vm4466_vm12, %v4428_v31  ;;  %4479 = vst.msk [vmem:[#allocation2 + $0xef] sm:$0x10] %vm4466_vm12, %v4429_v61 }
 0x5ca   :  { %4480 = vst.msk [vmem:[#allocation2 + $0xff] sm:$0x10] %vm4466_vm12, %v4430_v10  ;;  %4481 = vst.msk [vmem:[#allocation2 + $0x10f] sm:$0x10] %vm4466_vm12, %v4431_v39 }
 0x5cb   :  { %4495 = vst.msk [vmem:[#allocation2 + $0xde] sm:$0x40] %vm4483_vm13, %v4428_v31  ;;  %4496 = vst.msk [vmem:[#allocation2 + $0xee] sm:$0x40] %vm4483_vm13, %v4429_v61  ;;  %v4652_v61 = vld [vmem:[#allocation2 + $0xa1] sm:$0xff] }
 0x5cc   :  { %4497 = vst.msk [vmem:[#allocation2 + $0xfe] sm:$0x40] %vm4483_vm13, %v4430_v10  ;;  %4498 = vst.msk [vmem:[#allocation2 + $0x10e] sm:$0x40] %vm4483_vm13, %v4431_v39  ;;  %v4668_v39 = vld [vmem:[#allocation2 + $0xa2] sm:$0xff] }
 0x5cd   :  { %4567 = vst.msk [vmem:[#allocation2 + $0x45] sm:$0x1] %vm4336_vm9, %v4551_v23  ;;  %4568 = vst.msk [vmem:[#allocation2 + $0x55] sm:$0x1] %vm4336_vm9, %v4552_v56 }
 0x5ce   :  { %4569 = vst.msk [vmem:[#allocation2 + $0x65] sm:$0x1] %vm4336_vm9, %v4553_v12  ;;  %4570 = vst.msk [vmem:[#allocation2 + $0x75] sm:$0x1] %vm4336_vm9, %v4554_v38 }
 0x5cf   :  { %4583 = vst.msk [vmem:[#allocation2 + $0x44] sm:$0x4] %vm4449_vm11, %v4551_v23  ;;  %4584 = vst.msk [vmem:[#allocation2 + $0x54] sm:$0x4] %vm4449_vm11, %v4552_v56 }
 0x5d0   :  { %4585 = vst.msk [vmem:[#allocation2 + $0x64] sm:$0x4] %vm4449_vm11, %v4553_v12  ;;  %4586 = vst.msk [vmem:[#allocation2 + $0x74] sm:$0x4] %vm4449_vm11, %v4554_v38 }
 0x5d1   :  { %4599 = vst.msk [vmem:[#allocation2 + $0x43] sm:$0x10] %vm4466_vm12, %v4551_v23  ;;  %4600 = vst.msk [vmem:[#allocation2 + $0x53] sm:$0x10] %vm4466_vm12, %v4552_v56 }
 0x5d2   :  { %4601 = vst.msk [vmem:[#allocation2 + $0x63] sm:$0x10] %vm4466_vm12, %v4553_v12  ;;  %4602 = vst.msk [vmem:[#allocation2 + $0x73] sm:$0x10] %vm4466_vm12, %v4554_v38 }
 0x5d3   :  { %4615 = vst.msk [vmem:[#allocation2 + $0x42] sm:$0x40] %vm4483_vm13, %v4551_v23  ;;  %4616 = vst.msk [vmem:[#allocation2 + $0x52] sm:$0x40] %vm4483_vm13, %v4552_v56 }
 0x5d4   :  { %4617 = vst.msk [vmem:[#allocation2 + $0x62] sm:$0x40] %vm4483_vm13, %v4553_v12  ;;  %4618 = vst.msk [vmem:[#allocation2 + $0x72] sm:$0x40] %vm4483_vm13, %v4554_v38 }
 0x5d5   :  { %4571 = vst.msk [vmem:[#allocation2 + $0x85] sm:$0x1] %vm4336_vm9, %v4555_v6  ;;  %4572 = vst.msk [vmem:[#allocation2 + $0xb5] sm:$0x1] %vm4336_vm9, %v4556_v44 }
 0x5d6   :  { %4573 = vst.msk [vmem:[#allocation2 + $0xc5] sm:$0x1] %vm4336_vm9, %v4557_v50  ;;  %4574 = vst.msk [vmem:[#allocation2 + $0xd5] sm:$0x1] %vm4336_vm9, %v4558_v37 }
 0x5d7   :  { %4587 = vst.msk [vmem:[#allocation2 + $0x84] sm:$0x4] %vm4449_vm11, %v4555_v6  ;;  %4588 = vst.msk [vmem:[#allocation2 + $0xb4] sm:$0x4] %vm4449_vm11, %v4556_v44 }
 0x5d8   :  { %4589 = vst.msk [vmem:[#allocation2 + $0xc4] sm:$0x4] %vm4449_vm11, %v4557_v50  ;;  %4590 = vst.msk [vmem:[#allocation2 + $0xd4] sm:$0x4] %vm4449_vm11, %v4558_v37  ;;  %v11544_v42 = vld [vmem:[#allocation2 + $0x40] sm:$0xff]  ;;  %v11556_v59 = vld [vmem:[#allocation2 + $0x50] sm:$0xff] }
 0x5d9   :  { %4603 = vst.msk [vmem:[#allocation2 + $0x83] sm:$0x10] %vm4466_vm12, %v4555_v6  ;;  %4604 = vst.msk [vmem:[#allocation2 + $0xb3] sm:$0x10] %vm4466_vm12, %v4556_v44  ;;  %v6793_v11 = vpack.i.bf16 %v11296_v34, %v11544_v42  ;;  %v6808_v34 = vpack.i.bf16 %v4710_v16, %v11556_v59  ;;  %v11565_v1 = vld [vmem:[#allocation2 + $0x60] sm:$0xff]  ;;  %v11584_v55 = vld [vmem:[#allocation2 + $0x70] sm:$0xff] }
 0x5da   :  { %4605 = vst.msk [vmem:[#allocation2 + $0xc3] sm:$0x10] %vm4466_vm12, %v4557_v50  ;;  %4606 = vst.msk [vmem:[#allocation2 + $0xd3] sm:$0x10] %vm4466_vm12, %v4558_v37  ;;  %v11549_v43 = vld [vmem:[#allocation2 + $0x41] sm:$0xff]  ;;  %v11558_v7 = vld [vmem:[#allocation2 + $0x51] sm:$0xff] }
 0x5db   :  { %4619 = vst.msk [vmem:[#allocation2 + $0x82] sm:$0x40] %vm4483_vm13, %v4555_v6  ;;  %4620 = vst.msk [vmem:[#allocation2 + $0xb2] sm:$0x40] %vm4483_vm13, %v4556_v44  ;;  %v4711_v22 = vld [vmem:[#allocation2 + $0x42] sm:$0xff]  ;;  %6794 = vrot.lane.b32.xlu1 %v6793_v11, %s7044_s18  ;;  %v6798_v33 = vpack.i.bf16 %v11534_v45, %v11549_v43  ;;  %v6813_v27 = vpack.i.bf16 %v11544_v42, %v11558_v7  ;;  %v4712_v4 = vld [vmem:[#allocation2 + $0x52] sm:$0xff] }
 0x5dc   :  { %4621 = vst.msk [vmem:[#allocation2 + $0xc2] sm:$0x40] %vm4483_vm13, %v4557_v50  ;;  %4622 = vst.msk [vmem:[#allocation2 + $0xd2] sm:$0x40] %vm4483_vm13, %v4558_v37  ;;  %v6803_v47 = vpack.i.bf16 %v11536_v20, %v4711_v22  ;;  %v6818_v24 = vpack.i.bf16 %v11549_v43, %v4712_v4  ;;  %v6823_v8 = vpack.i.bf16 %v4711_v22, %v11565_v1  ;;  %v11571_v15 = vld [vmem:[#allocation2 + $0x61] sm:$0xff]  ;;  %v11586_v5 = vld [vmem:[#allocation2 + $0x71] sm:$0xff] }
 0x5dd   :  { %4575 = vst.msk [vmem:[#allocation2 + $0xe5] sm:$0x1] %vm4336_vm9, %v4559_v58  ;;  %4576 = vst.msk [vmem:[#allocation2 + $0xf5] sm:$0x1] %vm4336_vm9, %v4560_v30  ;;  %6799 = vrot.lane.b32.xlu0 %v6798_v33, %s7046_s6  ;;  %v4713_v19 = vld [vmem:[#allocation2 + $0x62] sm:$0xff]  ;;  %v6828_v63 = vpack.i.bf16 %v11556_v59, %v11571_v15  ;;  %v6838_v36 = vpack.i.bf16 %v4712_v4, %v11584_v55  ;;  %v6843_v25 = vpack.i.bf16 %v11565_v1, %v11586_v5  ;;  %v11593_v60 = vld [vmem:[#allocation2 + $0x72] sm:$0xff] }
 0x5de   :  { %4577 = vst.msk [vmem:[#allocation2 + $0x105] sm:$0x1] %vm4336_vm9, %v4561_v17  ;;  %4578 = vst.msk [vmem:[#allocation2 + $0x115] sm:$0x1] %vm4336_vm9, %v4562_v48  ;;  %v6833_v41 = vpack.i.bf16 %v11558_v7, %v4713_v19  ;;  %v6848_v32 = vpack.i.bf16 %v11571_v15, %v11593_v60  ;;  %v6868_v40 = vpack.i.bf16 %v11593_v60, %v4732_v3 }
 0x5df   :  { %4591 = vst.msk [vmem:[#allocation2 + $0xe4] sm:$0x4] %vm4449_vm11, %v4559_v58  ;;  %4592 = vst.msk [vmem:[#allocation2 + $0xf4] sm:$0x4] %vm4449_vm11, %v4560_v30  ;;  %6804 = vrot.lane.b32.xlu1 %v6803_v47, %s7040_s22 }
 0x5e0   :  { %4593 = vst.msk [vmem:[#allocation2 + $0x104] sm:$0x4] %vm4449_vm11, %v4561_v17  ;;  %4594 = vst.msk [vmem:[#allocation2 + $0x114] sm:$0x4] %vm4449_vm11, %v4562_v48  ;;  %v4731_v18 = vld [vmem:[#allocation2 + $0x80] sm:$0xff]  ;;  %v11617_v38 = vld [vmem:[#allocation2 + $0xb0] sm:$0xff] }
 0x5e1   :  { %4607 = vst.msk [vmem:[#allocation2 + $0xe3] sm:$0x10] %vm4466_vm12, %v4559_v58  ;;  %4608 = vst.msk [vmem:[#allocation2 + $0xf3] sm:$0x10] %vm4466_vm12, %v4560_v30  ;;  %6809 = vrot.lane.b32.xlu0 %v6808_v34, %s7044_s18  ;;  %v6853_v26 = vpack.i.bf16 %v4713_v19, %v4731_v18  ;;  %v6873_v31 = vpack.i.bf16 %v4731_v18, %v4748_v51  ;;  %v11612_v23 = vld [vmem:[#allocation2 + $0xc0] sm:$0xff]  ;;  %v11631_v37 = vld [vmem:[#allocation2 + $0xd0] sm:$0xff] }
 0x5e2   :  { %4609 = vst.msk [vmem:[#allocation2 + $0x103] sm:$0x10] %vm4466_vm12, %v4561_v17  ;;  %4610 = vst.msk [vmem:[#allocation2 + $0x113] sm:$0x10] %vm4466_vm12, %v4562_v48  ;;  %v11599_v35 = vld [vmem:[#allocation2 + $0x81] sm:$0xff]  ;;  %v4716_v10 = vld [vmem:[#allocation2 + $0xb2] sm:$0xff]  ;;  %v6883_v12 = vpack.i.bf16 %v4668_v39, %v11612_v23 }
 0x5e3   :  { %4623 = vst.msk [vmem:[#allocation2 + $0xe2] sm:$0x40] %vm4483_vm13, %v4559_v58  ;;  %4624 = vst.msk [vmem:[#allocation2 + $0xf2] sm:$0x40] %vm4483_vm13, %v4560_v30  ;;  %6814 = vrot.lane.b32.xlu1 %v6813_v27, %s7046_s6  ;;  %v11601_v28 = vld [vmem:[#allocation2 + $0x82] sm:$0xff]  ;;  %v6858_v14 = vpack.i.bf16 %v11584_v55, %v11599_v35  ;;  %v6878_v56 = vpack.i.bf16 %v4652_v61, %v4716_v10  ;;  %v11621_v44 = vld [vmem:[#allocation2 + $0xb1] sm:$0xff]  ;;  %v6898_v58 = vpack.i.bf16 %v4716_v10, %v11631_v37 }
 0x5e4   :  { %4625 = vst.msk [vmem:[#allocation2 + $0x102] sm:$0x40] %vm4483_vm13, %v4561_v17  ;;  %4626 = vst.msk [vmem:[#allocation2 + $0x112] sm:$0x40] %vm4483_vm13, %v4562_v48  ;;  %v6863_v29 = vpack.i.bf16 %v11586_v5, %v11601_v28  ;;  %v11619_v6 = vld [vmem:[#allocation2 + $0xc1] sm:$0xff]  ;;  %v11633_v13 = vld [vmem:[#allocation2 + $0xd1] sm:$0xff] }
 0x5e5   :  { %4579 = vst.msk [vmem:[#allocation2 + $0x125] sm:$0x1] %vm4336_vm9, %v4563_v2  ;;  %6819 = vrot.lane.b32.xlu0 %v6818_v24, %s7040_s22  ;;  %v11623_v57 = vld [vmem:[#allocation2 + $0xc2] sm:$0xff]  ;;  %v6888_v50 = vpack.i.bf16 %v11617_v38, %v11619_v6  ;;  %v6903_v30 = vpack.i.bf16 %v11612_v23, %v11633_v13  ;;  %v11640_v17 = vld [vmem:[#allocation2 + $0xd2] sm:$0xff] }
 0x5e6   :  { %4595 = vst.msk [vmem:[#allocation2 + $0x124] sm:$0x4] %vm4449_vm11, %v4563_v2  ;;  %v6893_v46 = vpack.i.bf16 %v11621_v44, %v11623_v57  ;;  %v4740_v10 = vld [vmem:[#allocation2 + $0x130] sm:$0xff] }
 0x5e7   :  { %4611 = vst.msk [vmem:[#allocation2 + $0x123] sm:$0x10] %vm4466_vm12, %v4563_v2  ;;  %6824 = vrot.lane.b32.xlu1 %v6823_v8, %s7044_s18  ;;  %v4756_v39 = vld [vmem:[#allocation2 + $0x131] sm:$0xff] }
 0x5e8   :  { %4627 = vst.msk [vmem:[#allocation2 + $0x122] sm:$0x40] %vm4483_vm13, %v4563_v2  ;;  %v11642_v48 = vld [vmem:[#allocation2 + $0xe0] sm:$0xff]  ;;  %v6908_v2 = vpack.i.bf16 %v11619_v6, %v11640_v17  ;;  %v11660_v11 = vld [vmem:[#allocation2 + $0xf0] sm:$0xff] }
 0x5e9   :  { %6829 = vrot.lane.b32.xlu0 %v6828_v63, %s7046_s6  ;;  %v6913_v62 = vpack.i.bf16 %v11623_v57, %v11642_v48  ;;  %v6928_v33 = vpack.i.bf16 %v11640_v17, %v11660_v11  ;;  %v11672_v27 = vld [vmem:[#allocation2 + $0x100] sm:$0xff] }
 0x5ea   :  { %v11650_v0 = vld [vmem:[#allocation2 + $0xe1] sm:$0xff]  ;;  %v11662_v22 = vld [vmem:[#allocation2 + $0xf1] sm:$0xff] }
 0x5eb   :  { %6834 = vrot.lane.b32.xlu1 %v6833_v41, %s7040_s22  ;;  %v11652_v21 = vld [vmem:[#allocation2 + $0xe2] sm:$0xff]  ;;  %v6918_v16 = vpack.i.bf16 %v11631_v37, %v11650_v0  ;;  %v6933_v47 = vpack.i.bf16 %v11642_v48, %v11662_v22  ;;  %v11670_v34 = vld [vmem:[#allocation2 + $0xf2] sm:$0xff] }
 0x5ec   :  { %v6923_v54 = vpack.i.bf16 %v11633_v13, %v11652_v21  ;;  %v6938_v4 = vpack.i.bf16 %v11650_v0, %v11670_v34  ;;  %v6943_v24 = vpack.i.bf16 %v11652_v21, %v11672_v27  ;;  %v11680_v8 = vld [vmem:[#allocation2 + $0x101] sm:$0xff] }
 0x5ed   :  { %6839 = vrot.lane.b32.xlu0 %v6838_v36, %s7044_s18  ;;  %v11682_v19 = vld [vmem:[#allocation2 + $0x102] sm:$0xff]  ;;  %v6948_v63 = vpack.i.bf16 %v11660_v11, %v11680_v8  ;;  %v11690_v36 = vld [vmem:[#allocation2 + $0x110] sm:$0xff] }
 0x5ee   :  { %v6953_v41 = vpack.i.bf16 %v11662_v22, %v11682_v19  ;;  %v6958_v18 = vpack.i.bf16 %v11670_v34, %v11690_v36 }
 0x5ef   :  { %6844 = vrot.lane.b32.xlu1 %v6843_v25, %s7046_s6  ;;  %v11692_v25 = vld [vmem:[#allocation2 + $0x111] sm:$0xff]  ;;  %v11707_v51 = vld [vmem:[#allocation2 + $0x121] sm:$0xff] }
 0x5f1   :  { %6849 = vrot.lane.b32.xlu0 %v6848_v32, %s7040_s22  ;;  %v6963_v32 = vpack.i.bf16 %v11672_v27, %v11692_v25 }
 0x5f3   :  { %6854 = vrot.lane.b32.xlu1 %v6853_v26, %s7044_s18  ;;  %v11700_v26 = vld [vmem:[#allocation2 + $0x112] sm:$0xff] }
 0x5f5   :  { %6859 = vrot.lane.b32.xlu0 %v6858_v14, %s7046_s6  ;;  %v4739_v14 = vld [vmem:[#allocation2 + $0x120] sm:$0xff] }
 0x5f6   :  { %v6973_v3 = vpack.i.bf16 %v11682_v19, %v4739_v14 }
 0x5f7   :  { %6864 = vrot.lane.b32.xlu1 %v6863_v29, %s7040_s22  ;;  %v6968_v29 = vpack.i.bf16 %v11680_v8, %v11700_v26 }
 0x5f9   :  { %6869 = vrot.lane.b32.xlu0 %v6868_v40, %s7044_s18  ;;  %v11709_v40 = vld [vmem:[#allocation2 + $0x122] sm:$0xff] }
 0x5fa   :  { %v6983_v61 = vpack.i.bf16 %v11692_v25, %v11709_v40 }
 0x5fb   :  { %6874 = vrot.lane.b32.xlu1 %v6873_v31, %s7046_s6  ;;  %v6978_v31 = vpack.i.bf16 %v11690_v36, %v11707_v51 }
 0x5fd   :  { %6879 = vrot.lane.b32.xlu0 %v6878_v56, %s7040_s22  ;;  %v6988_v56 = vpack.i.bf16 %v11700_v26, %v4740_v10 }
 0x5ff   :  { %6884 = vrot.lane.b32.xlu1 %v6883_v12, %s7044_s18  ;;  %v6993_v12 = vpack.i.bf16 %v4739_v14, %v4756_v39  ;;  %v5288_v14 = vld [vmem:[%s12207_s2 + $0x110] sm:$0xff] }
 0x601   :  { %6889 = vrot.lane.b32.xlu0 %v6888_v50, %s7046_s6  ;;  %v6765_v50 = vpop.permute.xlu1 %6764 }
 0x603   :  { %6894 = vrot.lane.b32.xlu1 %v6893_v46, %s7040_s22 }
 0x605   :  { %6899 = vrot.lane.b32.xlu0 %v6898_v58, %s7044_s18  ;;  %v4628_v58 = vld [vmem:[#allocation2] sm:$0xff] }
 0x607   :  { %6904 = vrot.lane.b32.xlu1 %v6903_v30, %s7046_s6 }
 0x609   :  { %6909 = vrot.lane.b32.xlu0 %v6908_v2, %s7040_s22 }
 0x60b   :  { %6914 = vrot.lane.b32.xlu1 %v6913_v62, %s7044_s18  ;;  %v6767_v62 = vunpack.i.h.bf16 %v6765_v50 }
 0x60d   :  { %6919 = vrot.lane.b32.xlu0 %v6918_v16, %s7046_s6  ;;  %v6766_v16 = vunpack.i.l.bf16 %v6765_v50 }
 0x60f   :  { %6924 = vrot.lane.b32.xlu1 %v6923_v54, %s7040_s22 }
 0x611   :  { %6929 = vrot.lane.b32.xlu0 %v6928_v33, %s7044_s18 }
 0x613   :  { %6934 = vrot.lane.b32.xlu1 %v6933_v47, %s7046_s6  ;;  %v6760_v46 = vpop.permute.xlu0 %6759 }
 0x614   :  { %v6762_v30 = vunpack.i.h.bf16 %v6760_v46  ;;  %v6761_v2 = vunpack.i.l.bf16 %v6760_v46 }
 0x615   :  { %6939 = vrot.lane.b32.xlu0 %v6938_v4, %s7040_s22 }
 0x616   :  { %v5206_v54 = vsel %vm2842_vm3, %v11294_v52, %v6761_v2  ;;  %v5157_v33 = vsel %vm2842_vm3, %v4628_v58, %v6762_v30  ;;  %v5287_v52 = vld [vmem:[%s12207_s2 + $0x108] sm:$0xff] }
 0x617   :  { %6944 = vrot.lane.b32.xlu1 %v6943_v24, %s7044_s18  ;;  %v6770_v47 = vpop.permute.xlu0 %6769 }
 0x618   :  { %v6772_v4 = vunpack.i.h.bf16 %v6770_v47  ;;  %v6771_v24 = vunpack.i.l.bf16 %v6770_v47 }
 0x619   :  { %6949 = vrot.lane.b32.xlu0 %v6948_v63, %s7046_s6  ;;  %v5222_v63 = vsel %vm3102_vm7, %v5206_v54, %v6766_v16 }
 0x61b   :  { %6954 = vrot.lane.b32.xlu1 %v6953_v41, %s7040_s22  ;;  %v5173_v41 = vsel %vm3102_vm7, %v5157_v33, %v6767_v62 }
 0x61d   :  { %6959 = vrot.lane.b32.xlu0 %v6958_v18, %s7044_s18  ;;  %v5238_v18 = vsel %vm5189_vm14, %v5222_v63, %v6771_v24 }
 0x61e   :  { %5402 = vmatprep.mubr.f32.mxu1 %v5238_v18 }
 0x61f   :  { %6964 = vrot.lane.b32.xlu1 %v6963_v32, %s7046_s6  ;;  %v5190_v32 = vsel %vm5189_vm14, %v5173_v41, %v6772_v4 }
 0x620   :  { %5403 = vmatmul.mubr.f32.vlgmr.msra.gmra.mxu1 %v5190_v32 }
 0x621   :  { %6969 = vrot.lane.b32.xlu0 %v6968_v29, %s7040_s22  ;;  %6717 = vmatpush3.msra.mxu1 %v11576_v49  ;;  %v5286_v29 = vld [vmem:[%s12207_s2 + $0x100] sm:$0xff] }
 0x622   :  { %6718 = vmatprep.subr.mxu1 %v5288_v14 }
 0x623   :  { %6974 = vrot.lane.b32.xlu1 %v6973_v3, %s7044_s18  ;;  %6719 = vmatpush3.msra.mxu1 %v5288_v14  ;;  %v6775_v3 = vpop.permute.xlu1 %6774 }
 0x624   :  { %6720 = vmatprep.subr.mxu1 %v5287_v52 }
 0x625   :  { %6979 = vrot.lane.b32.xlu0 %v6978_v31, %s7046_s6  ;;  %6721 = vmatpush3.msra.mxu1 %v5287_v52  ;;  %v6777_v31 = vunpack.i.h.bf16 %v6775_v3 }
 0x626   :  { %6722 = vmatprep.subr.mxu1 %v5286_v29 }
 0x627   :  { %6984 = vrot.lane.b32.xlu1 %v6983_v61, %s7040_s22  ;;  %6723 = vmatpush3.msra.mxu1 %v5286_v29  ;;  %v6776_v61 = vunpack.i.l.bf16 %v6775_v3  ;;  %v5158_v58 = vsel %vm2842_vm3, %v11183_v53, %v6777_v31 }
 0x629   :  { %6989 = vrot.lane.b32.xlu0 %v6988_v56, %s7044_s18  ;;  %v5207_v46 = vsel %vm2842_vm3, %v11167_v9, %v6776_v61  ;;  %v4630_v9 = vld [vmem:[#allocation2 + $0x20] sm:$0xff] }
 0x62b   :  { %6994 = vrot.lane.b32.xlu1 %v6993_v12, %s7046_s6 }
 0x630   :  { %v6780_v10 = vpop.permute.xlu0 %6779 }
 0x631   :  { %v6785_v39 = vpop.permute.xlu1 %6784  ;;  %v6782_v49 = vunpack.i.h.bf16 %v6780_v10  ;;  %v6781_v56 = vunpack.i.l.bf16 %v6780_v10 }
 0x632   :  { %v6787_v12 = vunpack.i.h.bf16 %v6785_v39  ;;  %v6786_v50 = vunpack.i.l.bf16 %v6785_v39 }
 0x633   :  { %v5223_v30 = vsel %vm3102_vm7, %v5207_v46, %v6781_v56  ;;  %v5174_v2 = vsel %vm3102_vm7, %v5158_v58, %v6782_v49 }
 0x634   :  { %v6790_v62 = vpop.permute.xlu0 %6789  ;;  %v5239_v54 = vsel %vm5189_vm14, %v5223_v30, %v6786_v50  ;;  %v5191_v33 = vsel %vm5189_vm14, %v5174_v2, %v6787_v12 }
 0x635   :  { %v6792_v47 = vunpack.i.h.bf16 %v6790_v62  ;;  %v6791_v4 = vunpack.i.l.bf16 %v6790_v62  ;;  %5407 = vmatprep.mubr.f32.mxu1 %v5239_v54 }
 0x636   :  { %5408 = vmatmul.mubr.f32.gmra.mxu1 %v5191_v33 }
 0x637   :  { %v5208_v53 = vsel %vm2842_vm3, %v11536_v20, %v6791_v4  ;;  %v5159_v41 = vsel %vm2842_vm3, %v4630_v9, %v6792_v47 }
 0x64d   :  { %v6795_v16 = vpop.permute.xlu1 %6794 }
 0x64e   :  { %v6797_v24 = vunpack.i.h.bf16 %v6795_v16  ;;  %v6796_v63 = vunpack.i.l.bf16 %v6795_v16 }
 0x64f   :  { %v6800_v18 = vpop.permute.xlu0 %6799 }
 0x650   :  { %v6802_v14 = vunpack.i.h.bf16 %v6800_v18  ;;  %v6801_v52 = vunpack.i.l.bf16 %v6800_v18  ;;  %v5224_v31 = vsel %vm3102_vm7, %v5208_v53, %v6796_v63  ;;  %v5175_v61 = vsel %vm3102_vm7, %v5159_v41, %v6797_v24 }
 0x651   :  { %v6805_v32 = vpop.permute.xlu1 %6804 }
 0x652   :  { %v6807_v29 = vunpack.i.h.bf16 %v6805_v32  ;;  %v6806_v3 = vunpack.i.l.bf16 %v6805_v32  ;;  %v5240_v10 = vsel %vm5189_vm14, %v5224_v31, %v6801_v52  ;;  %v5192_v39 = vsel %vm5189_vm14, %v5175_v61, %v6802_v14 }
 0x653   :  { %v6810_v49 = vpop.permute.xlu0 %6809  ;;  %5412 = vmatprep.mubr.f32.mxu1 %v5240_v10 }
 0x654   :  { %v6812_v20 = vunpack.i.h.bf16 %v6810_v49  ;;  %v6811_v12 = vunpack.i.l.bf16 %v6810_v49  ;;  %5413 = vmatmul.mubr.f32.gmra.mxu1 %v5192_v39  ;;  %v5209_v58 = vsel %vm2842_vm3, %v11549_v43, %v6806_v3  ;;  %v5160_v30 = vsel %vm2842_vm3, %v11534_v45, %v6807_v29 }
 0x655   :  { %v6815_v56 = vpop.permute.xlu1 %6814 }
 0x656   :  { %v6817_v50 = vunpack.i.h.bf16 %v6815_v56  ;;  %v6816_v46 = vunpack.i.l.bf16 %v6815_v56  ;;  %v5225_v2 = vsel %vm3102_vm7, %v5209_v58, %v6811_v12  ;;  %v5176_v62 = vsel %vm3102_vm7, %v5160_v30, %v6812_v20 }
 0x657   :  { %v6820_v16 = vpop.permute.xlu0 %6819 }
 0x658   :  { %v5241_v33 = vsel %vm5189_vm14, %v5225_v2, %v6816_v46  ;;  %v5193_v47 = vsel %vm5189_vm14, %v5176_v62, %v6817_v50  ;;  %v6822_v4 = vunpack.i.h.bf16 %v6820_v16  ;;  %v6821_v24 = vunpack.i.l.bf16 %v6820_v16 }
 0x659   :  { %v6825_v54 = vpop.permute.xlu1 %6824  ;;  %5417 = vmatprep.mubr.f32.mxu1 %v5241_v33 }
 0x65a   :  { %v6827_v63 = vunpack.i.h.bf16 %v6825_v54  ;;  %v6826_v9 = vunpack.i.l.bf16 %v6825_v54  ;;  %5418 = vmatmul.mubr.f32.gmra.mxu1 %v5193_v47  ;;  %v5210_v43 = vsel %vm2842_vm3, %v11558_v7, %v6821_v24  ;;  %v5161_v45 = vsel %vm2842_vm3, %v11544_v42, %v6822_v4 }
 0x65b   :  { %v6830_v53 = vpop.permute.xlu0 %6829 }
 0x65c   :  { %v6832_v18 = vunpack.i.h.bf16 %v6830_v53  ;;  %v6831_v32 = vunpack.i.l.bf16 %v6830_v53  ;;  %v5226_v29 = vsel %vm3102_vm7, %v5210_v43, %v6826_v9  ;;  %v5177_v3 = vsel %vm3102_vm7, %v5161_v45, %v6827_v63 }
 0x65d   :  { %v6835_v41 = vpop.permute.xlu1 %6834 }
 0x65e   :  { %v6837_v14 = vunpack.i.h.bf16 %v6835_v41  ;;  %v6836_v52 = vunpack.i.l.bf16 %v6835_v41  ;;  %v5242_v31 = vsel %vm5189_vm14, %v5226_v29, %v6831_v32  ;;  %v5194_v61 = vsel %vm5189_vm14, %v5177_v3, %v6832_v18 }
 0x65f   :  { %v6840_v10 = vpop.permute.xlu0 %6839  ;;  %5422 = vmatprep.mubr.f32.mxu1 %v5242_v31 }
 0x660   :  { %v6842_v7 = vunpack.i.h.bf16 %v6840_v10  ;;  %v6841_v49 = vunpack.i.l.bf16 %v6840_v10  ;;  %5423 = vmatmul.mubr.f32.gmra.mxu1 %v5194_v61  ;;  %v5211_v20 = vsel %vm2842_vm3, %v11571_v15, %v6836_v52  ;;  %v5162_v12 = vsel %vm2842_vm3, %v11556_v59, %v6837_v14 }
 0x661   :  { %v6845_v39 = vpop.permute.xlu1 %6844 }
 0x662   :  { %v6847_v42 = vunpack.i.h.bf16 %v6845_v39  ;;  %v6846_v56 = vunpack.i.l.bf16 %v6845_v39  ;;  %v5227_v50 = vsel %vm3102_vm7, %v5211_v20, %v6841_v49  ;;  %v5178_v46 = vsel %vm3102_vm7, %v5162_v12, %v6842_v7  ;;  %v4636_v20 = vld [vmem:[#allocation2 + $0xa0] sm:$0xff] }
 0x663   :  { %v6850_v58 = vpop.permute.xlu0 %6849 }
 0x664   :  { %v5243_v2 = vsel %vm5189_vm14, %v5227_v50, %v6846_v56  ;;  %v5195_v62 = vsel %vm5189_vm14, %v5178_v46, %v6847_v42  ;;  %v6852_v16 = vunpack.i.h.bf16 %v6850_v58  ;;  %v6851_v54 = vunpack.i.l.bf16 %v6850_v58 }
 0x665   :  { %v6855_v30 = vpop.permute.xlu1 %6854  ;;  %5427 = vmatprep.mubr.f32.mxu1 %v5243_v2 }
 0x666   :  { %v6857_v33 = vunpack.i.h.bf16 %v6855_v30  ;;  %v6856_v47 = vunpack.i.l.bf16 %v6855_v30  ;;  %5428 = vmatmul.mubr.f32.gmra.mxu1 %v5195_v62  ;;  %v5212_v15 = vsel %vm2842_vm3, %v11586_v5, %v6851_v54  ;;  %v5163_v59 = vsel %vm2842_vm3, %v11565_v1, %v6852_v16 }
 0x667   :  { %v6860_v4 = vpop.permute.xlu0 %6859 }
 0x668   :  { %v6862_v63 = vunpack.i.h.bf16 %v6860_v4  ;;  %v6861_v9 = vunpack.i.l.bf16 %v6860_v4  ;;  %v5228_v53 = vsel %vm3102_vm7, %v5212_v15, %v6856_v47  ;;  %v5179_v41 = vsel %vm3102_vm7, %v5163_v59, %v6857_v33 }
 0x669   :  { %v6865_v24 = vpop.permute.xlu1 %6864 }
 0x66a   :  { %v6867_v43 = vunpack.i.h.bf16 %v6865_v24  ;;  %v6866_v45 = vunpack.i.l.bf16 %v6865_v24  ;;  %v5244_v18 = vsel %vm5189_vm14, %v5228_v53, %v6861_v9  ;;  %v5196_v32 = vsel %vm5189_vm14, %v5179_v41, %v6862_v63 }
 0x66b   :  { %v6870_v14 = vpop.permute.xlu0 %6869  ;;  %5432 = vmatprep.mubr.f32.mxu1 %v5244_v18 }
 0x66c   :  { %v6872_v5 = vunpack.i.h.bf16 %v6870_v14  ;;  %v6871_v29 = vunpack.i.l.bf16 %v6870_v14  ;;  %5433 = vmatmul.mubr.f32.gmra.mxu1 %v5196_v32  ;;  %v5213_v31 = vsel %vm2842_vm3, %v11599_v35, %v6866_v45  ;;  %v5164_v61 = vsel %vm2842_vm3, %v11584_v55, %v6867_v43 }
 0x66d   :  { %v6875_v52 = vpop.permute.xlu1 %6874 }
 0x66e   :  { %v6877_v1 = vunpack.i.h.bf16 %v6875_v52  ;;  %v6876_v3 = vunpack.i.l.bf16 %v6875_v52  ;;  %v5229_v10 = vsel %vm3102_vm7, %v5213_v31, %v6871_v29  ;;  %v5180_v39 = vsel %vm3102_vm7, %v5164_v61, %v6872_v5 }
 0x66f   :  { %v6880_v7 = vpop.permute.xlu0 %6879 }
 0x670   :  { %v5245_v42 = vsel %vm5189_vm14, %v5229_v10, %v6876_v3  ;;  %v5197_v56 = vsel %vm5189_vm14, %v5180_v39, %v6877_v1  ;;  %v6882_v12 = vunpack.i.h.bf16 %v6880_v7  ;;  %v6881_v50 = vunpack.i.l.bf16 %v6880_v7 }
 0x671   :  { %v6885_v49 = vpop.permute.xlu1 %6884  ;;  %5437 = vmatprep.mubr.f32.mxu1 %v5245_v42 }
 0x672   :  { %v6887_v46 = vunpack.i.h.bf16 %v6885_v49  ;;  %v6886_v58 = vunpack.i.l.bf16 %v6885_v49  ;;  %5438 = vmatmul.mubr.f32.gmra.mxu1 %v5197_v56  ;;  %v5214_v55 = vsel %vm2842_vm3, %v11621_v44, %v6881_v50  ;;  %v5165_v35 = vsel %vm2842_vm3, %v4636_v20, %v6882_v12 }
 0x673   :  { %v6890_v30 = vpop.permute.xlu0 %6889 }
 0x674   :  { %v6892_v62 = vunpack.i.h.bf16 %v6890_v30  ;;  %v6891_v16 = vunpack.i.l.bf16 %v6890_v30  ;;  %v5230_v47 = vsel %vm3102_vm7, %v5214_v55, %v6886_v58  ;;  %v5181_v15 = vsel %vm3102_vm7, %v5165_v35, %v6887_v46 }
 0x675   :  { %v6895_v2 = vpop.permute.xlu1 %6894 }
 0x676   :  { %v6897_v54 = vunpack.i.h.bf16 %v6895_v2  ;;  %v6896_v33 = vunpack.i.l.bf16 %v6895_v2  ;;  %v5246_v59 = vsel %vm5189_vm14, %v5230_v47, %v6891_v16  ;;  %v5198_v4 = vsel %vm5189_vm14, %v5181_v15, %v6892_v62 }
 0x677   :  { %v6900_v24 = vpop.permute.xlu0 %6899  ;;  %5442 = vmatprep.mubr.f32.mxu1 %v5246_v59 }
 0x678   :  { %v6902_v44 = vunpack.i.h.bf16 %v6900_v24  ;;  %v6901_v9 = vunpack.i.l.bf16 %v6900_v24  ;;  %5443 = vmatmul.mubr.f32.gmra.mxu1 %v5198_v4  ;;  %v5215_v53 = vsel %vm2842_vm3, %v11619_v6, %v6896_v33  ;;  %v5166_v41 = vsel %vm2842_vm3, %v11617_v38, %v6897_v54 }
 0x679   :  { %v6905_v63 = vpop.permute.xlu1 %6904 }
 0x67a   :  { %v6907_v43 = vunpack.i.h.bf16 %v6905_v63  ;;  %v6906_v45 = vunpack.i.l.bf16 %v6905_v63  ;;  %v5231_v18 = vsel %vm3102_vm7, %v5215_v53, %v6901_v9  ;;  %v5182_v32 = vsel %vm3102_vm7, %v5166_v41, %v6902_v44 }
 0x67b   :  { %v6910_v14 = vpop.permute.xlu0 %6909 }
 0x67c   :  { %v5247_v5 = vsel %vm5189_vm14, %v5231_v18, %v6906_v45  ;;  %v5199_v29 = vsel %vm5189_vm14, %v5182_v32, %v6907_v43  ;;  %v6912_v1 = vunpack.i.h.bf16 %v6910_v14  ;;  %v6911_v3 = vunpack.i.l.bf16 %v6910_v14 }
 0x67d   :  { %v6915_v52 = vpop.permute.xlu1 %6914  ;;  %5447 = vmatprep.mubr.f32.mxu1 %v5247_v5 }
 0x67e   :  { %v6917_v31 = vunpack.i.h.bf16 %v6915_v52  ;;  %v6916_v61 = vunpack.i.l.bf16 %v6915_v52  ;;  %5448 = vmatmul.mubr.f32.gmra.mxu1 %v5199_v29  ;;  %v5216_v6 = vsel %vm2842_vm3, %v11633_v13, %v6911_v3  ;;  %v5167_v38 = vsel %vm2842_vm3, %v11612_v23, %v6912_v1 }
 0x67f   :  { %v6920_v10 = vpop.permute.xlu0 %6919 }
 0x680   :  { %v6922_v7 = vunpack.i.h.bf16 %v6920_v10  ;;  %v6921_v49 = vunpack.i.l.bf16 %v6920_v10  ;;  %v5232_v20 = vsel %vm3102_vm7, %v5216_v6, %v6916_v61  ;;  %v5183_v12 = vsel %vm3102_vm7, %v5167_v38, %v6917_v31 }
 0x681   :  { %v6925_v39 = vpop.permute.xlu1 %6924 }
 0x682   :  { %v6927_v42 = vunpack.i.h.bf16 %v6925_v39  ;;  %v6926_v56 = vunpack.i.l.bf16 %v6925_v39  ;;  %v5248_v50 = vsel %vm5189_vm14, %v5232_v20, %v6921_v49  ;;  %v5200_v46 = vsel %vm5189_vm14, %v5183_v12, %v6922_v7 }
 0x683   :  { %v6930_v58 = vpop.permute.xlu0 %6929  ;;  %5452 = vmatprep.mubr.f32.mxu1 %v5248_v50 }
 0x684   :  { %v6932_v13 = vunpack.i.h.bf16 %v6930_v58  ;;  %v6931_v35 = vunpack.i.l.bf16 %v6930_v58  ;;  %5453 = vmatmul.mubr.f32.gmra.mxu1 %v5200_v46  ;;  %v5217_v2 = vsel %vm2842_vm3, %v11650_v0, %v6926_v56  ;;  %v5168_v62 = vsel %vm2842_vm3, %v11631_v37, %v6927_v42 }
 0x685   :  { %v6935_v55 = vpop.permute.xlu1 %6934 }
 0x686   :  { %v6937_v23 = vunpack.i.h.bf16 %v6935_v55  ;;  %v6936_v30 = vunpack.i.l.bf16 %v6935_v55  ;;  %v5233_v16 = vsel %vm3102_vm7, %v5217_v2, %v6931_v35  ;;  %v5184_v54 = vsel %vm3102_vm7, %v5168_v62, %v6932_v13 }
 0x687   :  { %v6940_v33 = vpop.permute.xlu0 %6939 }
 0x688   :  { %v5249_v15 = vsel %vm5189_vm14, %v5233_v16, %v6936_v30  ;;  %v5201_v59 = vsel %vm5189_vm14, %v5184_v54, %v6937_v23  ;;  %v6942_v4 = vunpack.i.h.bf16 %v6940_v33  ;;  %v6941_v24 = vunpack.i.l.bf16 %v6940_v33 }
 0x689   :  { %v6945_v47 = vpop.permute.xlu1 %6944  ;;  %5457 = vmatprep.mubr.f32.mxu1 %v5249_v15 }
 0x68a   :  { %v6947_v63 = vunpack.i.h.bf16 %v6945_v47  ;;  %v6946_v44 = vunpack.i.l.bf16 %v6945_v47  ;;  %5458 = vmatmul.mubr.f32.gmra.mxu1 %v5201_v59  ;;  %v5218_v0 = vsel %vm2842_vm3, %v11662_v22, %v6941_v24  ;;  %v5169_v37 = vsel %vm2842_vm3, %v11642_v48, %v6942_v4 }
 0x68b   :  { %v6950_v9 = vpop.permute.xlu0 %6949 }
 0x68c   :  { %v6952_v45 = vunpack.i.h.bf16 %v6950_v9  ;;  %v6951_v53 = vunpack.i.l.bf16 %v6950_v9  ;;  %v5234_v32 = vsel %vm3102_vm7, %v5218_v0, %v6946_v44  ;;  %v5185_v14 = vsel %vm3102_vm7, %v5169_v37, %v6947_v63  ;;  %v4757_v37 = vld [vmem:[#allocation2 + $0x22] sm:$0xff]  ;;  %v4758_v9 = vld [vmem:[#allocation2 + $0x32] sm:$0xff] }
 0x68d   :  { %v6955_v43 = vpop.permute.xlu1 %6954 }
 0x68e   :  { %v6957_v41 = vunpack.i.h.bf16 %v6955_v43  ;;  %v6956_v18 = vunpack.i.l.bf16 %v6955_v43  ;;  %v5250_v52 = vsel %vm5189_vm14, %v5234_v32, %v6951_v53  ;;  %v5202_v5 = vsel %vm5189_vm14, %v5185_v14, %v6952_v45  ;;  %v4761_v43 = vld [vmem:[#allocation2 + $0x62] sm:$0xff]  ;;  %v4764_v45 = vld [vmem:[#allocation2 + $0x92] sm:$0xff] }
 0x68f   :  { %v6960_v29 = vpop.permute.xlu0 %6959  ;;  %5462 = vmatprep.mubr.f32.mxu1 %v5250_v52 }
 0x690   :  { %v6962_v22 = vunpack.i.h.bf16 %v6960_v29  ;;  %v6961_v3 = vunpack.i.l.bf16 %v6960_v29  ;;  %5463 = vmatmul.mubr.f32.gmra.mxu1 %v5202_v5  ;;  %v5219_v61 = vsel %vm2842_vm3, %v11680_v8, %v6956_v18  ;;  %v5170_v6 = vsel %vm2842_vm3, %v11660_v11, %v6957_v41 }
 0x691   :  { %v6965_v1 = vpop.permute.xlu1 %6964 }
 0x692   :  { %v6967_v48 = vunpack.i.h.bf16 %v6965_v1  ;;  %v6966_v31 = vunpack.i.l.bf16 %v6965_v1  ;;  %v5235_v38 = vsel %vm3102_vm7, %v5219_v61, %v6961_v3  ;;  %v5186_v10 = vsel %vm3102_vm7, %v5170_v6, %v6962_v22 }
 0x693   :  { %v6970_v39 = vpop.permute.xlu0 %6969 }
 0x694   :  { %v5251_v49 = vsel %vm5189_vm14, %v5235_v38, %v6966_v31  ;;  %v5203_v42 = vsel %vm5189_vm14, %v5186_v10, %v6967_v48  ;;  %v6972_v56 = vunpack.i.h.bf16 %v6970_v39  ;;  %v6971_v20 = vunpack.i.l.bf16 %v6970_v39 }
 0x695   :  { %v6975_v7 = vpop.permute.xlu1 %6974  ;;  %5467 = vmatprep.mubr.f32.mxu1 %v5251_v49 }
 0x696   :  { %v6977_v12 = vunpack.i.h.bf16 %v6975_v7  ;;  %v6976_v50 = vunpack.i.l.bf16 %v6975_v7  ;;  %5468 = vmatmul.mubr.f32.gmra.mxu1 %v5203_v42  ;;  %v5220_v8 = vsel %vm2842_vm3, %v11692_v25, %v6971_v20  ;;  %v5171_v11 = vsel %vm2842_vm3, %v11672_v27, %v6972_v56 }
 0x697   :  { %v6980_v46 = vpop.permute.xlu0 %6979 }
 0x698   :  { %v6982_v55 = vunpack.i.h.bf16 %v6980_v46  ;;  %v6981_v13 = vunpack.i.l.bf16 %v6980_v46  ;;  %v5236_v30 = vsel %vm3102_vm7, %v5220_v8, %v6976_v50  ;;  %v5187_v2 = vsel %vm3102_vm7, %v5171_v11, %v6977_v12 }
 0x699   :  { %v6985_v58 = vpop.permute.xlu1 %6984 }
 0x69a   :  { %v6987_v35 = vunpack.i.h.bf16 %v6985_v58  ;;  %v6986_v23 = vunpack.i.l.bf16 %v6985_v58  ;;  %v5252_v62 = vsel %vm5189_vm14, %v5236_v30, %v6981_v13  ;;  %v5204_v16 = vsel %vm5189_vm14, %v5187_v2, %v6982_v55 }
 0x69b   :  { %v6990_v54 = vpop.permute.xlu0 %6989  ;;  %5472 = vmatprep.mubr.f32.mxu1 %v5252_v62 }
 0x69c   :  { %v6992_v25 = vunpack.i.h.bf16 %v6990_v54  ;;  %v6991_v47 = vunpack.i.l.bf16 %v6990_v54  ;;  %5473 = vmatmul.mubr.f32.gmra.mxu1 %v5204_v16  ;;  %v5221_v59 = vsel %vm2842_vm3, %v11707_v51, %v6986_v23  ;;  %v5172_v4 = vsel %vm2842_vm3, %v11690_v36, %v6987_v35  ;;  %v4759_v51 = vld [vmem:[#allocation2 + $0x42] sm:$0xff]  ;;  %v4760_v36 = vld [vmem:[#allocation2 + $0x52] sm:$0xff] }
 0x69d   :  { %v6995_v33 = vpop.permute.xlu1 %6994 }
 0x69e   :  { %v6997_v27 = vunpack.i.h.bf16 %v6995_v33  ;;  %v6996_v15 = vunpack.i.l.bf16 %v6995_v33  ;;  %v5237_v24 = vsel %vm3102_vm7, %v5221_v59, %v6991_v47  ;;  %v5188_v63 = vsel %vm3102_vm7, %v5172_v4, %v6992_v25 }
 0x6a0   :  { %v5253_v44 = vsel %vm5189_vm14, %v5237_v24, %v6996_v15  ;;  %v5205_v0 = vsel %vm5189_vm14, %v5188_v63, %v6997_v27 }
 0x6a1   :  { %5477 = vmatprep.mubr.f32.mxu1 %v5253_v44 }
 0x6a2   :  { %5478 = vmatmul.mubr.f32.gmra.mxu1 %v5205_v0 }
 0x6a3   :  { %6724 = vmatprep.mubr.msk.f32.mxu1 %vm2842_vm3, %v4757_v37 }
 0x6a6   :  { %6725 = vmatmul.mubr.msk.f32.vlgmr.msra.gmra.mxu1 %vm2842_vm3, %v4758_v9 }
 0x6a7   :  { %6727 = vmatprep.mubr.msk.f32.mxu1 %vm2842_vm3, %v4759_v51 }
 0x6aa   :  { %6728 = vmatmul.mubr.msk.f32.gmra.mxu1 %vm2842_vm3, %v4760_v36 }
 0x6ab   :  { %6730 = vmatprep.mubr.msk.f32.mxu1 %vm2842_vm3, %v4761_v43 }
 0x6ae   :  { %6731 = vmatmul.mubr.msk.f32.gmra.mxu1 %vm2842_vm3, %v11593_v60  ;;  %v4772_v60 = vld [vmem:[#allocation2 + $0x132] sm:$0xff] }
 0x6af   :  { %6733 = vmatprep.mubr.msk.f32.mxu1 %vm2842_vm3, %v11601_v28 }
 0x6b2   :  { %6734 = vmatmul.mubr.msk.f32.gmra.mxu1 %vm2842_vm3, %v4764_v45 }
 0x6b3   :  { %6736 = vmatprep.mubr.msk.f32.mxu1 %vm2842_vm3, %v11623_v57 }
 0x6b6   :  { %6737 = vmatmul.mubr.msk.f32.gmra.mxu1 %vm2842_vm3, %v11640_v17 }
 0x6b7   :  { %6739 = vmatprep.mubr.msk.f32.mxu1 %vm2842_vm3, %v11652_v21 }
 0x6ba   :  { %6740 = vmatmul.mubr.msk.f32.gmra.mxu1 %vm2842_vm3, %v11670_v34 }
 0x6bb   :  { %6742 = vmatprep.mubr.msk.f32.mxu1 %vm2842_vm3, %v11682_v19 }
 0x6be   :  { %6743 = vmatmul.mubr.msk.f32.gmra.mxu1 %vm2842_vm3, %v11700_v26 }
 0x6bf   :  { %6745 = vmatprep.mubr.msk.f32.mxu1 %vm2842_vm3, %v11709_v40 }
 0x6c2   :  { %6746 = vmatmul.mubr.msk.f32.gmra.mxu1 %vm2842_vm3, %v4772_v60 }
 0x6e0   :  { %v6534_v28 = vpop.f32.mrf.mxu1 }
 0x6e2   :  { %v6535_v57 = vpop.f32.mrf.mxu1 }
 0x6e3   :  { %v6536_v17 = vadd.f32 %v6535_v57, %v6534_v28 }
 0x6f6   :  { %v6537_v53 = vpop.f32.mrf.mxu1 }
 0x6f8   :  { %v6538_v21 = vpop.f32.mrf.mxu1 }
 0x6f9   :  { %v6539_v8 = vadd.f32 %v6538_v21, %v6537_v53 }
 0x714   :  { %v6540_v41 = vpop.f32.mrf.mxu1 }
 0x716   :  { %v6541_v18 = vpop.f32.mrf.mxu1 }
 0x717   :  { %v6542_v35 = vadd.f32 %v6541_v18, %v6540_v41 }
 0x71a   :  { %v6543_v34 = vpop.f32.mrf.mxu1 }
 0x71c   :  { %v6544_v32 = vpop.f32.mrf.mxu1 }
 0x71d   :  { %v6545_v55 = vadd.f32 %v6544_v32, %v6543_v34 }
 0x720   :  { %v6546_v14 = vpop.f32.mrf.mxu1 }
 0x722   :  { %v6547_v19 = vpop.f32.mrf.mxu1 }
 0x723   :  { %v6548_v15 = vadd.f32 %v6547_v19, %v6546_v14 }
 0x726   :  { %v6549_v52 = vpop.f32.mrf.mxu1 }
 0x728   :  { %v6550_v5 = vpop.f32.mrf.mxu1 }
 0x729   :  { %v6551_v33 = vadd.f32 %v6550_v5, %v6549_v52 }
 0x72c   :  { %v6552_v26 = vpop.f32.mrf.mxu1 }
 0x72e   :  { %v6553_v29 = vpop.f32.mrf.mxu1 }
 0x72f   :  { %v6554_v57 = vadd.f32 %v6553_v29, %v6552_v26 }
 0x732   :  { %v6555_v1 = vpop.f32.mrf.mxu1 }
 0x734   :  { %v6556_v40 = vpop.f32.mrf.mxu1 }
 0x735   :  { %v6557_v43 = vadd.f32 %v6556_v40, %v6555_v1 }
 0x738   :  { %v11882_v22 = vpop.f32.mrf.mxu1 }
 0x73a   :  { %v11884_v3 = vpop.f32.mrf.mxu1 }
 0x73e   :  { %v6561_v48 = vpop.f32.mrf.mxu1 }
 0x740   :  { %v6562_v31 = vpop.f32.mrf.mxu1 }
 0x741   :  { %v6563_v26 = vadd.f32 %v6562_v31, %v6561_v48 }
 0x744   :  { %v11886_v61 = vpop.f32.mrf.mxu1 }
 0x746   :  { %v11888_v6 = vpop.f32.mrf.mxu1 }
 0x74a   :  { %v11890_v38 = vpop.f32.mrf.mxu1 }
 0x74c   :  { %v11892_v10 = vpop.f32.mrf.mxu1 }
 0x750   :  { %v11894_v39 = vpop.f32.mrf.mxu1 }
 0x752   :  { %v11896_v7 = vpop.f32.mrf.mxu1 }
 0x756   :  { %v11898_v49 = vpop.f32.mrf.mxu1 }
 0x758   :  { %v11900_v42 = vpop.f32.mrf.mxu1 }
 0x75c   :  { %v11902_v56 = vpop.f32.mrf.mxu1 }
 0x75e   :  { %v11904_v20 = vpop.f32.mrf.mxu1 }
 0x762   :  { %v11906_v12 = vpop.f32.mrf.mxu1 }
 0x764   :  { %v11908_v50 = vpop.f32.mrf.mxu1 }
 0x766   :  { %v6726_v11 = vpop.f32.mrf.mxu1 }
 0x767   :  { %v11910_v46 = vadd.f32 %v6726_v11, %v6539_v8  ;;  %v6560_v8 = vadd.f32 %v11884_v3, %v11882_v22  ;;  %v6569_v22 = vadd.f32 %v11892_v10, %v11890_v38 }
 0x768   :  { %v5549_v58 = vpop.f32.mrf.mxu1 }
 0x769   :  { %v11912_v13 = vadd.f32 %v6536_v17, %v5549_v58  ;;  %v5666_v30 = vmul.f32 %v11910_v46, %v11910_v46  ;;  %v5629_v25 = vsel %vm2842_vm3, %v11910_v46, 0.0 }
 0x76a   :  { %v6729_v23 = vpop.f32.mrf.mxu1 }
 0x76b   :  { %v5628_v2 = vsel %vm2842_vm3, %v11912_v13, 0.0  ;;  %v5665_v62 = vmul.f32 %v11912_v13, %v11912_v13  ;;  %v11920_v16 = vadd.f32 %v6729_v23, %v6545_v55  ;;  %v5682_v63 = vsel %vm2842_vm3, %v5666_v30, 0.0 }
 0x76c   :  { %v5559_v54 = vpop.f32.mrf.mxu1  ;;  %v5630_v59 = vadd.f32 %v5629_v25, %v5628_v2 }
 0x76d   :  { %v5681_v47 = vsel %vm2842_vm3, %v5665_v62, 0.0  ;;  %v11925_v27 = vadd.f32 %v6542_v35, %v5559_v54  ;;  %v5668_v4 = vmul.f32 %v11920_v16, %v11920_v16  ;;  %v5633_v45 = vsel %vm2842_vm3, %v11920_v16, 0.0 }
 0x76e   :  { %v6732_v24 = vpop.f32.mrf.mxu1  ;;  %v5683_v9 = vadd.f32 %v5682_v63, %v5681_v47  ;;  %v6566_v47 = vadd.f32 %v11888_v6, %v11886_v61  ;;  %v6575_v61 = vadd.f32 %v11900_v42, %v11898_v49 }
 0x76f   :  { %v5631_v44 = vsel %vm2842_vm3, %v11925_v27, 0.0  ;;  %v5667_v0 = vmul.f32 %v11925_v27, %v11925_v27  ;;  %v11934_v37 = vadd.f32 %v6732_v24, %v6551_v33  ;;  %v5686_v17 = vsel %vm2842_vm3, %v5668_v4, 0.0 }
 0x770   :  { %v5632_v51 = vadd.f32 %v5631_v44, %v5630_v59  ;;  %v5569_v36 = vpop.f32.mrf.mxu1 }
 0x771   :  { %v5684_v60 = vsel %vm2842_vm3, %v5667_v0, 0.0  ;;  %v11939_v28 = vadd.f32 %v6548_v15, %v5569_v36  ;;  %v5670_v18 = vmul.f32 %v11934_v37, %v11934_v37  ;;  %v5637_v29 = vsel %vm2842_vm3, %v11934_v37, 0.0 }
 0x772   :  { %v5685_v53 = vadd.f32 %v5684_v60, %v5683_v9  ;;  %v5634_v21 = vadd.f32 %v5633_v45, %v5632_v51  ;;  %v6735_v41 = vpop.f32.mrf.mxu1  ;;  %v6572_v45 = vadd.f32 %v11896_v7, %v11894_v39  ;;  %v6581_v39 = vadd.f32 %v11908_v50, %v11906_v12 }
 0x773   :  { %v5635_v34 = vsel %vm2842_vm3, %v11939_v28, 0.0  ;;  %v5669_v32 = vmul.f32 %v11939_v28, %v11939_v28  ;;  %v11948_v14 = vadd.f32 %v6735_v41, %v6557_v43  ;;  %v5690_v23 = vsel %vm2842_vm3, %v5670_v18, 0.0 }
 0x774   :  { %v5636_v19 = vadd.f32 %v5635_v34, %v5634_v21  ;;  %v5687_v52 = vadd.f32 %v5686_v17, %v5685_v53  ;;  %v5579_v5 = vpop.f32.mrf.mxu1 }
 0x775   :  { %v5688_v1 = vsel %vm2842_vm3, %v5669_v32, 0.0  ;;  %v11953_v40 = vadd.f32 %v6554_v57, %v5579_v5  ;;  %v5672_v58 = vmul.f32 %v11948_v14, %v11948_v14  ;;  %v5641_v3 = vsel %vm2842_vm3, %v11948_v14, 0.0 }
 0x776   :  { %v5689_v11 = vadd.f32 %v5688_v1, %v5687_v52  ;;  %v5638_v55 = vadd.f32 %v5637_v29, %v5636_v19  ;;  %v6738_v35 = vpop.f32.mrf.mxu1  ;;  %v6578_v5 = vadd.f32 %v11904_v20, %v11902_v56 }
 0x777   :  { %v5639_v48 = vsel %vm2842_vm3, %v11953_v40, 0.0  ;;  %v5671_v31 = vmul.f32 %v11953_v40, %v11953_v40  ;;  %v11964_v30 = vadd.f32 %v6738_v35, %v6563_v26  ;;  %v5694_v15 = vsel %vm2842_vm3, %v5672_v58, 0.0 }
 0x778   :  { %v5640_v2 = vadd.f32 %v5639_v48, %v5638_v55  ;;  %v5691_v62 = vadd.f32 %v5690_v23, %v5689_v11  ;;  %v5589_v54 = vpop.f32.mrf.mxu1 }
 0x779   :  { %v5692_v33 = vsel %vm2842_vm3, %v5671_v31, 0.0  ;;  %v11971_v25 = vadd.f32 %v6560_v8, %v5589_v54  ;;  %v5674_v63 = vmul.f32 %v11964_v30, %v11964_v30  ;;  %v5645_v6 = vsel %vm2842_vm3, %v11964_v30, 0.0 }
 0x77a   :  { %v5693_v59 = vadd.f32 %v5692_v33, %v5691_v62  ;;  %v5642_v4 = vadd.f32 %v5641_v3, %v5640_v2  ;;  %v6741_v24 = vpop.f32.mrf.mxu1 }
 0x77b   :  { %v5643_v38 = vsel %vm2842_vm3, %v11971_v25, 0.0  ;;  %v5673_v10 = vmul.f32 %v11971_v25, %v11971_v25  ;;  %v11982_v44 = vadd.f32 %v6741_v24, %v6569_v22  ;;  %v5698_v21 = vsel %vm2842_vm3, %v5674_v63, 0.0 }
 0x77c   :  { %v5644_v0 = vadd.f32 %v5643_v38, %v5642_v4  ;;  %v5695_v9 = vadd.f32 %v5694_v15, %v5693_v59  ;;  %v5599_v51 = vpop.f32.mrf.mxu1 }
 0x77d   :  { %v5696_v36 = vsel %vm2842_vm3, %v5673_v10, 0.0  ;;  %v11989_v43 = vadd.f32 %v6566_v47, %v5599_v51  ;;  %v5676_v57 = vmul.f32 %v11982_v44, %v11982_v44  ;;  %v5649_v7 = vsel %vm2842_vm3, %v11982_v44, 0.0 }
 0x77e   :  { %v5697_v60 = vadd.f32 %v5696_v36, %v5695_v9  ;;  %v5646_v17 = vadd.f32 %v5645_v6, %v5644_v0  ;;  %v6744_v53 = vpop.f32.mrf.mxu1 }
 0x77f   :  { %v5647_v49 = vsel %vm2842_vm3, %v11989_v43, 0.0  ;;  %v5675_v42 = vmul.f32 %v11989_v43, %v11989_v43  ;;  %v12000_v41 = vadd.f32 %v6744_v53, %v6575_v61  ;;  %v5702_v26 = vsel %vm2842_vm3, %v5676_v57, 0.0 }
 0x780   :  { %v5648_v18 = vadd.f32 %v5647_v49, %v5646_v17  ;;  %v5699_v34 = vadd.f32 %v5698_v21, %v5697_v60  ;;  %v5609_v32 = vpop.f32.mrf.mxu1 }
 0x781   :  { %v5700_v19 = vsel %vm2842_vm3, %v5675_v42, 0.0  ;;  %v12007_v52 = vadd.f32 %v6572_v45, %v5609_v32  ;;  %v5678_v11 = vmul.f32 %v12000_v41, %v12000_v41  ;;  %v5653_v56 = vsel %vm2842_vm3, %v12000_v41, 0.0  ;;  %v19_v32 = vld [vmem:[%s12206_s3 + $0x2] sm:$0x1] }
 0x782   :  { %v5701_v29 = vadd.f32 %v5700_v19, %v5699_v34  ;;  %v5650_v1 = vadd.f32 %v5649_v7, %v5648_v18  ;;  %v6747_v8 = vpop.f32.mrf.mxu1  ;;  %v20_v19 = vld [vmem:[%s12206_s3 + $0x3] sm:$0x1] }
 0x783   :  { %v5651_v12 = vsel %vm2842_vm3, %v12007_v52, 0.0  ;;  %v5677_v50 = vmul.f32 %v12007_v52, %v12007_v52  ;;  %v5625_v58 = vadd.f32 %v6747_v8, %v6581_v39  ;;  %v5706_v62 = vsel %vm2842_vm3, %v5678_v11, 0.0 }
 0x784   :  { %v5652_v55 = vadd.f32 %v5651_v12, %v5650_v1  ;;  %v5703_v35 = vadd.f32 %v5702_v26, %v5701_v29  ;;  %v5619_v23 = vpop.f32.mrf.mxu1  ;;  %v12633_v1 = vld [vmem:[#allocation61_spill] sm:$0xff] }
 0x785   :  { %v5704_v20 = vsel %vm2842_vm3, %v5677_v50, 0.0  ;;  %v5620_v48 = vadd.f32 %v6578_v5, %v5619_v23  ;;  %v5680_v54 = vmul.f32 %v5625_v58, %v5625_v58  ;;  %v5657_v15 = vsel %vm2842_vm3, %v5625_v58, 0.0 }
 0x786   :  { %v5705_v31 = vadd.f32 %v5704_v20, %v5703_v35  ;;  %v5654_v2 = vadd.f32 %v5653_v56, %v5652_v55 }
 0x787   :  { %v5655_v22 = vsel %vm2842_vm3, %v5620_v48, 0.0  ;;  %v5679_v3 = vmul.f32 %v5620_v48, %v5620_v48  ;;  %v5710_v63 = vsel %vm2842_vm3, %v5680_v54, 0.0 }
 0x788   :  { %v5656_v33 = vadd.f32 %v5655_v22, %v5654_v2  ;;  %v5707_v47 = vadd.f32 %v5706_v62, %v5705_v31 }
 0x789   :  { %v5708_v59 = vsel %vm2842_vm3, %v5679_v3, 0.0 }
 0x78a   :  { %v5658_v4 = vadd.f32 %v5657_v15, %v5656_v33  ;;  %v5709_v24 = vadd.f32 %v5708_v59, %v5707_v47 }
 0x78c   :  { %v5659_v38 = vrot.slane %v5658_v4, 4  ;;  %v5711_v10 = vadd.f32 %v5710_v63, %v5709_v24 }
 0x78e   :  { %v5660_v0 = vadd.f32 %v5659_v38, %v5658_v4  ;;  %v5712_v9 = vrot.slane %v5711_v10, 4 }
 0x790   :  { %v5661_v51 = vrot.slane %v5660_v0, 2  ;;  %v5713_v61 = vadd.f32 %v5712_v9, %v5711_v10 }
 0x792   :  { %v5662_v6 = vadd.f32 %v5661_v51, %v5660_v0  ;;  %v5714_v36 = vrot.slane %v5713_v61, 2 }
 0x794   :  { %v5663_v45 = vrot.slane %v5662_v6, 1  ;;  %v5715_v60 = vadd.f32 %v5714_v36, %v5713_v61 }
 0x796   :  { %v5664_v57 = vadd.f32 %v5663_v45, %v5662_v6  ;;  %v5716_v17 = vrot.slane %v5715_v60, 1 }
 0x798   :  { %v5717_v53 = vadd.f32 %v5716_v17, %v5715_v60  ;;  %v5718_v21 = vmul.f32 0.0078125, %v5664_v57 }
 0x79a   :  { %v5719_v49 = vmul.f32 0.0078125, %v5717_v53  ;;  %v5720_v42 = vmul.f32 %v5718_v21, %v5718_v21 }
 0x79c   :  { %v5721_v18 = vsub.f32 %v5719_v49, %v5720_v42 }
 0x79e   :  { %v5722_v34 = vadd.f32 1e-05, %v5721_v18 }
 0x7a0   :  { %7000 = vrsqrt.f32 %v5722_v34 }
 0x7ad   :  { %v7001_v39 = vpop.eup %7000 }
 0x7ae   :  { %v5724_v7 = vmul.f32 %v7001_v39, %v19_v32 }
 0x7b0   :  { %v5725_v5 = vmul.f32 0.25, %v5724_v7  ;;  %v5726_v26 = vmul.f32 %v5724_v7, %v5718_v21 }
 0x7b2   :  { %v5727_v29 = vsub.f32 %v20_v19, %v5726_v26  ;;  %v12033_v8 = vrot.slane %v5725_v5, %v12633_v1 }
 0x7b4   :  { %v5728_v11 = vmul.f32 0.25, %v5727_v29  ;;  %v5747_v12 = vmul.f32 %v12033_v8, %v5620_v48  ;;  %v5748_v50 = vmul.f32 %v12033_v8, %v5625_v58  ;;  %v5735_v55 = vmul.f32 %v12033_v8, %v11925_v27 }
 0x7b5   :  { %v5736_v35 = vmul.f32 %v12033_v8, %v11920_v16  ;;  %v5733_v23 = vmul.f32 %v12033_v8, %v11912_v13  ;;  %v5734_v20 = vmul.f32 %v12033_v8, %v11910_v46  ;;  %v5739_v48 = vmul.f32 %v12033_v8, %v11953_v40 }
 0x7b6   :  { %v12044_v56 = vrot.slane %v5728_v11, %v12633_v1  ;;  %v5740_v58 = vmul.f32 %v12033_v8, %v11948_v14  ;;  %v5737_v27 = vmul.f32 %v12033_v8, %v11939_v28  ;;  %v5738_v16 = vmul.f32 %v12033_v8, %v11934_v37 }
 0x7b7   :  { %v5743_v13 = vmul.f32 %v12033_v8, %v11989_v43  ;;  %v5744_v31 = vmul.f32 %v12033_v8, %v11982_v44  ;;  %v5741_v44 = vmul.f32 %v12033_v8, %v11971_v25  ;;  %v5742_v25 = vmul.f32 %v12033_v8, %v11964_v30 }
 0x7b8   :  { %v5767_v46 = vadd.f32 %v12044_v56, %v5747_v12  ;;  %v5768_v2 = vadd.f32 %v12044_v56, %v5748_v50  ;;  %v5755_v40 = vadd.f32 %v12044_v56, %v5735_v55  ;;  %v5756_v14 = vadd.f32 %v12044_v56, %v5736_v35 }
 0x7b9   :  { %v5753_v62 = vadd.f32 %v12044_v56, %v5733_v23  ;;  %v5754_v28 = vadd.f32 %v12044_v56, %v5734_v20  ;;  %v5759_v37 = vadd.f32 %v12044_v56, %v5739_v48  ;;  %v5760_v54 = vadd.f32 %v12044_v56, %v5740_v58 }
 0x7ba   :  { %v5783_v43 = vmax.f32 %v5767_v46, 0.0  ;;  %v5771_v22 = vmax.f32 %v5755_v40, 0.0  ;;  %v5772_v3 = vmax.f32 %v5756_v14, 0.0  ;;  %v5784_v4 = vmax.f32 %v5768_v2, 0.0 }
 0x7bb   :  { %v5769_v33 = vmax.f32 %v5753_v62, 0.0  ;;  %v5770_v47 = vmax.f32 %v5754_v28, 0.0  ;;  %v5775_v15 = vmax.f32 %v5759_v37, 0.0  ;;  %v5776_v59 = vmax.f32 %v5760_v54, 0.0 }
 0x7bc   :  { %v5786_v24 = vadd.f32 %v5772_v3, %v5771_v22  ;;  %v5757_v63 = vadd.f32 %v12044_v56, %v5737_v27  ;;  %v5758_v38 = vadd.f32 %v12044_v56, %v5738_v16  ;;  %v5763_v9 = vadd.f32 %v12044_v56, %v5743_v13 }
 0x7bd   :  { %v5785_v10 = vadd.f32 %v5770_v47, %v5769_v33  ;;  %v5788_v0 = vadd.f32 %v5776_v59, %v5775_v15  ;;  %v5764_v51 = vadd.f32 %v12044_v56, %v5744_v31  ;;  %v5761_v49 = vadd.f32 %v12044_v56, %v5741_v44 }
 0x7be   :  { %v5802_v61 = vrot.slane %v5786_v24, 1  ;;  %v5773_v6 = vmax.f32 %v5757_v63, 0.0  ;;  %v5774_v36 = vmax.f32 %v5758_v38, 0.0  ;;  %v5779_v57 = vmax.f32 %v5763_v9, 0.0 }
 0x7bf   :  { %v5801_v45 = vrot.slane %v5785_v10, 1  ;;  %v5804_v60 = vrot.slane %v5788_v0, 1  ;;  %v5780_v17 = vmax.f32 %v5764_v51, 0.0  ;;  %v5792_v42 = vadd.f32 %v5784_v4, %v5783_v43 }
 0x7c0   :  { %v12076_v53 = vadd.f32 %v5802_v61, %v5786_v24  ;;  %v5787_v21 = vadd.f32 %v5774_v36, %v5773_v6  ;;  %v5762_v32 = vadd.f32 %v12044_v56, %v5742_v25  ;;  %v5777_v19 = vmax.f32 %v5761_v49, 0.0 }
 0x7c1   :  { %v12079_v18 = vadd.f32 %v5801_v45, %v5785_v10  ;;  %v5790_v34 = vadd.f32 %v5780_v17, %v5779_v57  ;;  %v12083_v7 = vadd.f32 %v5804_v60, %v5788_v0  ;;  %v5745_v11 = vmul.f32 %v12033_v8, %v12007_v52 }
 0x7c2   :  { %v5834_v39 = vrot.slane %v12076_v53, 2  ;;  %v5803_v30 = vrot.slane %v5787_v21, 1  ;;  %v5778_v29 = vmax.f32 %v5762_v32, 0.0  ;;  %v5746_v12 = vmul.f32 %v12033_v8, %v12000_v41 }
 0x7c3   :  { %v5833_v5 = vrot.slane %v12079_v18, 2  ;;  %v5806_v26 = vrot.slane %v5790_v34, 1  ;;  %v5808_v50 = vrot.slane %v5792_v42, 1  ;;  %v5836_v35 = vrot.slane %v12083_v7, 2 }
 0x7c4   :  { %5843 = vrot.lane.b32.xlu1 %v5834_v39, %s7040_s22  ;;  %v12087_v1 = vadd.f32 %v5803_v30, %v5787_v21  ;;  %v5789_v55 = vadd.f32 %v5778_v29, %v5777_v19  ;;  %v5765_v20 = vadd.f32 %v12044_v56, %v5745_v11  ;;  %v5766_v48 = vadd.f32 %v12044_v56, %v5746_v12 }
 0x7c5   :  { %5841 = vrot.lane.b32.xlu0 %v5833_v5, %s7040_s22  ;;  %v12095_v23 = vadd.f32 %v5806_v26, %v5790_v34  ;;  %v12104_v8 = vadd.f32 %v5808_v50, %v5792_v42  ;;  %v5866_v62 = vrot.slane %v12076_v53, 4  ;;  %v5865_v28 = vrot.slane %v12079_v18, 4 }
 0x7c6   :  { %v5835_v58 = vrot.slane %v12087_v1, 2  ;;  %v5805_v27 = vrot.slane %v5789_v55, 1  ;;  %v5781_v52 = vmax.f32 %v5765_v20, 0.0  ;;  %v5782_v16 = vmax.f32 %v5766_v48, 0.0 }
 0x7c7   :  { %v5838_v13 = vrot.slane %v12095_v23, 2  ;;  %v5840_v2 = vrot.slane %v12104_v8, 2  ;;  %v5868_v37 = vrot.slane %v12083_v7, 4  ;;  %v5867_v54 = vrot.slane %v12087_v1, 4 }
 0x7c8   :  { %5847 = vrot.lane.b32.xlu1 %v5836_v35, %s7040_s22  ;;  %v12102_v41 = vadd.f32 %v5805_v27, %v5789_v55  ;;  %v5791_v31 = vadd.f32 %v5782_v16, %v5781_v52  ;;  %v5870_v43 = vrot.slane %v12095_v23, 4  ;;  %v5872_v3 = vrot.slane %v12104_v8, 4 }
 0x7c9   :  { %5845 = vrot.lane.b32.xlu0 %v5835_v58, %s7040_s22  ;;  %v5898_v33 = vrot.slane %v12076_v53, 6  ;;  %v5897_v47 = vrot.slane %v12079_v18, 6  ;;  %v5900_v15 = vrot.slane %v12083_v7, 6  ;;  %v5899_v59 = vrot.slane %v12087_v1, 6 }
 0x7ca   :  { %v5837_v46 = vrot.slane %v12102_v41, 2  ;;  %v5807_v56 = vrot.slane %v5791_v31, 1  ;;  %v5869_v22 = vrot.slane %v12102_v41, 4  ;;  %v5902_v4 = vrot.slane %v12095_v23, 6 }
 0x7cb   :  { %v5901_v24 = vrot.slane %v12102_v41, 6  ;;  %v5904_v63 = vrot.slane %v12104_v8, 6 }
 0x7cc   :  { %5851 = vrot.lane.b32.xlu1 %v5838_v13, %s7040_s22  ;;  %v12111_v40 = vadd.f32 %v5807_v56, %v5791_v31 }
 0x7cd   :  { %5849 = vrot.lane.b32.xlu0 %v5837_v46, %s7040_s22 }
 0x7ce   :  { %v5839_v14 = vrot.slane %v12111_v40, 2  ;;  %v5871_v44 = vrot.slane %v12111_v40, 4  ;;  %v5903_v38 = vrot.slane %v12111_v40, 6 }
 0x7d0   :  { %5855 = vrot.lane.b32.xlu1 %v5840_v2, %s7040_s22 }
 0x7d1   :  { %5853 = vrot.lane.b32.xlu0 %v5839_v14, %s7040_s22 }
 0x7d4   :  { %5875 = vrot.lane.b32.xlu1 %v5866_v62, %s7044_s18 }
 0x7d5   :  { %5873 = vrot.lane.b32.xlu0 %v5865_v28, %s7044_s18 }
 0x7d8   :  { %5879 = vrot.lane.b32.xlu1 %v5868_v37, %s7044_s18 }
 0x7d9   :  { %5877 = vrot.lane.b32.xlu0 %v5867_v54, %s7044_s18 }
 0x7dc   :  { %5883 = vrot.lane.b32.xlu1 %v5870_v43, %s7044_s18 }
 0x7dd   :  { %5881 = vrot.lane.b32.xlu0 %v5869_v22, %s7044_s18 }
 0x7e0   :  { %5887 = vrot.lane.b32.xlu1 %v5872_v3, %s7044_s18 }
 0x7e1   :  { %5885 = vrot.lane.b32.xlu0 %v5871_v44, %s7044_s18 }
 0x7e4   :  { %5907 = vrot.lane.b32.xlu1 %v5898_v33, %s7046_s6 }
 0x7e5   :  { %5905 = vrot.lane.b32.xlu0 %v5897_v47, %s7046_s6 }
 0x7e8   :  { %5911 = vrot.lane.b32.xlu1 %v5900_v15, %s7046_s6 }
 0x7e9   :  { %5909 = vrot.lane.b32.xlu0 %v5899_v59, %s7046_s6 }
 0x7ec   :  { %5915 = vrot.lane.b32.xlu1 %v5902_v4, %s7046_s6 }
 0x7ed   :  { %5913 = vrot.lane.b32.xlu0 %v5901_v24, %s7046_s6 }
 0x7f0   :  { %5919 = vrot.lane.b32.xlu1 %v5904_v63, %s7046_s6 }
 0x7f1   :  { %5917 = vrot.lane.b32.xlu0 %v5903_v38, %s7046_s6 }
 0x836   :  { %v5844_v10 = vpop.permute.xlu1 %5843 }
 0x837   :  { %v5842_v0 = vpop.permute.xlu0 %5841  ;;  %v5930_v32 = vsel %vm2842_vm3, %v12076_v53, %v5844_v10 }
 0x838   :  { %v5929_v19 = vsel %vm2842_vm3, %v12079_v18, %v5842_v0 }
 0x83a   :  { %v5848_v9 = vpop.permute.xlu1 %5847 }
 0x83b   :  { %v5846_v51 = vpop.permute.xlu0 %5845  ;;  %v5932_v11 = vsel %vm2842_vm3, %v12083_v7, %v5848_v9 }
 0x83c   :  { %v5931_v50 = vsel %vm2842_vm3, %v12087_v1, %v5846_v51 }
 0x83e   :  { %v5852_v61 = vpop.permute.xlu1 %5851 }
 0x83f   :  { %v5850_v6 = vpop.permute.xlu0 %5849  ;;  %v5934_v20 = vsel %vm2842_vm3, %v12095_v23, %v5852_v61 }
 0x840   :  { %v5933_v27 = vsel %vm2842_vm3, %v12102_v41, %v5850_v6 }
 0x842   :  { %v5856_v36 = vpop.permute.xlu1 %5855 }
 0x843   :  { %v5854_v25 = vpop.permute.xlu0 %5853  ;;  %v5936_v13 = vsel %vm2842_vm3, %v12104_v8, %v5856_v36 }
 0x844   :  { %v5935_v56 = vsel %vm2842_vm3, %v12111_v40, %v5854_v25 }
 0x846   :  { %v5876_v45 = vpop.permute.xlu1 %5875 }
 0x847   :  { %v5874_v60 = vpop.permute.xlu0 %5873  ;;  %v5938_v39 = vsel %vm3102_vm7, %v5930_v32, %v5876_v45 }
 0x848   :  { %v5937_v26 = vsel %vm3102_vm7, %v5929_v19, %v5874_v60 }
 0x84a   :  { %v5880_v57 = vpop.permute.xlu1 %5879 }
 0x84b   :  { %v5878_v17 = vpop.permute.xlu0 %5877  ;;  %v5940_v12 = vsel %vm3102_vm7, %v5932_v11, %v5880_v57 }
 0x84c   :  { %v5939_v35 = vsel %vm3102_vm7, %v5931_v50, %v5878_v17 }
 0x84e   :  { %v5884_v21 = vpop.permute.xlu1 %5883 }
 0x84f   :  { %v5882_v49 = vpop.permute.xlu0 %5881  ;;  %v5942_v58 = vsel %vm3102_vm7, %v5934_v20, %v5884_v21 }
 0x850   :  { %v5941_v16 = vsel %vm3102_vm7, %v5933_v27, %v5882_v49 }
 0x852   :  { %v5888_v42 = vpop.permute.xlu1 %5887 }
 0x853   :  { %v5886_v34 = vpop.permute.xlu0 %5885  ;;  %v5944_v46 = vsel %vm3102_vm7, %v5936_v13, %v5888_v42 }
 0x854   :  { %v5943_v14 = vsel %vm3102_vm7, %v5935_v56, %v5886_v34 }
 0x856   :  { %v5908_v30 = vpop.permute.xlu1 %5907 }
 0x857   :  { %v5946_v5 = vsel %vm5189_vm14, %v5938_v39, %v5908_v30  ;;  %v5906_v29 = vpop.permute.xlu0 %5905 }
 0x858   :  { %5954 = vst [vmem:[%s12208_s4 + $0x1] sm:$0x1] %v5946_v5  ;;  %v5945_v53 = vsel %vm5189_vm14, %v5937_v26, %v5906_v29 }
 0x859   :  { %5953 = vst [vmem:[%s12208_s4] sm:$0x1] %v5945_v53 }
 0x85a   :  { %v5912_v18 = vpop.permute.xlu1 %5911 }
 0x85b   :  { %v5948_v55 = vsel %vm5189_vm14, %v5940_v12, %v5912_v18  ;;  %v5910_v7 = vpop.permute.xlu0 %5909 }
 0x85c   :  { %5956 = vst [vmem:[%s12208_s4 + $0x3] sm:$0x1] %v5948_v55  ;;  %v5947_v48 = vsel %vm5189_vm14, %v5939_v35, %v5910_v7 }
 0x85d   :  { %5955 = vst [vmem:[%s12208_s4 + $0x2] sm:$0x1] %v5947_v48 }
 0x85e   :  { %v5916_v1 = vpop.permute.xlu1 %5915 }
 0x85f   :  { %v5950_v52 = vsel %vm5189_vm14, %v5942_v58, %v5916_v1  ;;  %v5914_v23 = vpop.permute.xlu0 %5913 }
 0x860   :  { %5958 = vst [vmem:[%s12208_s4 + $0x5] sm:$0x1] %v5950_v52  ;;  %v5949_v31 = vsel %vm5189_vm14, %v5941_v16, %v5914_v23 }
 0x861   :  { %5957 = vst [vmem:[%s12208_s4 + $0x4] sm:$0x1] %v5949_v31 }
 0x862   :  { %v5920_v41 = vpop.permute.xlu1 %5919 }
 0x863   :  { %v5952_v2 = vsel %vm5189_vm14, %v5944_v46, %v5920_v41  ;;  %v5918_v8 = vpop.permute.xlu0 %5917 }
 0x864   :  { %5960 = vst [vmem:[%s12208_s4 + $0x7] sm:$0x1] %v5952_v2  ;;  %v5951_v62 = vsel %vm5189_vm14, %v5943_v14, %v5918_v8 }
 0x865   :  { %5959 = vst [vmem:[%s12208_s4 + $0x6] sm:$0x1] %v5951_v62 }

</bundles_post_ra>
